<compile_context>
chip_gen: v7x
topology: tpu7x:2x2x1
jax: 0.10.0
libtpu: 0.0.40
codegen_flags: <defaults>
</compile_context>

<pallas_src>
import functools

import jax
import jax.numpy as jnp
import numpy as np
from jax import lax
from jax.experimental import pallas as pl
from jax.experimental.pallas import tpu as pltpu


# ---------------------------------------------------------------------------
# Fused Pallas kernel: conv1 -> ReLU -> conv2, B images per grid step.
# ---------------------------------------------------------------------------
def _vgg_block_kernel(acols_ref, w1_ref, bmap_ref, w2_ref, b2_ref,
                      out_ref, pad_ref, cols_ref, *, Wg, Mg, B):
    """Activations are (Mg, 64) slabs; row p = h*Wg + w enumerates a (H1 x Wg)
    output grid where Wg = round_up(W1+1, 8); the >= 1 right-most filler columns
    are zero and discarded by the wrapper.

    acols_ref: (B, Mg, 9)    f32  im2col of the zero-padded 1-channel image
    w1_ref:    (9, 64)       f32  folded conv1 weights (sum_c W1/std_c)
    bmap_ref:  (Mg, 64)      f32  precomputed border-aware conv1 bias map
    w2_ref:    (576, 64)     bf16 conv2 weights, row index = tap*64 + c_in
    b2_ref:    (1, 64)       f32
    out_ref:   (B, Mg, 128)  f32  lanes [0:64]=conv1, [64:128]=conv2 (pre-ReLU)
    pad_ref:   (pad_rows,64) bf16 scratch: zero-padded relu1 (row r = ph*Wg + pw)
    cols_ref:  (Mg, 576)     bf16 scratch: im2col of relu1
    """
    CO = b2_ref.shape[-1]
    pad_rows = pad_ref.shape[0]

    # Zero only the padding border rows (top [0, Wg+1) and tail past the image);
    # ~7 KB/step instead of the full 68 KB slab, and safe under parallel grid
    # sharding (each core zeroes its own scratch every step).  The interior
    # [Wg+1, Wg+1+Mg) is fully overwritten for every image below.
    pad_ref[0:Wg + 1, :] = jnp.zeros((Wg + 1, CO), pad_ref.dtype)
    pad_ref[Wg + 1 + Mg:pad_rows, :] = jnp.zeros(
        (pad_rows - (Wg + 1 + Mg), CO), pad_ref.dtype)

    for b in range(B):
        # ---- conv1: one (Mg,9)@(9,64) f32 MXU matmul + border-aware bias map ---
        c1 = jnp.dot(acols_ref[b], w1_ref[...],
                     preferred_element_type=jnp.float32) + bmap_ref[...]
        r1 = jnp.maximum(c1, 0.0)

        # ---- stage zero-padded relu1 entirely in VMEM (no HBM round-trip) ------
        pad_ref[Wg + 1:Wg + 1 + Mg, :] = r1.astype(pad_ref.dtype)

        # ---- build (Mg, 576) im2col of relu1 from 9 contiguous shifted windows -
        for t in range(9):
            ky, kx = t // 3, t % 3
            off = ky * Wg + kx          # ky*Wg is sublane-aligned (Wg % 8 == 0)
            cols_ref[:, t * CO:(t + 1) * CO] = pad_ref[off:off + Mg, :]

        # ---- conv2: a single (Mg,576)@(576,64) bf16 matmul, f32 accumulation ---
        c2 = jnp.dot(cols_ref[...], w2_ref[...],
                     preferred_element_type=jnp.float32) + b2_ref[...]

        # ---- lane-dense packed store: [conv1 | conv2] on the 128-lane axis -----
        out_ref[b] = jnp.concatenate([c1, c2], axis=-1)


def _pick_batch_block(n):
    """Images per grid step: amortize per-step overhead while keeping >= 2 grid
    steps so v7x's two TensorCores both get work."""
    for b in (8, 4, 2):
        if n % b == 0 and n // b >= 2:
            return b
    return 1


# ---------------------------------------------------------------------------
# Wrapper
# ---------------------------------------------------------------------------
def vgg16_forward(x_nchw, params):
    """x_nchw: (N, 1, H, W) float32.  Returns 4 NCHW tensors like the torch module."""
    N, C, H, W = x_nchw.shape
    assert C == 1, "module's forward expects a 1-channel input (it concats it to 3)"
    f32 = jnp.float32
    CO = 64
    H1, W1 = H + 4, W + 4              # conv output spatial dims (F.pad(2) + SAME conv)
    # Internal flattened-grid width: >= W1+1 so the zero filler column doubles as
    # conv2's padding across the row seam, rounded to a multiple of 8 so ky*Wg tap
    # offsets are sublane-aligned (and Mg is a multiple of 8).
    Wg = ((W1 + 1) + 7) // 8 * 8
    Mg = H1 * Wg
    pad_rows = ((Mg + 2 * Wg + 2) + 7) // 8 * 8
    B = _pick_batch_block(N)

    mean = jnp.array([0.485, 0.456, 0.406], f32)
    std = jnp.array([0.229, 0.224, 0.225], f32)
    taps = [(ky, kx) for ky in range(3) for kx in range(3)]

    # ---- fold pad + cat + normalize into conv1 (exact algebra) -------------
    w1 = params["w1"].astype(f32)                                  # (3,3,3,64) HWIO
    w1a = jnp.einsum("hwcf,c->hwf", w1, 1.0 / std).reshape(9, CO)
    w1b = jnp.einsum("hwcf,c->hwf", w1, -(mean / std)).reshape(9, CO)

    # indicator of the F.pad(2) region inside conv1's pad=1 frame: its normalized
    # zeros contribute -mean/std, while the outermost conv ring is true zero.
    ind = jnp.zeros((H1 + 2, W1 + 2), f32).at[1:1 + H1, 1:1 + W1].set(1.0)
    ind_cols = jnp.stack(
        [ind[ky:ky + H1, kx:kx + W1].reshape(H1 * W1) for ky, kx in taps], axis=-1)
    bias_valid = ind_cols @ w1b + params["b1"].astype(f32)[None, :]      # (H1*W1, 64)
    bias_map = jnp.pad(bias_valid.reshape(H1, W1, CO),
                       ((0, 0), (0, Wg - W1), (0, 0))).reshape(Mg, CO)

    # ---- im2col of the tiny zero-padded 1-channel image (XLA side) ---------
    # NOTE: the (Mg, 9) block is lane-sparse in VMEM (9 of 128 lanes valid) -->
    # ~245 KB per buffered copy at these shapes; negligible but budgeted for.
    xpad = jnp.pad(x_nchw[:, 0, :, :], ((0, 0), (3, 3), (3, 3)))         # (N, H+6, W+6)
    a_valid = jnp.stack(
        [xpad[:, ky:ky + H1, kx:kx + W1].reshape(N, H1 * W1) for ky, kx in taps],
        axis=-1)                                                          # (N, H1*W1, 9)
    a_cols = jnp.pad(a_valid.reshape(N, H1, W1, 9),
                     ((0, 0), (0, 0), (0, Wg - W1), (0, 0))).reshape(N, Mg, 9)

    # conv1 stays f32 (K=9, negligible cost, better parity with the f32 reference);
    # conv2 operands are bf16 with f32 accumulation on the MXU.
    w2_cols = params["w2"].astype(jnp.bfloat16).reshape(9 * CO, CO)       # (576, 64)
    b2 = params["b2"].astype(f32).reshape(1, CO)

    kernel = functools.partial(_vgg_block_kernel, Wg=Wg, Mg=Mg, B=B)
    packed = pl.pallas_call(
        kernel,
        out_shape=jax.ShapeDtypeStruct((N, Mg, 2 * CO), f32),
        grid=(N // B,),
        in_specs=[
            pl.BlockSpec((B, Mg, 9), lambda n: (n, 0, 0)),
            pl.BlockSpec((9, CO), lambda n: (0, 0)),
            pl.BlockSpec((Mg, CO), lambda n: (0, 0)),
            pl.BlockSpec((9 * CO, CO), lambda n: (0, 0)),
            pl.BlockSpec((1, CO), lambda n: (0, 0)),
        ],
        out_specs=pl.BlockSpec((B, Mg, 2 * CO), lambda n: (n, 0, 0)),
        scratch_shapes=[pltpu.VMEM((pad_rows, CO), jnp.bfloat16),
                        pltpu.VMEM((Mg, 9 * CO), jnp.bfloat16)],
        compiler_params=pltpu.CompilerParams(
            dimension_semantics=("parallel",),
            vmem_limit_bytes=32 * 1024 * 1024),
    )(a_cols, w1a, bias_map, w2_cols, b2)

    # Split the packed lanes, drop the filler columns, apply the ReLUs in XLA
    # (they fuse into consumers), and restore NCHW.
    packed = packed.reshape(N, H1, Wg, 2 * CO)[:, :, :W1, :]
    c1 = jnp.transpose(packed[..., :CO], (0, 3, 1, 2))
    c2 = jnp.transpose(packed[..., CO:], (0, 3, 1, 2))
    r1 = jnp.maximum(c1, 0.0)
    r2 = jnp.maximum(c2, 0.0)
    # (relu1_2, h_relu2_2, h_relu3_3, relu4_3) per the torch forward
    return c1, r1, c2, r2


# ---------------------------------------------------------------------------
# Pure-JAX f32 reference (exact torch semantics, for correctness check only)
# ---------------------------------------------------------------------------
def _conv_ref(x_nhwc, w_hwio, b):
    y = lax.conv_general_dilated(
        x_nhwc, w_hwio, window_strides=(1, 1), padding="SAME",
        dimension_numbers=("NHWC", "HWIO", "NHWC"))
    return y + b.reshape(1, 1, 1, -1)


def vgg16_reference(x_nchw, params):
    mean = jnp.array([0.485, 0.456, 0.406], jnp.float32).reshape(1, 1, 1, 3)
    std = jnp.array([0.229, 0.224, 0.225], jnp.float32).reshape(1, 1, 1, 3)
    x = jnp.transpose(x_nchw, (0, 2, 3, 1))
    x = jnp.pad(x, ((0, 0), (2, 2), (2, 2), (0, 0)))
    x = jnp.concatenate([x, x, x], axis=-1)
    x = (x - mean) / std
    c1 = _conv_ref(x, params["w1"], params["b1"])
    r1 = jnp.maximum(c1, 0.0)
    c2 = _conv_ref(r1, params["w2"], params["b2"])
    r2 = jnp.maximum(c2, 0.0)
    to_nchw = lambda t: jnp.transpose(t, (0, 3, 1, 2))
    return to_nchw(c1), to_nchw(r1), to_nchw(c2), to_nchw(r2)


# ---------------------------------------------------------------------------
if __name__ == "__main__":
    key = jax.random.PRNGKey(0)
    kx, k1, k2, k3, k4 = jax.random.split(key, 5)

    # N=4 exercises the batched (B=2 images per grid step) path with grid=(2,).
    N, H, W = 4, 16, 16
    x = jax.random.normal(kx, (N, 1, H, W), jnp.float32)

    # Deterministic synthetic weights (VGG16 conv1_1 / conv1_2 shapes, HWIO).
    params = {
        "w1": jax.random.normal(k1, (3, 3, 3, 64), jnp.float32) * 0.1,
        "b1": jax.random.normal(k2, (64,), jnp.float32) * 0.1,
        "w2": jax.random.normal(k3, (3, 3, 64, 64), jnp.float32) * 0.05,
        "b2": jax.random.normal(k4, (64,), jnp.float32) * 0.1,
    }

    fwd = jax.jit(functools.partial(vgg16_forward, params=params))
    outs = jax.block_until_ready(fwd(x))

    refs = jax.block_until_ready(vgg16_reference(x, params))
    for o, r in zip(outs, refs):
        assert o.shape == r.shape and o.dtype == r.dtype
        # conv2 uses bf16 MXU operands (f32 accumulation) -> compare to the f32
        # reference with a loose tolerance.
        np.testing.assert_allclose(np.asarray(o), np.asarray(r),
                                   rtol=2e-2, atol=3e-2)

    print("KERNEL_OK")
</pallas_src>

<mosaic_0001>
module attributes {stable_mosaic.version = 11 : i64} {
  func.func @_vgg_block_kernel(%arg0: i32, %arg1: memref<2x480x9xf32, #tpu.memory_space<vmem>>, %arg2: memref<9x64xf32, #tpu.memory_space<vmem>>, %arg3: memref<480x64xf32, #tpu.memory_space<vmem>>, %arg4: memref<576x64xbf16, #tpu.memory_space<vmem>>, %arg5: memref<1x64xf32, #tpu.memory_space<vmem>>, %arg6: memref<2x480x128xf32, #tpu.memory_space<vmem>>, %arg7: memref<536x64xbf16, #tpu.memory_space<vmem>>, %arg8: memref<480x576xbf16, #tpu.memory_space<vmem>>) attributes {dimension_semantics = [#tpu.dimension_semantics<parallel>], iteration_bounds = array<i64: 2>, scalar_prefetch = 0 : i64, scratch_operands = 2 : i64, tpu.core_type = #tpu.core_type<tc>, window_params = [{transform_indices = @transform_0, window_bounds = array<i64: 2, 480, 9>}, {pipeline_mode = #tpu.pipeline_mode<synchronous>, transform_indices = @transform_1, window_bounds = array<i64: 9, 64>}, {pipeline_mode = #tpu.pipeline_mode<synchronous>, transform_indices = @transform_2, window_bounds = array<i64: 480, 64>}, {pipeline_mode = #tpu.pipeline_mode<synchronous>, transform_indices = @transform_3, window_bounds = array<i64: 576, 64>}, {pipeline_mode = #tpu.pipeline_mode<synchronous>, transform_indices = @transform_4, window_bounds = array<i64: 1, 64>}, {transform_indices = @transform_5, window_bounds = array<i64: 2, 480, 128>}]} {
    %cst = arith.constant 0.000000e+00 : bf16
    %0 = vector.broadcast %cst : bf16 to vector<25x64xbf16>
    %c0 = arith.constant 0 : index
    %c0_0 = arith.constant 0 : index
    %1 = vector.load %arg7[%c0, %c0_0] : memref<536x64xbf16, #tpu.memory_space<vmem>>, vector<25x64xbf16>
    tpu.vector_store %arg7[%c0, %c0_0], %0 {strides = array<i32>} : memref<536x64xbf16, #tpu.memory_space<vmem>>, vector<25x64xbf16>,
    %cst_1 = arith.constant 0.000000e+00 : bf16
    %2 = vector.broadcast %cst_1 : bf16 to vector<31x64xbf16>
    %c505 = arith.constant 505 : index
    %c0_2 = arith.constant 0 : index
    %3 = vector.load %arg7[%c505, %c0_2] : memref<536x64xbf16, #tpu.memory_space<vmem>>, vector<31x64xbf16>
    tpu.vector_store %arg7[%c505, %c0_2], %2 {strides = array<i32>} : memref<536x64xbf16, #tpu.memory_space<vmem>>, vector<31x64xbf16>,
    %c0_3 = arith.constant 0 : index
    %c0_4 = arith.constant 0 : index
    %c0_5 = arith.constant 0 : index
    %4 = vector.load %arg1[%c0_3, %c0_4, %c0_5] : memref<2x480x9xf32, #tpu.memory_space<vmem>>, vector<1x480x9xf32>
    %5 = vector.shape_cast %4 : vector<1x480x9xf32> to vector<480x9xf32>
    %c0_6 = arith.constant 0 : index
    %c0_7 = arith.constant 0 : index
    %6 = vector.load %arg2[%c0_6, %c0_7] : memref<9x64xf32, #tpu.memory_space<vmem>>, vector<9x64xf32>
    %cst_8 = arith.constant dense<0.000000e+00> : vector<480x64xf32>
    %7 = tpu.matmul %5, %6, %cst_8 {dimension_numbers = #tpu.dot_dimension_numbers<[1], [0], [0], [1], [0, 0, 1, 1], [], []>} : vector<480x9xf32>, vector<9x64xf32>, vector<480x64xf32> -> vector<480x64xf32>
    %c0_9 = arith.constant 0 : index
    %c0_10 = arith.constant 0 : index
    %8 = vector.load %arg3[%c0_9, %c0_10] : memref<480x64xf32, #tpu.memory_space<vmem>>, vector<480x64xf32>
    %9 = arith.addf %7, %8 : vector<480x64xf32>
    %cst_11 = arith.constant 0.000000e+00 : f32
    %10 = vector.broadcast %cst_11 : f32 to vector<480x64xf32>
    %11 = arith.maximumf %9, %10 : vector<480x64xf32>
    %12 = arith.truncf %11 : vector<480x64xf32> to vector<480x64xbf16>
    %c25 = arith.constant 25 : index
    %c0_12 = arith.constant 0 : index
    %13 = vector.load %arg7[%c25, %c0_12] : memref<536x64xbf16, #tpu.memory_space<vmem>>, vector<480x64xbf16>
    tpu.vector_store %arg7[%c25, %c0_12], %12 {strides = array<i32>} : memref<536x64xbf16, #tpu.memory_space<vmem>>, vector<480x64xbf16>,
    %c0_13 = arith.constant 0 : index
    %c0_14 = arith.constant 0 : index
    %14 = vector.load %arg7[%c0_13, %c0_14] : memref<536x64xbf16, #tpu.memory_space<vmem>>, vector<480x64xbf16>
    %c0_15 = arith.constant 0 : index
    %c0_16 = arith.constant 0 : index
    %15 = vector.load %arg8[%c0_15, %c0_16] : memref<480x576xbf16, #tpu.memory_space<vmem>>, vector<480x64xbf16>
    tpu.vector_store %arg8[%c0_15, %c0_16], %14 {strides = array<i32>} : memref<480x576xbf16, #tpu.memory_space<vmem>>, vector<480x64xbf16>,
    %c1 = arith.constant 1 : index
    %c0_17 = arith.constant 0 : index
    %16 = vector.load %arg7[%c1, %c0_17] : memref<536x64xbf16, #tpu.memory_space<vmem>>, vector<480x64xbf16>
    %c0_18 = arith.constant 0 : index
    %c64 = arith.constant 64 : index
    %17 = vector.load %arg8[%c0_18, %c64] : memref<480x576xbf16, #tpu.memory_space<vmem>>, vector<480x64xbf16>
    tpu.vector_store %arg8[%c0_18, %c64], %16 {strides = array<i32>} : memref<480x576xbf16, #tpu.memory_space<vmem>>, vector<480x64xbf16>,
    %c2 = arith.constant 2 : index
    %c0_19 = arith.constant 0 : index
    %18 = vector.load %arg7[%c2, %c0_19] : memref<536x64xbf16, #tpu.memory_space<vmem>>, vector<480x64xbf16>
    %c0_20 = arith.constant 0 : index
    %c128 = arith.constant 128 : index
    %19 = vector.load %arg8[%c0_20, %c128] : memref<480x576xbf16, #tpu.memory_space<vmem>>, vector<480x64xbf16>
    tpu.vector_store %arg8[%c0_20, %c128], %18 {strides = array<i32>} : memref<480x576xbf16, #tpu.memory_space<vmem>>, vector<480x64xbf16>,
    %c24 = arith.constant 24 : index
    %c0_21 = arith.constant 0 : index
    %20 = vector.load %arg7[%c24, %c0_21] : memref<536x64xbf16, #tpu.memory_space<vmem>>, vector<480x64xbf16>
    %c0_22 = arith.constant 0 : index
    %c192 = arith.constant 192 : index
    %21 = vector.load %arg8[%c0_22, %c192] : memref<480x576xbf16, #tpu.memory_space<vmem>>, vector<480x64xbf16>
    tpu.vector_store %arg8[%c0_22, %c192], %20 {strides = array<i32>} : memref<480x576xbf16, #tpu.memory_space<vmem>>, vector<480x64xbf16>,
    %c25_23 = arith.constant 25 : index
    %c0_24 = arith.constant 0 : index
    %22 = vector.load %arg7[%c25_23, %c0_24] : memref<536x64xbf16, #tpu.memory_space<vmem>>, vector<480x64xbf16>
    %c0_25 = arith.constant 0 : index
    %c256 = arith.constant 256 : index
    %23 = vector.load %arg8[%c0_25, %c256] : memref<480x576xbf16, #tpu.memory_space<vmem>>, vector<480x64xbf16>
    tpu.vector_store %arg8[%c0_25, %c256], %22 {strides = array<i32>} : memref<480x576xbf16, #tpu.memory_space<vmem>>, vector<480x64xbf16>,
    %c26 = arith.constant 26 : index
    %c0_26 = arith.constant 0 : index
    %24 = vector.load %arg7[%c26, %c0_26] : memref<536x64xbf16, #tpu.memory_space<vmem>>, vector<480x64xbf16>
    %c0_27 = arith.constant 0 : index
    %c320 = arith.constant 320 : index
    %25 = vector.load %arg8[%c0_27, %c320] : memref<480x576xbf16, #tpu.memory_space<vmem>>, vector<480x64xbf16>
    tpu.vector_store %arg8[%c0_27, %c320], %24 {strides = array<i32>} : memref<480x576xbf16, #tpu.memory_space<vmem>>, vector<480x64xbf16>,
    %c48 = arith.constant 48 : index
    %c0_28 = arith.constant 0 : index
    %26 = vector.load %arg7[%c48, %c0_28] : memref<536x64xbf16, #tpu.memory_space<vmem>>, vector<480x64xbf16>
    %c0_29 = arith.constant 0 : index
    %c384 = arith.constant 384 : index
    %27 = vector.load %arg8[%c0_29, %c384] : memref<480x576xbf16, #tpu.memory_space<vmem>>, vector<480x64xbf16>
    tpu.vector_store %arg8[%c0_29, %c384], %26 {strides = array<i32>} : memref<480x576xbf16, #tpu.memory_space<vmem>>, vector<480x64xbf16>,
    %c49 = arith.constant 49 : index
    %c0_30 = arith.constant 0 : index
    %28 = vector.load %arg7[%c49, %c0_30] : memref<536x64xbf16, #tpu.memory_space<vmem>>, vector<480x64xbf16>
    %c0_31 = arith.constant 0 : index
    %c448 = arith.constant 448 : index
    %29 = vector.load %arg8[%c0_31, %c448] : memref<480x576xbf16, #tpu.memory_space<vmem>>, vector<480x64xbf16>
    tpu.vector_store %arg8[%c0_31, %c448], %28 {strides = array<i32>} : memref<480x576xbf16, #tpu.memory_space<vmem>>, vector<480x64xbf16>,
    %c50 = arith.constant 50 : index
    %c0_32 = arith.constant 0 : index
    %30 = vector.load %arg7[%c50, %c0_32] : memref<536x64xbf16, #tpu.memory_space<vmem>>, vector<480x64xbf16>
    %c0_33 = arith.constant 0 : index
    %c512 = arith.constant 512 : index
    %31 = vector.load %arg8[%c0_33, %c512] : memref<480x576xbf16, #tpu.memory_space<vmem>>, vector<480x64xbf16>
    tpu.vector_store %arg8[%c0_33, %c512], %30 {strides = array<i32>} : memref<480x576xbf16, #tpu.memory_space<vmem>>, vector<480x64xbf16>,
    %c0_34 = arith.constant 0 : index
    %c0_35 = arith.constant 0 : index
    %32 = vector.load %arg8[%c0_34, %c0_35] : memref<480x576xbf16, #tpu.memory_space<vmem>>, vector<480x576xbf16>
    %c0_36 = arith.constant 0 : index
    %c0_37 = arith.constant 0 : index
    %33 = vector.load %arg4[%c0_36, %c0_37] : memref<576x64xbf16, #tpu.memory_space<vmem>>, vector<576x64xbf16>
    %cst_38 = arith.constant dense<0.000000e+00> : vector<480x64xf32>
    %34 = tpu.matmul %32, %33, %cst_38 {dimension_numbers = #tpu.dot_dimension_numbers<[1], [0], [0], [1], [0, 0, 1, 1], [], []>} : vector<480x576xbf16>, vector<576x64xbf16>, vector<480x64xf32> -> vector<480x64xf32>
    %c0_39 = arith.constant 0 : index
    %c0_40 = arith.constant 0 : index
    %35 = vector.load %arg5[%c0_39, %c0_40] : memref<1x64xf32, #tpu.memory_space<vmem>>, vector<1x64xf32>
    %36 = vector.broadcast %35 : vector<1x64xf32> to vector<480x64xf32>
    %37 = arith.addf %34, %36 : vector<480x64xf32>
    %38 = tpu.concatenate %9, %37 in 1 : vector<480x64xf32>, vector<480x64xf32> -> vector<480x128xf32>
    %c0_41 = arith.constant 0 : index
    %c0_42 = arith.constant 0 : index
    %c0_43 = arith.constant 0 : index
    %39 = vector.load %arg6[%c0_41, %c0_42, %c0_43] : memref<2x480x128xf32, #tpu.memory_space<vmem>>, vector<1x480x128xf32>
    %40 = vector.shape_cast %39 : vector<1x480x128xf32> to vector<480x128xf32>
    %41 = vector.shape_cast %38 : vector<480x128xf32> to vector<1x480x128xf32>
    tpu.vector_store %arg6[%c0_41, %c0_42, %c0_43], %41 {strides = array<i32>} : memref<2x480x128xf32, #tpu.memory_space<vmem>>, vector<1x480x128xf32>,
    %c1_44 = arith.constant 1 : index
    %c0_45 = arith.constant 0 : index
    %c0_46 = arith.constant 0 : index
    %42 = vector.load %arg1[%c1_44, %c0_45, %c0_46] : memref<2x480x9xf32, #tpu.memory_space<vmem>>, vector<1x480x9xf32>
    %43 = vector.shape_cast %42 : vector<1x480x9xf32> to vector<480x9xf32>
    %c0_47 = arith.constant 0 : index
    %c0_48 = arith.constant 0 : index
    %44 = vector.load %arg2[%c0_47, %c0_48] : memref<9x64xf32, #tpu.memory_space<vmem>>, vector<9x64xf32>
    %cst_49 = arith.constant dense<0.000000e+00> : vector<480x64xf32>
    %45 = tpu.matmul %43, %44, %cst_49 {dimension_numbers = #tpu.dot_dimension_numbers<[1], [0], [0], [1], [0, 0, 1, 1], [], []>} : vector<480x9xf32>, vector<9x64xf32>, vector<480x64xf32> -> vector<480x64xf32>
    %c0_50 = arith.constant 0 : index
    %c0_51 = arith.constant 0 : index
    %46 = vector.load %arg3[%c0_50, %c0_51] : memref<480x64xf32, #tpu.memory_space<vmem>>, vector<480x64xf32>
    %47 = arith.addf %45, %46 : vector<480x64xf32>
    %cst_52 = arith.constant 0.000000e+00 : f32
    %48 = vector.broadcast %cst_52 : f32 to vector<480x64xf32>
    %49 = arith.maximumf %47, %48 : vector<480x64xf32>
    %50 = arith.truncf %49 : vector<480x64xf32> to vector<480x64xbf16>
    %c25_53 = arith.constant 25 : index
    %c0_54 = arith.constant 0 : index
    %51 = vector.load %arg7[%c25_53, %c0_54] : memref<536x64xbf16, #tpu.memory_space<vmem>>, vector<480x64xbf16>
    tpu.vector_store %arg7[%c25_53, %c0_54], %50 {strides = array<i32>} : memref<536x64xbf16, #tpu.memory_space<vmem>>, vector<480x64xbf16>,
    %c0_55 = arith.constant 0 : index
    %c0_56 = arith.constant 0 : index
    %52 = vector.load %arg7[%c0_55, %c0_56] : memref<536x64xbf16, #tpu.memory_space<vmem>>, vector<480x64xbf16>
    %c0_57 = arith.constant 0 : index
    %c0_58 = arith.constant 0 : index
    %53 = vector.load %arg8[%c0_57, %c0_58] : memref<480x576xbf16, #tpu.memory_space<vmem>>, vector<480x64xbf16>
    tpu.vector_store %arg8[%c0_57, %c0_58], %52 {strides = array<i32>} : memref<480x576xbf16, #tpu.memory_space<vmem>>, vector<480x64xbf16>,
    %c1_59 = arith.constant 1 : index
    %c0_60 = arith.constant 0 : index
    %54 = vector.load %arg7[%c1_59, %c0_60] : memref<536x64xbf16, #tpu.memory_space<vmem>>, vector<480x64xbf16>
    %c0_61 = arith.constant 0 : index
    %c64_62 = arith.constant 64 : index
    %55 = vector.load %arg8[%c0_61, %c64_62] : memref<480x576xbf16, #tpu.memory_space<vmem>>, vector<480x64xbf16>
    tpu.vector_store %arg8[%c0_61, %c64_62], %54 {strides = array<i32>} : memref<480x576xbf16, #tpu.memory_space<vmem>>, vector<480x64xbf16>,
    %c2_63 = arith.constant 2 : index
    %c0_64 = arith.constant 0 : index
    %56 = vector.load %arg7[%c2_63, %c0_64] : memref<536x64xbf16, #tpu.memory_space<vmem>>, vector<480x64xbf16>
    %c0_65 = arith.constant 0 : index
    %c128_66 = arith.constant 128 : index
    %57 = vector.load %arg8[%c0_65, %c128_66] : memref<480x576xbf16, #tpu.memory_space<vmem>>, vector<480x64xbf16>
    tpu.vector_store %arg8[%c0_65, %c128_66], %56 {strides = array<i32>} : memref<480x576xbf16, #tpu.memory_space<vmem>>, vector<480x64xbf16>,
    %c24_67 = arith.constant 24 : index
    %c0_68 = arith.constant 0 : index
    %58 = vector.load %arg7[%c24_67, %c0_68] : memref<536x64xbf16, #tpu.memory_space<vmem>>, vector<480x64xbf16>
    %c0_69 = arith.constant 0 : index
    %c192_70 = arith.constant 192 : index
    %59 = vector.load %arg8[%c0_69, %c192_70] : memref<480x576xbf16, #tpu.memory_space<vmem>>, vector<480x64xbf16>
    tpu.vector_store %arg8[%c0_69, %c192_70], %58 {strides = array<i32>} : memref<480x576xbf16, #tpu.memory_space<vmem>>, vector<480x64xbf16>,
    %c25_71 = arith.constant 25 : index
    %c0_72 = arith.constant 0 : index
    %60 = vector.load %arg7[%c25_71, %c0_72] : memref<536x64xbf16, #tpu.memory_space<vmem>>, vector<480x64xbf16>
    %c0_73 = arith.constant 0 : index
    %c256_74 = arith.constant 256 : index
    %61 = vector.load %arg8[%c0_73, %c256_74] : memref<480x576xbf16, #tpu.memory_space<vmem>>, vector<480x64xbf16>
    tpu.vector_store %arg8[%c0_73, %c256_74], %60 {strides = array<i32>} : memref<480x576xbf16, #tpu.memory_space<vmem>>, vector<480x64xbf16>,
    %c26_75 = arith.constant 26 : index
    %c0_76 = arith.constant 0 : index
    %62 = vector.load %arg7[%c26_75, %c0_76] : memref<536x64xbf16, #tpu.memory_space<vmem>>, vector<480x64xbf16>
    %c0_77 = arith.constant 0 : index
    %c320_78 = arith.constant 320 : index
    %63 = vector.load %arg8[%c0_77, %c320_78] : memref<480x576xbf16, #tpu.memory_space<vmem>>, vector<480x64xbf16>
    tpu.vector_store %arg8[%c0_77, %c320_78], %62 {strides = array<i32>} : memref<480x576xbf16, #tpu.memory_space<vmem>>, vector<480x64xbf16>,
    %c48_79 = arith.constant 48 : index
    %c0_80 = arith.constant 0 : index
    %64 = vector.load %arg7[%c48_79, %c0_80] : memref<536x64xbf16, #tpu.memory_space<vmem>>, vector<480x64xbf16>
    %c0_81 = arith.constant 0 : index
    %c384_82 = arith.constant 384 : index
    %65 = vector.load %arg8[%c0_81, %c384_82] : memref<480x576xbf16, #tpu.memory_space<vmem>>, vector<480x64xbf16>
    tpu.vector_store %arg8[%c0_81, %c384_82], %64 {strides = array<i32>} : memref<480x576xbf16, #tpu.memory_space<vmem>>, vector<480x64xbf16>,
    %c49_83 = arith.constant 49 : index
    %c0_84 = arith.constant 0 : index
    %66 = vector.load %arg7[%c49_83, %c0_84] : memref<536x64xbf16, #tpu.memory_space<vmem>>, vector<480x64xbf16>
    %c0_85 = arith.constant 0 : index
    %c448_86 = arith.constant 448 : index
    %67 = vector.load %arg8[%c0_85, %c448_86] : memref<480x576xbf16, #tpu.memory_space<vmem>>, vector<480x64xbf16>
    tpu.vector_store %arg8[%c0_85, %c448_86], %66 {strides = array<i32>} : memref<480x576xbf16, #tpu.memory_space<vmem>>, vector<480x64xbf16>,
    %c50_87 = arith.constant 50 : index
    %c0_88 = arith.constant 0 : index
    %68 = vector.load %arg7[%c50_87, %c0_88] : memref<536x64xbf16, #tpu.memory_space<vmem>>, vector<480x64xbf16>
    %c0_89 = arith.constant 0 : index
    %c512_90 = arith.constant 512 : index
    %69 = vector.load %arg8[%c0_89, %c512_90] : memref<480x576xbf16, #tpu.memory_space<vmem>>, vector<480x64xbf16>
    tpu.vector_store %arg8[%c0_89, %c512_90], %68 {strides = array<i32>} : memref<480x576xbf16, #tpu.memory_space<vmem>>, vector<480x64xbf16>,
    %c0_91 = arith.constant 0 : index
    %c0_92 = arith.constant 0 : index
    %70 = vector.load %arg8[%c0_91, %c0_92] : memref<480x576xbf16, #tpu.memory_space<vmem>>, vector<480x576xbf16>
    %c0_93 = arith.constant 0 : index
    %c0_94 = arith.constant 0 : index
    %71 = vector.load %arg4[%c0_93, %c0_94] : memref<576x64xbf16, #tpu.memory_space<vmem>>, vector<576x64xbf16>
    %cst_95 = arith.constant dense<0.000000e+00> : vector<480x64xf32>
    %72 = tpu.matmul %70, %71, %cst_95 {dimension_numbers = #tpu.dot_dimension_numbers<[1], [0], [0], [1], [0, 0, 1, 1], [], []>} : vector<480x576xbf16>, vector<576x64xbf16>, vector<480x64xf32> -> vector<480x64xf32>
    %c0_96 = arith.constant 0 : index
    %c0_97 = arith.constant 0 : index
    %73 = vector.load %arg5[%c0_96, %c0_97] : memref<1x64xf32, #tpu.memory_space<vmem>>, vector<1x64xf32>
    %74 = vector.broadcast %73 : vector<1x64xf32> to vector<480x64xf32>
    %75 = arith.addf %72, %74 : vector<480x64xf32>
    %76 = tpu.concatenate %47, %75 in 1 : vector<480x64xf32>, vector<480x64xf32> -> vector<480x128xf32>
    %c1_98 = arith.constant 1 : index
    %c0_99 = arith.constant 0 : index
    %c0_100 = arith.constant 0 : index
    %77 = vector.load %arg6[%c1_98, %c0_99, %c0_100] : memref<2x480x128xf32, #tpu.memory_space<vmem>>, vector<1x480x128xf32>
    %78 = vector.shape_cast %77 : vector<1x480x128xf32> to vector<480x128xf32>
    %79 = vector.shape_cast %76 : vector<480x128xf32> to vector<1x480x128xf32>
    tpu.vector_store %arg6[%c1_98, %c0_99, %c0_100], %79 {strides = array<i32>} : memref<2x480x128xf32, #tpu.memory_space<vmem>>, vector<1x480x128xf32>,
    return
  }
  func.func @transform_0(%arg0: i32) -> (i32, i32, i32) {
    %c0_i32 = arith.constant 0 : i32
    %c0_i32_0 = arith.constant 0 : i32
    %c0_i32_1 = arith.constant 0 : i32
    return %arg0, %c0_i32, %c0_i32_0 : i32, i32, i32
  }
  func.func @transform_1(%arg0: i32) -> (i32, i32) {
    %c0_i32 = arith.constant 0 : i32
    %c0_i32_0 = arith.constant 0 : i32
    %c0_i32_1 = arith.constant 0 : i32
    return %c0_i32, %c0_i32_0 : i32, i32
  }
  func.func @transform_2(%arg0: i32) -> (i32, i32) {
    %c0_i32 = arith.constant 0 : i32
    %c0_i32_0 = arith.constant 0 : i32
    %c0_i32_1 = arith.constant 0 : i32
    return %c0_i32, %c0_i32_0 : i32, i32
  }
  func.func @transform_3(%arg0: i32) -> (i32, i32) {
    %c0_i32 = arith.constant 0 : i32
    %c0_i32_0 = arith.constant 0 : i32
    %c0_i32_1 = arith.constant 0 : i32
    return %c0_i32, %c0_i32_0 : i32, i32
  }
  func.func @transform_4(%arg0: i32) -> (i32, i32) {
    %c0_i32 = arith.constant 0 : i32
    %c0_i32_0 = arith.constant 0 : i32
    %c0_i32_1 = arith.constant 0 : i32
    return %c0_i32, %c0_i32_0 : i32, i32
  }
  func.func @transform_5(%arg0: i32) -> (i32, i32, i32) {
    %c0_i32 = arith.constant 0 : i32
    %c0_i32_0 = arith.constant 0 : i32
    %c0_i32_1 = arith.constant 0 : i32
    return %arg0, %c0_i32, %c0_i32_0 : i32, i32, i32
  }
}

</mosaic_0001>

<bundles_post_ra>
// kernel: vgg16_forward.1
= control target key start
LH: loop header
LB: loop body
LE: loop exit
PB: predicated region body
PF: predicated region fallthrough
CT: control target
= control target key end

     0   :  { %s16857_s18 = smov 0   ;;  %s22592_s0 = inlined_call_operand.vmem [shape: f32[4,480,9], index: 0, kind: input, shape index: {}]   ;;  %s22593_s1 = inlined_call_operand.vmem [shape: f32[9,64], index: 1, kind: input, shape index: {}]   ;;  %s22594_s2 = inlined_call_operand.vmem [shape: f32[480,64], index: 2, kind: input, shape index: {}]   ;;  %s22595_s3 = inlined_call_operand.vmem [shape: bf16[576,64], index: 3, kind: input, shape index: {}]   ;;  %s22596_s4 = inlined_call_operand.vmem [shape: f32[1,64], index: 4, kind: input, shape index: {}]   ;;  %s22597_s5 = inlined_call_operand.vmem [shape: f32[4,480,128], index: 5, kind: output, shape index: {}]  }
   0x1 LB: > { %s14117_s19 = sadd.s32 4294967295, %s16822_s18   ;;  %p14121_p0 = scmp.ge.s32.totalorder %s16822_s18, 1  ;;  %s16822_s18 = sphi %s16857_s18, %s15_s18  }
   0x2   : > { %p189_p1 = scmp.lt.s32.totalorder %s16822_s18, 3 }
   0x4   : > { %p190_p2 = pnand %p14121_p0, %p189_p1 }
   0x6   : > { %193 = sbr.rel (%p190_p2) target bundleno = 1680 (0x690), region = 40 }
   0xd   : > { %v313_v0 = vld [vmem:[%s22593_s1] sm:$0xff]  ;;  %v314_v1 = vld [vmem:[%s22593_s1 + $0x8] sm:$0x1]  ;;  %vm556_vm0 = vcmask 1040384   ;;  %s14122_s24 = sshll.u32 %s14117_s19, 1  ;;  %vm16824_vm1 = vmmov 1  }
   0xe   : > { %v15812_v2 = vpack.c.bf16 %v314_v1, %v313_v0  ;;  %vm16871_vm2 = vmpackc.low %vm556_vm0, %vm16824_vm1  ;;  %p220_p3 = scmp.lt.s32.totalorder %s14122_s24, 3  ;;  %vm375_vm3 = vcmask 72704   ;;  %vm238_vm4 = vcmask 516096   ;;  %vm239_vm5 = vsmask.f32 256  ;;  %s16826_s8 = smov 64  }
   0xf   : > { %vm16982_vm6 = vmand %vm238_vm4, %vm239_vm5  ;;  %v241_v52 = vld [vmem:[#allocation2 + $0xc] sm:$0x1]  ;;  %vm234_vm7 = vcmask 519168   ;;  %vm245_vm8 = vsmask.f32 7938  ;;  %v22598_v63 = vmov 0  }
  0x10   : > { %15814 = vmatprep.subr.msk.bf16.mxu1 %vm16871_vm2, %v15812_v2  ;;  %s23151_s24 = smov (!%p220_p3, %s14122_s24), 3  ;;  %v242_v53 = vsel %vm16982_vm6, 0, %v241_v52  ;;  %v247_v58 = vld [vmem:[#allocation2 + $0xfc] sm:$0xf]  ;;  %vm16997_vm9 = vmand %vm234_vm7, %vm245_vm8  ;;  %235 = vst.msk [vmem:[#allocation2] sm:$0xf] %vm234_vm7, %v22598_v63 }
  0x11   : > { %15817 = vmatpush3.bf16.msk.msra.mxu1 %vm16871_vm2, %v15812_v2  ;;  %s16184_s25 = smul.u32 480, %s23151_s24  ;;  %243 = vst [vmem:[#allocation2 + $0xc] sm:$0x1] %v242_v53  ;;  %v248_v60 = vsel %vm16997_vm9, 0, %v247_v58  ;;  %236 = vst.msk [vmem:[#allocation2 + $0x4] sm:$0xf] %vm234_vm7, %v22598_v63 }
  0x12   : > { %249 = vst [vmem:[#allocation2 + $0xfc] sm:$0xf] %v248_v60  ;;  %237 = vst.msk [vmem:[#allocation2 + $0x8] sm:$0xf] %vm234_vm7, %v22598_v63  ;;  %5980 = vmatprep.subr.bf16.mxu1 %v22598_v63  ;;  %vm1165_vm10 = vsmask.f32 4368 }
  0x13   : > { %s16887_s28 = scalar_lea.vmem %s22592_s0, %s16184_s25  ;;  %250 = vst.msk [vmem:[#allocation2 + $0x100] sm:$0xf] %vm234_vm7, %v22598_v63  ;;  %251 = vst.msk [vmem:[#allocation2 + $0x104] sm:$0xf] %vm234_vm7, %v22598_v63  ;;  %vm2317_vm12 = vsmask.f32 7424  ;;  %s21369_s26 = scalar_lea.vmem %s22597_s5, %s16184_s25 }
  0x14   : > { %v253_v4 = vld [vmem:[%s16887_s28] sm:$0xff]  ;;  %v254_v5 = vld [vmem:[%s16887_s28 + $0x8] sm:$0xff]  ;;  %v255_v6 = vld [vmem:[%s16887_s28 + $0x10] sm:$0xff]  ;;  %252 = vst.msk [vmem:[#allocation2 + $0x108] sm:$0xf] %vm234_vm7, %v22598_v63  ;;  %vm2897_vm13 = vcmask 1046528  }
  0x15   : > { %15492 = vmatprep.mubr.msk.f32.mxu1 %vm375_vm3, %v253_v4  ;;  %v256_v7 = vld [vmem:[%s16887_s28 + $0x18] sm:$0xff]  ;;  %v257_v8 = vld [vmem:[%s16887_s28 + $0x20] sm:$0xff]  ;;  %v258_v9 = vld [vmem:[%s16887_s28 + $0x28] sm:$0xff]  ;;  %vm2072_vm14 = vcmask 523264   ;;  %vm2652_vm15 = vcmask 1048064  }
  0x16   : > { %15493 = vmatmul.mubr.msk.f32.vlgmr.msra.gmra.mrb[0].mxu1 %vm375_vm3, %v254_v5  ;;  %v259_v10 = vld [vmem:[%s16887_s28 + $0x30] sm:$0xff]  ;;  %v260_v11 = vld [vmem:[%s16887_s28 + $0x38] sm:$0xff]  ;;  %v261_v12 = vld [vmem:[%s16887_s28 + $0x40] sm:$0xff] }
  0x17   : > { %15495 = vmatprep.mubr.msk.f32.mxu1 %vm375_vm3, %v255_v6  ;;  %v262_v13 = vld [vmem:[%s16887_s28 + $0x48] sm:$0xff]  ;;  %v263_v14 = vld [vmem:[%s16887_s28 + $0x50] sm:$0xff]  ;;  %v264_v15 = vld [vmem:[%s16887_s28 + $0x58] sm:$0xff] }
  0x18   : > { %v265_v16 = vld [vmem:[%s16887_s28 + $0x60] sm:$0xff]  ;;  %v266_v17 = vld [vmem:[%s16887_s28 + $0x68] sm:$0xff]  ;;  %v267_v18 = vld [vmem:[%s16887_s28 + $0x70] sm:$0xff] }
  0x19   : > { %v268_v19 = vld [vmem:[%s16887_s28 + $0x78] sm:$0xff]  ;;  %v269_v20 = vld [vmem:[%s16887_s28 + $0x80] sm:$0xff]  ;;  %v270_v21 = vld [vmem:[%s16887_s28 + $0x88] sm:$0xff] }
  0x1a   : > { %15496 = vmatmul.mubr.msk.f32.gmra.mrb[2].mxu1 %vm375_vm3, %v256_v7  ;;  %v271_v22 = vld [vmem:[%s16887_s28 + $0x90] sm:$0xff]  ;;  %v272_v23 = vld [vmem:[%s16887_s28 + $0x98] sm:$0xff]  ;;  %v273_v24 = vld [vmem:[%s16887_s28 + $0xa0] sm:$0xff] }
  0x1b   : > { %15498 = vmatprep.mubr.msk.f32.mxu1 %vm375_vm3, %v257_v8  ;;  %v274_v25 = vld [vmem:[%s16887_s28 + $0xa8] sm:$0xff]  ;;  %v275_v26 = vld [vmem:[%s16887_s28 + $0xb0] sm:$0xff]  ;;  %v276_v27 = vld [vmem:[%s16887_s28 + $0xb8] sm:$0xff] }
  0x1c   : > { %v277_v28 = vld [vmem:[%s16887_s28 + $0xc0] sm:$0xff]  ;;  %v278_v29 = vld [vmem:[%s16887_s28 + $0xc8] sm:$0xff]  ;;  %v279_v30 = vld [vmem:[%s16887_s28 + $0xd0] sm:$0xff] }
  0x1d   : > { %v280_v31 = vld [vmem:[%s16887_s28 + $0xd8] sm:$0xff]  ;;  %v281_v32 = vld [vmem:[%s16887_s28 + $0xe0] sm:$0xff]  ;;  %v282_v33 = vld [vmem:[%s16887_s28 + $0xe8] sm:$0xff] }
  0x1e   : > { %15499 = vmatmul.mubr.msk.f32.gmra.mrb[4].mxu1 %vm375_vm3, %v258_v9  ;;  %v283_v34 = vld [vmem:[%s16887_s28 + $0xf0] sm:$0xff]  ;;  %v284_v35 = vld [vmem:[%s16887_s28 + $0xf8] sm:$0xff]  ;;  %v285_v36 = vld [vmem:[%s16887_s28 + $0x100] sm:$0xff] }
  0x1f   : > { %15501 = vmatprep.mubr.msk.f32.mxu1 %vm375_vm3, %v259_v10  ;;  %v286_v37 = vld [vmem:[%s16887_s28 + $0x108] sm:$0xff]  ;;  %v287_v38 = vld [vmem:[%s16887_s28 + $0x110] sm:$0xff]  ;;  %v288_v39 = vld [vmem:[%s16887_s28 + $0x118] sm:$0xff] }
  0x20   : > { %v289_v40 = vld [vmem:[%s16887_s28 + $0x120] sm:$0xff]  ;;  %v290_v41 = vld [vmem:[%s16887_s28 + $0x128] sm:$0xff]  ;;  %v291_v42 = vld [vmem:[%s16887_s28 + $0x130] sm:$0xff] }
  0x21   : > { %v292_v43 = vld [vmem:[%s16887_s28 + $0x138] sm:$0xff]  ;;  %v293_v44 = vld [vmem:[%s16887_s28 + $0x140] sm:$0xff]  ;;  %v294_v45 = vld [vmem:[%s16887_s28 + $0x148] sm:$0xff] }
  0x22   : > { %15502 = vmatmul.mubr.msk.f32.gmra.mrb[6].mxu1 %vm375_vm3, %v260_v11  ;;  %v295_v46 = vld [vmem:[%s16887_s28 + $0x150] sm:$0xff]  ;;  %v296_v47 = vld [vmem:[%s16887_s28 + $0x158] sm:$0xff]  ;;  %v297_v48 = vld [vmem:[%s16887_s28 + $0x160] sm:$0xff] }
  0x23   : > { %15504 = vmatprep.mubr.msk.f32.mxu1 %vm375_vm3, %v261_v12  ;;  %v298_v49 = vld [vmem:[%s16887_s28 + $0x168] sm:$0xff]  ;;  %v299_v50 = vld [vmem:[%s16887_s28 + $0x170] sm:$0xff]  ;;  %v300_v54 = vld [vmem:[%s16887_s28 + $0x178] sm:$0xff] }
  0x24   : > { %v301_v55 = vld [vmem:[%s16887_s28 + $0x180] sm:$0xff]  ;;  %v302_v56 = vld [vmem:[%s16887_s28 + $0x188] sm:$0xff]  ;;  %v303_v57 = vld [vmem:[%s16887_s28 + $0x190] sm:$0xff] }
  0x25   : > { %v304_v61 = vld [vmem:[%s16887_s28 + $0x198] sm:$0xff]  ;;  %v305_v62 = vld [vmem:[%s16887_s28 + $0x1a0] sm:$0xff]  ;;  %v306_v0 = vld [vmem:[%s16887_s28 + $0x1a8] sm:$0xff] }
  0x26   : > { %15505 = vmatmul.mubr.msk.f32.gmra.mrb[8].mxu1 %vm375_vm3, %v262_v13  ;;  %v307_v1 = vld [vmem:[%s16887_s28 + $0x1b0] sm:$0xff]  ;;  %v308_v2 = vld [vmem:[%s16887_s28 + $0x1b8] sm:$0xff]  ;;  %v309_v4 = vld [vmem:[%s16887_s28 + $0x1c0] sm:$0xff] }
  0x27   : > { %15507 = vmatprep.mubr.msk.f32.mxu1 %vm375_vm3, %v263_v14  ;;  %v310_v5 = vld [vmem:[%s16887_s28 + $0x1c8] sm:$0xff]  ;;  %v311_v6 = vld [vmem:[%s16887_s28 + $0x1d0] sm:$0xff]  ;;  %v312_v7 = vld [vmem:[%s16887_s28 + $0x1d8] sm:$0xff] }
  0x28   : > { %v16202_v8 = vld [vmem:[%s22595_s3 + $0x100] sm:$0xff]   ;;  %v16205_v9 = vld [vmem:[%s22595_s3 + $0x108] sm:$0xff]   ;;  %v16208_v10 = vld [vmem:[%s22595_s3 + $0x110] sm:$0xff]  }
  0x29   : > { %15582 = vmatprep.subr.bf16.mxu0 %v16202_v8  ;;  %v16211_v11 = vld [vmem:[%s22595_s3 + $0x118] sm:$0xff]   ;;  %v7220_v12 = vld [vmem:[%s22593_s1] sm:$0xff]  ;;  %v7221_v13 = vld [vmem:[%s22593_s1 + $0x8] sm:$0x1] }
  0x2a   : > { %15508 = vmatmul.mubr.msk.f32.gmra.mrb[10].mxu1 %vm375_vm3, %v264_v15  ;;  %15583 = vmatpush3.bf16.msra.mxu0 %v16202_v8  ;;  %v17054_v14 = vpack.c.bf16 %v7221_v13, %v7220_v12  ;;  %v16198_v15 = vld [vmem:[#allocation2] sm:$0xff]   ;;  %vm17104_vm11 = vmor %vm239_vm5, %vm1165_vm10  ;;  %v1767_v58 = vld [vmem:[#allocation2 + $0xc] sm:$0xf] }
  0x2b   : > { %15510 = vmatprep.mubr.msk.f32.mxu1 %vm375_vm3, %v265_v16  ;;  %15584 = vmatprep.subr.bf16.mxu0 %v16205_v9  ;;  %v316_v16 = vld [vmem:[%s22594_s2 + $0x8] sm:$0xff] }
  0x2e   : > { %15511 = vmatmul.mubr.msk.f32.gmra.mrb[12].mxu1 %vm375_vm3, %v266_v17  ;;  %15585 = vmatpush3.bf16.msra.mxu0 %v16205_v9  ;;  %v315_v17 = vld [vmem:[%s22594_s2] sm:$0xff] }
  0x2f   : > { %15513 = vmatprep.mubr.msk.f32.mxu1 %vm375_vm3, %v267_v18  ;;  %15586 = vmatprep.subr.bf16.mxu0 %v16208_v10 }
  0x32   : > { %15514 = vmatmul.mubr.msk.f32.gmra.mrb[14].mxu1 %vm375_vm3, %v268_v19  ;;  %15587 = vmatpush3.bf16.msra.mxu0 %v16208_v10  ;;  %v2321_v19 = vshll.u32 %v16198_v15, 16 }
  0x33   : > { %15516 = vmatprep.mubr.msk.f32.mxu1 %vm375_vm3, %v269_v20  ;;  %15588 = vmatprep.subr.bf16.mxu0 %v16211_v11 }
  0x36   : > { %15517 = vmatmul.mubr.msk.f32.gmra.mrb[16].mxu1 %vm375_vm3, %v270_v21  ;;  %15589 = vmatpush3.bf16.msra.mxu0 %v16211_v11 }
  0x37   : > { %15519 = vmatprep.mubr.msk.f32.mxu1 %vm375_vm3, %v271_v22  ;;  %15820 = vmatprep.subr.msk.bf16.mxu0 %vm16871_vm2, %v17054_v14 }
  0x3a   : > { %15520 = vmatmul.mubr.msk.f32.gmra.mrb[18].mxu1 %vm375_vm3, %v272_v23  ;;  %v318_v23 = vld [vmem:[%s22594_s2 + $0x18] sm:$0xff] }
  0x3b   : > { %15522 = vmatprep.mubr.msk.f32.mxu1 %vm375_vm3, %v273_v24 }
  0x3e   : > { %15523 = vmatmul.mubr.msk.f32.gmra.mrb[20].mxu1 %vm375_vm3, %v274_v25  ;;  %v317_v25 = vld [vmem:[%s22594_s2 + $0x10] sm:$0xff] }
  0x3f   : > { %15525 = vmatprep.mubr.msk.f32.mxu1 %vm375_vm3, %v275_v26 }
  0x42   : > { %15526 = vmatmul.mubr.msk.f32.gmra.mrb[22].mxu1 %vm375_vm3, %v276_v27 }
  0x43   : > { %15528 = vmatprep.mubr.msk.f32.mxu1 %vm375_vm3, %v277_v28  ;;  %v2319_v28 = vshrl.u32 %v16198_v15, 16 }
  0x46   : > { %15529 = vmatmul.mubr.msk.f32.gmra.mrb[24].mxu1 %vm375_vm3, %v278_v29  ;;  %v2323_v29 = vrot.slane %v2321_v19, 1 }
  0x47   : > { %15531 = vmatprep.mubr.msk.f32.mxu1 %vm375_vm3, %v279_v30 }
  0x4a   : > { %15532 = vmatmul.mubr.msk.f32.gmra.mrb[26].mxu1 %vm375_vm3, %v280_v31 }
  0x4b   : > { %15534 = vmatprep.mubr.msk.f32.mxu1 %vm375_vm3, %v281_v32 }
  0x4e   : > { %15535 = vmatmul.mubr.msk.f32.gmra.mrb[28].mxu1 %vm375_vm3, %v282_v33 }
  0x4f   : > { %15537 = vmatprep.mubr.msk.f32.mxu1 %vm375_vm3, %v283_v34 }
  0x52   : > { %15538 = vmatmul.mubr.msk.f32.gmra.mrb[30].mxu1 %vm375_vm3, %v284_v35  ;;  %v320_v35 = vld [vmem:[%s22594_s2 + $0x28] sm:$0xff] }
  0x53   : > { %15540 = vmatprep.mubr.msk.f32.mxu1 %vm375_vm3, %v285_v36  ;;  %v16243_v36 = vld [vmem:[%s22595_s3] sm:$0xff]  }
  0x54   : > { %5981 = vmatpush1.bf16.msra.mxu1 %v16243_v36 }
  0x55   : > { %5982 = vmatprep.subr.bf16.mxu1 %v22598_v63 }
  0x56   : > { %15541 = vmatmul.mubr.msk.f32.gmra.mrb[32].mxu1 %vm375_vm3, %v286_v37 }
  0x57   : > { %15543 = vmatprep.mubr.msk.f32.mxu1 %vm375_vm3, %v287_v38 }
  0x5a   : > { %15544 = vmatmul.mubr.msk.f32.gmra.mrb[34].mxu1 %vm375_vm3, %v288_v39  ;;  %v319_v39 = vld [vmem:[%s22594_s2 + $0x20] sm:$0xff] }
  0x5b   : > { %15546 = vmatprep.mubr.msk.f32.mxu1 %vm375_vm3, %v289_v40 }
  0x5e   : > { %15547 = vmatmul.mubr.msk.f32.gmra.mrb[36].mxu1 %vm375_vm3, %v290_v41 }
  0x5f   : > { %15549 = vmatprep.mubr.msk.f32.mxu1 %vm375_vm3, %v291_v42 }
  0x62   : > { %15550 = vmatmul.mubr.msk.f32.gmra.mrb[38].mxu1 %vm375_vm3, %v292_v43  ;;  %v17092_v43 = vor.u32 %v2323_v29, %v2319_v28  ;;  %v323_v29 = vld [vmem:[%s22594_s2 + $0x40] sm:$0xff] }
  0x63   : > { %15552 = vmatprep.mubr.msk.f32.mxu1 %vm375_vm3, %v293_v44 }
  0x66   : > { %15553 = vmatmul.mubr.msk.f32.gmra.mrb[40].mxu1 %vm375_vm3, %v294_v45 }
  0x67   : > { %15555 = vmatprep.mubr.msk.f32.mxu1 %vm375_vm3, %v295_v46 }
  0x6a   : > { %15556 = vmatmul.mubr.msk.f32.gmra.mrb[42].mxu1 %vm375_vm3, %v296_v47 }
  0x6b   : > { %15558 = vmatprep.mubr.msk.f32.mxu1 %vm375_vm3, %v297_v48 }
  0x6e   : > { %15559 = vmatmul.mubr.msk.f32.gmra.mrb[44].mxu1 %vm375_vm3, %v298_v49 }
  0x6f   : > { %15561 = vmatprep.mubr.msk.f32.mxu1 %vm375_vm3, %v299_v50 }
  0x72   : > { %15562 = vmatmul.mubr.msk.f32.gmra.mrb[46].mxu1 %vm375_vm3, %v300_v54  ;;  %v322_v54 = vld [vmem:[%s22594_s2 + $0x38] sm:$0xff] }
  0x73   : > { %15564 = vmatprep.mubr.msk.f32.mxu1 %vm375_vm3, %v301_v55 }
  0x76   : > { %15565 = vmatmul.mubr.msk.f32.gmra.mrb[48].mxu1 %vm375_vm3, %v302_v56 }
  0x77   : > { %15567 = vmatprep.mubr.msk.f32.mxu1 %vm375_vm3, %v303_v57 }
  0x7a   : > { %15568 = vmatmul.mubr.msk.f32.gmra.mrb[50].mxu1 %vm375_vm3, %v304_v61 }
  0x7b   : > { %15570 = vmatprep.mubr.msk.f32.mxu1 %vm375_vm3, %v305_v62  ;;  %v321_v62 = vld [vmem:[%s22594_s2 + $0x30] sm:$0xff] }
  0x7e   : > { %15571 = vmatmul.mubr.msk.f32.gmra.mrb[52].mxu1 %vm375_vm3, %v306_v0 }
  0x7f   : > { %15573 = vmatprep.mubr.msk.f32.mxu1 %vm375_vm3, %v307_v1 }
  0x82   : > { %15574 = vmatmul.mubr.msk.f32.gmra.mrb[54].mxu1 %vm375_vm3, %v308_v2 }
  0x83   : > { %15576 = vmatprep.mubr.msk.f32.mxu1 %vm375_vm3, %v309_v4 }
  0x86   : > { %15577 = vmatmul.mubr.msk.f32.gmra.mrb[56].mxu1 %vm375_vm3, %v310_v5 }
  0x87   : > { %15579 = vmatprep.mubr.msk.f32.mxu1 %vm375_vm3, %v311_v6 }
  0x8a   : > { %15580 = vmatmul.mubr.msk.f32.gmra.mrb[58].mxu1 %vm375_vm3, %v312_v7 }
  0xe9   : > { %v15494_v18 = vpop.f32.mrb[0].mxu1 }
  0xea   : > { %v17065_v20 = vadd.f32 %v15494_v18, %v316_v16  ;;  %v626_v21 = vpop.f32.mrb[1].mxu1 }
  0xeb   : > { %v17067_v22 = vadd.f32 %v626_v21, %v315_v17  ;;  %v16246_v21 = vld [vmem:[%s22595_s3 + $0x8] sm:$0xff]  }
  0xec   : > { %22738 = vst [vmem:[#allocation4_spill] sm:$0xff] %v17065_v20  ;;  %v926_v24 = vmax.f32 %v17065_v20, 0.0  ;;  %5983 = vmatpush1.bf16.msra.mxu1 %v16246_v21 }
  0xed   : > { %22739 = vst [vmem:[#allocation5_spill] sm:$0xff] %v17067_v22  ;;  %v925_v26 = vmax.f32 %v17067_v22, 0.0  ;;  %v15497_v27 = vpop.f32.mrb[2].mxu1  ;;  %5984 = vmatprep.subr.bf16.mxu1 %v22598_v63 }
  0xee   : > { %v15177_v30 = vpack.c.bf16 %v926_v24, %v926_v24  ;;  %v17077_v31 = vadd.f32 %v15497_v27, %v318_v23  ;;  %v636_v32 = vpop.f32.mrb[3].mxu1  ;;  %v324_v27 = vld [vmem:[%s22594_s2 + $0x48] sm:$0xff] }
  0xef   : > { %v15176_v33 = vpack.c.bf16 %v925_v26, %v925_v26  ;;  %v17079_v34 = vadd.f32 %v636_v32, %v317_v25 }
  0xf0   : > { %22740 = vst [vmem:[#allocation6_spill] sm:$0xff] %v17077_v31  ;;  %v1176_v37 = vshrl.u32 %v15177_v30, 16  ;;  %v928_v38 = vmax.f32 %v17077_v31, 0.0  ;;  %v1179_v45 = vshll.u32 %v15177_v30, 16 }
  0xf1   : > { %22741 = vst [vmem:[#allocation7_spill] sm:$0xff] %v17079_v34  ;;  %v1168_v40 = vshrl.u32 %v15176_v33, 16  ;;  %v927_v41 = vmax.f32 %v17079_v34, 0.0  ;;  %v15500_v42 = vpop.f32.mrb[4].mxu1  ;;  %v1171_v50 = vshll.u32 %v15176_v33, 16 }
  0xf2   : > { %v1178_v44 = vrot.slane %v1176_v37, 7  ;;  %v15179_v46 = vpack.c.bf16 %v928_v38, %v928_v38  ;;  %v17094_v47 = vadd.f32 %v15500_v42, %v320_v35  ;;  %v646_v48 = vpop.f32.mrb[5].mxu1 }
  0xf3   : > { %v1170_v49 = vrot.slane %v1168_v40, 7  ;;  %v15178_v52 = vpack.c.bf16 %v927_v41, %v927_v41  ;;  %v17097_v53 = vadd.f32 %v646_v48, %v319_v39  ;;  %v325_v48 = vld [vmem:[%s22594_s2 + $0x50] sm:$0xff] }
  0xf4   : > { %22742 = vst [vmem:[#allocation8_spill] sm:$0xff] %v17094_v47  ;;  %v1181_v55 = vor.u32 %v1179_v45, %v1178_v44  ;;  %v1183_v56 = vrot.slane %v1178_v44, 4  ;;  %v1194_v60 = vshrl.u32 %v15179_v46, 16  ;;  %v1197_v61 = vshll.u32 %v15179_v46, 16  ;;  %v326_v46 = vld [vmem:[%s22594_s2 + $0x58] sm:$0xff] }
  0xf5   : > { %22743 = vst [vmem:[#allocation9_spill] sm:$0xff] %v17097_v53  ;;  %v1173_v0 = vor.u32 %v1171_v50, %v1170_v49  ;;  %v1174_v1 = vrot.slane %v1170_v49, 4  ;;  %v1185_v2 = vshrl.u32 %v15178_v52, 16  ;;  %v1188_v4 = vshll.u32 %v15178_v52, 16  ;;  %v15503_v5 = vpop.f32.mrb[6].mxu1 }
  0xf6   : > { %v1196_v6 = vrot.slane %v1194_v60, 7  ;;  %v930_v7 = vmax.f32 %v17094_v47, 0.0  ;;  %v929_v8 = vmax.f32 %v17097_v53, 0.0  ;;  %v17113_v9 = vadd.f32 %v15503_v5, %v322_v54  ;;  %v656_v10 = vpop.f32.mrb[7].mxu1 }
  0xf7   : > { %v1182_v11 = vsel %vm17104_vm11, %v1174_v1, %v1181_v55  ;;  %v1768_v12 = vsel %vm16997_vm9, %v1173_v0, %v1767_v58  ;;  %v1187_v13 = vrot.slane %v1185_v2, 7  ;;  %v17119_v15 = vadd.f32 %v656_v10, %v321_v62  ;;  %v328_v0 = vld [vmem:[%s22594_s2 + $0x68] sm:$0xff]  ;;  %v327_v1 = vld [vmem:[%s22594_s2 + $0x60] sm:$0xff]  ;;  %v16249_v2 = vld [vmem:[%s22595_s3 + $0x10] sm:$0xff]  }
  0xf8   : > { %22746 = vst [vmem:[#allocation10_spill] sm:$0xff] %v17113_v9  ;;  %1769 = vst [vmem:[#allocation2 + $0xc] sm:$0xf] %v1768_v12  ;;  %v1199_v16 = vor.u32 %v1197_v61, %v1196_v6  ;;  %v1201_v17 = vrot.slane %v1196_v6, 4  ;;  %v15181_v18 = vpack.c.bf16 %v930_v7, %v930_v7  ;;  %v15180_v19 = vpack.c.bf16 %v929_v8, %v929_v8 }
  0xf9   : > { %22747 = vst [vmem:[#allocation11_spill] sm:$0xff] %v17119_v15  ;;  %1770 = vst.msk [vmem:[#allocation2 + $0x10] sm:$0xf] %vm234_vm7, %v1182_v11  ;;  %v1190_v23 = vor.u32 %v1188_v4, %v1187_v13  ;;  %v1192_v24 = vrot.slane %v1187_v13, 4  ;;  %v932_v25 = vmax.f32 %v17113_v9, 0.0  ;;  %v931_v26 = vmax.f32 %v17119_v15, 0.0  ;;  %5985 = vmatpush1.bf16.msra.mxu1 %v16249_v2 }
  0xfa   : > { %v15506_v28 = vpop.f32.mrb[8].mxu1  ;;  %v1212_v30 = vshrl.u32 %v15181_v18, 16  ;;  %v1215_v32 = vshll.u32 %v15181_v18, 16  ;;  %v1203_v33 = vshrl.u32 %v15180_v19, 16  ;;  %v1206_v35 = vshll.u32 %v15180_v19, 16  ;;  %5986 = vmatprep.subr.bf16.mxu1 %v22598_v63 }
  0xfb   : > { %v666_v36 = vpop.f32.mrb[9].mxu1  ;;  %v1191_v37 = vsel %vm17104_vm11, %v1183_v56, %v1190_v23  ;;  %v1200_v38 = vsel %vm17104_vm11, %v1192_v24, %v1199_v16  ;;  %v15183_v39 = vpack.c.bf16 %v932_v25, %v932_v25  ;;  %v15182_v40 = vpack.c.bf16 %v931_v26, %v931_v26 }
  0xfc   : > { %1771 = vst.msk [vmem:[#allocation2 + $0x14] sm:$0xf] %vm234_vm7, %v1191_v37  ;;  %1772 = vst.msk [vmem:[#allocation2 + $0x18] sm:$0xf] %vm234_vm7, %v1200_v38  ;;  %v1214_v41 = vrot.slane %v1212_v30, 7  ;;  %v1205_v42 = vrot.slane %v1203_v33, 7  ;;  %v17140_v44 = vadd.f32 %v15506_v28, %v324_v27  ;;  %v17142_v45 = vadd.f32 %v666_v36, %v323_v29 }
  0xfd   : > { %v1230_v49 = vshrl.u32 %v15183_v39, 16  ;;  %v1233_v50 = vshll.u32 %v15183_v39, 16  ;;  %v1221_v52 = vshrl.u32 %v15182_v40, 16  ;;  %v1224_v54 = vshll.u32 %v15182_v40, 16  ;;  %v15509_v55 = vpop.f32.mrb[10].mxu1  ;;  %v330_v28 = vld [vmem:[%s22594_s2 + $0x78] sm:$0xff] }
  0xfe   : > { %22748 = vst [vmem:[#allocation12_spill] sm:$0xff] %v17140_v44  ;;  %22749 = vst [vmem:[#allocation13_spill] sm:$0xff] %v17142_v45  ;;  %v1217_v56 = vor.u32 %v1215_v32, %v1214_v41  ;;  %v1219_v58 = vrot.slane %v1214_v41, 4  ;;  %v1208_v60 = vor.u32 %v1206_v35, %v1205_v42  ;;  %v1210_v61 = vrot.slane %v1205_v42, 4  ;;  %v676_v62 = vpop.f32.mrb[11].mxu1  ;;  %v16252_v30 = vld [vmem:[%s22595_s3 + $0x18] sm:$0xff]  }
  0xff   : > { %v17159_v4 = vrot.slane %v1230_v49, 7  ;;  %v1223_v5 = vrot.slane %v1221_v52, 7  ;;  %v934_v6 = vmax.f32 %v17140_v44, 0.0  ;;  %v933_v7 = vmax.f32 %v17142_v45, 0.0  ;;  %v17182_v29 = vld [vmem:[#allocation2 + $0x8] sm:$0xff]   ;;  %5987 = vmatpush1.bf16.msra.mxu1 %v16252_v30 }
 0x100   : > { %v1209_v8 = vsel %vm17104_vm11, %v1201_v17, %v1208_v60  ;;  %v1218_v10 = vsel %vm17104_vm11, %v1210_v61, %v1217_v56  ;;  %v17167_v11 = vadd.f32 %v15509_v55, %v326_v46  ;;  %v17169_v12 = vadd.f32 %v676_v62, %v325_v48  ;;  %v16196_v13 = vld [vmem:[#allocation2 + $0xc] sm:$0xff]   ;;  %5988 = vmatprep.subr.bf16.mxu1 %v22598_v63 }
 0x101   : > { %1773 = vst.msk [vmem:[#allocation2 + $0x1c] sm:$0xf] %vm234_vm7, %v1209_v8  ;;  %1774 = vst.msk [vmem:[#allocation2 + $0x20] sm:$0xf] %vm234_vm7, %v1218_v10  ;;  %v1235_v16 = vor.u32 %v1233_v50, %v17159_v4  ;;  %v1237_v18 = vrot.slane %v17159_v4, 4  ;;  %v1226_v19 = vor.u32 %v1224_v54, %v1223_v5  ;;  %v1228_v21 = vrot.slane %v1223_v5, 4  ;;  %3229 = vrot.lane.b32.xlu0 %v16196_v13, %s16826_s8 }
 0x102   : > { %22750 = vst [vmem:[#allocation14_spill] sm:$0xff] %v17167_v11  ;;  %22751 = vst [vmem:[#allocation15_spill] sm:$0xff] %v17169_v12  ;;  %v15512_v17 = vpop.f32.mrb[12].mxu1  ;;  %v15185_v23 = vpack.c.bf16 %v934_v6, %v934_v6  ;;  %v15184_v24 = vpack.c.bf16 %v933_v7, %v933_v7  ;;  %v936_v25 = vmax.f32 %v17167_v11, 0.0  ;;  %v935_v26 = vmax.f32 %v17169_v12, 0.0 }
 0x103   : > { %v686_v27 = vpop.f32.mrb[13].mxu1  ;;  %v1227_v32 = vsel %vm17104_vm11, %v1219_v58, %v1226_v19  ;;  %v1236_v33 = vsel %vm17104_vm11, %v1228_v21, %v1235_v16  ;;  %v17191_v35 = vadd.f32 %v15512_v17, %v328_v0  ;;  %v16197_v37 = vld [vmem:[#allocation2 + $0x14] sm:$0xff]   ;;  %v2326_v58 = vshll.u32 %v17182_v29, 16 }
 0x104   : > { %v17193_v36 = vadd.f32 %v686_v27, %v327_v1  ;;  %1775 = vst.msk [vmem:[#allocation2 + $0x24] sm:$0xf] %vm234_vm7, %v1227_v32  ;;  %1776 = vst.msk [vmem:[#allocation2 + $0x28] sm:$0xf] %vm234_vm7, %v1236_v33  ;;  %v1248_v38 = vshrl.u32 %v15185_v23, 16  ;;  %v1251_v39 = vshll.u32 %v15185_v23, 16  ;;  %v15187_v42 = vpack.c.bf16 %v936_v25, %v936_v25  ;;  %3231 = vrot.lane.b32.xlu1 %v16197_v37, %s16826_s8 }
 0x105   : > { %22752 = vst [vmem:[#allocation16_spill] sm:$0xff] %v17191_v35  ;;  %v1239_v40 = vshrl.u32 %v15184_v24, 16  ;;  %v1242_v41 = vshll.u32 %v15184_v24, 16  ;;  %v15186_v46 = vpack.c.bf16 %v935_v26, %v935_v26  ;;  %v938_v48 = vmax.f32 %v17191_v35, 0.0  ;;  %v15515_v50 = vpop.f32.mrb[14].mxu1  ;;  %v329_v1 = vld [vmem:[%s22594_s2 + $0x70] sm:$0xff] }
 0x106   : > { %22753 = vst [vmem:[#allocation17_spill] sm:$0xff] %v17193_v36  ;;  %v937_v49 = vmax.f32 %v17193_v36, 0.0  ;;  %v1250_v52 = vrot.slane %v1248_v38, 7  ;;  %v17201_v55 = vadd.f32 %v15515_v50, %v330_v28  ;;  %v696_v56 = vpop.f32.mrb[15].mxu1  ;;  %v1266_v60 = vshrl.u32 %v15187_v42, 16  ;;  %v332_v24 = vld [vmem:[%s22594_s2 + $0x88] sm:$0xff] }
 0x107   : > { %v1241_v54 = vrot.slane %v1239_v40, 7  ;;  %v1269_v61 = vshll.u32 %v15187_v42, 16  ;;  %v1257_v62 = vshrl.u32 %v15186_v46, 16  ;;  %v1260_v0 = vshll.u32 %v15186_v46, 16  ;;  %v331_v38 = vld [vmem:[%s22594_s2 + $0x80] sm:$0xff] }
 0x108   : > { %22754 = vst [vmem:[#allocation18_spill] sm:$0xff] %v17201_v55  ;;  %v1253_v2 = vor.u32 %v1251_v39, %v1250_v52  ;;  %v1255_v4 = vrot.slane %v1250_v52, 4  ;;  %v1268_v7 = vrot.slane %v1266_v60, 7  ;;  %v15189_v10 = vpack.c.bf16 %v938_v48, %v938_v48 }
 0x109   : > { %v1244_v5 = vor.u32 %v1242_v41, %v1241_v54  ;;  %v1246_v6 = vrot.slane %v1241_v54, 4  ;;  %v1259_v8 = vrot.slane %v1257_v62, 7  ;;  %v15188_v13 = vpack.c.bf16 %v937_v49, %v937_v49  ;;  %v15518_v16 = vpop.f32.mrb[16].mxu1 }
 0x10a   : > { %v940_v17 = vmax.f32 %v17201_v55, 0.0  ;;  %v17212_v23 = vadd.f32 %v696_v56, %v329_v1  ;;  %v706_v25 = vpop.f32.mrb[17].mxu1  ;;  %v1271_v26 = vor.u32 %v1269_v61, %v1268_v7  ;;  %v1273_v27 = vrot.slane %v1268_v7, 4 }
 0x10b   : > { %v1245_v19 = vsel %vm17104_vm11, %v1237_v18, %v1244_v5  ;;  %v1254_v21 = vsel %vm17104_vm11, %v1246_v6, %v1253_v2  ;;  %v1262_v28 = vor.u32 %v1260_v0, %v1259_v8  ;;  %v1264_v18 = vrot.slane %v1259_v8, 4  ;;  %v17233_v5 = vld [vmem:[#allocation2 + $0x10] sm:$0xff]   ;;  %v334_v6 = vld [vmem:[%s22594_s2 + $0x98] sm:$0xff] }
 0x10c   : > { %22755 = vst [vmem:[#allocation19_spill] sm:$0xff] %v17212_v23  ;;  %1777 = vst.msk [vmem:[#allocation2 + $0x2c] sm:$0xf] %vm234_vm7, %v1245_v19  ;;  %v1284_v30 = vshrl.u32 %v15189_v10, 16  ;;  %v1287_v32 = vshll.u32 %v15189_v10, 16  ;;  %v1275_v33 = vshrl.u32 %v15188_v13, 16  ;;  %v15191_v41 = vpack.c.bf16 %v940_v17, %v940_v17 }
 0x10d   : > { %1778 = vst.msk [vmem:[#allocation2 + $0x30] sm:$0xf] %vm234_vm7, %v1254_v21  ;;  %v1278_v37 = vshll.u32 %v15188_v13, 16  ;;  %v1263_v39 = vsel %vm17104_vm11, %v1255_v4, %v1262_v28  ;;  %v1272_v40 = vsel %vm17104_vm11, %v1264_v18, %v1271_v26  ;;  %v939_v42 = vmax.f32 %v17212_v23, 0.0  ;;  %v15521_v46 = vpop.f32.mrb[18].mxu1 }
 0x10e   : > { %1779 = vst.msk [vmem:[#allocation2 + $0x34] sm:$0xf] %vm234_vm7, %v1263_v39  ;;  %1780 = vst.msk [vmem:[#allocation2 + $0x38] sm:$0xf] %vm234_vm7, %v1272_v40  ;;  %v1286_v48 = vrot.slane %v1284_v30, 7  ;;  %v1277_v49 = vrot.slane %v1275_v33, 7  ;;  %v17229_v52 = vadd.f32 %v15518_v16, %v332_v24  ;;  %v17231_v62 = vadd.f32 %v706_v25, %v331_v38 }
 0x10f   : > { %v2328_v50 = vrot.slane %v2326_v58, 1  ;;  %v716_v54 = vpop.f32.mrb[19].mxu1  ;;  %v1302_v56 = vshrl.u32 %v15191_v41, 16  ;;  %v1305_v60 = vshll.u32 %v15191_v41, 16  ;;  %v15190_v61 = vpack.c.bf16 %v939_v42, %v939_v42  ;;  %v333_v58 = vld [vmem:[%s22594_s2 + $0x90] sm:$0xff]  ;;  %v16201_v25 = vld [vmem:[#allocation2 + $0x1c] sm:$0xff]  }
 0x110   : > { %22756 = vst [vmem:[#allocation20_spill] sm:$0xff] %v17229_v52  ;;  %22757 = vst [vmem:[#allocation21_spill] sm:$0xff] %v17231_v62  ;;  %v1289_v0 = vor.u32 %v1287_v32, %v1286_v48  ;;  %v1291_v1 = vrot.slane %v1286_v48, 4  ;;  %v1280_v2 = vor.u32 %v1278_v37, %v1277_v49  ;;  %v1282_v4 = vrot.slane %v1277_v49, 4  ;;  %v17262_v38 = vld [vmem:[#allocation2 + $0x18] sm:$0xff]   ;;  %v336_v39 = vld [vmem:[%s22594_s2 + $0xa8] sm:$0xff] }
 0x111   : > { %v17241_v7 = vrot.slane %v1302_v56, 7  ;;  %v1293_v8 = vshrl.u32 %v15190_v61, 16  ;;  %v1296_v10 = vshll.u32 %v15190_v61, 16  ;;  %v2329_v13 = vsel %vm2317_vm12, %v17092_v43, %v2328_v50  ;;  %v15524_v16 = vpop.f32.mrb[20].mxu1 }
 0x112   : > { %v1281_v19 = vsel %vm17104_vm11, %v1273_v27, %v1280_v2  ;;  %v1290_v21 = vsel %vm17104_vm11, %v1282_v4, %v1289_v0  ;;  %2562 = vrot.lane.b32.xlu0 %v2329_v13, %s16826_s8  ;;  %v942_v17 = vmax.f32 %v17229_v52, 0.0  ;;  %v941_v24 = vmax.f32 %v17231_v62, 0.0  ;;  %v17252_v26 = vpop.f32.mrb[21].mxu1 }
 0x113   : > { %1781 = vst.msk [vmem:[#allocation2 + $0x3c] sm:$0xf] %vm234_vm7, %v1281_v19  ;;  %1782 = vst.msk [vmem:[#allocation2 + $0x40] sm:$0xf] %vm234_vm7, %v1290_v21  ;;  %v1307_v43 = vor.u32 %v1305_v60, %v17241_v7  ;;  %v1309_v27 = vrot.slane %v17241_v7, 4  ;;  %v1295_v28 = vrot.slane %v1293_v8, 7  ;;  %v17260_v37 = vadd.f32 %v15521_v46, %v334_v6 }
 0x114   : > { %v2330_v18 = vshrl.u32 %v17182_v29, 16  ;;  %v15193_v30 = vpack.c.bf16 %v942_v17, %v942_v17  ;;  %v15192_v32 = vpack.c.bf16 %v941_v24, %v941_v24  ;;  %v2334_v33 = vshll.u32 %v17233_v5, 16  ;;  %v16204_v46 = vld [vmem:[#allocation2 + $0x24] sm:$0xff]  }
 0x115   : > { %22758 = vst [vmem:[#allocation22_spill] sm:$0xff] %v17260_v37  ;;  %v1298_v40 = vor.u32 %v1296_v10, %v1295_v28  ;;  %v1300_v41 = vrot.slane %v1295_v28, 4  ;;  %v17267_v48 = vadd.f32 %v716_v54, %v333_v58  ;;  %v17269_v49 = vpop.f32.mrb[22].mxu1  ;;  %v944_v54 = vmax.f32 %v17260_v37, 0.0  ;;  %v17288_v10 = vld [vmem:[#allocation2 + $0x20] sm:$0xff]  }
 0x116   : > { %v2332_v42 = vor.u32 %v2330_v18, %v2328_v50  ;;  %v1320_v29 = vshrl.u32 %v15193_v30, 16  ;;  %v1323_v56 = vshll.u32 %v15193_v30, 16  ;;  %v1311_v60 = vshrl.u32 %v15192_v32, 16  ;;  %3233 = vrot.lane.b32.xlu0 %v16201_v25, %s16826_s8  ;;  %v17272_v0 = vpop.f32.mrb[23].mxu1  ;;  %v16207_v18 = vld [vmem:[#allocation2 + $0x2c] sm:$0xff]  }
 0x117   : > { %22759 = vst [vmem:[#allocation23_spill] sm:$0xff] %v17267_v48  ;;  %v1314_v61 = vshll.u32 %v15192_v32, 16  ;;  %v1299_v2 = vsel %vm17104_vm11, %v1291_v1, %v1298_v40  ;;  %v1308_v4 = vsel %vm17104_vm11, %v1300_v41, %v1307_v43  ;;  %v2336_v50 = vrot.slane %v2334_v33, 1  ;;  %v335_v1 = vld [vmem:[%s22594_s2 + $0xa0] sm:$0xff] }
 0x118   : > { %1783 = vst.msk [vmem:[#allocation2 + $0x44] sm:$0xf] %vm234_vm7, %v1299_v2  ;;  %1784 = vst.msk [vmem:[#allocation2 + $0x48] sm:$0xf] %vm234_vm7, %v1308_v4  ;;  %v17281_v6 = vrot.slane %v1320_v29, 7  ;;  %v1313_v58 = vrot.slane %v1311_v60, 7  ;;  %v15195_v19 = vpack.c.bf16 %v944_v54, %v944_v54  ;;  %v17292_v17 = vadd.f32 %v15524_v16, %v336_v39 }
 0x119   : > { %v943_v7 = vmax.f32 %v17267_v48, 0.0  ;;  %v2338_v8 = vshrl.u32 %v17233_v5, 16  ;;  %v2337_v13 = vsel %vm2317_vm12, %v2332_v42, %v2336_v50  ;;  %v2342_v21 = vshll.u32 %v17262_v38, 16  ;;  %v17294_v24 = vpop.f32.mrb[24].mxu1  ;;  %v16210_v60 = vld [vmem:[#allocation2 + $0x34] sm:$0xff]  }
 0x11a   : > { %22760 = vst [vmem:[#allocation24_spill] sm:$0xff] %v17292_v17  ;;  %v1325_v25 = vor.u32 %v1323_v56, %v17281_v6  ;;  %v1327_v43 = vrot.slane %v17281_v6, 4  ;;  %v1316_v5 = vor.u32 %v1314_v61, %v1313_v58  ;;  %v1318_v28 = vrot.slane %v1313_v58, 4  ;;  %2564 = vrot.lane.b32.xlu1 %v2337_v13, %s16826_s8  ;;  %3235 = vrot.lane.b32.xlu0 %v16204_v46, %s16826_s8  ;;  %v17300_v30 = vpop.f32.mrb[25].mxu1  ;;  %v338_v56 = vld [vmem:[%s22594_s2 + $0xb8] sm:$0xff] }
 0x11b   : > { %v1338_v32 = vshrl.u32 %v15195_v19, 16  ;;  %v1341_v33 = vshll.u32 %v15195_v19, 16  ;;  %v15194_v40 = vpack.c.bf16 %v943_v7, %v943_v7  ;;  %v2340_v16 = vor.u32 %v2338_v8, %v2336_v50  ;;  %v16255_v8 = vld [vmem:[%s22595_s3 + $0x20] sm:$0xff]  }
 0x11c   : > { %v1317_v39 = vsel %vm17104_vm11, %v1309_v27, %v1316_v5  ;;  %v1326_v41 = vsel %vm17104_vm11, %v1318_v28, %v1325_v25  ;;  %v2344_v42 = vrot.slane %v2342_v21, 1  ;;  %v946_v29 = vmax.f32 %v17292_v17, 0.0  ;;  %5989 = vmatpush1.bf16.msra.mxu1 %v16255_v8 }
 0x11d   : > { %1785 = vst.msk [vmem:[#allocation2 + $0x4c] sm:$0xf] %vm234_vm7, %v1317_v39  ;;  %1786 = vst.msk [vmem:[#allocation2 + $0x50] sm:$0xf] %vm234_vm7, %v1326_v41  ;;  %v17312_v61 = vrot.slane %v1338_v32, 7  ;;  %v1329_v46 = vshrl.u32 %v15194_v40, 16  ;;  %v17315_v27 = vadd.f32 %v17252_v26, %v335_v1  ;;  %5990 = vmatprep.subr.bf16.mxu1 %v22598_v63 }
 0x11e   : > { %v1332_v2 = vshll.u32 %v15194_v40, 16  ;;  %v17317_v4 = vpop.f32.mrb[26].mxu1  ;;  %v2345_v50 = vsel %vm2317_vm12, %v2340_v16, %v2344_v42  ;;  %v15197_v54 = vpack.c.bf16 %v946_v29, %v946_v29  ;;  %v2346_v6 = vshrl.u32 %v17262_v38, 16  ;;  %3237 = vrot.lane.b32.xlu0 %v16207_v18, %s16826_s8  ;;  %v337_v38 = vld [vmem:[%s22594_s2 + $0xb0] sm:$0xff]  ;;  %v17335_v18 = vld [vmem:[#allocation2 + $0x28] sm:$0xff]   ;;  %v17342_v40 = vld [vmem:[#allocation2 + $0x20] sm:$0xff]  }
 0x11f   : > { %22761 = vst [vmem:[#allocation25_spill] sm:$0xff] %v17315_v27  ;;  %v2350_v58 = vshll.u32 %v17288_v10, 16  ;;  %v17323_v7 = vpop.f32.mrb[27].mxu1  ;;  %v1343_v26 = vor.u32 %v1341_v33, %v17312_v61  ;;  %v1345_v1 = vrot.slane %v17312_v61, 4  ;;  %v1331_v13 = vrot.slane %v1329_v46, 7  ;;  %2566 = vrot.lane.b32.xlu1 %v2345_v50, %s16826_s8  ;;  %v340_v32 = vld [vmem:[%s22594_s2 + $0xc8] sm:$0xff] }
 0x120   : > { %v945_v19 = vmax.f32 %v17315_v27, 0.0  ;;  %v1356_v21 = vshrl.u32 %v15197_v54, 16  ;;  %v1359_v25 = vshll.u32 %v15197_v54, 16  ;;  %v2348_v5 = vor.u32 %v2346_v6, %v2344_v42  ;;  %v17340_v33 = vld [vmem:[#allocation2 + $0x18] sm:$0xfe]  }
 0x121   : > { %v2352_v28 = vrot.slane %v2350_v58, 1  ;;  %v1334_v16 = vor.u32 %v1332_v2, %v1331_v13  ;;  %v1336_v39 = vrot.slane %v1331_v13, 4  ;;  %v17345_v29 = vadd.f32 %v17269_v49, %v338_v56  ;;  %v17347_v42 = vpop.f32.mrb[28].mxu1  ;;  %v16215_v2 = vld [vmem:[#allocation2 + $0x3c] sm:$0xff]  }
 0x122   : > { %v15196_v41 = vpack.c.bf16 %v945_v19, %v945_v19  ;;  %v17350_v46 = vrot.slane %v1356_v21, 7  ;;  %v17354_v54 = vadd.f32 %v17272_v0, %v337_v38  ;;  %v2354_v6 = vshrl.u32 %v17288_v10, 16  ;;  %3239 = vrot.lane.b32.xlu0 %v16210_v60, %s16826_s8  ;;  %v17358_v49 = vpop.f32.mrb[29].mxu1 }
 0x123   : > { %22762 = vst [vmem:[#allocation26_spill] sm:$0xff] %v17345_v29  ;;  %v2353_v50 = vsel %vm2317_vm12, %v2348_v5, %v2352_v28  ;;  %v1335_v56 = vsel %vm17104_vm11, %v1327_v43, %v1334_v16  ;;  %v1344_v58 = vsel %vm17104_vm11, %v1336_v39, %v1343_v26  ;;  %v948_v60 = vmax.f32 %v17345_v29, 0.0  ;;  %v339_v5 = vld [vmem:[%s22594_s2 + $0xc0] sm:$0xff] }
 0x124   : > { %22763 = vst [vmem:[#allocation27_spill] sm:$0xff] %v17354_v54  ;;  %v1347_v8 = vshrl.u32 %v15196_v41, 16  ;;  %v1350_v13 = vshll.u32 %v15196_v41, 16  ;;  %2568 = vrot.lane.b32.xlu1 %v2353_v50, %s16826_s8  ;;  %1787 = vst.msk [vmem:[#allocation2 + $0x54] sm:$0xf] %vm234_vm7, %v1335_v56  ;;  %v1361_v0 = vor.u32 %v1359_v25, %v17350_v46  ;;  %v947_v19 = vmax.f32 %v17354_v54, 0.0 }
 0x125   : > { %1788 = vst.msk [vmem:[#allocation2 + $0x58] sm:$0xf] %vm234_vm7, %v1344_v58  ;;  %v2356_v38 = vor.u32 %v2354_v6, %v2352_v28  ;;  %v2358_v26 = vshll.u32 %v17335_v18, 16  ;;  %v17373_v21 = vadd.f32 %v17294_v24, %v340_v32  ;;  %v17378_v16 = vpop.f32.mrb[30].mxu1  ;;  %v15199_v25 = vpack.c.bf16 %v948_v60, %v948_v60  ;;  %v16218_v28 = vld [vmem:[#allocation2 + $0x44] sm:$0xff]  }
 0x126   : > { %v1349_v43 = vrot.slane %v1347_v8, 7  ;;  %v15198_v39 = vpack.c.bf16 %v947_v19, %v947_v19  ;;  %v5324_v41 = vrot.slane %v17340_v33, 1  ;;  %3241 = vrot.lane.b32.xlu0 %v16215_v2, %s16826_s8  ;;  %v17383_v6 = vpop.f32.mrb[31].mxu1  ;;  %v17386_v8 = vld [vmem:[#allocation2 + $0x30] sm:$0xff]   ;;  %v17597_v12 = vld [vmem:[#allocation2 + $0x48] sm:$0xff]  }
 0x127   : > { %22764 = vst [vmem:[#allocation28_spill] sm:$0xff] %v17373_v21  ;;  %v2360_v32 = vrot.slane %v2358_v26, 1  ;;  %v950_v58 = vmax.f32 %v17373_v21, 0.0  ;;  %v1374_v10 = vshrl.u32 %v15199_v25, 16  ;;  %v1377_v63 = vshll.u32 %v15199_v25, 16  ;;  %v342_v26 = vld [vmem:[%s22594_s2 + $0xd8] sm:$0xff] }
 0x128   : > { %v1352_v56 = vor.u32 %v1350_v13, %v1349_v43  ;;  %v1354_v24 = vrot.slane %v1349_v43, 4  ;;  %v1365_v60 = vshrl.u32 %v15198_v39, 16  ;;  %v1368_v19 = vshll.u32 %v15198_v39, 16  ;;  %v17411_v39 = vld [vmem:[#allocation2 + $0x28] sm:$0xff]  }
 0x129   : > { %v2361_v13 = vsel %vm2317_vm12, %v2356_v38, %v2360_v32  ;;  %v15201_v43 = vpack.c.bf16 %v950_v58, %v950_v58  ;;  %v17398_v50 = vpop.f32.mrb[32].mxu1  ;;  %v17402_v61 = vrot.slane %v1374_v10, 7  ;;  %v17409_v38 = vadd.f32 %v17300_v30, %v339_v5  ;;  %v16258_v10 = vld [vmem:[%s22595_s3 + $0x28] sm:$0xff]   ;;  %v341_v5 = vld [vmem:[%s22594_s2 + $0xd0] sm:$0xff] }
 0x12a   : > { %v1353_v33 = vsel %vm17104_vm11, %v1345_v1, %v1352_v56  ;;  %v1362_v2 = vsel %vm17104_vm11, %v1354_v24, %v1361_v0  ;;  %v1367_v25 = vrot.slane %v1365_v60, 7  ;;  %2570 = vrot.lane.b32.xlu1 %v2361_v13, %s16826_s8  ;;  %v22765_v1 = vrot.slane %v17342_v40, 1  ;;  %3243 = vrot.lane.b32.xlu0 %v16218_v28, %s16826_s8  ;;  %v16221_v56 = vld [vmem:[#allocation2 + $0x4c] sm:$0xff]   ;;  %v17414_v24 = vpop.f32.mrb[33].mxu1 }
 0x12b   : > { %1789 = vst.msk [vmem:[#allocation2 + $0x5c] sm:$0xf] %vm234_vm7, %v1353_v33  ;;  %1790 = vst.msk [vmem:[#allocation2 + $0x60] sm:$0xf] %vm234_vm7, %v1362_v2  ;;  %v1392_v58 = vshrl.u32 %v15201_v43, 16  ;;  %v1395_v60 = vshll.u32 %v15201_v43, 16  ;;  %v1379_v28 = vor.u32 %v1377_v63, %v17402_v61  ;;  %5991 = vmatpush1.bf16.msra.mxu1 %v16258_v10  ;;  %v17447_v10 = vadd.f32 %v17317_v4, %v342_v26 }
 0x12c   : > { %v5326_v0 = vsel %vm2897_vm13, %v5324_v41, %v22765_v1  ;;  %22766 = vst [vmem:[#allocation29_spill] sm:$0xff] %v17409_v38  ;;  %v2362_v41 = vshrl.u32 %v17335_v18, 16  ;;  %v2366_v30 = vshll.u32 %v17386_v8, 16  ;;  %v1370_v2 = vor.u32 %v1368_v19, %v1367_v25  ;;  %v17427_v1 = vld [vmem:[#allocation2 + $0x38] sm:$0xff]   ;;  %v344_v43 = vld [vmem:[%s22594_s2 + $0xe8] sm:$0xff]  ;;  %v17633_v53 = vld [vmem:[#allocation2 + $0x50] sm:$0xff]  }
 0x12d   : > { %5415 = vst.msk [vmem:[#allocation3 + $0x20] sm:$0xff] %vm2072_vm14, %v5326_v0  ;;  %v1372_v13 = vrot.slane %v1367_v25, 4  ;;  %v17432_v0 = vld [vmem:[#allocation2 + $0x30] sm:$0xff]   ;;  %v17434_v54 = vrot.slane %v1392_v58, 7  ;;  %v949_v27 = vmax.f32 %v17409_v38, 0.0  ;;  %v17437_v62 = vpop.f32.mrb[34].mxu1 }
 0x12e   : > { %v16224_v18 = vld [vmem:[#allocation2 + $0x54] sm:$0xff]   ;;  %v2364_v48 = vor.u32 %v2362_v41, %v2360_v32  ;;  %v2368_v63 = vrot.slane %v2366_v30, 1  ;;  %v22767_v19 = vmov 0   ;;  %v22768_v25 = vrot.slane %v17350_v46, 4  ;;  %22769 = vst [vmem:[#allocation30_spill] sm:$0xff] %v17447_v10  ;;  %3245 = vrot.lane.b32.xlu0 %v16221_v56, %s16826_s8  ;;  %v17451_v32 = vpop.f32.mrb[35].mxu1 }
 0x12f   : > { %5992 = vmatprep.subr.bf16.mxu1 %v22767_v19  ;;  %v1380_v23 = vsel %vm17104_vm11, %v1372_v13, %v1379_v28  ;;  %v5327_v58 = vrot.slane %v17411_v39, 1  ;;  %v1397_v46 = vor.u32 %v1395_v60, %v17434_v54  ;;  %v15200_v30 = vpack.c.bf16 %v949_v27, %v949_v27  ;;  %v343_v60 = vld [vmem:[%s22594_s2 + $0xe0] sm:$0xff] }
 0x130   : > { %v1371_v33 = vsel %vm17104_vm11, %v22768_v25, %v1370_v2  ;;  %1792 = vst.msk [vmem:[#allocation2 + $0x68] sm:$0xf] %vm234_vm7, %v1380_v23  ;;  %v2369_v28 = vsel %vm2317_vm12, %v2364_v48, %v2368_v63  ;;  %v952_v4 = vmax.f32 %v17447_v10, 0.0  ;;  %v22770_v26 = vrot.slane %v17342_v40, 1  ;;  %v16261_v48 = vld [vmem:[%s22595_s3 + $0x30] sm:$0xff]  }
 0x131   : > { %1791 = vst.msk [vmem:[#allocation2 + $0x64] sm:$0xf] %vm234_vm7, %v1371_v33  ;;  %2572 = vrot.lane.b32.xlu1 %v2369_v28, %s16826_s8  ;;  %v17464_v56 = vadd.f32 %v17323_v7, %v341_v5  ;;  %v2370_v23 = vshrl.u32 %v17386_v8, 16  ;;  %v1383_v27 = vshrl.u32 %v15200_v30, 16  ;;  %v1386_v33 = vshll.u32 %v15200_v30, 16  ;;  %5993 = vmatpush1.bf16.msra.mxu1 %v16261_v48  ;;  %v17492_v48 = vld [vmem:[#allocation2 + $0x40] sm:$0xff]  }
 0x132   : > { %v5328_v39 = vsel %vm2897_vm13, %v22770_v26, %v5327_v58  ;;  %v2374_v40 = vshll.u32 %v17427_v1, 16  ;;  %v17476_v2 = vadd.f32 %v17347_v42, %v344_v43  ;;  %v15203_v5 = vpack.c.bf16 %v952_v4, %v952_v4  ;;  %3247 = vrot.lane.b32.xlu0 %v16224_v18, %s16826_s8  ;;  %v16227_v28 = vld [vmem:[#allocation2 + $0x5c] sm:$0xff]   ;;  %v17486_v43 = vpop.f32.mrb[36].mxu1  ;;  %5994 = vmatprep.subr.bf16.mxu1 %v22767_v19 }
 0x133   : > { %22771 = vst [vmem:[#allocation31_spill] sm:$0xff] %v17464_v56  ;;  %5416 = vst.msk [vmem:[#allocation3 + $0x48] sm:$0xff] %vm2072_vm14, %v5328_v39  ;;  %v951_v8 = vmax.f32 %v17464_v56, 0.0  ;;  %v2372_v13 = vor.u32 %v2370_v23, %v2368_v63  ;;  %v22605_v25 = vrot.slane %v17432_v0, 1  ;;  %v1385_v30 = vrot.slane %v1383_v27, 7  ;;  %v346_v27 = vld [vmem:[%s22594_s2 + $0xf8] sm:$0xff] }
 0x134   : > { %22772 = vst [vmem:[#allocation32_spill] sm:$0xff] %v17476_v2  ;;  %v5449_v7 = vld [vmem:[#allocation3 + $0x20] sm:$0xff]  ;;  %v2376_v26 = vrot.slane %v2374_v40, 1  ;;  %v954_v39 = vmax.f32 %v17476_v2, 0.0  ;;  %v17484_v42 = vadd.f32 %v17358_v49, %v343_v60  ;;  %v1410_v63 = vshrl.u32 %v15203_v5, 16  ;;  %v17497_v40 = vpop.f32.mrb[37].mxu1 }
 0x135   : > { %15590 = vmatprep.mubr.msk.bf16.mxu0 %vm2072_vm14, %v5449_v7  ;;  %v1413_v4 = vshll.u32 %v15203_v5, 16  ;;  %v15202_v23 = vpack.c.bf16 %v951_v8, %v951_v8  ;;  %v5330_v18 = vsel %vm2897_vm13, %v5327_v58, %v22605_v25  ;;  %v1388_v49 = vor.u32 %v1386_v33, %v1385_v30  ;;  %v17501_v5 = vpop.f32.mrb[38].mxu1  ;;  %v16429_v2 = vld [vmem:[#allocation2 + $0x34] sm:$0xff]  }
 0x136   : > { %22773 = vst [vmem:[#allocation33_spill] sm:$0xff] %v17484_v42  ;;  %v1390_v60 = vrot.slane %v1385_v30, 4  ;;  %v2377_v7 = vsel %vm2317_vm12, %v2372_v13, %v2376_v26  ;;  %v15205_v41 = vpack.c.bf16 %v954_v39, %v954_v39  ;;  %5417 = vst.msk [vmem:[#allocation3 + $0x70] sm:$0xff] %vm2072_vm14, %v5330_v18  ;;  %v17503_v8 = vrot.slane %v1410_v63, 7  ;;  %3249 = vrot.lane.b32.xlu0 %v16227_v28, %s16826_s8  ;;  %v17514_v63 = vld [vmem:[#allocation2 + $0x38] sm:$0xff]  }
 0x137   : > { %v1401_v58 = vshrl.u32 %v15202_v23, 16  ;;  %v1404_v25 = vshll.u32 %v15202_v23, 16  ;;  %2574 = vrot.lane.b32.xlu1 %v2377_v7, %s16826_s8  ;;  %v953_v56 = vmax.f32 %v17484_v42, 0.0  ;;  %v22774_v33 = vrot.slane %v17402_v61, 4 }
 0x138   : > { %v1398_v30 = vsel %vm17104_vm11, %v1390_v60, %v1397_v46  ;;  %v1428_v39 = vshrl.u32 %v15205_v41, 16  ;;  %v1431_v18 = vshll.u32 %v15205_v41, 16  ;;  %v16230_v38 = vld [vmem:[#allocation2 + $0x64] sm:$0xff]   ;;  %v1415_v23 = vor.u32 %v1413_v4, %v17503_v8  ;;  %v345_v46 = vld [vmem:[%s22594_s2 + $0xf0] sm:$0xff] }
 0x139   : > { %v1389_v13 = vsel %vm17104_vm11, %v22774_v33, %v1388_v49  ;;  %1794 = vst.msk [vmem:[#allocation2 + $0x70] sm:$0xf] %vm234_vm7, %v1398_v30  ;;  %v1417_v28 = vrot.slane %v17503_v8, 4  ;;  %v1403_v7 = vrot.slane %v1401_v58, 7  ;;  %v15204_v42 = vpack.c.bf16 %v953_v56, %v953_v56  ;;  %v17523_v49 = vpop.f32.mrb[39].mxu1 }
 0x13a   : > { %1793 = vst.msk [vmem:[#allocation2 + $0x6c] sm:$0xf] %vm234_vm7, %v1389_v13  ;;  %v5454_v61 = vld [vmem:[#allocation3 + $0x48] sm:$0xff]  ;;  %v17526_v41 = vrot.slane %v1428_v39, 7  ;;  %v2378_v60 = vshrl.u32 %v17427_v1, 16  ;;  %v2382_v33 = vshll.u32 %v17492_v48, 16  ;;  %v17531_v4 = vadd.f32 %v17378_v16, %v346_v27  ;;  %3251 = vrot.lane.b32.xlu0 %v16230_v38, %s16826_s8 }
 0x13b   : > { %15591 = vmatmul.mubr.msk.bf16.vlgmr.msra.gmra.mrb[0].mxu0 %vm2072_vm14, %v5454_v61  ;;  %v17533_v8 = vpop.f32.mrb[40].mxu1  ;;  %v1406_v56 = vor.u32 %v1404_v25, %v1403_v7  ;;  %v1408_v58 = vrot.slane %v1403_v7, 4  ;;  %v1419_v13 = vshrl.u32 %v15204_v42, 16  ;;  %v1422_v30 = vshll.u32 %v15204_v42, 16  ;;  %v17538_v61 = vld [vmem:[#allocation2 + $0x48] sm:$0xff]   ;;  %v16264_v7 = vld [vmem:[%s22595_s3 + $0x38] sm:$0xff]  }
 0x13c   : > { %22775 = vst [vmem:[#allocation34_spill] sm:$0xff] %v17531_v4  ;;  %15823 = vmatpush3.bf16.msk.msra.mxu0 %vm16871_vm2, %v17054_v14  ;;  %v1433_v1 = vor.u32 %v1431_v18, %v17526_v41  ;;  %v2380_v16 = vor.u32 %v2378_v60, %v2376_v26  ;;  %v2384_v27 = vrot.slane %v2382_v33, 1  ;;  %v17543_v36 = vpop.f32.mrb[41].mxu1  ;;  %v22776_v3 = vrot.slane %v17434_v54, 4  ;;  %v348_v26 = vld [vmem:[%s22594_s2 + $0x108] sm:$0xff]  ;;  %5995 = vmatpush1.bf16.msra.mxu1 %v16264_v7 }
 0x13d   : > { %12879 = vmatprep.subr.bf16.mxu0 %v22767_v19  ;;  %v1416_v25 = vsel %vm17104_vm11, %v1408_v58, %v1415_v23  ;;  %v5459_v42 = vld [vmem:[#allocation3 + $0x70] sm:$0xff]  ;;  %v1421_v38 = vrot.slane %v1419_v13, 7  ;;  %v956_v18 = vmax.f32 %v17531_v4, 0.0  ;;  %v5331_v23 = vrot.slane %v17514_v63, 1  ;;  %v17573_v13 = vld [vmem:[#allocation2 + $0x50] sm:$0xff]   ;;  %5996 = vmatprep.subr.bf16.mxu1 %v22767_v19 }
 0x13e   : > { %v1407_v14 = vsel %vm17104_vm11, %v22776_v3, %v1406_v56  ;;  %1796 = vst.msk [vmem:[#allocation2 + $0x78] sm:$0xf] %vm234_vm7, %v1416_v25  ;;  %15594 = vmatprep.mubr.msk.bf16.mxu0 %vm2072_vm14, %v5459_v42  ;;  %v2385_v54 = vsel %vm2317_vm12, %v2380_v16, %v2384_v27  ;;  %v17565_v60 = vadd.f32 %v17383_v6, %v345_v46  ;;  %v2386_v33 = vshrl.u32 %v17492_v48, 16  ;;  %v17568_v56 = vld [vmem:[#allocation2 + $0x40] sm:$0xff]   ;;  %v17575_v3 = vpop.f32.mrb[42].mxu1 }
 0x13f   : > { %1795 = vst.msk [vmem:[#allocation2 + $0x74] sm:$0xf] %vm234_vm7, %v1407_v14  ;;  %v347_v58 = vld [vmem:[%s22594_s2 + $0x100] sm:$0xff]  ;;  %v1424_v14 = vor.u32 %v1422_v30, %v1421_v38  ;;  %v1426_v25 = vrot.slane %v1421_v38, 4  ;;  %2576 = vrot.lane.b32.xlu1 %v2385_v54, %s16826_s8  ;;  %v15207_v63 = vpack.c.bf16 %v956_v18, %v956_v18  ;;  %v2390_v6 = vshll.u32 %v17538_v61, 16  ;;  %v17579_v46 = vpop.f32.mrb[43].mxu1 }
 0x140   : > { %22777 = vst [vmem:[#allocation35_spill] sm:$0xff] %v17565_v60  ;;  %v16267_v48 = vld [vmem:[%s22595_s3 + $0x40] sm:$0xff]   ;;  %v22778_v16 = vrot.slane %v17432_v0, 1  ;;  %v955_v39 = vmax.f32 %v17565_v60, 0.0  ;;  %v17589_v30 = vadd.f32 %v17398_v50, %v348_v26  ;;  %v2388_v0 = vor.u32 %v2386_v33, %v2384_v27  ;;  %v16270_v50 = vld [vmem:[%s22595_s3 + $0x48] sm:$0xff]   ;;  %v350_v27 = vld [vmem:[%s22594_s2 + $0x118] sm:$0xff] }
 0x141   : > { %v16233_v38 = vld [vmem:[#allocation2 + $0x6c] sm:$0xff]   ;;  %v1425_v18 = vsel %vm17104_vm11, %v1417_v28, %v1424_v14  ;;  %v1434_v7 = vsel %vm17104_vm11, %v1426_v25, %v1433_v1  ;;  %v1446_v54 = vshrl.u32 %v15207_v63, 16  ;;  %v17610_v33 = vpop.f32.mrb[44].mxu1  ;;  %v1449_v25 = vshll.u32 %v15207_v63, 16  ;;  %5997 = vmatpush1.bf16.msra.mxu1 %v16267_v48  ;;  %v16288_v63 = vld [vmem:[#allocation2] sm:$0xff]  }
 0x142   : > { %v5332_v42 = vsel %vm2897_vm13, %v22778_v16, %v5331_v23  ;;  %22779 = vst [vmem:[#allocation36_spill] sm:$0xff] %v17589_v30  ;;  %1797 = vst.msk [vmem:[#allocation2 + $0x7c] sm:$0xf] %vm234_vm7, %v1425_v18  ;;  %v15206_v26 = vpack.c.bf16 %v955_v39, %v955_v39  ;;  %v2392_v16 = vrot.slane %v2390_v6, 1  ;;  %v958_v28 = vmax.f32 %v17589_v30, 0.0  ;;  %3253 = vrot.lane.b32.xlu0 %v16233_v38, %s16826_s8  ;;  %v17618_v6 = vpop.f32.mrb[45].mxu1 }
 0x143   : > { %5418 = vst.msk [vmem:[#allocation3 + $0x98] sm:$0xff] %vm2072_vm14, %v5332_v42  ;;  %v17612_v14 = vrot.slane %v1446_v54, 7  ;;  %v17615_v42 = vadd.f32 %v17414_v24, %v347_v58  ;;  %v2398_v39 = vshll.u32 %v17573_v13, 16  ;;  %v2394_v60 = vshrl.u32 %v17538_v61, 16  ;;  %v349_v38 = vld [vmem:[%s22594_s2 + $0x110] sm:$0xff]  ;;  %5998 = vmatprep.subr.bf16.mxu1 %v22767_v19  ;;  %2073 = vst.msk [vmem:[#allocation3] sm:$0xff] %vm2072_vm14, %v16288_v63 }
 0x144   : > { %1798 = vst.msk [vmem:[#allocation2 + $0x80] sm:$0xf] %vm234_vm7, %v1434_v7  ;;  %v1437_v18 = vshrl.u32 %v15206_v26, 16  ;;  %v2393_v7 = vsel %vm2317_vm12, %v2388_v0, %v2392_v16  ;;  %v15209_v1 = vpack.c.bf16 %v958_v28, %v958_v28  ;;  %v1440_v58 = vshll.u32 %v15206_v26, 16 }
 0x145   : > { %22780 = vst [vmem:[#allocation37_spill] sm:$0xff] %v17615_v42  ;;  %v1451_v24 = vor.u32 %v1449_v25, %v17612_v14  ;;  %2578 = vrot.lane.b32.xlu1 %v2393_v7, %s16826_s8  ;;  %v22781_v48 = vrot.slane %v17568_v56, 1  ;;  %v957_v0 = vmax.f32 %v17615_v42, 0.0  ;;  %v2396_v15 = vor.u32 %v2394_v60, %v2392_v16  ;;  %5999 = vmatpush1.bf16.msra.mxu1 %v16270_v50  ;;  %v16273_v60 = vld [vmem:[%s22595_s3 + $0x50] sm:$0xff]   ;;  %v16292_v42 = vld [vmem:[#allocation2 + $0x8] sm:$0xff]  }
 0x146   : > { %v1439_v28 = vrot.slane %v1437_v18, 7  ;;  %v1464_v61 = vshrl.u32 %v15209_v1, 16  ;;  %v1467_v45 = vshll.u32 %v15209_v1, 16  ;;  %v16236_v34 = vld [vmem:[#allocation2 + $0x74] sm:$0xff]   ;;  %v2400_v25 = vrot.slane %v2398_v39, 1  ;;  %v352_v1 = vld [vmem:[%s22594_s2 + $0x128] sm:$0xff]  ;;  %6000 = vmatprep.subr.bf16.mxu1 %v22767_v19 }
 0x147   : > { %v5334_v54 = vsel %vm2897_vm13, %v5331_v23, %v22781_v48  ;;  %v15208_v26 = vpack.c.bf16 %v957_v0, %v957_v0  ;;  %v17637_v7 = vadd.f32 %v17437_v62, %v350_v27  ;;  %v5335_v23 = vrot.slane %v17597_v12, 1  ;;  %v17640_v48 = vld [vmem:[#allocation2 + $0x58] sm:$0xff]   ;;  %3255 = vrot.lane.b32.xlu0 %v16236_v34, %s16826_s8  ;;  %v17654_v12 = vpop.f32.mrb[46].mxu1  ;;  %2074 = vst.msk [vmem:[#allocation3 + $0x28] sm:$0xff] %vm2072_vm14, %v16292_v42  ;;  %v18840_v4 = vld [vmem:[#allocation2 + $0x70] sm:$0xff]  }
 0x148   : > { %5419 = vst.msk [vmem:[#allocation3 + $0xc0] sm:$0xff] %vm2072_vm14, %v5334_v54  ;;  %v1442_v18 = vor.u32 %v1440_v58, %v1439_v28  ;;  %v1444_v63 = vrot.slane %v1439_v28, 4  ;;  %v17648_v39 = vrot.slane %v1464_v61, 7  ;;  %v17651_v62 = vadd.f32 %v17451_v32, %v349_v38 }
 0x149   : > { %22782 = vst [vmem:[#allocation38_spill] sm:$0xff] %v17637_v7  ;;  %v1453_v50 = vrot.slane %v17612_v14, 4  ;;  %v1455_v27 = vshrl.u32 %v15208_v26, 16  ;;  %v2401_v54 = vsel %vm2317_vm12, %v2396_v15, %v2400_v25  ;;  %v960_v58 = vmax.f32 %v17637_v7, 0.0  ;;  %v16276_v15 = vld [vmem:[%s22595_s3 + $0x58] sm:$0xff]   ;;  %6001 = vmatpush1.bf16.msra.mxu1 %v16273_v60  ;;  %v17691_v60 = vpop.f32.mrb[47].mxu1 }
 0x14a   : > { %v5464_v16 = vld [vmem:[#allocation3 + $0x98] sm:$0xff]  ;;  %22783 = vst [vmem:[#allocation39_spill] sm:$0xff] %v17651_v62  ;;  %v22784_v28 = vrot.slane %v17526_v41, 4  ;;  %v1452_v34 = vsel %vm17104_vm11, %v1444_v63, %v1451_v24  ;;  %v1469_v38 = vor.u32 %v1467_v45, %v17648_v39  ;;  %v1458_v61 = vshll.u32 %v15208_v26, 16  ;;  %2580 = vrot.lane.b32.xlu1 %v2401_v54, %s16826_s8  ;;  %6002 = vmatprep.subr.bf16.mxu1 %v22767_v19  ;;  %v16472_v47 = vld [vmem:[#allocation2 + $0x78] sm:$0xff]  }
 0x14b   : > { %15595 = vmatmul.mubr.msk.bf16.gmra.mrb[4].mxu0 %vm2072_vm14, %v5464_v16  ;;  %v16239_v0 = vld [vmem:[#allocation2 + $0x7c] sm:$0xff]   ;;  %1800 = vst.msk [vmem:[#allocation2 + $0x88] sm:$0xf] %vm234_vm7, %v1452_v34  ;;  %v1457_v41 = vrot.slane %v1455_v27, 7  ;;  %v15211_v14 = vpack.c.bf16 %v960_v58, %v960_v58  ;;  %v22785_v16 = vrot.slane %v17568_v56, 1  ;;  %v959_v24 = vmax.f32 %v17651_v62, 0.0 }
 0x14c   : > { %v1443_v32 = vsel %vm17104_vm11, %v22784_v28, %v1442_v18  ;;  %v2402_v45 = vshrl.u32 %v17573_v13, 16  ;;  %v2406_v26 = vshll.u32 %v17640_v48, 16  ;;  %v17682_v63 = vadd.f32 %v17486_v43, %v352_v1  ;;  %v351_v56 = vld [vmem:[%s22594_s2 + $0x120] sm:$0xff]  ;;  %3257 = vrot.lane.b32.xlu0 %v16239_v0, %s16826_s8  ;;  %v17694_v1 = vld [vmem:[#allocation2 + $0x58] sm:$0xff]   ;;  %v17701_v62 = vpop.f32.mrb[48].mxu1  ;;  %4514 = vst.msk [vmem:[#allocation3 + $0x1f8] sm:$0xff] %vm2072_vm14, %v16472_v47 }
 0x14d   : > { %1799 = vst.msk [vmem:[#allocation2 + $0x84] sm:$0xf] %vm234_vm7, %v1443_v32  ;;  %v5336_v18 = vsel %vm2897_vm13, %v22785_v16, %v5335_v23  ;;  %v17688_v27 = vld [vmem:[#allocation2 + $0x60] sm:$0xff]   ;;  %v1460_v58 = vor.u32 %v1458_v61, %v1457_v41  ;;  %v1462_v28 = vrot.slane %v1457_v41, 4  ;;  %v1482_v32 = vshrl.u32 %v15211_v14, 16  ;;  %6003 = vmatpush1.bf16.msra.mxu1 %v16276_v15 }
 0x14e   : > { %5420 = vst.msk [vmem:[#allocation3 + $0xe8] sm:$0xff] %vm2072_vm14, %v5336_v18  ;;  %22786 = vst [vmem:[#allocation40_spill] sm:$0xff] %v17682_v63  ;;  %v1485_v43 = vshll.u32 %v15211_v14, 16  ;;  %v16279_v34 = vld [vmem:[%s22595_s3 + $0x60] sm:$0xff]   ;;  %v15210_v16 = vpack.c.bf16 %v959_v24, %v959_v24  ;;  %v2404_v18 = vor.u32 %v2402_v45, %v2400_v25  ;;  %v2408_v0 = vrot.slane %v2406_v26, 1  ;;  %v17712_v24 = vpop.f32.mrb[49].mxu1  ;;  %6004 = vmatprep.subr.bf16.mxu1 %v22767_v19 }
 0x14f   : > { %v5469_v13 = vld [vmem:[#allocation3 + $0xc0] sm:$0xff]  ;;  %v962_v54 = vmax.f32 %v17682_v63, 0.0  ;;  %v1461_v61 = vsel %vm17104_vm11, %v1453_v50, %v1460_v58  ;;  %v1470_v41 = vsel %vm17104_vm11, %v1462_v28, %v1469_v38  ;;  %v17707_v14 = vrot.slane %v1482_v32, 7  ;;  %v354_v38 = vld [vmem:[%s22594_s2 + $0x138] sm:$0xff] }
 0x150   : > { %15598 = vmatprep.mubr.msk.bf16.mxu0 %vm2072_vm14, %v5469_v13  ;;  %v22787_v22 = vrot.slane %v17633_v53, 1  ;;  %v1471_v25 = vrot.slane %v17648_v39, 4  ;;  %1801 = vst.msk [vmem:[#allocation2 + $0x8c] sm:$0xf] %vm234_vm7, %v1461_v61  ;;  %1802 = vst.msk [vmem:[#allocation2 + $0x90] sm:$0xf] %vm234_vm7, %v1470_v41  ;;  %v2409_v50 = vsel %vm2317_vm12, %v2404_v18, %v2408_v0  ;;  %v17729_v15 = vadd.f32 %v17497_v40, %v351_v56 }
 0x151   : > { %v1473_v45 = vshrl.u32 %v15210_v16, 16  ;;  %v15213_v26 = vpack.c.bf16 %v962_v54, %v962_v54  ;;  %v1476_v39 = vshll.u32 %v15210_v16, 16  ;;  %2582 = vrot.lane.b32.xlu1 %v2409_v50, %s16826_s8  ;;  %v2410_v54 = vshrl.u32 %v17640_v48, 16  ;;  %v353_v58 = vld [vmem:[%s22594_s2 + $0x130] sm:$0xff]  ;;  %v356_v56 = vld [vmem:[%s22594_s2 + $0x148] sm:$0xff]  ;;  %6005 = vmatpush1.bf16.msra.mxu1 %v16279_v34 }
 0x152   : > { %v5338_v13 = vsel %vm2897_vm13, %v5335_v23, %v22787_v22  ;;  %v17722_v22 = vpop.f32.mrb[50].mxu1  ;;  %v1487_v23 = vor.u32 %v1485_v43, %v17707_v14  ;;  %22788 = vst [vmem:[#allocation41_spill] sm:$0xff] %v17729_v15  ;;  %v2414_v42 = vshll.u32 %v17688_v27, 16  ;;  %v961_v16 = vmax.f32 %v17729_v15, 0.0  ;;  %6006 = vmatprep.subr.bf16.mxu1 %v22767_v19 }
 0x153   : > { %5421 = vst.msk [vmem:[#allocation3 + $0x110] sm:$0xff] %vm2072_vm14, %v5338_v13  ;;  %v17735_v28 = vpop.f32.mrb[51].mxu1  ;;  %v1475_v32 = vrot.slane %v1473_v45, 7  ;;  %v1500_v18 = vshrl.u32 %v15213_v26, 16  ;;  %v1503_v61 = vshll.u32 %v15213_v26, 16  ;;  %v2412_v41 = vor.u32 %v2410_v54, %v2408_v0  ;;  %v16284_v13 = vld [vmem:[%s22595_s3 + $0x68] sm:$0xff]  }
 0x154   : > { %v17740_v40 = vadd.f32 %v17501_v5, %v354_v38  ;;  %v5339_v48 = vrot.slane %v17694_v1, 1  ;;  %v2416_v0 = vrot.slane %v2414_v42, 1  ;;  %v17752_v5 = vld [vmem:[#allocation2 + $0x68] sm:$0xff]   ;;  %v15212_v1 = vpack.c.bf16 %v961_v16, %v961_v16 }
 0x155   : > { %v5474_v43 = vld [vmem:[#allocation3 + $0xe8] sm:$0xff]  ;;  %v1478_v45 = vor.u32 %v1476_v39, %v1475_v32  ;;  %v1480_v50 = vrot.slane %v1475_v32, 4  ;;  %v17750_v26 = vrot.slane %v1500_v18, 7  ;;  %v22790_v34 = vrot.slane %v17633_v53, 1  ;;  %v17771_v53 = vpop.f32.mrb[52].mxu1  ;;  %6007 = vmatpush1.bf16.msra.mxu1 %v16284_v13  ;;  %v19044_v11 = vld [vmem:[#allocation2 + $0x84] sm:$0xff]  }
 0x156   : > { %22789 = vst [vmem:[#allocation42_spill] sm:$0xff] %v17740_v40  ;;  %15599 = vmatmul.mubr.msk.bf16.gmra.mrb[8].mxu0 %vm2072_vm14, %v5474_v43  ;;  %v964_v38 = vmax.f32 %v17740_v40, 0.0  ;;  %v17760_v15 = vadd.f32 %v17523_v49, %v353_v58  ;;  %v17762_v43 = vld [vmem:[#allocation2 + $0x60] sm:$0xff]   ;;  %v1489_v39 = vrot.slane %v17707_v14, 4  ;;  %v1491_v58 = vshrl.u32 %v15212_v1, 16  ;;  %6008 = vmatprep.subr.bf16.mxu1 %v22767_v19 }
 0x157   : > { %v5340_v54 = vsel %vm2897_vm13, %v22790_v34, %v5339_v48  ;;  %v1479_v32 = vsel %vm17104_vm11, %v1471_v25, %v1478_v45  ;;  %v1488_v18 = vsel %vm17104_vm11, %v1480_v50, %v1487_v23  ;;  %v1505_v42 = vor.u32 %v1503_v61, %v17750_v26  ;;  %v16289_v25 = vld [vmem:[%s22595_s3 + $0x70] sm:$0xff]  }
 0x158   : > { %22791 = vst [vmem:[#allocation43_spill] sm:$0xff] %v17760_v15  ;;  %5422 = vst.msk [vmem:[#allocation3 + $0x138] sm:$0xff] %vm2072_vm14, %v5340_v54  ;;  %v1494_v16 = vshll.u32 %v15212_v1, 16  ;;  %v2417_v14 = vsel %vm2317_vm12, %v2412_v41, %v2416_v0  ;;  %v15215_v34 = vpack.c.bf16 %v964_v38, %v964_v38  ;;  %v963_v23 = vmax.f32 %v17760_v15, 0.0  ;;  %v355_v54 = vld [vmem:[%s22594_s2 + $0x140] sm:$0xff] }
 0x159   : > { %1803 = vst.msk [vmem:[#allocation2 + $0x94] sm:$0xf] %vm234_vm7, %v1479_v32  ;;  %1804 = vst.msk [vmem:[#allocation2 + $0x98] sm:$0xf] %vm234_vm7, %v1488_v18  ;;  %2584 = vrot.lane.b32.xlu1 %v2417_v14, %s16826_s8  ;;  %v2418_v61 = vshrl.u32 %v17688_v27, 16  ;;  %v2422_v45 = vshll.u32 %v17752_v5, 16  ;;  %v17785_v50 = vadd.f32 %v17533_v8, %v356_v56  ;;  %6009 = vmatpush1.bf16.msra.mxu1 %v16289_v25 }
 0x15a   : > { %v5479_v49 = vld [vmem:[#allocation3 + $0x110] sm:$0xff]  ;;  %v1493_v41 = vrot.slane %v1491_v58, 7  ;;  %v1518_v1 = vshrl.u32 %v15215_v34, 16  ;;  %v1521_v13 = vshll.u32 %v15215_v34, 16  ;;  %v5341_v38 = vrot.slane %v17762_v43, 1  ;;  %v17791_v32 = vld [vmem:[#allocation2 + $0x70] sm:$0xff]   ;;  %6010 = vmatprep.subr.bf16.mxu1 %v22767_v19 }
 0x15b   : > { %15602 = vmatprep.mubr.msk.bf16.mxu0 %vm2072_vm14, %v5479_v49  ;;  %22792 = vst [vmem:[#allocation44_spill] sm:$0xff] %v17785_v50  ;;  %v17793_v18 = vld [vmem:[#allocation2 + $0x68] sm:$0xff]   ;;  %v15214_v27 = vpack.c.bf16 %v963_v23, %v963_v23  ;;  %v2420_v49 = vor.u32 %v2418_v61, %v2416_v0  ;;  %v2424_v14 = vrot.slane %v2422_v45, 1  ;;  %v966_v8 = vmax.f32 %v17785_v50, 0.0  ;;  %v17797_v56 = vpop.f32.mrb[53].mxu1  ;;  %v16294_v43 = vld [vmem:[%s22595_s3 + $0x78] sm:$0xff]  }
 0x15c   : > { %v1496_v58 = vor.u32 %v1494_v16, %v1493_v41  ;;  %v1498_v34 = vrot.slane %v1493_v41, 4  ;;  %v17802_v15 = vrot.slane %v1518_v1, 7  ;;  %v5342_v40 = vsel %vm2897_vm13, %v5339_v48, %v5341_v38  ;;  %v17805_v63 = vpop.f32.mrb[54].mxu1  ;;  %v16297_v23 = vld [vmem:[#allocation2 + $0x10] sm:$0xff]   ;;  %v358_v16 = vld [vmem:[%s22594_s2 + $0x158] sm:$0xff] }
 0x15d   : > { %v1507_v0 = vrot.slane %v17750_v26, 4  ;;  %v1509_v61 = vshrl.u32 %v15214_v27, 16  ;;  %v2425_v45 = vsel %vm2317_vm12, %v2420_v49, %v2424_v14  ;;  %v15217_v50 = vpack.c.bf16 %v966_v8, %v966_v8  ;;  %5423 = vst.msk [vmem:[#allocation3 + $0x160] sm:$0xff] %vm2072_vm14, %v5342_v40  ;;  %v17813_v41 = vpop.f32.mrb[55].mxu1  ;;  %2075 = vst.msk [vmem:[#allocation3 + $0x50] sm:$0xff] %vm2072_vm14, %v16297_v23  ;;  %v16301_v8 = vld [vmem:[#allocation2 + $0x18] sm:$0xff]   ;;  %6011 = vmatpush1.bf16.msra.mxu1 %v16294_v43 }
 0x15e   : > { %v1497_v48 = vsel %vm17104_vm11, %v1489_v39, %v1496_v58  ;;  %v1506_v26 = vsel %vm17104_vm11, %v1498_v34, %v1505_v42  ;;  %v1523_v25 = vor.u32 %v1521_v13, %v17802_v15  ;;  %v1512_v49 = vshll.u32 %v15214_v27, 16  ;;  %2586 = vrot.lane.b32.xlu1 %v2425_v45, %s16826_s8  ;;  %v17822_v40 = vpop.f32.mrb[56].mxu1  ;;  %v357_v27 = vld [vmem:[%s22594_s2 + $0x150] sm:$0xff]  ;;  %2076 = vst.msk [vmem:[#allocation3 + $0x78] sm:$0xff] %vm2072_vm14, %v16301_v8 }
 0x15f   : > { %v5484_v1 = vld [vmem:[#allocation3 + $0x138] sm:$0xff]  ;;  %1805 = vst.msk [vmem:[#allocation2 + $0x9c] sm:$0xf] %vm234_vm7, %v1497_v48  ;;  %1806 = vst.msk [vmem:[#allocation2 + $0xa0] sm:$0xf] %vm234_vm7, %v1506_v26  ;;  %v1511_v39 = vrot.slane %v1509_v61, 7  ;;  %v17829_v13 = vadd.f32 %v17543_v36, %v355_v54  ;;  %v17837_v45 = vadd.f32 %v17575_v3, %v358_v16  ;;  %6253 = vmatprep.subr.bf16.mxu1 %v22767_v19 }
 0x160   : > { %15603 = vmatmul.mubr.msk.bf16.gmra.mrb[12].mxu0 %vm2072_vm14, %v5484_v1  ;;  %v1536_v58 = vshrl.u32 %v15217_v50, 16  ;;  %v1539_v42 = vshll.u32 %v15217_v50, 16  ;;  %v2426_v34 = vshrl.u32 %v17752_v5, 16  ;;  %v2430_v23 = vshll.u32 %v17791_v32, 16  ;;  %v360_v50 = vld [vmem:[%s22594_s2 + $0x168] sm:$0xff]  ;;  %v17843_v61 = vld [vmem:[#allocation2 + $0x70] sm:$0xff]  }
 0x161   : > { %22793 = vst [vmem:[#allocation45_spill] sm:$0xff] %v17829_v13  ;;  %22794 = vst [vmem:[#allocation46_spill] sm:$0xff] %v17837_v45  ;;  %v5343_v48 = vrot.slane %v17793_v18, 1  ;;  %v1514_v36 = vor.u32 %v1512_v49, %v1511_v39  ;;  %v1516_v54 = vrot.slane %v1511_v39, 4  ;;  %v965_v5 = vmax.f32 %v17829_v13, 0.0  ;;  %v17849_v1 = vld [vmem:[#allocation2 + $0x78] sm:$0xff]  }
 0x162   : > { %v17846_v26 = vrot.slane %v1536_v58, 7  ;;  %v2428_v3 = vor.u32 %v2426_v34, %v2424_v14  ;;  %v2432_v18 = vrot.slane %v2430_v23, 1  ;;  %v968_v16 = vmax.f32 %v17837_v45, 0.0  ;;  %v359_v14 = vld [vmem:[%s22594_s2 + $0x160] sm:$0xff]  ;;  %v17864_v58 = vpop.f32.mrb[57].mxu1 }
 0x163   : > { %v5344_v7 = vsel %vm2897_vm13, %v5341_v38, %v5343_v48  ;;  %v1525_v43 = vrot.slane %v17802_v15, 4  ;;  %v1515_v49 = vsel %vm17104_vm11, %v1507_v0, %v1514_v36  ;;  %v1524_v8 = vsel %vm17104_vm11, %v1516_v54, %v1523_v25 }
 0x164   : > { %v1541_v39 = vor.u32 %v1539_v42, %v17846_v26  ;;  %5424 = vst.msk [vmem:[#allocation3 + $0x188] sm:$0xff] %vm2072_vm14, %v5344_v7  ;;  %v5489_v15 = vld [vmem:[#allocation3 + $0x160] sm:$0xff]  ;;  %v15216_v38 = vpack.c.bf16 %v965_v5, %v965_v5  ;;  %v2433_v0 = vsel %vm2317_vm12, %v2428_v3, %v2432_v18  ;;  %v15219_v34 = vpack.c.bf16 %v968_v16, %v968_v16  ;;  %v362_v7 = vld [vmem:[%s22594_s2 + $0x178] sm:$0xff]  ;;  %v17875_v42 = vpop.f32.mrb[58].mxu1 }
 0x165   : > { %1807 = vst.msk [vmem:[#allocation2 + $0xa4] sm:$0xf] %vm234_vm7, %v1515_v49  ;;  %1808 = vst.msk [vmem:[#allocation2 + $0xa8] sm:$0xf] %vm234_vm7, %v1524_v8  ;;  %v17870_v25 = vadd.f32 %v17579_v46, %v357_v27  ;;  %15606 = vmatprep.mubr.msk.bf16.mxu0 %vm2072_vm14, %v5489_v15  ;;  %2588 = vrot.lane.b32.xlu1 %v2433_v0, %s16826_s8  ;;  %v2434_v23 = vshrl.u32 %v17791_v32, 16  ;;  %v2438_v36 = vshll.u32 %v17849_v1, 16 }
 0x166   : > { %v17882_v54 = vadd.f32 %v17610_v33, %v360_v50  ;;  %v22628_v46 = vrot.slane %v17843_v61, 1  ;;  %v17885_v27 = vpop.f32.mrb[59].mxu1  ;;  %v1527_v5 = vshrl.u32 %v15216_v38, 16  ;;  %v1530_v3 = vshll.u32 %v15216_v38, 16 }
 0x167   : > { %22795 = vst [vmem:[#allocation47_spill] sm:$0xff] %v17870_v25  ;;  %v1554_v16 = vshrl.u32 %v15219_v34, 16  ;;  %v1557_v49 = vshll.u32 %v15219_v34, 16  ;;  %v967_v8 = vmax.f32 %v17870_v25, 0.0  ;;  %v2436_v15 = vor.u32 %v2434_v23, %v2432_v18  ;;  %v17905_v23 = vld [vmem:[#allocation2 + $0x78] sm:$0xff]  }
 0x168   : > { %22796 = vst [vmem:[#allocation48_spill] sm:$0xff] %v17882_v54  ;;  %v17888_v13 = vrot.slane %v2438_v36, 1  ;;  %v970_v32 = vmax.f32 %v17882_v54, 0.0  ;;  %v1529_v0 = vrot.slane %v1527_v5, 7  ;;  %v5346_v33 = vsel %vm2897_vm13, %v5343_v48, %v22628_v46  ;;  %v361_v36 = vld [vmem:[%s22594_s2 + $0x170] sm:$0xff] }
 0x169   : > { %v17891_v45 = vrot.slane %v1554_v16, 7  ;;  %v17897_v50 = vadd.f32 %v17618_v6, %v359_v14  ;;  %v15218_v38 = vpack.c.bf16 %v967_v8, %v967_v8  ;;  %5425 = vst.msk [vmem:[#allocation3 + $0x1b0] sm:$0xff] %vm2072_vm14, %v5346_v33  ;;  %v17903_v18 = vadd.f32 %v17654_v12, %v362_v7  ;;  %v17913_v8 = vld [vmem:[#allocation2 + $0x80] sm:$0xff]   ;;  %v14644_v54 = vld [vmem:[%s16887_s28 + $0x390] sm:$0xff] }
 0x16a   : > { %v2441_v34 = vsel %vm2317_vm12, %v2436_v15, %v17888_v13  ;;  %v15221_v25 = vpack.c.bf16 %v970_v32, %v970_v32  ;;  %v1543_v48 = vrot.slane %v17846_v26, 4  ;;  %v1532_v6 = vor.u32 %v1530_v3, %v1529_v0 }
 0x16b   : > { %22797 = vst [vmem:[#allocation49_spill] sm:$0xff] %v17897_v50  ;;  %22798 = vst [vmem:[#allocation50_spill] sm:$0xff] %v17903_v18  ;;  %v1534_v14 = vrot.slane %v1529_v0, 4  ;;  %v1559_v5 = vor.u32 %v1557_v49, %v17891_v45  ;;  %v5494_v16 = vld [vmem:[#allocation3 + $0x188] sm:$0xff]  ;;  %2590 = vrot.lane.b32.xlu1 %v2441_v34, %s16826_s8  ;;  %v1545_v12 = vshrl.u32 %v15218_v38, 16  ;;  %v1548_v7 = vshll.u32 %v15218_v38, 16 }
 0x16c   : > { %15607 = vmatmul.mubr.msk.bf16.gmra.mrb[16].mxu0 %vm2072_vm14, %v5494_v16  ;;  %v1572_v15 = vshrl.u32 %v15221_v25, 16  ;;  %v1575_v32 = vshll.u32 %v15221_v25, 16  ;;  %v1533_v33 = vsel %vm17104_vm11, %v1525_v43, %v1532_v6  ;;  %v969_v3 = vmax.f32 %v17897_v50, 0.0  ;;  %v16244_v49 = vld [vmem:[#allocation2 + $0x84] sm:$0xff]  }
 0x16d   : > { %v1542_v26 = vsel %vm17104_vm11, %v1534_v14, %v1541_v39  ;;  %v972_v0 = vmax.f32 %v17903_v18, 0.0  ;;  %1809 = vst.msk [vmem:[#allocation2 + $0xac] sm:$0xf] %vm234_vm7, %v1533_v33  ;;  %v1547_v34 = vrot.slane %v1545_v12, 7  ;;  %v5347_v25 = vrot.slane %v17905_v23, 1  ;;  %v17930_v43 = vld [vmem:[#allocation2 + $0x80] sm:$0xff]  }
 0x16e   : > { %1810 = vst.msk [vmem:[#allocation2 + $0xb0] sm:$0xf] %vm234_vm7, %v1542_v26  ;;  %v17924_v16 = vrot.slane %v1572_v15, 7  ;;  %v17928_v38 = vadd.f32 %v17691_v60, %v361_v36  ;;  %v1561_v39 = vrot.slane %v17891_v45, 4  ;;  %v15220_v6 = vpack.c.bf16 %v969_v3, %v969_v3  ;;  %v364_v12 = vld [vmem:[%s22594_s2 + $0x188] sm:$0xff] }
 0x16f   : > { %3259 = vrot.lane.b32.xlu1 %v16244_v49, %s16826_s8  ;;  %v15223_v14 = vpack.c.bf16 %v972_v0, %v972_v0  ;;  %v2446_v33 = vshll.u32 %v17913_v8, 16  ;;  %v1550_v15 = vor.u32 %v1548_v7, %v1547_v34  ;;  %v1552_v26 = vrot.slane %v1547_v34, 4  ;;  %v363_v49 = vld [vmem:[%s22594_s2 + $0x180] sm:$0xff] }
 0x170   : > { %22799 = vst [vmem:[#allocation51_spill] sm:$0xff] %v17928_v38  ;;  %v1577_v23 = vor.u32 %v1575_v32, %v17924_v16  ;;  %v2442_v60 = vshrl.u32 %v17849_v1, 16  ;;  %v5499_v36 = vld [vmem:[#allocation3 + $0x1b0] sm:$0xff]  ;;  %v1563_v46 = vshrl.u32 %v15220_v6, 16  ;;  %v1566_v50 = vshll.u32 %v15220_v6, 16 }
 0x171   : > { %v1590_v45 = vshrl.u32 %v15223_v14, 16  ;;  %v1593_v3 = vshll.u32 %v15223_v14, 16  ;;  %v1551_v0 = vsel %vm17104_vm11, %v1543_v48, %v1550_v15  ;;  %v1560_v7 = vsel %vm17104_vm11, %v1552_v26, %v1559_v5  ;;  %15610 = vmatprep.mubr.msk.bf16.mxu0 %vm2072_vm14, %v5499_v36  ;;  %v16305_v6 = vld [vmem:[#allocation2 + $0x20] sm:$0xff]  }
 0x172   : > { %v22800_v32 = vrot.slane %v17843_v61, 1  ;;  %v971_v34 = vmax.f32 %v17928_v38, 0.0  ;;  %1811 = vst.msk [vmem:[#allocation2 + $0xb4] sm:$0xf] %vm234_vm7, %v1551_v0  ;;  %1812 = vst.msk [vmem:[#allocation2 + $0xb8] sm:$0xf] %vm234_vm7, %v1560_v7  ;;  %v2444_v48 = vor.u32 %v2442_v60, %v17888_v13  ;;  %v17961_v61 = vadd.f32 %v17701_v62, %v364_v12 }
 0x173   : > { %v1565_v14 = vrot.slane %v1563_v46, 7  ;;  %v17954_v18 = vrot.slane %v1590_v45, 7  ;;  %v17958_v5 = vrot.slane %v2446_v33, 1  ;;  %v5349_v26 = vrot.slane %v17930_v43, 1  ;;  %v17967_v0 = vld [vmem:[#allocation2 + $0x88] sm:$0xff]   ;;  %2077 = vst.msk [vmem:[#allocation3 + $0xa0] sm:$0xff] %vm2072_vm14, %v16305_v6 }
 0x174   : > { %v5348_v1 = vsel %vm2897_vm13, %v22800_v32, %v5347_v25  ;;  %v15222_v15 = vpack.c.bf16 %v971_v34, %v971_v34  ;;  %22801 = vst [vmem:[#allocation52_spill] sm:$0xff] %v17961_v61  ;;  %v17965_v36 = vadd.f32 %v17712_v24, %v363_v49  ;;  %v1579_v46 = vrot.slane %v17924_v16, 4  ;;  %v366_v62 = vld [vmem:[%s22594_s2 + $0x198] sm:$0xff]  ;;  %v17975_v33 = vld [vmem:[#allocation2 + $0x88] sm:$0xff]  }
 0x175   : > { %5426 = vst.msk [vmem:[#allocation3 + $0x1d8] sm:$0xff] %vm2072_vm14, %v5348_v1  ;;  %v1568_v45 = vor.u32 %v1566_v50, %v1565_v14  ;;  %v1570_v7 = vrot.slane %v1565_v14, 4  ;;  %v1595_v13 = vor.u32 %v1593_v3, %v17954_v18  ;;  %v2449_v24 = vsel %vm2317_vm12, %v2444_v48, %v17958_v5  ;;  %v365_v50 = vld [vmem:[%s22594_s2 + $0x190] sm:$0xff]  ;;  %v16311_v34 = vld [vmem:[#allocation2 + $0x28] sm:$0xff]  }
 0x176   : > { %22802 = vst [vmem:[#allocation53_spill] sm:$0xff] %v17965_v36  ;;  %v1581_v43 = vshrl.u32 %v15222_v15, 16  ;;  %v1584_v12 = vshll.u32 %v15222_v15, 16  ;;  %v974_v60 = vmax.f32 %v17961_v61, 0.0  ;;  %2592 = vrot.lane.b32.xlu1 %v2449_v24, %s16826_s8  ;;  %v5350_v49 = vsel %vm2897_vm13, %v5347_v25, %v5349_v26  ;;  %v16250_v1 = vld [vmem:[#allocation2 + $0x8c] sm:$0xff]   ;;  %2078 = vst.msk [vmem:[#allocation3 + $0xc8] sm:$0xff] %vm2072_vm14, %v16311_v34 }
 0x177   : > { %v1569_v16 = vsel %vm17104_vm11, %v1561_v39, %v1568_v45  ;;  %v1578_v3 = vsel %vm17104_vm11, %v1570_v7, %v1577_v23  ;;  %v973_v32 = vmax.f32 %v17965_v36, 0.0  ;;  %5427 = vst.msk [vmem:[#allocation3 + $0x200] sm:$0xff] %vm2072_vm14, %v5350_v49  ;;  %v17994_v39 = vadd.f32 %v17722_v22, %v366_v62  ;;  %v14642_v61 = vld [vmem:[%s16887_s28 + $0x380] sm:$0xff] }
 0x178   : > { %1813 = vst.msk [vmem:[#allocation2 + $0xbc] sm:$0xf] %vm234_vm7, %v1569_v16  ;;  %1814 = vst.msk [vmem:[#allocation2 + $0xc0] sm:$0xf] %vm234_vm7, %v1578_v3  ;;  %v1583_v6 = vrot.slane %v1581_v43, 7  ;;  %v15225_v14 = vpack.c.bf16 %v974_v60, %v974_v60  ;;  %v5351_v23 = vrot.slane %v17967_v0, 1  ;;  %v17999_v15 = vadd.f32 %v17735_v28, %v365_v50 }
 0x179   : > { %22803 = vst [vmem:[#allocation54_spill] sm:$0xff] %v17994_v39  ;;  %v1597_v48 = vrot.slane %v17954_v18, 4  ;;  %v15224_v25 = vpack.c.bf16 %v973_v32, %v973_v32  ;;  %v2454_v45 = vshll.u32 %v17975_v33, 16  ;;  %v2450_v16 = vshrl.u32 %v17913_v8, 16 }
 0x17a   : > { %22804 = vst [vmem:[#allocation55_spill] sm:$0xff] %v17999_v15  ;;  %v1586_v43 = vor.u32 %v1584_v12, %v1583_v6  ;;  %v1588_v24 = vrot.slane %v1583_v6, 4  ;;  %v1608_v60 = vshrl.u32 %v15225_v14, 16  ;;  %v1611_v22 = vshll.u32 %v15225_v14, 16  ;;  %3261 = vrot.lane.b32.xlu1 %v16250_v1, %s16826_s8  ;;  %v368_v12 = vld [vmem:[%s22594_s2 + $0x1a8] sm:$0xff]  ;;  %v16254_v6 = vld [vmem:[#allocation2 + $0x90] sm:$0xff]  }
 0x17b   : > { %v1599_v62 = vshrl.u32 %v15224_v25, 16  ;;  %v976_v18 = vmax.f32 %v17994_v39, 0.0  ;;  %v5352_v28 = vsel %vm2897_vm13, %v5349_v26, %v5351_v23  ;;  %v975_v49 = vmax.f32 %v17999_v15, 0.0 }
 0x17c   : > { %v5504_v7 = vld [vmem:[#allocation3 + $0x1d8] sm:$0xff]  ;;  %v1587_v50 = vsel %vm17104_vm11, %v1579_v46, %v1586_v43  ;;  %v1596_v8 = vsel %vm17104_vm11, %v1588_v24, %v1595_v13  ;;  %v1610_v3 = vrot.slane %v1608_v60, 7  ;;  %5428 = vst.msk [vmem:[#allocation3 + $0x228] sm:$0xff] %vm2072_vm14, %v5352_v28  ;;  %v1602_v32 = vshll.u32 %v15224_v25, 16  ;;  %v370_v24 = vld [vmem:[%s22594_s2 + $0x1b8] sm:$0xff] }
 0x17d   : > { %15611 = vmatmul.mubr.msk.bf16.gmra.mrb[20].mxu0 %vm2072_vm14, %v5504_v7  ;;  %1815 = vst.msk [vmem:[#allocation2 + $0xc4] sm:$0xf] %vm234_vm7, %v1587_v50  ;;  %1816 = vst.msk [vmem:[#allocation2 + $0xc8] sm:$0xf] %vm234_vm7, %v1596_v8  ;;  %v1601_v26 = vrot.slane %v1599_v62, 7  ;;  %v15227_v1 = vpack.c.bf16 %v976_v18, %v976_v18  ;;  %v18021_v34 = vrot.slane %v2454_v45, 1  ;;  %v15226_v14 = vpack.c.bf16 %v975_v49, %v975_v49 }
 0x17e   : > { %v367_v46 = vld [vmem:[%s22594_s2 + $0x1a0] sm:$0xff]  ;;  %v1613_v13 = vor.u32 %v1611_v22, %v1610_v3  ;;  %v2452_v7 = vor.u32 %v2450_v16, %v17958_v5  ;;  %v18028_v43 = vadd.f32 %v17771_v53, %v368_v12  ;;  %v18033_v25 = vld [vmem:[#allocation2 + $0x98] sm:$0xff]   ;;  %v5509_v45 = vld [vmem:[#allocation3 + $0x200] sm:$0xff]  ;;  %v5353_v49 = vrot.slane %v16254_v6, 1 }
 0x17f   : > { %v1604_v60 = vor.u32 %v1602_v32, %v1601_v26  ;;  %v1606_v62 = vrot.slane %v1601_v26, 4  ;;  %v1626_v18 = vshrl.u32 %v15227_v1, 16  ;;  %v1629_v28 = vshll.u32 %v15227_v1, 16  ;;  %15614 = vmatprep.mubr.msk.bf16.mxu0 %vm2072_vm14, %v5509_v45  ;;  %v18046_v26 = vpop.permute.xlu0 %3229 }
 0x180   : > { %22805 = vst [vmem:[#allocation56_spill] sm:$0xff] %v18028_v43  ;;  %v1617_v22 = vshrl.u32 %v15226_v14, 16  ;;  %v1620_v50 = vshll.u32 %v15226_v14, 16  ;;  %v2457_v5 = vsel %vm2317_vm12, %v2452_v7, %v18021_v34  ;;  %v978_v53 = vmax.f32 %v18028_v43, 0.0 }
 0x181   : > { %v1605_v16 = vsel %vm17104_vm11, %v1597_v48, %v1604_v60  ;;  %v1614_v12 = vsel %vm17104_vm11, %v1606_v62, %v1613_v13  ;;  %v18043_v8 = vrot.slane %v1626_v18, 7  ;;  %2594 = vrot.lane.b32.xlu1 %v2457_v5, %s16826_s8  ;;  %v18051_v14 = vadd.f32 %v17797_v56, %v367_v46  ;;  %v16256_v48 = vld [vmem:[#allocation2 + $0x94] sm:$0xff]  }
 0x182   : > { %1817 = vst.msk [vmem:[#allocation2 + $0xcc] sm:$0xf] %vm234_vm7, %v1605_v16  ;;  %1818 = vst.msk [vmem:[#allocation2 + $0xd0] sm:$0xf] %vm234_vm7, %v1614_v12  ;;  %v1619_v32 = vrot.slane %v1617_v22, 7  ;;  %v15229_v1 = vpack.c.bf16 %v978_v53, %v978_v53  ;;  %v18054_v7 = vadd.f32 %v17805_v63, %v370_v24  ;;  %v369_v13 = vld [vmem:[%s22594_s2 + $0x1b0] sm:$0xff]  ;;  %v5354_v62 = vsel %vm2897_vm13, %v5351_v23, %v5353_v49 }
 0x183   : > { %22806 = vst [vmem:[#allocation57_spill] sm:$0xff] %v18051_v14  ;;  %v1615_v6 = vrot.slane %v1610_v3, 4  ;;  %v1631_v45 = vor.u32 %v1629_v28, %v18043_v8  ;;  %v5514_v60 = vld [vmem:[#allocation3 + $0x228] sm:$0xff]  ;;  %v5355_v18 = vrot.slane %v18033_v25, 1  ;;  %5429 = vst.msk [vmem:[#allocation3 + $0x250] sm:$0xff] %vm2072_vm14, %v5354_v62  ;;  %v977_v3 = vmax.f32 %v18051_v14, 0.0 }
 0x184   : > { %22807 = vst [vmem:[#allocation58_spill] sm:$0xff] %v18054_v7  ;;  %v18064_v56 = vld [vmem:[#allocation2 + $0x90] sm:$0xff]   ;;  %v1622_v63 = vor.u32 %v1620_v50, %v1619_v32  ;;  %v1624_v46 = vrot.slane %v1619_v32, 4  ;;  %v1644_v24 = vshrl.u32 %v15229_v1, 16  ;;  %v1647_v22 = vshll.u32 %v15229_v1, 16  ;;  %v372_v28 = vld [vmem:[%s22594_s2 + $0x1c8] sm:$0xff] }
 0x185   : > { %15615 = vmatmul.mubr.msk.bf16.gmra.mrb[24].mxu0 %vm2072_vm14, %v5514_v60  ;;  %3263 = vrot.lane.b32.xlu1 %v16256_v48, %s16826_s8  ;;  %v980_v0 = vmax.f32 %v18054_v7, 0.0  ;;  %v5356_v23 = vsel %vm2897_vm13, %v5353_v49, %v5355_v18  ;;  %v18073_v25 = vadd.f32 %v17813_v41, %v369_v13  ;;  %v18078_v50 = vld [vmem:[#allocation2 + $0xa0] sm:$0xff]   ;;  %v2458_v12 = vshrl.u32 %v17975_v33, 16  ;;  %v18092_v48 = vpop.permute.xlu0 %2562  ;;  %v16314_v13 = vld [vmem:[#allocation2 + $0x30] sm:$0xff]   ;;  %v1829_v7 = vld [vmem:[#allocation2 + $0xfc] sm:$0x1] }
 0x186   : > { %v1623_v5 = vsel %vm17104_vm11, %v1615_v6, %v1622_v63  ;;  %v1632_v53 = vsel %vm17104_vm11, %v1624_v46, %v1631_v45  ;;  %v18084_v16 = vrot.slane %v1644_v24, 7  ;;  %5430 = vst.msk [vmem:[#allocation3 + $0x278] sm:$0xff] %vm2072_vm14, %v5356_v23  ;;  %v15228_v41 = vpack.c.bf16 %v977_v3, %v977_v3  ;;  %v371_v24 = vld [vmem:[%s22594_s2 + $0x1c0] sm:$0xff]  ;;  %v374_v3 = vld [vmem:[%s22594_s2 + $0x1d8] sm:$0xff]  ;;  %2079 = vst.msk [vmem:[#allocation3 + $0xf0] sm:$0xff] %vm2072_vm14, %v16314_v13 }
 0x187   : > { %22808 = vst [vmem:[#allocation59_spill] sm:$0xff] %v18073_v25  ;;  %1819 = vst.msk [vmem:[#allocation2 + $0xd4] sm:$0xf] %vm234_vm7, %v1623_v5  ;;  %v15231_v49 = vpack.c.bf16 %v980_v0, %v980_v0  ;;  %v979_v32 = vmax.f32 %v18073_v25, 0.0  ;;  %v2462_v1 = vshll.u32 %v18064_v56, 16  ;;  %v1633_v6 = vrot.slane %v18043_v8, 4  ;;  %v18106_v0 = vpop.permute.xlu1 %3231 }
 0x188   : > { %1820 = vst.msk [vmem:[#allocation2 + $0xd8] sm:$0xf] %vm234_vm7, %v1632_v53  ;;  %v1649_v45 = vor.u32 %v1647_v22, %v18084_v16  ;;  %v18097_v60 = vadd.f32 %v17822_v40, %v372_v28  ;;  %v1635_v33 = vshrl.u32 %v15228_v41, 16  ;;  %v2460_v46 = vor.u32 %v2458_v12, %v18021_v34 }
 0x189   : > { %v1662_v62 = vshrl.u32 %v15231_v49, 16  ;;  %v15230_v63 = vpack.c.bf16 %v979_v32, %v979_v32  ;;  %v1638_v8 = vshll.u32 %v15228_v41, 16  ;;  %v18109_v40 = vrot.slane %v2462_v1, 1  ;;  %v18115_v32 = vld [vmem:[#allocation2 + $0xa8] sm:$0xff]   ;;  %v18117_v25 = vpop.permute.xlu0 %3233  ;;  %2653 = vst.msk [vmem:[#allocation3] sm:$0xff] %vm2652_vm15, %v18092_v48 }
 0x18a   : > { %22809 = vst [vmem:[#allocation60_spill] sm:$0xff] %v18097_v60  ;;  %v982_v22 = vmax.f32 %v18097_v60, 0.0  ;;  %v5357_v23 = vrot.slane %v18078_v50, 1  ;;  %v5519_v34 = vld [vmem:[#allocation3 + $0x250] sm:$0xff]  ;;  %v1637_v28 = vrot.slane %v1635_v33, 7  ;;  %v1665_v53 = vshll.u32 %v15231_v49, 16 }
 0x18b   : > { %v18113_v5 = vrot.slane %v1662_v62, 7  ;;  %v1653_v12 = vshrl.u32 %v15230_v63, 16  ;;  %15618 = vmatprep.mubr.msk.bf16.mxu0 %vm2072_vm14, %v5519_v34  ;;  %v2465_v41 = vsel %vm2317_vm12, %v2460_v46, %v18109_v40  ;;  %v18124_v50 = vadd.f32 %v17864_v58, %v371_v24  ;;  %v18876_v21 = vld [vmem:[#allocation2 + $0xcc] sm:$0xff]  }
 0x18c   : > { %v15233_v1 = vpack.c.bf16 %v982_v22, %v982_v22  ;;  %v5358_v13 = vsel %vm2897_vm13, %v5355_v18, %v5357_v23  ;;  %v1651_v33 = vrot.slane %v18084_v16, 4  ;;  %v1640_v62 = vor.u32 %v1638_v8, %v1637_v28  ;;  %2596 = vrot.lane.b32.xlu1 %v2465_v41, %s16826_s8  ;;  %v16262_v18 = vld [vmem:[#allocation2 + $0x9c] sm:$0xff]   ;;  %v373_v16 = vld [vmem:[%s22594_s2 + $0x1d0] sm:$0xff] }
 0x18d   : > { %22810 = vst [vmem:[#allocation61_spill] sm:$0xff] %v18124_v50  ;;  %v1642_v49 = vrot.slane %v1637_v28, 4  ;;  %v5524_v14 = vld [vmem:[#allocation3 + $0x278] sm:$0xff]  ;;  %v1656_v15 = vshll.u32 %v15230_v63, 16  ;;  %5431 = vst.msk [vmem:[#allocation3 + $0x2a0] sm:$0xff] %vm2072_vm14, %v5358_v13  ;;  %v1667_v34 = vor.u32 %v1665_v53, %v18113_v5  ;;  %v1655_v46 = vrot.slane %v1653_v12, 7  ;;  %v18145_v12 = vpop.permute.xlu1 %2564 }
 0x18e   : > { %15619 = vmatmul.mubr.msk.bf16.gmra.mrb[28].mxu0 %vm2072_vm14, %v5524_v14  ;;  %v1680_v22 = vshrl.u32 %v15233_v1, 16  ;;  %v18132_v58 = vadd.f32 %v17875_v42, %v374_v3  ;;  %v1641_v63 = vsel %vm17104_vm11, %v1633_v6, %v1640_v62  ;;  %v981_v8 = vmax.f32 %v18124_v50, 0.0  ;;  %v18143_v28 = vld [vmem:[#allocation2 + $0x98] sm:$0xff]   ;;  %v16266_v53 = vld [vmem:[#allocation2 + $0xb0] sm:$0xff]   ;;  %v18147_v42 = vpop.permute.xlu0 %3235  ;;  %2654 = vst.msk [vmem:[#allocation3 + $0x28] sm:$0xff] %vm2652_vm15, %v18145_v12 }
 0x18f   : > { %v1650_v24 = vsel %vm17104_vm11, %v1642_v49, %v1649_v45  ;;  %v5359_v14 = vrot.slane %v18115_v32, 1  ;;  %1821 = vst.msk [vmem:[#allocation2 + $0xdc] sm:$0xf] %vm234_vm7, %v1641_v63  ;;  %v1658_v3 = vor.u32 %v1656_v15, %v1655_v46  ;;  %v1660_v6 = vrot.slane %v1655_v46, 4  ;;  %v18154_v13 = vld [vmem:[#allocation2 + $0xb8] sm:$0xff]  }
 0x190   : > { %22811 = vst [vmem:[#allocation62_spill] sm:$0xff] %v18132_v58  ;;  %1822 = vst.msk [vmem:[#allocation2 + $0xe0] sm:$0xf] %vm234_vm7, %v1650_v24  ;;  %v18151_v41 = vrot.slane %v1680_v22, 7  ;;  %v984_v45 = vmax.f32 %v18132_v58, 0.0  ;;  %v15232_v32 = vpack.c.bf16 %v981_v8, %v981_v8  ;;  %3265 = vrot.lane.b32.xlu1 %v16262_v18, %s16826_s8  ;;  %v18159_v49 = vadd.f32 %v17885_v27, %v373_v16  ;;  %v18170_v16 = vld [vmem:[#allocation2 + $0xa0] sm:$0xff]  }
 0x191   : > { %v5360_v62 = vsel %vm2897_vm13, %v5357_v23, %v5359_v14  ;;  %v1659_v63 = vsel %vm17104_vm11, %v1651_v33, %v1658_v3  ;;  %v1668_v15 = vsel %vm17104_vm11, %v1660_v6, %v1667_v34  ;;  %v1683_v46 = vshll.u32 %v15233_v1, 16  ;;  %v18177_v6 = vld [vmem:[#allocation2] sm:$0xfe]  }
 0x192   : > { %22812 = vst [vmem:[#allocation63_spill] sm:$0xff] %v18159_v49  ;;  %5432 = vst.msk [vmem:[#allocation3 + $0x2c8] sm:$0xff] %vm2072_vm14, %v5360_v62  ;;  %v1671_v22 = vshrl.u32 %v15232_v32, 16  ;;  %v15235_v18 = vpack.c.bf16 %v984_v45, %v984_v45  ;;  %v983_v23 = vmax.f32 %v18159_v49, 0.0  ;;  %v2466_v27 = vshrl.u32 %v18064_v56, 16  ;;  %v18172_v24 = vpop.permute.xlu0 %3237  ;;  %v18179_v62 = vpop.permute.xlu1 %2566  ;;  %v16317_v49 = vld [vmem:[#allocation2 + $0x38] sm:$0xff]  }
 0x193   : > { %1823 = vst.msk [vmem:[#allocation2 + $0xe4] sm:$0xf] %vm234_vm7, %v1659_v63  ;;  %1824 = vst.msk [vmem:[#allocation2 + $0xe8] sm:$0xf] %vm234_vm7, %v1668_v15  ;;  %v1685_v33 = vor.u32 %v1683_v46, %v18151_v41  ;;  %v2470_v1 = vshll.u32 %v18143_v28, 16  ;;  %v5361_v8 = vrot.slane %v16266_v53, 1 }
 0x194   : > { %v5529_v34 = vld [vmem:[#allocation3 + $0x2a0] sm:$0xff]  ;;  %v5363_v3 = vrot.slane %v18154_v13, 1  ;;  %v1673_v45 = vrot.slane %v1671_v22, 7  ;;  %v1674_v56 = vshll.u32 %v15232_v32, 16  ;;  %v1698_v63 = vshrl.u32 %v15235_v18, 16  ;;  %v16272_v32 = vld [vmem:[#allocation2 + $0xc0] sm:$0xff]  }
 0x195   : > { %15622 = vmatprep.mubr.msk.bf16.mxu0 %vm2072_vm14, %v5529_v34  ;;  %v15234_v15 = vpack.c.bf16 %v983_v23, %v983_v23  ;;  %v2468_v50 = vor.u32 %v2466_v27, %v18109_v40  ;;  %v2472_v46 = vrot.slane %v2470_v1, 1  ;;  %v5362_v36 = vsel %vm2897_vm13, %v5359_v14, %v5361_v8  ;;  %v16275_v22 = vld [vmem:[#allocation2 + $0xc8] sm:$0xff]   ;;  %2080 = vst.msk [vmem:[#allocation3 + $0x118] sm:$0xff] %vm2072_vm14, %v16317_v49 }
 0x196   : > { %v5364_v53 = vsel %vm2897_vm13, %v5361_v8, %v5363_v3  ;;  %v1669_v13 = vrot.slane %v18113_v5, 4  ;;  %v1676_v38 = vor.u32 %v1674_v56, %v1673_v45  ;;  %v1678_v58 = vrot.slane %v1673_v45, 4  ;;  %5433 = vst.msk [vmem:[#allocation3 + $0x2f0] sm:$0xff] %vm2072_vm14, %v5362_v36  ;;  %v18188_v23 = vpop.permute.xlu0 %3239  ;;  %v18192_v5 = vld [vmem:[#allocation2 + $0xd0] sm:$0xff]   ;;  %v2569_v45 = vpop.permute.xlu1 %2568  ;;  %v16268_v56 = vld [vmem:[#allocation2 + $0xa4] sm:$0xff]   ;;  %v16283_v43 = vld [vmem:[#allocation2 + $0xd8] sm:$0xff]  }
 0x197   : > { %v1701_v60 = vshll.u32 %v15235_v18, 16  ;;  %5434 = vst.msk [vmem:[#allocation3 + $0x318] sm:$0xff] %vm2072_vm14, %v5364_v53  ;;  %v1700_v40 = vrot.slane %v1698_v63, 7  ;;  %v1689_v14 = vshrl.u32 %v15234_v15, 16  ;;  %v1692_v27 = vshll.u32 %v15234_v15, 16  ;;  %v18205_v63 = vld [vmem:[#allocation2 + $0x8] sm:$0xff]  }
 0x198   : > { %v2473_v34 = vsel %vm2317_vm12, %v2468_v50, %v2472_v46  ;;  %v1677_v18 = vsel %vm17104_vm11, %v1669_v13, %v1676_v38  ;;  %v1686_v36 = vsel %vm17104_vm11, %v1678_v58, %v1685_v33  ;;  %v2478_v8 = vshll.u32 %v18170_v16, 16  ;;  %v18207_v13 = vld [vmem:[#allocation2 + $0xa8] sm:$0xff]   ;;  %2655 = vst.msk [vmem:[#allocation3 + $0x50] sm:$0xff] %vm2652_vm15, %v18179_v62  ;;  %2656 = vst.msk [vmem:[#allocation3 + $0x78] sm:$0xff] %vm2652_vm15, %v2569_v45  ;;  %v18262_v45 = vld [vmem:[#allocation2 + $0x100] sm:$0xff]  }
 0x199   : > { %v5534_v1 = vld [vmem:[#allocation3 + $0x2c8] sm:$0xff]  ;;  %2598 = vrot.lane.b32.xlu1 %v2473_v34, %s16826_s8  ;;  %v1687_v49 = vrot.slane %v18151_v41, 4  ;;  %1825 = vst.msk [vmem:[#allocation2 + $0xec] sm:$0xf] %vm234_vm7, %v1677_v18  ;;  %1826 = vst.msk [vmem:[#allocation2 + $0xf0] sm:$0xf] %vm234_vm7, %v1686_v36  ;;  %v1703_v58 = vor.u32 %v1701_v60, %v1700_v40 }
 0x19a   : > { %v1705_v50 = vrot.slane %v1700_v40, 4  ;;  %15623 = vmatmul.mubr.msk.bf16.gmra.mrb[32].mxu0 %vm2072_vm14, %v5534_v1  ;;  %v2898_v38 = vrot.slane %v18177_v6, 1  ;;  %v1691_v33 = vrot.slane %v1689_v14, 7  ;;  %v5365_v15 = vrot.slane %v16272_v32, 1  ;;  %v18209_v34 = vld [vmem:[#allocation2 + $0x10] sm:$0xff]   ;;  %v18211_v41 = vpop.permute.xlu0 %3241  ;;  %v18221_v40 = vld [vmem:[#allocation2 + $0xe0] sm:$0xff]  }
 0x19b   : > { %v5367_v53 = vrot.slane %v16275_v22, 1  ;;  %v2474_v36 = vshrl.u32 %v18143_v28, 16  ;;  %v18216_v1 = vrot.slane %v2478_v8, 1  ;;  %v5369_v6 = vrot.slane %v18192_v5, 1  ;;  %v18223_v14 = vld [vmem:[#allocation2 + $0x18] sm:$0xff]   ;;  %v19086_v31 = vld [vmem:[#allocation2 + $0xe4] sm:$0xff]  }
 0x19c   : > { %v1830_v18 = vsel %vm16982_vm6, %v1705_v50, %v1829_v7  ;;  %v1694_v60 = vor.u32 %v1692_v27, %v1691_v33  ;;  %v1696_v32 = vrot.slane %v1691_v33, 4  ;;  %v5366_v22 = vsel %vm2897_vm13, %v5363_v3, %v5365_v15 }
 0x19d   : > { %1831 = vst [vmem:[#allocation2 + $0xfc] sm:$0x1] %v1830_v18  ;;  %3267 = vrot.lane.b32.xlu1 %v16268_v56, %s16826_s8  ;;  %v5539_v39 = vld [vmem:[#allocation3 + $0x2f0] sm:$0xff]  ;;  %v2476_v50 = vor.u32 %v2474_v36, %v2472_v46  ;;  %5435 = vst.msk [vmem:[#allocation3 + $0x340] sm:$0xff] %vm2072_vm14, %v5366_v22  ;;  %v5368_v28 = vsel %vm2897_vm13, %v5365_v15, %v5367_v53  ;;  %v5370_v5 = vsel %vm2897_vm13, %v5367_v53, %v5369_v6  ;;  %v2571_v46 = vpop.permute.xlu1 %2570  ;;  %v18254_v15 = vld [vmem:[#allocation2 + $0x28] sm:$0xff]  }
 0x19e   : > { %v5544_v7 = vld [vmem:[#allocation3 + $0x318] sm:$0xff]  ;;  %v1695_v27 = vsel %vm17104_vm11, %v1687_v49, %v1694_v60  ;;  %v1704_v8 = vsel %vm17104_vm11, %v1696_v32, %v1703_v58  ;;  %15626 = vmatprep.mubr.msk.bf16.mxu0 %vm2072_vm14, %v5539_v39  ;;  %5436 = vst.msk [vmem:[#allocation3 + $0x368] sm:$0xff] %vm2072_vm14, %v5368_v28  ;;  %5437 = vst.msk [vmem:[#allocation3 + $0x390] sm:$0xff] %vm2072_vm14, %v5370_v5  ;;  %v2899_v3 = vrot.slane %v18205_v63, 1  ;;  %v18236_v56 = vpop.permute.xlu0 %3243  ;;  %v2486_v58 = vshll.u32 %v18207_v13, 16  ;;  %v18264_v53 = vld [vmem:[#allocation2 + $0x30] sm:$0xff]  }
 0x19f   : > { %1827 = vst.msk [vmem:[#allocation2 + $0xf4] sm:$0xf] %vm234_vm7, %v1695_v27  ;;  %1828 = vst.msk [vmem:[#allocation2 + $0xf8] sm:$0xf] %vm234_vm7, %v1704_v8  ;;  %v2481_v49 = vsel %vm2317_vm12, %v2476_v50, %v18216_v1  ;;  %v5371_v39 = vrot.slane %v16283_v43, 1  ;;  %v16298_v63 = vld [vmem:[#allocation2 + $0x20] sm:$0xff]  }
 0x1a0   : > { %2657 = vst.msk [vmem:[#allocation3 + $0xa0] sm:$0xff] %vm2652_vm15, %v2571_v46  ;;  %v2900_v33 = vsel %vm2897_vm13, %v2898_v38, %v2899_v3  ;;  %v2901_v43 = vrot.slane %v18209_v34, 1  ;;  %v5373_v12 = vrot.slane %v18221_v40, 1  ;;  %v18260_v62 = vld [vmem:[#allocation2 + $0xe8] sm:$0xff]   ;;  %v16320_v18 = vld [vmem:[#allocation2 + $0x40] sm:$0xff]   ;;  %v2482_v34 = vshrl.u32 %v18170_v16, 16 }
 0x1a1   : > { %2600 = vrot.lane.b32.xlu1 %v2481_v49, %s16826_s8  ;;  %2989 = vst.msk [vmem:[#allocation3 + $0x8] sm:$0xff] %vm2072_vm14, %v2900_v33  ;;  %v5372_v48 = vsel %vm2897_vm13, %v5369_v6, %v5371_v39  ;;  %v16274_v38 = vld [vmem:[#allocation2 + $0xac] sm:$0xff]   ;;  %v2903_v60 = vrot.slane %v18223_v14, 1  ;;  %v18276_v22 = vrot.slane %v2486_v58, 1  ;;  %v5375_v16 = vrot.slane %v18260_v62, 1  ;;  %2081 = vst.msk [vmem:[#allocation3 + $0x140] sm:$0xff] %vm2072_vm14, %v16320_v18 }
 0x1a2   : > { %15627 = vmatmul.mubr.msk.bf16.gmra.mrb[36].mxu0 %vm2072_vm14, %v5544_v7  ;;  %3319 = vst.msk [vmem:[#allocation3 + $0x8] sm:$0xff] %vm2652_vm15, %v18046_v26  ;;  %v18270_v36 = vld [vmem:[#allocation2 + $0xb0] sm:$0xff]   ;;  %v2902_v6 = vsel %vm2897_vm13, %v2899_v3, %v2901_v43  ;;  %v18274_v32 = vpop.permute.xlu0 %3245  ;;  %v5374_v40 = vsel %vm2897_vm13, %v5371_v39, %v5373_v12  ;;  %v2905_v7 = vrot.slane %v16298_v63, 1  ;;  %v16308_v26 = vld [vmem:[#allocation2 + $0x108] ss:$0 sps:$4 sm:$0x11]   ;;  %v2484_v8 = vor.u32 %v2482_v34, %v18216_v1 }
 0x1a3   : > { %5438 = vst.msk [vmem:[#allocation3 + $0x3b8] sm:$0xff] %vm2072_vm14, %v5372_v48  ;;  %2990 = vst.msk [vmem:[#allocation3 + $0x30] sm:$0xff] %vm2072_vm14, %v2902_v6  ;;  %v2904_v14 = vsel %vm2897_vm13, %v2901_v43, %v2903_v60  ;;  %v2907_v28 = vrot.slane %v18254_v15, 1  ;;  %v2573_v5 = vpop.permute.xlu1 %2572  ;;  %v18288_v27 = vld [vmem:[#allocation2 + $0x38] sm:$0xff]   ;;  %v5376_v3 = vsel %vm2897_vm13, %v5373_v12, %v5375_v16  ;;  %v18298_v49 = vld [vmem:[#allocation2 + $0x40] sm:$0xff]   ;;  %v2494_v63 = vshll.u32 %v18270_v36, 16 }
 0x1a4   : > { %v5549_v50 = vld [vmem:[#allocation3 + $0x340] sm:$0xff]  ;;  %3320 = vst.msk [vmem:[#allocation3 + $0x30] sm:$0xff] %vm2652_vm15, %v18106_v0  ;;  %v2906_v46 = vsel %vm2897_vm13, %v2903_v60, %v2905_v7  ;;  %v18295_v0 = vld [vmem:[#allocation2 + $0x108] ss:$0 sps:$4 sm:$0x11]   ;;  %2658 = vst.msk [vmem:[#allocation3 + $0xc8] sm:$0xff] %vm2652_vm15, %v2573_v5  ;;  %v2489_v43 = vsel %vm2317_vm12, %v2484_v8, %v18276_v22 }
 0x1a5   : > { %3269 = vrot.lane.b32.xlu1 %v16274_v38, %s16826_s8  ;;  %5439 = vst.msk [vmem:[#allocation3 + $0x3e0] sm:$0xff] %vm2072_vm14, %v5374_v40  ;;  %15630 = vmatprep.mubr.msk.bf16.mxu0 %vm2072_vm14, %v5549_v50  ;;  %2991 = vst.msk [vmem:[#allocation3 + $0x58] sm:$0xff] %vm2072_vm14, %v2904_v14  ;;  %v5554_v58 = vld [vmem:[#allocation3 + $0x368] sm:$0xff]  ;;  %v5559_v39 = vld [vmem:[#allocation3 + $0x390] sm:$0xff]  ;;  %v2908_v1 = vsel %vm2897_vm13, %v2905_v7, %v2907_v28  ;;  %v5381_v48 = vrot.slane %v18262_v45, 1  ;;  %v2909_v12 = vrot.slane %v18264_v53, 1 }
 0x1a6   : > { %5440 = vst.msk [vmem:[#allocation3 + $0x408] sm:$0xff] %vm2072_vm14, %v5376_v3  ;;  %2992 = vst.msk [vmem:[#allocation3 + $0x80] sm:$0xff] %vm2072_vm14, %v2906_v46  ;;  %v18306_v33 = vld [vmem:[#allocation2 + $0x48] sm:$0xff]   ;;  %v16296_v15 = vld [vmem:[#allocation2 + $0xf0] sm:$0xff]   ;;  %v18317_v18 = vpop.permute.xlu0 %3247  ;;  %v2490_v7 = vshrl.u32 %v18207_v13, 16  ;;  %v2496_v5 = vrot.slane %v2494_v63, 1 }
 0x1a7   : > { %3321 = vst.msk [vmem:[#allocation3 + $0x58] sm:$0xff] %vm2652_vm15, %v18117_v25  ;;  %3322 = vst.msk [vmem:[#allocation3 + $0x80] sm:$0xff] %vm2652_vm15, %v18147_v42  ;;  %v5383_v25 = vrot.slane %v16308_v26, 1  ;;  %v18315_v62 = vld [vmem:[#allocation2 + $0x100] sm:$0xff]   ;;  %v5445_v38 = vld [vmem:[#allocation3] sm:$0xff]  ;;  %v5377_v45 = vrot.slane %v16296_v15, 1  ;;  %v2910_v53 = vsel %vm2897_vm13, %v2907_v28, %v2909_v12 }
 0x1a8   : > { %2993 = vst.msk [vmem:[#allocation3 + $0xa8] sm:$0xff] %vm2072_vm14, %v2908_v1  ;;  %22813 = vst [vmem:[#allocation64_spill] sm:$0xff] %v18315_v62  ;;  %v16300_v34 = vld [vmem:[#allocation2 + $0xf8] sm:$0xff]   ;;  %v16321_v14 = vld [vmem:[#allocation2 + $0x50] sm:$0xff]   ;;  %v12282_v13 = vrot.slane %v18295_v0, 1  ;;  %v2913_v3 = vrot.slane %v18298_v49, 1 }
 0x1a9   : > { %2602 = vrot.lane.b32.xlu1 %v2489_v43, %s16826_s8  ;;  %3323 = vst.msk [vmem:[#allocation3 + $0xa8] sm:$0xff] %vm2652_vm15, %v18172_v24  ;;  %v16280_v42 = vld [vmem:[#allocation2 + $0xb4] sm:$0xff]   ;;  %v5384_v40 = vsel %vm2897_vm13, %v5381_v48, %v5383_v25  ;;  %v5379_v26 = vrot.slane %v16300_v34, 1  ;;  %v2911_v24 = vrot.slane %v18288_v27, 1  ;;  %v2575_v50 = vpop.permute.xlu1 %2574  ;;  %v5378_v8 = vsel %vm2897_vm13, %v5375_v16, %v5377_v45 }
 0x1aa   : > { %15631 = vmatmul.mubr.msk.bf16.gmra.mrb[40].mxu0 %vm2072_vm14, %v5554_v58  ;;  %v5446_v6 = vld [vmem:[#allocation3 + $0x8] sm:$0xff]  ;;  %2994 = vst.msk [vmem:[#allocation3 + $0xd0] sm:$0xff] %vm2072_vm14, %v2910_v53  ;;  %5444 = vst.msk [vmem:[#allocation3 + $0x4a8] sm:$0xff] %vm2072_vm14, %v5384_v40  ;;  %v2915_v58 = vrot.slane %v18306_v33, 1  ;;  %v22643_v0 = vrot.slane %v18315_v62, 1  ;;  %v5564_v63 = vld [vmem:[#allocation3 + $0x3b8] sm:$0xff] }
 0x1ab   : > { %v18323_v60 = vld [vmem:[#allocation2 + $0xb8] sm:$0xff]   ;;  %15634 = vmatprep.mubr.msk.bf16.mxu0 %vm2072_vm14, %v5559_v39  ;;  %6012 = vmatprep.mubr.bf16.mxu1 %v5446_v6  ;;  %3324 = vst.msk [vmem:[#allocation3 + $0xd0] sm:$0xff] %vm2652_vm15, %v18188_v23  ;;  %2659 = vst.msk [vmem:[#allocation3 + $0xf0] sm:$0xff] %vm2652_vm15, %v2575_v50  ;;  %v5380_v27 = vsel %vm2897_vm13, %v5377_v45, %v5379_v26  ;;  %v5382_v16 = vsel %vm2897_vm13, %v5379_v26, %v5381_v48  ;;  %v3250_v39 = vpop.permute.xlu0 %3249  ;;  %v2498_v34 = vshrl.u32 %v18270_v36, 16  ;;  %v16326_v26 = vld [vmem:[#allocation2 + $0x50] sm:$0xff]  }
 0x1ac   : > { %6013 = vmatmul.mubr.bf16.vlgmr.msra.gmra.mrb[60].mxu1 %v5445_v38  ;;  %v5451_v28 = vld [vmem:[#allocation3 + $0x30] sm:$0xff]  ;;  %5441 = vst.msk [vmem:[#allocation3 + $0x430] sm:$0xff] %vm2072_vm14, %v5378_v8  ;;  %v2912_v46 = vsel %vm2897_vm13, %v2909_v12, %v2911_v24  ;;  %v2492_v23 = vor.u32 %v2490_v7, %v18276_v22  ;;  %5442 = vst.msk [vmem:[#allocation3 + $0x458] sm:$0xff] %vm2072_vm14, %v5380_v27  ;;  %v2914_v49 = vsel %vm2897_vm13, %v2911_v24, %v2913_v3  ;;  %v5569_v43 = vld [vmem:[#allocation3 + $0x3e0] sm:$0xff] }
 0x1ad   : > { %3271 = vrot.lane.b32.xlu1 %v16280_v42, %s16826_s8  ;;  %6020 = vmatprep.mubr.bf16.mxu1 %v5451_v28  ;;  %5443 = vst.msk [vmem:[#allocation3 + $0x480] sm:$0xff] %vm2072_vm14, %v5382_v16  ;;  %2995 = vst.msk [vmem:[#allocation3 + $0xf8] sm:$0xff] %vm2072_vm14, %v2912_v46  ;;  %v2916_v1 = vsel %vm2897_vm13, %v2913_v3, %v2915_v58  ;;  %v2917_v22 = vrot.slane %v16321_v14, 1  ;;  %v2502_v15 = vshll.u32 %v18323_v60, 16  ;;  %v16324_v25 = vld [vmem:[#allocation2 + $0x58] sm:$0xff]   ;;  %v18373_v42 = vld [vmem:[#allocation2 + $0xc0] sm:$0xff]  }
 0x1ae   : > { %3325 = vst.msk [vmem:[#allocation3 + $0xf8] sm:$0xff] %vm2652_vm15, %v18211_v41  ;;  %v2497_v33 = vsel %vm2317_vm12, %v2492_v23, %v2496_v5  ;;  %v12283_v48 = vsel %vm2897_vm13, %v22643_v0, %v12282_v13  ;;  %v16323_v41 = vld [vmem:[#allocation2 + $0x48] sm:$0xff]   ;;  %v5450_v6 = vld [vmem:[#allocation3 + $0x28] sm:$0xff]  ;;  %v2919_v45 = vrot.slane %v16324_v25, 1  ;;  %v2500_v24 = vor.u32 %v2498_v34, %v2496_v5  ;;  %v16327_v50 = vld [vmem:[#allocation2 + $0x60] sm:$0xff]  }
 0x1af   : > { %2996 = vst.msk [vmem:[#allocation3 + $0x120] sm:$0xff] %vm2072_vm14, %v2914_v49  ;;  %2997 = vst.msk [vmem:[#allocation3 + $0x148] sm:$0xff] %vm2072_vm14, %v2916_v1  ;;  %v2918_v12 = vsel %vm2897_vm13, %v2915_v58, %v2917_v22  ;;  %v2504_v53 = vrot.slane %v2502_v15, 1  ;;  %v5456_v40 = vld [vmem:[#allocation3 + $0x58] sm:$0xff]  ;;  %v3252_v7 = vpop.permute.xlu0 %3251  ;;  %v5574_v14 = vld [vmem:[#allocation3 + $0x408] sm:$0xff]  ;;  %v2510_v28 = vshll.u32 %v18373_v42, 16 }
 0x1b0   : > { %3326 = vst.msk [vmem:[#allocation3 + $0x120] sm:$0xff] %vm2652_vm15, %v18236_v56  ;;  %3327 = vst.msk [vmem:[#allocation3 + $0x148] sm:$0xff] %vm2652_vm15, %v18274_v32  ;;  %v16290_v56 = vld [vmem:[#allocation2 + $0xbc] sm:$0xff]   ;;  %v2920_v36 = vsel %vm2897_vm13, %v2917_v22, %v2919_v45  ;;  %v2921_v13 = vrot.slane %v16327_v50, 1  ;;  %v16299_v3 = vld [vmem:[#allocation2 + $0xc4] sm:$0xff]   ;;  %v2506_v49 = vshrl.u32 %v18323_v60, 16 }
 0x1b1   : > { %2604 = vrot.lane.b32.xlu1 %v2497_v33, %s16826_s8  ;;  %v18367_v38 = vld [vmem:[#allocation3 + $0x4a8] sm:$0xff]  ;;  %2998 = vst.msk [vmem:[#allocation3 + $0x170] sm:$0xff] %vm2072_vm14, %v2918_v12  ;;  %2082 = vst.msk [vmem:[#allocation3 + $0x168] sm:$0xff] %vm2072_vm14, %v16323_v41  ;;  %v2577_v32 = vpop.permute.xlu1 %2576  ;;  %v5455_v27 = vld [vmem:[#allocation3 + $0x50] sm:$0xff] }
 0x1b2   : > { %15635 = vmatmul.mubr.msk.bf16.gmra.mrb[44].mxu0 %vm2072_vm14, %v5564_v63  ;;  %12343 = vst.msk [vmem:[#allocation3 + $0x4a8] sm:$0xff] %vm2072_vm14, %v12283_v48  ;;  %2999 = vst.msk [vmem:[#allocation3 + $0x198] sm:$0xff] %vm2072_vm14, %v2920_v36  ;;  %v2922_v5 = vsel %vm2897_vm13, %v2919_v45, %v2921_v13  ;;  %v16329_v46 = vld [vmem:[#allocation2 + $0x58] sm:$0xff]   ;;  %v16330_v23 = vld [vmem:[#allocation2 + $0x68] sm:$0xff]  }
 0x1b3   : > { %15638 = vmatprep.mubr.msk.bf16.mxu0 %vm2072_vm14, %v5569_v43  ;;  %3328 = vst.msk [vmem:[#allocation3 + $0x170] sm:$0xff] %vm2652_vm15, %v18317_v18  ;;  %2660 = vst.msk [vmem:[#allocation3 + $0x118] sm:$0xff] %vm2652_vm15, %v2577_v32  ;;  %v2505_v18 = vsel %vm2317_vm12, %v2500_v24, %v2504_v53  ;;  %v5579_v8 = vld [vmem:[#allocation3 + $0x430] sm:$0xff]  ;;  %v18393_v63 = vld [vmem:[#allocation2 + $0xc8] sm:$0xff]   ;;  %v2923_v22 = vrot.slane %v16330_v23, 1  ;;  %v2508_v43 = vor.u32 %v2506_v49, %v2504_v53 }
 0x1b4   : > { %6021 = vmatmul.mubr.bf16.gmra.mrb[64].mxu1 %v5450_v6  ;;  %3329 = vst.msk [vmem:[#allocation3 + $0x198] sm:$0xff] %vm2652_vm15, %v3250_v39  ;;  %v3254_v58 = vpop.permute.xlu0 %3253  ;;  %v2512_v39 = vrot.slane %v2510_v28, 1  ;;  %v5461_v1 = vld [vmem:[#allocation3 + $0x80] sm:$0xff]  ;;  %v16332_v33 = vld [vmem:[#allocation2 + $0x60] sm:$0xff]   ;;  %v2518_v25 = vshll.u32 %v18393_v63, 16  ;;  %v16336_v36 = vld [vmem:[#allocation2 + $0x78] sm:$0xff]  }
 0x1b5   : > { %3273 = vrot.lane.b32.xlu1 %v16290_v56, %s16826_s8  ;;  %6028 = vmatprep.mubr.bf16.mxu1 %v5456_v40  ;;  %2083 = vst.msk [vmem:[#allocation3 + $0x190] sm:$0xff] %vm2072_vm14, %v16326_v26  ;;  %3000 = vst.msk [vmem:[#allocation3 + $0x1c0] sm:$0xff] %vm2072_vm14, %v2922_v5  ;;  %v16333_v48 = vld [vmem:[#allocation2 + $0x70] sm:$0xff]   ;;  %v2924_v60 = vsel %vm2897_vm13, %v2921_v13, %v2923_v22  ;;  %v5584_v41 = vld [vmem:[#allocation3 + $0x458] sm:$0xff]  ;;  %v2514_v26 = vshrl.u32 %v18373_v42, 16 }
 0x1b6   : > { %3330 = vst.msk [vmem:[#allocation3 + $0x1c0] sm:$0xff] %vm2652_vm15, %v3252_v7  ;;  %v2513_v12 = vsel %vm2317_vm12, %v2508_v43, %v2512_v39  ;;  %v2925_v56 = vrot.slane %v16333_v48, 1  ;;  %v5589_v6 = vld [vmem:[#allocation3 + $0x480] sm:$0xff]  ;;  %v5460_v53 = vld [vmem:[#allocation3 + $0x78] sm:$0xff]  ;;  %v2520_v24 = vrot.slane %v2518_v25, 1  ;;  %v5466_v50 = vld [vmem:[#allocation3 + $0xa8] sm:$0xff] }
 0x1b7   : > { %v2579_v16 = vpop.permute.xlu1 %2578  ;;  %2084 = vst.msk [vmem:[#allocation3 + $0x1b8] sm:$0xff] %vm2072_vm14, %v16329_v46  ;;  %2085 = vst.msk [vmem:[#allocation3 + $0x1e0] sm:$0xff] %vm2072_vm14, %v16332_v33  ;;  %v16307_v32 = vld [vmem:[#allocation2 + $0xcc] sm:$0xff]   ;;  %v2516_v28 = vor.u32 %v2514_v26, %v2512_v39  ;;  %v16316_v5 = vld [vmem:[#allocation2 + $0xd4] sm:$0xff]  }
 0x1b8   : > { %2661 = vst.msk [vmem:[#allocation3 + $0x140] sm:$0xff] %vm2652_vm15, %v2579_v16  ;;  %v18405_v45 = vld [vmem:[#allocation2 + $0xd0] sm:$0xff]   ;;  %v2926_v40 = vsel %vm2897_vm13, %v2923_v22, %v2925_v56  ;;  %v16335_v7 = vld [vmem:[#allocation2 + $0x68] sm:$0xff]   ;;  %v14590_v16 = vld [vmem:[%s16887_s28 + $0x1e0] sm:$0xff] }
 0x1b9   : > { %2606 = vrot.lane.b32.xlu1 %v2505_v18, %s16826_s8  ;;  %3001 = vst.msk [vmem:[#allocation3 + $0x1e8] sm:$0xff] %vm2072_vm14, %v2924_v60  ;;  %v3256_v34 = vpop.permute.xlu0 %3255  ;;  %3002 = vst.msk [vmem:[#allocation3 + $0x210] sm:$0xff] %vm2072_vm14, %v2926_v40  ;;  %v2927_v18 = vrot.slane %v16336_v36, 1  ;;  %v2526_v42 = vshll.u32 %v18405_v45, 16  ;;  %v16340_v46 = vld [vmem:[#allocation2 + $0x80] sm:$0xff]   ;;  %v18428_v23 = vld [vmem:[#allocation2 + $0xd8] sm:$0xff]  }
 0x1ba   : > { %15639 = vmatmul.mubr.msk.bf16.gmra.mrb[48].mxu0 %vm2072_vm14, %v5574_v14  ;;  %3331 = vst.msk [vmem:[#allocation3 + $0x1e8] sm:$0xff] %vm2652_vm15, %v3254_v58  ;;  %3332 = vst.msk [vmem:[#allocation3 + $0x210] sm:$0xff] %vm2652_vm15, %v3256_v34  ;;  %v2522_v58 = vshrl.u32 %v18393_v63, 16  ;;  %v5465_v49 = vld [vmem:[#allocation3 + $0xa0] sm:$0xff]  ;;  %v2929_v22 = vrot.slane %v16340_v46, 1  ;;  %v16342_v33 = vld [vmem:[#allocation2 + $0x78] sm:$0xff]  }
 0x1bb   : > { %15642 = vmatprep.mubr.msk.bf16.mxu0 %vm2072_vm14, %v5579_v8  ;;  %2086 = vst.msk [vmem:[#allocation3 + $0x208] sm:$0xff] %vm2072_vm14, %v16335_v7  ;;  %v16338_v8 = vld [vmem:[#allocation2 + $0x70] sm:$0xff]   ;;  %v2528_v39 = vrot.slane %v2526_v42, 1  ;;  %2088 = vst.msk [vmem:[#allocation3 + $0x258] sm:$0xff] %vm2072_vm14, %v16342_v33  ;;  %v14591_v63 = vld [vmem:[%s16887_s28 + $0x1e8] sm:$0xff]  ;;  %v2534_v60 = vshll.u32 %v18428_v23, 16 }
 0x1bc   : > { %6029 = vmatmul.mubr.bf16.gmra.mrb[68].mxu1 %v5455_v27  ;;  %v2581_v15 = vpop.permute.xlu1 %2580  ;;  %2087 = vst.msk [vmem:[#allocation3 + $0x230] sm:$0xff] %vm2072_vm14, %v16338_v8  ;;  %v2521_v27 = vsel %vm2317_vm12, %v2516_v28, %v2520_v24  ;;  %v14592_v48 = vld [vmem:[%s16887_s28 + $0x1f0] sm:$0xff]  ;;  %v14593_v25 = vld [vmem:[%s16887_s28 + $0x1f8] sm:$0xff]  ;;  %v2530_v36 = vshrl.u32 %v18405_v45, 16  ;;  %v18464_v46 = vld [vmem:[#allocation2 + $0xe8] sm:$0xff]  }
 0x1bd   : > { %3275 = vrot.lane.b32.xlu1 %v16299_v3, %s16826_s8  ;;  %6036 = vmatprep.mubr.bf16.mxu1 %v5461_v1  ;;  %2662 = vst.msk [vmem:[#allocation3 + $0x168] sm:$0xff] %vm2652_vm15, %v2581_v15  ;;  %v2928_v3 = vsel %vm2897_vm13, %v2925_v56, %v2927_v18  ;;  %v5471_v1 = vld [vmem:[#allocation3 + $0xd0] sm:$0xff]  ;;  %v2524_v15 = vor.u32 %v2522_v58, %v2520_v24  ;;  %v5470_v40 = vld [vmem:[#allocation3 + $0xc8] sm:$0xff]  ;;  %v2536_v26 = vrot.slane %v2534_v60, 1  ;;  %v5476_v24 = vld [vmem:[#allocation3 + $0xf8] sm:$0xff] }
 0x1be   : > { %v3258_v13 = vpop.permute.xlu0 %3257  ;;  %3003 = vst.msk [vmem:[#allocation3 + $0x238] sm:$0xff] %vm2072_vm14, %v2928_v3  ;;  %v16322_v56 = vld [vmem:[#allocation2 + $0xdc] sm:$0xff]   ;;  %v16350_v8 = vld [vmem:[#allocation2 + $0x90] sm:$0xff]  }
 0x1bf   : > { %3333 = vst.msk [vmem:[#allocation3 + $0x238] sm:$0xff] %vm2652_vm15, %v3258_v13  ;;  %v14596_v28 = vld [vmem:[%s16887_s28 + $0x210] sm:$0xff]  ;;  %v14597_v3 = vld [vmem:[%s16887_s28 + $0x218] sm:$0xff] }
 0x1c0   : > { %v5475_v58 = vld [vmem:[#allocation3 + $0xf0] sm:$0xff]  ;;  %v5481_v33 = vld [vmem:[#allocation3 + $0x120] sm:$0xff] }
 0x1c1   : > { %2608 = vrot.lane.b32.xlu1 %v2513_v12, %s16826_s8  ;;  %v2529_v12 = vsel %vm2317_vm12, %v2524_v15, %v2528_v39  ;;  %v2550_v15 = vshll.u32 %v18464_v46, 16  ;;  %v16356_v60 = vld [vmem:[#allocation2 + $0x90] sm:$0xff]  }
 0x1c2   : > { %15643 = vmatmul.mubr.msk.bf16.gmra.mrb[52].mxu0 %vm2072_vm14, %v5584_v41  ;;  %v16345_v41 = vld [vmem:[#allocation2 + $0x88] sm:$0xff]   ;;  %2091 = vst.msk [vmem:[#allocation3 + $0x2d0] sm:$0xff] %vm2072_vm14, %v16356_v60 }
 0x1c3   : > { %15646 = vmatprep.mubr.msk.bf16.mxu0 %vm2072_vm14, %v5589_v6  ;;  %v2583_v14 = vpop.permute.xlu1 %2582  ;;  %v2931_v6 = vrot.slane %v16345_v41, 1  ;;  %v14607_v60 = vld [vmem:[%s16887_s28 + $0x268] sm:$0xff] }
 0x1c4   : > { %6037 = vmatmul.mubr.bf16.gmra.mrb[72].mxu1 %v5460_v53  ;;  %2663 = vst.msk [vmem:[#allocation3 + $0x190] sm:$0xff] %vm2652_vm15, %v2583_v14  ;;  %v18444_v53 = vld [vmem:[#allocation2 + $0xe0] sm:$0xff]   ;;  %v14595_v14 = vld [vmem:[%s16887_s28 + $0x208] sm:$0xff] }
 0x1c5   : > { %3277 = vrot.lane.b32.xlu1 %v16307_v32, %s16826_s8  ;;  %6044 = vmatprep.mubr.bf16.mxu1 %v5466_v50  ;;  %v14594_v32 = vld [vmem:[%s16887_s28 + $0x200] sm:$0xff]  ;;  %v2932_v7 = vsel %vm2897_vm13, %v2929_v22, %v2931_v6  ;;  %v2542_v13 = vshll.u32 %v18444_v53, 16 }
 0x1c6   : > { %3005 = vst.msk [vmem:[#allocation3 + $0x288] sm:$0xff] %vm2072_vm14, %v2932_v7  ;;  %v16348_v50 = vld [vmem:[#allocation2 + $0x80] sm:$0xff]  }
 0x1c7   : > { %2089 = vst.msk [vmem:[#allocation3 + $0x280] sm:$0xff] %vm2072_vm14, %v16348_v50  ;;  %v5480_v7 = vld [vmem:[#allocation3 + $0x118] sm:$0xff]  ;;  %v5486_v50 = vld [vmem:[#allocation3 + $0x148] sm:$0xff] }
 0x1c9   : > { %2610 = vrot.lane.b32.xlu1 %v2521_v27, %s16826_s8  ;;  %v2933_v27 = vrot.slane %v16350_v8, 1  ;;  %v16343_v8 = vld [vmem:[#allocation2 + $0x18] sm:$0xff]  }
 0x1ca   : > { %15647 = vmatmul.mubr.msk.bf16.gmra.mrb[56].mxu0 %vm2072_vm14, %v18367_v38  ;;  %v2930_v38 = vsel %vm2897_vm13, %v2927_v18, %v2929_v22  ;;  %v2532_v18 = vor.u32 %v2530_v36, %v2528_v39  ;;  %v14598_v39 = vld [vmem:[%s16887_s28 + $0x220] sm:$0xff]  ;;  %v2544_v22 = vrot.slane %v2542_v13, 1  ;;  %v2552_v36 = vrot.slane %v2550_v15, 1 }
 0x1cb   : > { %15654 = vmatprep.mubr.msk.f32.mxu0 %vm375_vm3, %v14590_v16  ;;  %v2585_v43 = vpop.permute.xlu1 %2584  ;;  %3004 = vst.msk [vmem:[#allocation3 + $0x260] sm:$0xff] %vm2072_vm14, %v2930_v38  ;;  %v16352_v16 = vld [vmem:[#allocation2 + $0x88] sm:$0xff]   ;;  %v16354_v38 = vld [vmem:[#allocation2 + $0x98] sm:$0xff]  }
 0x1cc   : > { %6045 = vmatmul.mubr.bf16.gmra.mrb[76].mxu1 %v5465_v49  ;;  %2664 = vst.msk [vmem:[#allocation3 + $0x1b8] sm:$0xff] %vm2652_vm15, %v2585_v43  ;;  %v2537_v45 = vsel %vm2317_vm12, %v2532_v18, %v2536_v26  ;;  %v2934_v49 = vsel %vm2897_vm13, %v2931_v6, %v2933_v27  ;;  %v5491_v15 = vld [vmem:[#allocation3 + $0x170] sm:$0xff] }
 0x1cd   : > { %3279 = vrot.lane.b32.xlu1 %v16316_v5, %s16826_s8  ;;  %6052 = vmatprep.mubr.bf16.mxu1 %v5471_v1  ;;  %v16328_v5 = vld [vmem:[#allocation2 + $0xe4] sm:$0xff]   ;;  %2090 = vst.msk [vmem:[#allocation3 + $0x2a8] sm:$0xff] %vm2072_vm14, %v16352_v16  ;;  %v2538_v1 = vshrl.u32 %v18428_v23, 16  ;;  %3006 = vst.msk [vmem:[#allocation3 + $0x2b0] sm:$0xff] %vm2072_vm14, %v2934_v49  ;;  %v16339_v16 = vld [vmem:[#allocation2 + $0xf4] sm:$0xff]  }
 0x1ce   : > { %v14599_v23 = vld [vmem:[%s16887_s28 + $0x228] sm:$0xff]  ;;  %v14606_v49 = vld [vmem:[%s16887_s28 + $0x260] sm:$0xff] }
 0x1d0   : > { %v2587_v34 = vpop.permute.xlu1 %2586 }
 0x1d1   : > { %2612 = vrot.lane.b32.xlu1 %v2529_v12, %s16826_s8  ;;  %2665 = vst.msk [vmem:[#allocation3 + $0x1e0] sm:$0xff] %vm2652_vm15, %v2587_v34  ;;  %v14600_v12 = vld [vmem:[%s16887_s28 + $0x230] sm:$0xff] }
 0x1d2   : > { %15655 = vmatmul.mubr.msk.f32.vlgmr.msra.gmra.mrb[60].mxu0 %vm375_vm3, %v14591_v63  ;;  %v2540_v63 = vor.u32 %v2538_v1, %v2536_v26  ;;  %v16358_v26 = vld [vmem:[#allocation2 + $0xa0] sm:$0xff]  }
 0x1d3   : > { %15657 = vmatprep.mubr.msk.f32.mxu0 %vm375_vm3, %v14592_v48  ;;  %v2935_v48 = vrot.slane %v16354_v38, 1  ;;  %v16364_v38 = vld [vmem:[#allocation2 + $0xa0] sm:$0xff]  }
 0x1d4   : > { %6053 = vmatmul.mubr.bf16.gmra.mrb[80].mxu1 %v5470_v40  ;;  %v2545_v41 = vsel %vm2317_vm12, %v2540_v63, %v2544_v22  ;;  %v2546_v40 = vshrl.u32 %v18444_v53, 16  ;;  %v16360_v53 = vld [vmem:[#allocation2 + $0x98] sm:$0xff]   ;;  %2093 = vst.msk [vmem:[#allocation3 + $0x320] sm:$0xff] %vm2072_vm14, %v16364_v38 }
 0x1d5   : > { %3281 = vrot.lane.b32.xlu1 %v16322_v56, %s16826_s8  ;;  %6060 = vmatprep.mubr.bf16.mxu1 %v5476_v24  ;;  %v16334_v56 = vld [vmem:[#allocation2 + $0xec] sm:$0xff]   ;;  %v2936_v6 = vsel %vm2897_vm13, %v2933_v27, %v2935_v48  ;;  %2092 = vst.msk [vmem:[#allocation3 + $0x2f8] sm:$0xff] %vm2072_vm14, %v16360_v53  ;;  %v14605_v27 = vld [vmem:[%s16887_s28 + $0x258] sm:$0xff] }
 0x1d6   : > { %15658 = vmatmul.mubr.msk.f32.gmra.mrb[62].mxu0 %vm375_vm3, %v14593_v25  ;;  %v14601_v25 = vld [vmem:[%s16887_s28 + $0x238] sm:$0xff]  ;;  %3007 = vst.msk [vmem:[#allocation3 + $0x2d8] sm:$0xff] %vm2072_vm14, %v2936_v6  ;;  %v16341_v24 = vld [vmem:[#allocation2 + $0xf0] ss:$0 sps:$4 sm:$0x11]   ;;  %v2548_v18 = vor.u32 %v2546_v40, %v2544_v22  ;;  %v4749_v22 = vshll.u32 %v16343_v8, 16 }
 0x1d7   : > { %15660 = vmatprep.mubr.msk.f32.mxu0 %vm375_vm3, %v14594_v32  ;;  %v2589_v42 = vpop.permute.xlu1 %2588  ;;  %v14602_v32 = vld [vmem:[%s16887_s28 + $0x240] sm:$0xff]  ;;  %v2558_v1 = vshll.u32 %v16341_v24, 16  ;;  %v4747_v6 = vshrl.u32 %v16343_v8, 16  ;;  %v18518_v40 = vld [vmem:[#allocation2 + $0x14] sm:$0xff]  }
 0x1d8   : > { %2666 = vst.msk [vmem:[#allocation3 + $0x208] sm:$0xff] %vm2652_vm15, %v2589_v42  ;;  %v2553_v13 = vsel %vm2317_vm12, %v2548_v18, %v2552_v36  ;;  %v14604_v42 = vld [vmem:[%s16887_s28 + $0x250] sm:$0xff] }
 0x1d9   : > { %2614 = vrot.lane.b32.xlu1 %v2537_v45, %s16826_s8  ;;  %v14603_v45 = vld [vmem:[%s16887_s28 + $0x248] sm:$0xff]  ;;  %v5490_v18 = vld [vmem:[#allocation3 + $0x168] sm:$0xff] }
 0x1da   : > { %15661 = vmatmul.mubr.msk.f32.gmra.mrb[64].mxu0 %vm375_vm3, %v14595_v14  ;;  %v2937_v14 = vrot.slane %v16358_v26, 1  ;;  %v16368_v26 = vld [vmem:[#allocation2 + $0xa8] sm:$0xff]  }
 0x1db   : > { %15663 = vmatprep.mubr.msk.f32.mxu0 %vm375_vm3, %v14596_v28  ;;  %2094 = vst.msk [vmem:[#allocation3 + $0x348] sm:$0xff] %vm2072_vm14, %v16368_v26  ;;  %v18561_v26 = vld [vmem:[#allocation2 + $0x24] sm:$0xff]  }
 0x1dc   : > { %6061 = vmatmul.mubr.bf16.gmra.mrb[84].mxu1 %v5475_v58  ;;  %v2938_v28 = vsel %vm2897_vm13, %v2935_v48, %v2937_v14  ;;  %v16362_v58 = vld [vmem:[#allocation2 + $0xa8] sm:$0xff]  }
 0x1dd   : > { %3283 = vrot.lane.b32.xlu1 %v16328_v5, %s16826_s8  ;;  %v2591_v43 = vpop.permute.xlu1 %2590  ;;  %6068 = vmatprep.mubr.bf16.mxu1 %v5481_v33  ;;  %3008 = vst.msk [vmem:[#allocation3 + $0x300] sm:$0xff] %vm2072_vm14, %v2938_v28  ;;  %v5485_v33 = vld [vmem:[#allocation3 + $0x140] sm:$0xff]  ;;  %v14610_v28 = vld [vmem:[%s16887_s28 + $0x280] sm:$0xff] }
 0x1de   : > { %15664 = vmatmul.mubr.msk.f32.gmra.mrb[66].mxu0 %vm375_vm3, %v14597_v3  ;;  %2667 = vst.msk [vmem:[#allocation3 + $0x230] sm:$0xff] %vm2652_vm15, %v2591_v43  ;;  %v18497_v3 = vld [vmem:[#allocation2 + $0x20] sm:$0xff]   ;;  %v2939_v43 = vrot.slane %v16362_v58, 1 }
 0x1df   : > { %15666 = vmatprep.mubr.msk.f32.mxu0 %vm375_vm3, %v14598_v39  ;;  %v2554_v39 = vshrl.u32 %v18464_v46, 16 }
 0x1e0   : > { %v2940_v46 = vsel %vm2897_vm13, %v2937_v14, %v2939_v43  ;;  %v14609_v14 = vld [vmem:[%s16887_s28 + $0x278] sm:$0xff] }
 0x1e1   : > { %2616 = vrot.lane.b32.xlu1 %v2545_v41, %s16826_s8  ;;  %v3260_v34 = vpop.permute.xlu1 %3259  ;;  %v2556_v63 = vor.u32 %v2554_v39, %v2552_v36  ;;  %v2560_v41 = vrot.slane %v2558_v1, 1  ;;  %3009 = vst.msk [vmem:[#allocation3 + $0x328] sm:$0xff] %vm2072_vm14, %v2940_v46  ;;  %v4758_v39 = vshrl.u32 %v18497_v3, 16  ;;  %v5495_v46 = vld [vmem:[#allocation3 + $0x190] sm:$0xff] }
 0x1e2   : > { %15667 = vmatmul.mubr.msk.f32.gmra.mrb[68].mxu0 %vm375_vm3, %v14599_v23  ;;  %3334 = vst.msk [vmem:[#allocation3 + $0x260] sm:$0xff] %vm2652_vm15, %v3260_v34  ;;  %v4754_v23 = vshll.u32 %v18497_v3, 16  ;;  %v14613_v3 = vld [vmem:[%s16887_s28 + $0x298] sm:$0xff] }
 0x1e3   : > { %15669 = vmatprep.mubr.msk.f32.mxu0 %vm375_vm3, %v14600_v12  ;;  %v14608_v12 = vld [vmem:[%s16887_s28 + $0x270] sm:$0xff]  ;;  %v2561_v34 = vsel %vm2317_vm12, %v2556_v63, %v2560_v41 }
 0x1e4   : > { %6069 = vmatmul.mubr.bf16.gmra.mrb[88].mxu1 %v5480_v7  ;;  %v18520_v7 = vld [vmem:[#allocation2 + $0x28] sm:$0xff]  }
 0x1e5   : > { %3285 = vrot.lane.b32.xlu1 %v16334_v56, %s16826_s8  ;;  %6076 = vmatprep.mubr.bf16.mxu1 %v5486_v50  ;;  %v16366_v56 = vld [vmem:[#allocation2 + $0xb0] sm:$0xff]  }
 0x1e6   : > { %15670 = vmatmul.mubr.msk.f32.gmra.mrb[70].mxu0 %vm375_vm3, %v14601_v25  ;;  %v4751_v25 = vrot.slane %v4749_v22, 1  ;;  %v2941_v36 = vrot.slane %v16366_v56, 1  ;;  %v16346_v50 = vld [vmem:[#allocation2 + $0xc] sm:$0xfe]   ;;  %v18540_v22 = vld [vmem:[#allocation2 + $0x1c] sm:$0xff]  }
 0x1e7   : > { %15672 = vmatprep.mubr.msk.f32.mxu0 %vm375_vm3, %v14602_v32  ;;  %v4756_v32 = vrot.slane %v4754_v23, 1  ;;  %v4081_v58 = vrot.slane %v16346_v50, 1  ;;  %v18544_v23 = vld [vmem:[#allocation2 + $0x30] sm:$0xff]  }
 0x1e8   : > { %v2593_v5 = vpop.permute.xlu1 %2592  ;;  %v4752_v24 = vor.u32 %v4751_v25, %v4747_v6  ;;  %v2942_v8 = vsel %vm2897_vm13, %v2939_v43, %v2941_v36  ;;  %v16372_v43 = vld [vmem:[#allocation2 + $0xb0] sm:$0xff]   ;;  %v4084_v25 = vrot.slane %v18540_v22, 1  ;;  %v4770_v56 = vshll.u32 %v18544_v23, 16 }
 0x1e9   : > { %2618 = vrot.lane.b32.xlu1 %v2553_v13, %s16826_s8  ;;  %2668 = vst.msk [vmem:[#allocation3 + $0x258] sm:$0xff] %vm2652_vm15, %v2593_v5  ;;  %v4082_v13 = vrot.slane %v18518_v40, 1  ;;  %v14611_v5 = vld [vmem:[%s16887_s28 + $0x288] sm:$0xff] }
 0x1ea   : > { %15673 = vmatmul.mubr.msk.f32.gmra.mrb[72].mxu0 %vm375_vm3, %v14603_v45  ;;  %v4757_v45 = vsel %vm2317_vm12, %v4752_v24, %v4756_v32  ;;  %3010 = vst.msk [vmem:[#allocation3 + $0x350] sm:$0xff] %vm2072_vm14, %v2942_v8  ;;  %2095 = vst.msk [vmem:[#allocation3 + $0x370] sm:$0xff] %vm2072_vm14, %v16372_v43  ;;  %v14615_v40 = vld [vmem:[%s16887_s28 + $0x2a8] sm:$0xff]  ;;  %v18569_v8 = vld [vmem:[#allocation2 + $0x38] sm:$0xff]  }
 0x1eb   : > { %15675 = vmatprep.mubr.msk.f32.mxu0 %vm375_vm3, %v14604_v42  ;;  %v4762_v42 = vshll.u32 %v18520_v7, 16  ;;  %v4083_v38 = vsel %vm2897_vm13, %v4081_v58, %v4082_v13  ;;  %v4085_v50 = vsel %vm2897_vm13, %v4082_v13, %v4084_v25  ;;  %v16380_v58 = vld [vmem:[#allocation2 + $0xc0] sm:$0xff]   ;;  %v18586_v43 = vld [vmem:[#allocation2 + $0x2c] sm:$0xff]  }
 0x1ec   : > { %6077 = vmatmul.mubr.bf16.gmra.mrb[92].mxu1 %v5485_v33  ;;  %v3262_v48 = vpop.permute.xlu1 %3261  ;;  %2097 = vst.msk [vmem:[#allocation3 + $0x3c0] sm:$0xff] %vm2072_vm14, %v16380_v58 }
 0x1ed   : > { %3287 = vrot.lane.b32.xlu1 %v16339_v16, %s16826_s8  ;;  %6084 = vmatprep.mubr.bf16.mxu1 %v5491_v15  ;;  %3335 = vst.msk [vmem:[#allocation3 + $0x288] sm:$0xff] %vm2652_vm15, %v3262_v48  ;;  %v16370_v16 = vld [vmem:[#allocation2 + $0xb8] sm:$0xff]   ;;  %v4764_v63 = vrot.slane %v4762_v42, 1  ;;  %v4760_v48 = vor.u32 %v4758_v39, %v4756_v32  ;;  %v4778_v39 = vshll.u32 %v18569_v8, 16 }
 0x1ee   : > { %15676 = vmatmul.mubr.msk.f32.gmra.mrb[74].mxu0 %vm375_vm3, %v14605_v27  ;;  %v5496_v27 = vld [vmem:[#allocation3 + $0x198] sm:$0xff]  ;;  %v2943_v33 = vrot.slane %v16370_v16, 1  ;;  %v16376_v32 = vld [vmem:[#allocation2 + $0xb8] sm:$0xff]   ;;  %v4086_v16 = vrot.slane %v18561_v26, 1 }
 0x1ef   : > { %15678 = vmatprep.mubr.msk.f32.mxu0 %vm375_vm3, %v14606_v49  ;;  %v14612_v49 = vld [vmem:[%s16887_s28 + $0x290] sm:$0xff]  ;;  %v4765_v41 = vsel %vm2317_vm12, %v4760_v48, %v4764_v63  ;;  %2096 = vst.msk [vmem:[#allocation3 + $0x398] sm:$0xff] %vm2072_vm14, %v16376_v32  ;;  %v4780_v48 = vrot.slane %v4778_v39, 1 }
 0x1f0   : > { %v2944_v15 = vsel %vm2897_vm13, %v2941_v36, %v2943_v33  ;;  %v5505_v32 = vld [vmem:[#allocation3 + $0x1e0] sm:$0xff] }
 0x1f1   : > { %2620 = vrot.lane.b32.xlu1 %v2561_v34, %s16826_s8  ;;  %3011 = vst.msk [vmem:[#allocation3 + $0x378] sm:$0xff] %vm2072_vm14, %v2944_v15  ;;  %v5501_v34 = vld [vmem:[#allocation3 + $0x1c0] sm:$0xff] }
 0x1f2   : > { %15679 = vmatmul.mubr.msk.f32.gmra.mrb[76].mxu0 %vm375_vm3, %v14607_v60  ;;  %v16374_v60 = vld [vmem:[#allocation2 + $0xc0] sm:$0xff]   ;;  %v14620_v15 = vld [vmem:[%s16887_s28 + $0x2d0] sm:$0xff] }
 0x1f3   : > { %15681 = vmatprep.mubr.msk.f32.mxu0 %vm375_vm3, %v14608_v12  ;;  %v2595_v53 = vpop.permute.xlu1 %2594  ;;  %v14614_v12 = vld [vmem:[%s16887_s28 + $0x2a0] sm:$0xff]  ;;  %v2945_v6 = vrot.slane %v16374_v60, 1  ;;  %v14621_v60 = vld [vmem:[%s16887_s28 + $0x2d8] sm:$0xff] }
 0x1f4   : > { %2669 = vst.msk [vmem:[#allocation3 + $0x280] sm:$0xff] %vm2652_vm15, %v2595_v53  ;;  %6085 = vmatmul.mubr.bf16.gmra.mrb[96].mxu1 %v5490_v18  ;;  %v4766_v53 = vshrl.u32 %v18520_v7, 16  ;;  %v4772_v18 = vrot.slane %v4770_v56, 1  ;;  %v5500_v7 = vld [vmem:[#allocation3 + $0x1b8] sm:$0xff] }
 0x1f5   : > { %4990 = vrot.lane.b32.xlu1 %v4757_v45, %s16826_s8  ;;  %6092 = vmatprep.mubr.bf16.mxu1 %v5496_v27  ;;  %v2946_v24 = vsel %vm2897_vm13, %v2943_v33, %v2945_v6  ;;  %v16378_v45 = vld [vmem:[#allocation2 + $0xc8] sm:$0xff]   ;;  %v14618_v27 = vld [vmem:[%s16887_s28 + $0x2c0] sm:$0xff] }
 0x1f6   : > { %15682 = vmatmul.mubr.msk.f32.gmra.mrb[78].mxu0 %vm375_vm3, %v14609_v14  ;;  %v14616_v14 = vld [vmem:[%s16887_s28 + $0x2b0] sm:$0xff]  ;;  %3012 = vst.msk [vmem:[#allocation3 + $0x3a0] sm:$0xff] %vm2072_vm14, %v2946_v24  ;;  %v4768_v42 = vor.u32 %v4766_v53, %v4764_v63  ;;  %v14619_v33 = vld [vmem:[%s16887_s28 + $0x2c8] sm:$0xff]  ;;  %v4087_v63 = vsel %vm2897_vm13, %v4084_v25, %v4086_v16  ;;  %v4088_v25 = vrot.slane %v18586_v43, 1  ;;  %v16386_v24 = vld [vmem:[#allocation2 + $0xd8] sm:$0xff]  }
 0x1f7   : > { %15684 = vmatprep.mubr.msk.f32.mxu0 %vm375_vm3, %v14610_v28  ;;  %v3264_v1 = vpop.permute.xlu1 %3263  ;;  %v14617_v28 = vld [vmem:[%s16887_s28 + $0x2b8] sm:$0xff]  ;;  %v2951_v53 = vrot.slane %v16386_v24, 1  ;;  %v18652_v24 = vld [vmem:[#allocation2 + $0x50] sm:$0xff]   ;;  %v16400_v43 = vld [vmem:[#allocation2 + $0xe8] sm:$0xff]  }
 0x1f8   : > { %3336 = vst.msk [vmem:[#allocation3 + $0x2b0] sm:$0xff] %vm2652_vm15, %v3264_v1  ;;  %v5506_v1 = vld [vmem:[#allocation3 + $0x1e8] sm:$0xff] }
 0x1f9   : > { %4142 = vrot.lane.b32.xlu1 %v4083_v38, %s16826_s8  ;;  %v16382_v38 = vld [vmem:[#allocation2 + $0xd0] sm:$0xff]   ;;  %2102 = vst.msk [vmem:[#allocation3 + $0x488] sm:$0xff] %vm2072_vm14, %v16400_v43 }
 0x1fa   : > { %15685 = vmatmul.mubr.msk.f32.gmra.mrb[80].mxu0 %vm375_vm3, %v14611_v5  ;;  %v2947_v5 = vrot.slane %v16378_v45, 1  ;;  %v5526_v43 = vld [vmem:[#allocation3 + $0x288] sm:$0xff] }
 0x1fb   : > { %15687 = vmatprep.mubr.msk.f32.mxu0 %vm375_vm3, %v14612_v49  ;;  %v4773_v49 = vsel %vm2317_vm12, %v4768_v42, %v4772_v18  ;;  %v4782_v42 = vshrl.u32 %v18569_v8, 16  ;;  %v14625_v8 = vld [vmem:[%s16887_s28 + $0x2f8] sm:$0xff] }
 0x1fc   : > { %6093 = vmatmul.mubr.bf16.gmra.mrb[100].mxu1 %v5495_v46  ;;  %v2948_v22 = vsel %vm2897_vm13, %v2945_v6, %v2947_v5  ;;  %v18593_v46 = vld [vmem:[#allocation2 + $0x40] sm:$0xff]  }
 0x1fd   : > { %4992 = vrot.lane.b32.xlu1 %v4765_v41, %s16826_s8  ;;  %6100 = vmatprep.mubr.bf16.mxu1 %v5501_v34  ;;  %3013 = vst.msk [vmem:[#allocation3 + $0x3c8] sm:$0xff] %vm2072_vm14, %v2948_v22  ;;  %v2949_v41 = vrot.slane %v16382_v38, 1  ;;  %v14622_v34 = vld [vmem:[%s16887_s28 + $0x2e0] sm:$0xff]  ;;  %v4786_v26 = vshll.u32 %v18593_v46, 16 }
 0x1fe   : > { %15688 = vmatmul.mubr.msk.f32.gmra.mrb[82].mxu0 %vm375_vm3, %v14613_v3  ;;  %v2597_v36 = vpop.permute.xlu1 %2596  ;;  %v4774_v3 = vshrl.u32 %v18544_v23, 16  ;;  %v5511_v23 = vld [vmem:[#allocation3 + $0x210] sm:$0xff] }
 0x1ff   : > { %15690 = vmatprep.mubr.msk.f32.mxu0 %vm375_vm3, %v14614_v12  ;;  %2670 = vst.msk [vmem:[#allocation3 + $0x2a8] sm:$0xff] %vm2652_vm15, %v2597_v36  ;;  %v16384_v12 = vld [vmem:[#allocation2 + $0xc8] sm:$0xff]   ;;  %v16390_v22 = vld [vmem:[#allocation2 + $0xe0] sm:$0xff]  }
 0x200   : > { %v4776_v56 = vor.u32 %v4774_v3, %v4772_v18  ;;  %2098 = vst.msk [vmem:[#allocation3 + $0x3e8] sm:$0xff] %vm2072_vm14, %v16384_v12  ;;  %v16388_v18 = vld [vmem:[#allocation2 + $0xd0] sm:$0xff]   ;;  %v2953_v12 = vrot.slane %v16390_v22, 1  ;;  %v5515_v22 = vld [vmem:[#allocation3 + $0x230] sm:$0xff] }
 0x201   : > { %4144 = vrot.lane.b32.xlu1 %v4085_v50, %s16826_s8  ;;  %v14623_v50 = vld [vmem:[%s16887_s28 + $0x2e8] sm:$0xff]  ;;  %2099 = vst.msk [vmem:[#allocation3 + $0x410] sm:$0xff] %vm2072_vm14, %v16388_v18  ;;  %v16396_v18 = vld [vmem:[#allocation2 + $0xe0] sm:$0xff]  }
 0x202   : > { %15691 = vmatmul.mubr.msk.f32.gmra.mrb[84].mxu0 %vm375_vm3, %v14615_v40  ;;  %v3266_v13 = vpop.permute.xlu1 %3265  ;;  %v2950_v40 = vsel %vm2897_vm13, %v2947_v5, %v2949_v41  ;;  %v4781_v36 = vsel %vm2317_vm12, %v4776_v56, %v4780_v48  ;;  %v4788_v5 = vrot.slane %v4786_v26, 1  ;;  %2101 = vst.msk [vmem:[#allocation3 + $0x460] sm:$0xff] %vm2072_vm14, %v16396_v18  ;;  %v14634_v18 = vld [vmem:[%s16887_s28 + $0x340] sm:$0xff] }
 0x203   : > { %15693 = vmatprep.mubr.msk.f32.mxu0 %vm375_vm3, %v14616_v14  ;;  %3337 = vst.msk [vmem:[#allocation3 + $0x2d8] sm:$0xff] %vm2652_vm15, %v3266_v13  ;;  %v18609_v14 = vld [vmem:[#allocation2 + $0x34] sm:$0xff]  }
 0x204   : > { %6101 = vmatmul.mubr.bf16.gmra.mrb[104].mxu1 %v5500_v7  ;;  %3014 = vst.msk [vmem:[#allocation3 + $0x3f0] sm:$0xff] %vm2072_vm14, %v2950_v40  ;;  %v4089_v7 = vsel %vm2897_vm13, %v4086_v16, %v4088_v25  ;;  %v4090_v39 = vrot.slane %v18609_v14, 1  ;;  %v4784_v16 = vor.u32 %v4782_v42, %v4780_v48  ;;  %v14627_v48 = vld [vmem:[%s16887_s28 + $0x308] sm:$0xff]  ;;  %v14628_v40 = vld [vmem:[%s16887_s28 + $0x310] sm:$0xff]  ;;  %v14630_v42 = vld [vmem:[%s16887_s28 + $0x320] sm:$0xff] }
 0x205   : > { %4994 = vrot.lane.b32.xlu1 %v4773_v49, %s16826_s8  ;;  %6108 = vmatprep.mubr.bf16.mxu1 %v5506_v1  ;;  %v2952_v49 = vsel %vm2897_vm13, %v2949_v41, %v2951_v53  ;;  %v5516_v41 = vld [vmem:[#allocation3 + $0x238] sm:$0xff]  ;;  %v16404_v14 = vld [vmem:[#allocation2 + $0xc] sm:$0xff]  }
 0x206   : > { %15694 = vmatmul.mubr.msk.f32.gmra.mrb[86].mxu0 %vm375_vm3, %v14617_v28  ;;  %v14624_v28 = vld [vmem:[%s16887_s28 + $0x2f0] sm:$0xff]  ;;  %3015 = vst.msk [vmem:[#allocation3 + $0x418] sm:$0xff] %vm2072_vm14, %v2952_v49  ;;  %v4789_v56 = vsel %vm2317_vm12, %v4784_v16, %v4788_v5 }
 0x207   : > { %15696 = vmatprep.mubr.msk.f32.mxu0 %vm375_vm3, %v14618_v27  ;;  %v18615_v27 = vld [vmem:[#allocation2 + $0x48] sm:$0xff]   ;;  %v16398_v49 = vld [vmem:[#allocation2 + $0xf0] ss:$0 sps:$4 sm:$0x11]  }
 0x208   : > { %v4794_v3 = vshll.u32 %v18615_v27, 16  ;;  %v5521_v16 = vld [vmem:[#allocation3 + $0x260] sm:$0xff] }
 0x209   : > { %4146 = vrot.lane.b32.xlu1 %v4087_v63, %s16826_s8  ;;  %v16392_v63 = vld [vmem:[#allocation2 + $0xd8] sm:$0xff]  }
 0x20a   : > { %15697 = vmatmul.mubr.msk.f32.gmra.mrb[88].mxu0 %vm375_vm3, %v14619_v33  ;;  %v14626_v33 = vld [vmem:[%s16887_s28 + $0x300] sm:$0xff]  ;;  %2100 = vst.msk [vmem:[#allocation3 + $0x438] sm:$0xff] %vm2072_vm14, %v16392_v63  ;;  %v4796_v26 = vrot.slane %v4794_v3, 1  ;;  %v14631_v63 = vld [vmem:[%s16887_s28 + $0x328] sm:$0xff]  ;;  %v4798_v3 = vshrl.u32 %v18615_v27, 16 }
 0x20b   : > { %15699 = vmatprep.mubr.msk.f32.mxu0 %vm375_vm3, %v14620_v15  ;;  %v2599_v6 = vpop.permute.xlu1 %2598 }
 0x20c   : > { %2671 = vst.msk [vmem:[#allocation3 + $0x2d0] sm:$0xff] %vm2652_vm15, %v2599_v6  ;;  %6109 = vmatmul.mubr.bf16.gmra.mrb[108].mxu1 %v5505_v32  ;;  %v2954_v6 = vsel %vm2897_vm13, %v2951_v53, %v2953_v12  ;;  %v16394_v32 = vld [vmem:[#allocation2 + $0xe8] sm:$0xff]  }
 0x20d   : > { %4996 = vrot.lane.b32.xlu1 %v4781_v36, %s16826_s8  ;;  %6116 = vmatprep.mubr.bf16.mxu1 %v5511_v23  ;;  %3016 = vst.msk [vmem:[#allocation3 + $0x440] sm:$0xff] %vm2072_vm14, %v2954_v6  ;;  %v4790_v36 = vshrl.u32 %v18593_v46, 16  ;;  %v2955_v53 = vrot.slane %v16394_v32, 1  ;;  %v16402_v32 = vld [vmem:[#allocation2 + $0x18] sm:$0xff]  }
 0x20e   : > { %15700 = vmatmul.mubr.msk.f32.gmra.mrb[90].mxu0 %vm375_vm3, %v14621_v60  ;;  %v18617_v13 = vpop.f32.mrb[0].mxu0  ;;  %v5510_v60 = vld [vmem:[#allocation3 + $0x208] sm:$0xff]  ;;  %4502 = vst.msk [vmem:[#allocation3 + $0x18] sm:$0xff] %vm2072_vm14, %v16402_v32  ;;  %v4806_v32 = vshrl.u32 %v18652_v24, 16 }
 0x20f   : > { %15702 = vmatprep.mubr.msk.f32.mxu0 %vm375_vm3, %v14622_v34  ;;  %v3268_v45 = vpop.permute.xlu1 %3267  ;;  %v18623_v58 = vpop.f32.mrb[1].mxu0  ;;  %v18644_v34 = vld [vmem:[#allocation2 + $0x3c] sm:$0xff]   ;;  %v4792_v46 = vor.u32 %v4790_v36, %v4788_v5 }
 0x210   : > { %3338 = vst.msk [vmem:[#allocation3 + $0x300] sm:$0xff] %vm2652_vm15, %v3268_v45  ;;  %v18630_v1 = vpop.f32.mrb[2].mxu0  ;;  %v14629_v45 = vld [vmem:[%s16887_s28 + $0x318] sm:$0xff] }
 0x211   : > { %4148 = vrot.lane.b32.xlu1 %v4089_v7, %s16826_s8  ;;  %v18635_v38 = vpop.f32.mrb[3].mxu0  ;;  %v2956_v7 = vsel %vm2897_vm13, %v2953_v12, %v2955_v53  ;;  %v4797_v5 = vsel %vm2317_vm12, %v4792_v46, %v4796_v26  ;;  %v14633_v36 = vld [vmem:[%s16887_s28 + $0x338] sm:$0xff] }
 0x212   : > { %15703 = vmatmul.mubr.msk.f32.gmra.mrb[92].mxu0 %vm375_vm3, %v14623_v50  ;;  %v4091_v50 = vsel %vm2897_vm13, %v4088_v25, %v4090_v39  ;;  %3017 = vst.msk [vmem:[#allocation3 + $0x468] sm:$0xff] %vm2072_vm14, %v2956_v7  ;;  %v5520_v7 = vld [vmem:[#allocation3 + $0x258] sm:$0xff] }
 0x213   : > { %15705 = vmatprep.mubr.msk.f32.mxu0 %vm375_vm3, %v14624_v28  ;;  %v2601_v15 = vpop.permute.xlu1 %2600  ;;  %v4092_v28 = vrot.slane %v18644_v34, 1  ;;  %v16411_v34 = vld [vmem:[#allocation2 + $0x1c] sm:$0xff]  }
 0x214   : > { %2672 = vst.msk [vmem:[#allocation3 + $0x2f8] sm:$0xff] %vm2652_vm15, %v2601_v15  ;;  %6117 = vmatmul.mubr.bf16.gmra.mrb[112].mxu1 %v5510_v60  ;;  %v14632_v15 = vld [vmem:[%s16887_s28 + $0x330] sm:$0xff] }
 0x215   : > { %4998 = vrot.lane.b32.xlu1 %v4789_v56, %s16826_s8  ;;  %6124 = vmatprep.mubr.bf16.mxu1 %v5516_v41  ;;  %v4093_v27 = vsel %vm2897_vm13, %v4090_v39, %v4092_v28  ;;  %v18706_v39 = vld [vmem:[#allocation2 + $0x14] sm:$0xff]  }
 0x216   : > { %15706 = vmatmul.mubr.msk.f32.gmra.mrb[94].mxu0 %vm375_vm3, %v14625_v8  ;;  %v4802_v8 = vshll.u32 %v18652_v24, 16  ;;  %v14637_v24 = vld [vmem:[%s16887_s28 + $0x358] sm:$0xff] }
 0x217   : > { %15708 = vmatprep.mubr.msk.f32.mxu0 %vm375_vm3, %v14626_v33  ;;  %v3270_v23 = vpop.permute.xlu1 %3269  ;;  %v2957_v33 = vrot.slane %v16398_v49, 1 }
 0x218   : > { %3339 = vst.msk [vmem:[#allocation3 + $0x328] sm:$0xff] %vm2652_vm15, %v3270_v23  ;;  %v4804_v56 = vrot.slane %v4802_v8, 1  ;;  %v18693_v23 = vld [vmem:[#allocation2 + $0x58] sm:$0xff]   ;;  %v3571_v8 = vshll.u32 %v18706_v39, 16 }
 0x219   : > { %4150 = vrot.lane.b32.xlu1 %v4091_v50, %s16826_s8  ;;  %v2958_v41 = vsel %vm2897_vm13, %v2955_v53, %v2957_v33  ;;  %v4800_v53 = vor.u32 %v4798_v3, %v4796_v26  ;;  %v4810_v26 = vshll.u32 %v18693_v23, 16  ;;  %v14636_v33 = vld [vmem:[%s16887_s28 + $0x350] sm:$0xff] }
 0x21a   : > { %15709 = vmatmul.mubr.msk.f32.gmra.mrb[96].mxu0 %vm375_vm3, %v14627_v48  ;;  %v18682_v48 = vld [vmem:[#allocation2 + $0x44] sm:$0xff]   ;;  %3018 = vst.msk [vmem:[#allocation3 + $0x490] sm:$0xff] %vm2072_vm14, %v2958_v41  ;;  %v3573_v3 = vrot.slane %v3571_v8, 1  ;;  %v3579_v8 = vshll.u32 %v16411_v34, 16 }
 0x21b   : > { %15711 = vmatprep.mubr.msk.f32.mxu0 %vm375_vm3, %v14628_v40  ;;  %v2603_v25 = vpop.permute.xlu1 %2602  ;;  %v4805_v49 = vsel %vm2317_vm12, %v4800_v53, %v4804_v56  ;;  %v4812_v53 = vrot.slane %v4810_v26, 1 }
 0x21c   : > { %2673 = vst.msk [vmem:[#allocation3 + $0x320] sm:$0xff] %vm2652_vm15, %v2603_v25  ;;  %6125 = vmatmul.mubr.bf16.gmra.mrb[116].mxu1 %v5515_v22  ;;  %v3566_v25 = vshll.u32 %v16404_v14, 16  ;;  %v16407_v22 = vld [vmem:[%s22595_s3 + $0x80] sm:$0xff]  }
 0x21d   : > { %5000 = vrot.lane.b32.xlu1 %v4797_v5, %s16826_s8  ;;  %6132 = vmatprep.mubr.bf16.mxu1 %v5521_v16  ;;  %v16408_v5 = vld [vmem:[#allocation2 + $0x20] sm:$0xff]   ;;  %v14635_v16 = vld [vmem:[%s16887_s28 + $0x348] sm:$0xff] }
 0x21e   : > { %15712 = vmatmul.mubr.msk.f32.gmra.mrb[98].mxu0 %vm375_vm3, %v14629_v45  ;;  %v18678_v60 = vpop.f32.mrb[4].mxu0  ;;  %v18704_v45 = vld [vmem:[#allocation2 + $0x4c] sm:$0xff]   ;;  %6254 = vmatpush1.bf16.msra.mxu1 %v16407_v22  ;;  %4503 = vst.msk [vmem:[#allocation3 + $0x40] sm:$0xff] %vm2072_vm14, %v16408_v5 }
 0x21f   : > { %15714 = vmatprep.mubr.msk.f32.mxu0 %vm375_vm3, %v14630_v42  ;;  %v3272_v12 = vpop.permute.xlu1 %3271  ;;  %v18684_v6 = vpop.f32.mrb[5].mxu0  ;;  %v4094_v42 = vrot.slane %v18682_v48, 1  ;;  %6255 = vmatprep.subr.bf16.mxu1 %v22767_v19  ;;  %v5525_v5 = vld [vmem:[#allocation3 + $0x280] sm:$0xff]  ;;  %v16419_v48 = vld [vmem:[%s22595_s3 + $0xa0] sm:$0xff]  }
 0x220   : > { %3340 = vst.msk [vmem:[#allocation3 + $0x350] sm:$0xff] %vm2652_vm15, %v3272_v12  ;;  %v18695_v40 = vpop.f32.mrb[6].mxu0 }
 0x221   : > { %4152 = vrot.lane.b32.xlu1 %v4093_v27, %s16826_s8  ;;  %v18699_v50 = vpop.f32.mrb[7].mxu0  ;;  %v4095_v12 = vsel %vm2897_vm13, %v4092_v28, %v4094_v42  ;;  %v18729_v27 = vld [vmem:[#allocation2 + $0x60] sm:$0xff]   ;;  %v3575_v28 = vshrl.u32 %v18706_v39, 16 }
 0x222   : > { %15715 = vmatmul.mubr.msk.f32.gmra.mrb[100].mxu0 %vm375_vm3, %v14631_v63  ;;  %v3564_v63 = vshrl.u32 %v16404_v14, 16  ;;  %v4818_v22 = vshll.u32 %v18729_v27, 16 }
 0x223   : > { %15717 = vmatprep.mubr.msk.f32.mxu0 %vm375_vm3, %v14632_v15  ;;  %v2605_v46 = vpop.permute.xlu1 %2604  ;;  %v3568_v15 = vrot.slane %v3566_v25, 1 }
 0x224   : > { %2674 = vst.msk [vmem:[#allocation3 + $0x348] sm:$0xff] %vm2652_vm15, %v2605_v46  ;;  %6133 = vmatmul.mubr.bf16.gmra.mrb[120].mxu1 %v5520_v7  ;;  %v16413_v7 = vld [vmem:[%s22595_s3 + $0x90] sm:$0xff]  }
 0x225   : > { %5002 = vrot.lane.b32.xlu1 %v4805_v49, %s16826_s8  ;;  %6140 = vmatprep.mubr.bf16.mxu1 %v5526_v43  ;;  %v3569_v14 = vor.u32 %v3568_v15, %v3564_v63  ;;  %v4808_v49 = vor.u32 %v4806_v32, %v4804_v56  ;;  %v14638_v43 = vld [vmem:[%s16887_s28 + $0x360] sm:$0xff]  ;;  %v16414_v56 = vld [vmem:[#allocation2 + $0x28] sm:$0xff]   ;;  %v18758_v15 = vld [vmem:[#allocation2 + $0x54] sm:$0xff]   ;;  %v3581_v32 = vrot.slane %v3579_v8, 1 }
 0x226   : > { %15718 = vmatmul.mubr.msk.f32.gmra.mrb[102].mxu0 %vm375_vm3, %v14633_v36  ;;  %v16410_v36 = vld [vmem:[%s22595_s3 + $0x88] sm:$0xff]   ;;  %4504 = vst.msk [vmem:[#allocation3 + $0x68] sm:$0xff] %vm2072_vm14, %v16414_v56  ;;  %v14640_v8 = vld [vmem:[%s16887_s28 + $0x370] sm:$0xff] }
 0x227   : > { %15720 = vmatprep.mubr.msk.f32.mxu0 %vm375_vm3, %v14634_v18  ;;  %v3274_v41 = vpop.permute.xlu1 %3273  ;;  %v22645_v18 = vrot.slane %v18704_v45, 1  ;;  %v3574_v25 = vsel %vm2317_vm12, %v3569_v14, %v3573_v3  ;;  %6256 = vmatpush1.bf16.msra.mxu1 %v16410_v36  ;;  %v4311_v36 = vld [vmem:[#allocation2 + $0xdc] sm:$0xf]  ;;  %v18764_v14 = vld [vmem:[#allocation2 + $0x24] sm:$0xff]  }
 0x228   : > { %3341 = vst.msk [vmem:[#allocation3 + $0x378] sm:$0xff] %vm2652_vm15, %v3274_v41  ;;  %6257 = vmatprep.subr.bf16.mxu1 %v22767_v19  ;;  %v5531_v41 = vld [vmem:[#allocation3 + $0x2b0] sm:$0xff]  ;;  %v18775_v56 = vld [vmem:[#allocation2 + $0x68] sm:$0xff]  }
 0x229   : > { %4154 = vrot.lane.b32.xlu1 %v4095_v12, %s16826_s8  ;;  %v18740_v46 = vpop.f32.mrb[8].mxu0  ;;  %3837 = vst.msk [vmem:[#allocation3 + $0x10] sm:$0xff] %vm2072_vm14, %v3574_v25  ;;  %v3577_v12 = vor.u32 %v3575_v28, %v3573_v3  ;;  %v16416_v25 = vld [vmem:[%s22595_s3 + $0x98] sm:$0xff]   ;;  %v14639_v3 = vld [vmem:[%s16887_s28 + $0x368] sm:$0xff] }
 0x22a   : > { %15721 = vmatmul.mubr.msk.f32.gmra.mrb[104].mxu0 %vm375_vm3, %v14635_v16  ;;  %v18747_v26 = vpop.f32.mrb[9].mxu0  ;;  %v4813_v16 = vsel %vm2317_vm12, %v4808_v49, %v4812_v53 }
 0x22b   : > { %15723 = vmatprep.mubr.msk.f32.mxu0 %vm375_vm3, %v14636_v33  ;;  %v2607_v39 = vpop.permute.xlu1 %2606  ;;  %v18752_v63 = vpop.f32.mrb[10].mxu0  ;;  %v3582_v49 = vsel %vm2317_vm12, %v3577_v12, %v3581_v32  ;;  %6258 = vmatpush1.bf16.msra.mxu1 %v16413_v7  ;;  %v3587_v7 = vshll.u32 %v18764_v14, 16  ;;  %v14641_v12 = vld [vmem:[%s16887_s28 + $0x378] sm:$0xff] }
 0x22c   : > { %2675 = vst.msk [vmem:[#allocation3 + $0x370] sm:$0xff] %vm2652_vm15, %v2607_v39  ;;  %6141 = vmatmul.mubr.bf16.gmra.mrb[124].mxu1 %v5525_v5  ;;  %v18760_v33 = vpop.f32.mrb[11].mxu0  ;;  %v4310_v39 = vld [vmem:[#allocation2 + $0xd8] sm:$0xf]  ;;  %v4814_v5 = vshrl.u32 %v18693_v23, 16  ;;  %6259 = vmatprep.subr.bf16.mxu1 %v22767_v19  ;;  %v16420_v23 = vld [vmem:[#allocation2 + $0x30] sm:$0xff]  }
 0x22d   : > { %5004 = vrot.lane.b32.xlu1 %v4813_v16, %s16826_s8  ;;  %6148 = vmatprep.mubr.bf16.mxu1 %v5531_v41  ;;  %3838 = vst.msk [vmem:[#allocation3 + $0x38] sm:$0xff] %vm2072_vm14, %v3582_v49  ;;  %v18786_v16 = vrot.slane %v4818_v22, 1  ;;  %v4313_v41 = vld [vmem:[#allocation2 + $0xe4] sm:$0xf]  ;;  %v3589_v0 = vrot.slane %v3587_v7, 1  ;;  %4505 = vst.msk [vmem:[#allocation3 + $0x90] sm:$0xff] %vm2072_vm14, %v16420_v23 }
 0x22e   : > { %15724 = vmatmul.mubr.msk.f32.gmra.mrb[106].mxu0 %vm375_vm3, %v14637_v24  ;;  %v3583_v24 = vshrl.u32 %v16411_v34, 16  ;;  %v4816_v34 = vor.u32 %v4814_v5, %v4812_v53  ;;  %v4312_v22 = vld [vmem:[#allocation2 + $0xe0] sm:$0xf]  ;;  %v5530_v53 = vld [vmem:[#allocation3 + $0x2a8] sm:$0xff]  ;;  %v5536_v5 = vld [vmem:[#allocation3 + $0x2d8] sm:$0xff] }
 0x22f   : > { %15726 = vmatprep.mubr.msk.f32.mxu0 %vm375_vm3, %v14638_v43  ;;  %v3276_v28 = vpop.permute.xlu1 %3275  ;;  %v4097_v43 = vsel %vm2897_vm13, %v4094_v42, %v22645_v18  ;;  %6260 = vmatpush1.bf16.msra.mxu1 %v16416_v25  ;;  %v14455_v42 = vcombine.low %v4310_v39, %v4311_v36  ;;  %v18803_v25 = vld [vmem:[#allocation2 + $0x2c] sm:$0xff]   ;;  %v18808_v39 = vld [vmem:[#allocation2 + $0x5c] sm:$0xff]   ;;  %v4314_v18 = vld [vmem:[#allocation2 + $0xe8] sm:$0xf] }
 0x230   : > { %3342 = vst.msk [vmem:[#allocation3 + $0x3a0] sm:$0xff] %vm2652_vm15, %v3276_v28  ;;  %v3585_v49 = vor.u32 %v3583_v24, %v3581_v32  ;;  %v4826_v32 = vshll.u32 %v18775_v56, 16  ;;  %6261 = vmatprep.subr.bf16.mxu1 %v22767_v19  ;;  %v4821_v36 = vsel %vm2317_vm12, %v4816_v34, %v18786_v16  ;;  %v4315_v7 = vld [vmem:[#allocation2 + $0xec] sm:$0xf]  ;;  %v3591_v34 = vshrl.u32 %v18764_v14, 16 }
 0x231   : > { %4156 = vrot.lane.b32.xlu1 %v4097_v43, %s16826_s8  ;;  %4526 = vst.msk [vmem:[#allocation3 + $0x3d8] sm:$0xff] %vm2072_vm14, %v14455_v42  ;;  %v16426_v42 = vld [vmem:[#allocation2 + $0x38] sm:$0xff]   ;;  %v4822_v14 = vshrl.u32 %v18729_v27, 16 }
 0x232   : > { %15727 = vmatmul.mubr.msk.f32.gmra.mrb[108].mxu0 %vm375_vm3, %v14639_v3  ;;  %v3590_v3 = vsel %vm2317_vm12, %v3585_v49, %v3589_v0  ;;  %v16422_v49 = vld [vmem:[%s22595_s3 + $0xa8] sm:$0xff]   ;;  %v3593_v30 = vor.u32 %v3591_v34, %v3589_v0  ;;  %4506 = vst.msk [vmem:[#allocation3 + $0xb8] sm:$0xff] %vm2072_vm14, %v16426_v42  ;;  %v4319_v27 = vld [vmem:[#allocation2 + $0xfc] sm:$0xf]  ;;  %v4317_v0 = vld [vmem:[#allocation2 + $0xf4] sm:$0xf] }
 0x233   : > { %15729 = vmatprep.mubr.msk.f32.mxu0 %vm375_vm3, %v14640_v8  ;;  %v2609_v43 = vpop.permute.xlu1 %2608  ;;  %v18799_v24 = vpop.f32.mrb[12].mxu0  ;;  %3839 = vst.msk [vmem:[#allocation3 + $0x60] sm:$0xff] %vm2072_vm14, %v3590_v3  ;;  %6262 = vmatpush1.bf16.msra.mxu1 %v16419_v48  ;;  %v14456_v3 = vcombine.low %v4312_v22, %v4313_v41  ;;  %v22814_v41 = vrot.slane %v18758_v15, 1  ;;  %v22815_v48 = vrot.slane %v18704_v45, 1  ;;  %v4318_v34 = vld [vmem:[#allocation2 + $0xf8] sm:$0xf]  ;;  %v4824_v45 = vor.u32 %v4822_v14, %v18786_v16 }
 0x234   : > { %2676 = vst.msk [vmem:[#allocation3 + $0x398] sm:$0xff] %vm2652_vm15, %v2609_v43  ;;  %v18810_v8 = vpop.f32.mrb[13].mxu0  ;;  %6149 = vmatmul.mubr.bf16.gmra.mrb[128].mxu1 %v5530_v53  ;;  %v3595_v43 = vshll.u32 %v18803_v25, 16  ;;  %6263 = vmatprep.subr.bf16.mxu1 %v22767_v19  ;;  %v16425_v42 = vld [vmem:[%s22595_s3 + $0xb0] sm:$0xff]   ;;  %v3599_v16 = vshrl.u32 %v18803_v25, 16  ;;  %v16432_v14 = vld [vmem:[#allocation2 + $0x40] sm:$0xff]   ;;  %v14459_v10 = vcombine.low %v4318_v34, %v4319_v27 }
 0x235   : > { %5006 = vrot.lane.b32.xlu1 %v4821_v36, %s16826_s8  ;;  %v18815_v23 = vpop.f32.mrb[14].mxu0  ;;  %6156 = vmatprep.mubr.bf16.mxu1 %v5536_v5  ;;  %v18825_v36 = vld [vmem:[#allocation2 + $0xc4] sm:$0xff]   ;;  %v4099_v22 = vsel %vm2897_vm13, %v22815_v48, %v22814_v41  ;;  %4527 = vst.msk [vmem:[#allocation3 + $0x400] sm:$0xff] %vm2072_vm14, %v14456_v3  ;;  %v14457_v3 = vcombine.low %v4314_v18, %v4315_v7  ;;  %v4316_v48 = vld [vmem:[#allocation2 + $0xf0] sm:$0xf]  ;;  %v4834_v18 = vshll.u32 %v18840_v4, 16 }
 0x236   : > { %15730 = vmatmul.mubr.msk.f32.gmra.mrb[110].mxu0 %vm375_vm3, %v14641_v12  ;;  %v18823_v53 = vpop.f32.mrb[15].mxu0  ;;  %v14643_v5 = vld [vmem:[%s16887_s28 + $0x388] sm:$0xff]  ;;  %v3597_v12 = vrot.slane %v3595_v43, 1  ;;  %4507 = vst.msk [vmem:[#allocation3 + $0xe0] sm:$0xff] %vm2072_vm14, %v16432_v14  ;;  %v22816_v27 = vrot.slane %v18808_v39, 1  ;;  %4530 = vst.msk [vmem:[#allocation3 + $0x478] sm:$0xff] %vm2072_vm14, %v14459_v10 }
 0x237   : > { %15732 = vmatprep.mubr.msk.f32.mxu0 %vm375_vm3, %v14642_v61  ;;  %v3278_v28 = vpop.permute.xlu1 %3277  ;;  %v18838_v61 = vrot.slane %v4826_v32, 1  ;;  %v14646_v32 = vld [vmem:[%s16887_s28 + $0x3a0] sm:$0xff]  ;;  %6264 = vmatpush1.bf16.msra.mxu1 %v16422_v49  ;;  %v5541_v7 = vld [vmem:[#allocation3 + $0x300] sm:$0xff]  ;;  %4528 = vst.msk [vmem:[#allocation3 + $0x428] sm:$0xff] %vm2072_vm14, %v14457_v3  ;;  %v16428_v3 = vld [vmem:[%s22595_s3 + $0xb8] sm:$0xff]  }
 0x238   : > { %3343 = vst.msk [vmem:[#allocation3 + $0x3c8] sm:$0xff] %vm2652_vm15, %v3278_v28  ;;  %v14645_v28 = vld [vmem:[%s16887_s28 + $0x398] sm:$0xff]  ;;  %v3598_v43 = vsel %vm2317_vm12, %v3593_v30, %v3597_v12  ;;  %6265 = vmatprep.subr.bf16.mxu1 %v22767_v19  ;;  %v3601_v25 = vor.u32 %v3599_v16, %v3597_v12  ;;  %v16438_v14 = vld [vmem:[#allocation2 + $0x48] sm:$0xff]   ;;  %v16431_v10 = vld [vmem:[%s22595_s3 + $0xc0] sm:$0xff]  }
 0x239   : > { %4158 = vrot.lane.b32.xlu1 %v4099_v22, %s16826_s8  ;;  %3840 = vst.msk [vmem:[#allocation3 + $0x88] sm:$0xff] %vm2072_vm14, %v3598_v43  ;;  %v5535_v22 = vld [vmem:[#allocation3 + $0x2d0] sm:$0xff]  ;;  %v4829_v49 = vsel %vm2317_vm12, %v4824_v45, %v18838_v61  ;;  %v18865_v43 = vld [vmem:[#allocation2 + $0x64] sm:$0xff]   ;;  %v14648_v45 = vld [vmem:[%s16887_s28 + $0x3b0] sm:$0xff] }
 0x23a   : > { %15733 = vmatmul.mubr.msk.f32.gmra.mrb[112].mxu0 %vm375_vm3, %v14643_v5  ;;  %v3603_v5 = vshll.u32 %v16429_v2, 16  ;;  %4508 = vst.msk [vmem:[#allocation3 + $0x108] sm:$0xff] %vm2072_vm14, %v16438_v14  ;;  %v5561_v55 = vld [vmem:[#allocation3 + $0x3a0] sm:$0xff] }
 0x23b   : > { %15735 = vmatprep.mubr.msk.f32.mxu0 %vm375_vm3, %v14644_v54  ;;  %v2611_v30 = vpop.permute.xlu1 %2610  ;;  %v14647_v54 = vld [vmem:[%s16887_s28 + $0x3a8] sm:$0xff]  ;;  %6266 = vmatpush1.bf16.msra.mxu1 %v16425_v42 }
 0x23c   : > { %2677 = vst.msk [vmem:[#allocation3 + $0x3c0] sm:$0xff] %vm2652_vm15, %v2611_v30  ;;  %6157 = vmatmul.mubr.bf16.gmra.mrb[132].mxu1 %v5535_v22  ;;  %v3605_v41 = vrot.slane %v3603_v5, 1  ;;  %v18868_v30 = vld [vmem:[#allocation2 + $0x3c] sm:$0xff]   ;;  %v4830_v22 = vshrl.u32 %v18775_v56, 16  ;;  %6267 = vmatprep.subr.bf16.mxu1 %v22767_v19 }
 0x23d   : > { %5008 = vrot.lane.b32.xlu1 %v4829_v49, %s16826_s8  ;;  %6164 = vmatprep.mubr.bf16.mxu1 %v5541_v7  ;;  %v14458_v49 = vcombine.low %v4316_v48, %v4317_v0  ;;  %v18881_v5 = vld [vmem:[#allocation2 + $0x78] sm:$0xff]   ;;  %v3611_v42 = vshll.u32 %v18868_v30, 16  ;;  %v22817_v0 = vrot.slane %v18758_v15, 1  ;;  %v3747_v7 = vshll.u32 %v18825_v36, 16 }
 0x23e   : > { %15736 = vmatmul.mubr.msk.f32.gmra.mrb[114].mxu0 %vm375_vm3, %v14645_v28  ;;  %v3606_v56 = vsel %vm2317_vm12, %v3601_v25, %v3605_v41  ;;  %v3607_v28 = vshrl.u32 %v16429_v2, 16  ;;  %v14649_v2 = vld [vmem:[%s16887_s28 + $0x3b8] sm:$0xff] }
 0x23f   : > { %15738 = vmatprep.mubr.msk.f32.mxu0 %vm375_vm3, %v14646_v32  ;;  %v3280_v12 = vpop.permute.xlu1 %3279  ;;  %v18879_v16 = vpop.f32.mrb[16].mxu0  ;;  %v4101_v34 = vsel %vm2897_vm13, %v22817_v0, %v22816_v27  ;;  %v4836_v32 = vrot.slane %v4834_v18, 1  ;;  %3841 = vst.msk [vmem:[#allocation3 + $0xb0] sm:$0xff] %vm2072_vm14, %v3606_v56  ;;  %4529 = vst.msk [vmem:[#allocation3 + $0x450] sm:$0xff] %vm2072_vm14, %v14458_v49  ;;  %v18902_v27 = vld [vmem:[#allocation2 + $0xd4] sm:$0xff]   ;;  %v4832_v18 = vor.u32 %v4830_v22, %v18838_v61  ;;  %v22652_v56 = vrot.slane %v18865_v43, 1 }
 0x240   : > { %3344 = vst.msk [vmem:[#allocation3 + $0x3f0] sm:$0xff] %vm2652_vm15, %v3280_v12  ;;  %v18892_v48 = vpop.f32.mrb[17].mxu0  ;;  %v3609_v15 = vor.u32 %v3607_v28, %v3605_v41  ;;  %v3613_v12 = vrot.slane %v3611_v42, 1  ;;  %v5540_v49 = vld [vmem:[#allocation3 + $0x2f8] sm:$0xff]  ;;  %6268 = vmatpush1.bf16.msra.mxu1 %v16428_v3  ;;  %v4842_v28 = vshll.u32 %v18881_v5, 16  ;;  %v3615_v42 = vshrl.u32 %v18868_v30, 16 }
 0x241   : > { %4160 = vrot.lane.b32.xlu1 %v4101_v34, %s16826_s8  ;;  %v18900_v25 = vpop.f32.mrb[18].mxu0  ;;  %6269 = vmatprep.subr.bf16.mxu1 %v22767_v19  ;;  %v4837_v22 = vsel %vm2317_vm12, %v4832_v18, %v4836_v32  ;;  %v16441_v3 = vld [vmem:[#allocation2 + $0x44] sm:$0xff]   ;;  %v18925_v34 = vrot.slane %v3747_v7, 1 }
 0x242   : > { %15739 = vmatmul.mubr.msk.f32.gmra.mrb[116].mxu0 %vm375_vm3, %v14647_v54  ;;  %v18907_v0 = vpop.f32.mrb[19].mxu0  ;;  %v5546_v54 = vld [vmem:[#allocation3 + $0x328] sm:$0xff]  ;;  %v3614_v61 = vsel %vm2317_vm12, %v3609_v15, %v3613_v12  ;;  %v3619_v14 = vshll.u32 %v16441_v3, 16  ;;  %v18936_v30 = vld [vmem:[#allocation2 + $0x80] sm:$0xff]   ;;  %v3617_v7 = vor.u32 %v3615_v42, %v3613_v12 }
 0x243   : > { %15741 = vmatprep.mubr.msk.f32.mxu0 %vm375_vm3, %v14648_v45  ;;  %v2613_v41 = vpop.permute.xlu1 %2612  ;;  %3842 = vst.msk [vmem:[#allocation3 + $0xd8] sm:$0xff] %vm2072_vm14, %v3614_v61  ;;  %v16434_v45 = vld [vmem:[%s22595_s3 + $0xc8] sm:$0xff]   ;;  %v16444_v15 = vld [vmem:[#allocation2 + $0x50] sm:$0xff]   ;;  %v4844_v61 = vrot.slane %v4842_v28, 1 }
 0x244   : > { %2678 = vst.msk [vmem:[#allocation3 + $0x3e8] sm:$0xff] %vm2652_vm15, %v2613_v41  ;;  %6165 = vmatmul.mubr.bf16.gmra.mrb[136].mxu1 %v5540_v49  ;;  %v22818_v49 = vrot.slane %v18808_v39, 1  ;;  %v3755_v39 = vshll.u32 %v18876_v21, 16  ;;  %v16437_v28 = vld [vmem:[%s22595_s3 + $0xd0] sm:$0xff]  }
 0x245   : > { %5010 = vrot.lane.b32.xlu1 %v4837_v22, %s16826_s8  ;;  %6172 = vmatprep.mubr.bf16.mxu1 %v5546_v54  ;;  %v4838_v54 = vshrl.u32 %v18840_v4, 16  ;;  %v18934_v22 = vld [vmem:[#allocation2 + $0x6c] sm:$0xff]   ;;  %4509 = vst.msk [vmem:[#allocation3 + $0x130] sm:$0xff] %vm2072_vm14, %v16444_v15 }
 0x246   : > { %15742 = vmatmul.mubr.msk.f32.gmra.mrb[118].mxu0 %vm375_vm3, %v14649_v2  ;;  %6270 = vmatpush1.bf16.msra.mxu1 %v16431_v10  ;;  %v4103_v41 = vsel %vm2897_vm13, %v22818_v49, %v22652_v56  ;;  %v3621_v2 = vrot.slane %v3619_v14, 1  ;;  %v3751_v10 = vshrl.u32 %v18825_v36, 16  ;;  %v18948_v56 = vld [vmem:[#allocation2 + $0x4c] sm:$0xff]   ;;  %v3757_v42 = vrot.slane %v3755_v39, 1 }
 0x247   : > { %v3282_v18 = vpop.permute.xlu1 %3281  ;;  %6271 = vmatprep.subr.bf16.mxu1 %v22767_v19  ;;  %v4840_v4 = vor.u32 %v4838_v54, %v4836_v32  ;;  %v5545_v32 = vld [vmem:[#allocation3 + $0x320] sm:$0xff]  ;;  %v16440_v54 = vld [vmem:[%s22595_s3 + $0xd8] sm:$0xff]   ;;  %v22820_v17 = vrot.slane %v18934_v22, 1 }
 0x248   : > { %3345 = vst.msk [vmem:[#allocation3 + $0x418] sm:$0xff] %vm2652_vm15, %v3282_v18  ;;  %v3622_v49 = vsel %vm2317_vm12, %v3617_v7, %v3621_v2  ;;  %v3753_v12 = vor.u32 %v3751_v10, %v18925_v34  ;;  %v4850_v18 = vshll.u32 %v18936_v30, 16  ;;  %v3623_v7 = vshrl.u32 %v16441_v3, 16  ;;  %v5565_v47 = vld [vmem:[#allocation3 + $0x3c0] sm:$0xff] }
 0x249   : > { %4162 = vrot.lane.b32.xlu1 %v4103_v41, %s16826_s8  ;;  %v4845_v36 = vsel %vm2317_vm12, %v4840_v4, %v4844_v61  ;;  %3843 = vst.msk [vmem:[#allocation3 + $0x100] sm:$0xff] %vm2072_vm14, %v3622_v49  ;;  %v5551_v41 = vld [vmem:[#allocation3 + $0x350] sm:$0xff]  ;;  %v3627_v10 = vshll.u32 %v18948_v56, 16  ;;  %v3763_v4 = vshll.u32 %v18902_v27, 16 }
 0x24a   : > { %6272 = vmatpush1.bf16.msra.mxu1 %v16434_v45  ;;  %v18957_v45 = vld [vmem:[#allocation2 + $0x74] sm:$0xff]   ;;  %v3758_v39 = vsel %vm2317_vm12, %v3753_v12, %v3757_v42  ;;  %v3625_v15 = vor.u32 %v3623_v7, %v3621_v2  ;;  %v22821_v12 = vrot.slane %v18865_v43, 1  ;;  %v4852_v2 = vrot.slane %v4850_v18, 1  ;;  %v16443_v18 = vld [vmem:[%s22595_s3 + $0xe0] sm:$0xff]  }
 0x24b   : > { %v2615_v14 = vpop.permute.xlu1 %2614  ;;  %6273 = vmatprep.subr.bf16.mxu1 %v22767_v19  ;;  %v16450_v49 = vld [vmem:[#allocation2 + $0x58] sm:$0xff]   ;;  %3860 = vst.msk [vmem:[#allocation3 + $0x3a8] sm:$0xff] %vm2072_vm14, %v3758_v39  ;;  %v3629_v29 = vrot.slane %v3627_v10, 1  ;;  %v18986_v7 = vrot.slane %v3763_v4, 1  ;;  %v22657_v39 = vrot.slane %v18957_v45, 1 }
 0x24c   : > { %2679 = vst.msk [vmem:[#allocation3 + $0x410] sm:$0xff] %vm2652_vm15, %v2615_v14  ;;  %6173 = vmatmul.mubr.bf16.gmra.mrb[140].mxu1 %v5545_v32  ;;  %v3759_v14 = vshrl.u32 %v18876_v21, 16  ;;  %v4105_v37 = vsel %vm2897_vm13, %v22821_v12, %v22820_v17  ;;  %v5550_v4 = vld [vmem:[#allocation3 + $0x348] sm:$0xff] }
 0x24d   : > { %5012 = vrot.lane.b32.xlu1 %v4845_v36, %s16826_s8  ;;  %6180 = vmatprep.mubr.bf16.mxu1 %v5551_v41  ;;  %v4846_v36 = vshrl.u32 %v18881_v5, 16  ;;  %4510 = vst.msk [vmem:[#allocation3 + $0x158] sm:$0xff] %vm2072_vm14, %v16450_v49  ;;  %v3630_v41 = vsel %vm2317_vm12, %v3625_v15, %v3629_v29  ;;  %v16453_v5 = vld [vmem:[#allocation2 + $0x54] sm:$0xff]   ;;  %v5556_v49 = vld [vmem:[#allocation3 + $0x378] sm:$0xff] }
 0x24e   : > { %6274 = vmatpush1.bf16.msra.mxu1 %v16437_v28  ;;  %v18983_v28 = vld [vmem:[#allocation2 + $0x88] sm:$0xff]   ;;  %v3761_v43 = vor.u32 %v3759_v14, %v3757_v42  ;;  %3844 = vst.msk [vmem:[#allocation3 + $0x128] sm:$0xff] %vm2072_vm14, %v3630_v41  ;;  %v3635_v14 = vshll.u32 %v16453_v5, 16 }
 0x24f   : > { %v3284_v3 = vpop.permute.xlu1 %3283  ;;  %6275 = vmatprep.subr.bf16.mxu1 %v22767_v19  ;;  %v4848_v10 = vor.u32 %v4846_v36, %v4844_v61 }
 0x250   : > { %v18968_v32 = vpop.f32.mrb[20].mxu0  ;;  %3346 = vst.msk [vmem:[#allocation3 + $0x440] sm:$0xff] %vm2652_vm15, %v3284_v3  ;;  %v3766_v42 = vsel %vm2317_vm12, %v3761_v43, %v18986_v7  ;;  %v16455_v3 = vld [vmem:[#allocation2 + $0x60] sm:$0xff]   ;;  %v3637_v36 = vrot.slane %v3635_v14, 1  ;;  %v19024_v14 = vld [vmem:[#allocation2 + $0x90] sm:$0xff]  }
 0x251   : > { %22819 = vst [vmem:[#allocation65_spill] sm:$0xff] %v18968_v32  ;;  %v18975_v52 = vpop.f32.mrb[21].mxu0  ;;  %4164 = vrot.lane.b32.xlu1 %v4105_v37, %s16826_s8  ;;  %v3631_v37 = vshrl.u32 %v18948_v56, 16  ;;  %3861 = vst.msk [vmem:[#allocation3 + $0x3d0] sm:$0xff] %vm2072_vm14, %v3766_v42  ;;  %v4853_v61 = vsel %vm2317_vm12, %v4848_v10, %v4852_v2  ;;  %v16446_v56 = vld [vmem:[%s22595_s3 + $0xe8] sm:$0xff]   ;;  %v4854_v10 = vshrl.u32 %v18936_v30, 16 }
 0x252   : > { %22822 = vst [vmem:[#allocation66_spill] sm:$0xff] %v18975_v52  ;;  %v18981_v21 = vpop.f32.mrb[22].mxu0  ;;  %6276 = vmatpush1.bf16.msra.mxu1 %v16440_v54  ;;  %v4858_v54 = vshll.u32 %v18983_v28, 16  ;;  %4511 = vst.msk [vmem:[#allocation3 + $0x180] sm:$0xff] %vm2072_vm14, %v16455_v3  ;;  %v19012_v42 = vld [vmem:[#allocation2 + $0x7c] sm:$0xff]   ;;  %v3639_v30 = vshrl.u32 %v16453_v5, 16 }
 0x253   : > { %22823 = vst [vmem:[#allocation67_spill] sm:$0xff] %v18981_v21  ;;  %v18989_v17 = vpop.f32.mrb[23].mxu0  ;;  %v2617_v15 = vpop.permute.xlu1 %2616  ;;  %6277 = vmatprep.subr.bf16.mxu1 %v22767_v19  ;;  %v3633_v12 = vor.u32 %v3631_v37, %v3629_v29  ;;  %v16457_v29 = vld [vmem:[#allocation2 + $0x5c] sm:$0xff]  }
 0x254   : > { %22824 = vst [vmem:[#allocation68_spill] sm:$0xff] %v18989_v17  ;;  %2680 = vst.msk [vmem:[#allocation3 + $0x438] sm:$0xff] %vm2652_vm15, %v2617_v15  ;;  %6181 = vmatmul.mubr.bf16.gmra.mrb[144].mxu1 %v5550_v4  ;;  %v4860_v37 = vrot.slane %v4858_v54, 1  ;;  %v3643_v3 = vshll.u32 %v16457_v29, 16  ;;  %v19035_v54 = vld [vmem:[#allocation2 + $0xdc] sm:$0xff]  }
 0x255   : > { %5014 = vrot.lane.b32.xlu1 %v4853_v61, %s16826_s8  ;;  %6188 = vmatprep.mubr.bf16.mxu1 %v5556_v49  ;;  %v3638_v15 = vsel %vm2317_vm12, %v3633_v12, %v3637_v36  ;;  %v5555_v5 = vld [vmem:[#allocation3 + $0x370] sm:$0xff] }
 0x256   : > { %6278 = vmatpush1.bf16.msra.mxu1 %v16443_v18  ;;  %v22826_v18 = vrot.slane %v18934_v22, 1  ;;  %3845 = vst.msk [vmem:[#allocation3 + $0x150] sm:$0xff] %vm2072_vm14, %v3638_v15  ;;  %v16449_v22 = vld [vmem:[%s22595_s3 + $0xf0] sm:$0xff]   ;;  %v3645_v35 = vrot.slane %v3643_v3, 1 }
 0x257   : > { %v3286_v41 = vpop.permute.xlu1 %3285  ;;  %6279 = vmatprep.subr.bf16.mxu1 %v22767_v19  ;;  %v16464_v3 = vld [vmem:[#allocation2 + $0x70] sm:$0xff]  }
 0x258   : > { %v19009_v43 = vpop.f32.mrb[24].mxu0  ;;  %3347 = vst.msk [vmem:[#allocation3 + $0x468] sm:$0xff] %vm2652_vm15, %v3286_v41  ;;  %v4107_v4 = vsel %vm2897_vm13, %v22826_v18, %v22657_v39  ;;  %v4856_v41 = vor.u32 %v4854_v10, %v4852_v2  ;;  %v16459_v18 = vld [vmem:[#allocation2 + $0x68] sm:$0xff]  }
 0x259   : > { %22825 = vst [vmem:[#allocation69_spill] sm:$0xff] %v19009_v43  ;;  %v19022_v49 = vpop.f32.mrb[25].mxu0  ;;  %4166 = vrot.lane.b32.xlu1 %v4107_v4, %s16826_s8  ;;  %v3641_v4 = vor.u32 %v3639_v30, %v3637_v36  ;;  %4512 = vst.msk [vmem:[#allocation3 + $0x1a8] sm:$0xff] %vm2072_vm14, %v16459_v18  ;;  %v16461_v10 = vld [vmem:[#allocation2 + $0x64] sm:$0xff]   ;;  %v3647_v36 = vshrl.u32 %v16457_v29, 16  ;;  %v22830_v18 = vrot.slane %v19012_v42, 1 }
 0x25a   : > { %22827 = vst [vmem:[#allocation70_spill] sm:$0xff] %v19022_v49  ;;  %v19028_v61 = vpop.f32.mrb[26].mxu0  ;;  %6280 = vmatpush1.bf16.msra.mxu1 %v16446_v56  ;;  %v4861_v2 = vsel %vm2317_vm12, %v4856_v41, %v4860_v37  ;;  %v4866_v56 = vshll.u32 %v19024_v14, 16  ;;  %v3651_v30 = vshll.u32 %v16461_v10, 16  ;;  %4513 = vst.msk [vmem:[#allocation3 + $0x1d0] sm:$0xff] %vm2072_vm14, %v16464_v3 }
 0x25b   : > { %22828 = vst [vmem:[#allocation71_spill] sm:$0xff] %v19028_v61  ;;  %v19030_v12 = vpop.f32.mrb[27].mxu0  ;;  %v2619_v39 = vpop.permute.xlu1 %2618  ;;  %6281 = vmatprep.subr.bf16.mxu1 %v22767_v19  ;;  %v3646_v15 = vsel %vm2317_vm12, %v3641_v4, %v3645_v35  ;;  %v19057_v4 = vld [vmem:[#allocation2 + $0x98] sm:$0xff]  }
 0x25c   : > { %22829 = vst [vmem:[#allocation72_spill] sm:$0xff] %v19030_v12  ;;  %2681 = vst.msk [vmem:[#allocation3 + $0x460] sm:$0xff] %vm2652_vm15, %v2619_v39  ;;  %6189 = vmatmul.mubr.bf16.gmra.mrb[148].mxu1 %v5555_v5  ;;  %v16452_v39 = vld [vmem:[%s22595_s3 + $0xf8] sm:$0xff]   ;;  %v22831_v5 = vrot.slane %v18957_v45, 1  ;;  %v3653_v29 = vrot.slane %v3651_v30, 1  ;;  %v16468_v45 = vld [vmem:[%s22595_s3] sm:$0xff]  }
 0x25d   : > { %5016 = vrot.lane.b32.xlu1 %v4861_v2, %s16826_s8  ;;  %6196 = vmatprep.mubr.bf16.mxu1 %v5561_v55  ;;  %3846 = vst.msk [vmem:[#allocation3 + $0x178] sm:$0xff] %vm2072_vm14, %v3646_v15  ;;  %v4862_v55 = vshrl.u32 %v18983_v28, 16  ;;  %v3649_v15 = vor.u32 %v3647_v36, %v3645_v35  ;;  %v16469_v35 = vld [vmem:[#allocation2 + $0x6c] sm:$0xff]   ;;  %v4874_v3 = vshll.u32 %v19057_v4, 16 }
 0x25e   : > { %6282 = vmatpush1.bf16.msra.mxu1 %v16449_v22  ;;  %v4109_v2 = vsel %vm2897_vm13, %v22831_v5, %v22830_v18  ;;  %v4868_v22 = vrot.slane %v4866_v56, 1  ;;  %12880 = vmatpush1.bf16.msra.mxu0 %v16468_v45  ;;  %v19083_v5 = vld [vmem:[#allocation2 + $0xa0] sm:$0xff]   ;;  %v16496_v12 = vld [vmem:[#allocation2 + $0xfc] ss:$0 sps:$4 sm:$0x11]  }
 0x25f   : > { %v3288_v41 = vpop.permute.xlu1 %3287  ;;  %6283 = vmatprep.subr.bf16.mxu1 %v22767_v19  ;;  %v4864_v18 = vor.u32 %v4862_v55, %v4860_v37  ;;  %v3654_v56 = vsel %vm2317_vm12, %v3649_v15, %v3653_v29  ;;  %v3659_v55 = vshll.u32 %v16469_v35, 16  ;;  %12881 = vmatprep.subr.bf16.mxu0 %v22767_v19  ;;  %v3771_v15 = vshll.u32 %v19035_v54, 16 }
 0x260   : > { %3348 = vst.msk [vmem:[#allocation3 + $0x490] sm:$0xff] %vm2652_vm15, %v3288_v41  ;;  %v5560_v41 = vld [vmem:[#allocation3 + $0x398] sm:$0xff] }
 0x261   : > { %4168 = vrot.lane.b32.xlu1 %v4109_v2, %s16826_s8  ;;  %v19063_v44 = vpop.f32.mrb[28].mxu0  ;;  %v5566_v2 = vld [vmem:[#allocation3 + $0x3c8] sm:$0xff]  ;;  %3847 = vst.msk [vmem:[#allocation3 + $0x1a0] sm:$0xff] %vm2072_vm14, %v3654_v56  ;;  %v4869_v37 = vsel %vm2317_vm12, %v4864_v18, %v4868_v22  ;;  %v3661_v45 = vrot.slane %v3659_v55, 1 }
 0x262   : > { %22832 = vst [vmem:[#allocation73_spill] sm:$0xff] %v19063_v44  ;;  %v19068_v28 = vpop.f32.mrb[29].mxu0  ;;  %6284 = vmatpush1.bf16.msra.mxu1 %v16452_v39  ;;  %v3655_v39 = vshrl.u32 %v16461_v10, 16  ;;  %v4870_v10 = vshrl.u32 %v19024_v14, 16  ;;  %v16476_v55 = vld [vmem:[#allocation2 + $0x74] sm:$0xff]   ;;  %v16479_v44 = vld [vmem:[#allocation2 + $0x80] sm:$0xff]  }
 0x263   : > { %22833 = vst [vmem:[#allocation74_spill] sm:$0xff] %v19068_v28  ;;  %v2621_v36 = vpop.permute.xlu1 %2620  ;;  %v19072_v30 = vpop.f32.mrb[30].mxu0  ;;  %v3667_v62 = vshll.u32 %v16476_v55, 16  ;;  %4515 = vst.msk [vmem:[#allocation3 + $0x220] sm:$0xff] %vm2072_vm14, %v16479_v44  ;;  %v3779_v44 = vshll.u32 %v19086_v31, 16 }
 0x264   : > { %22834 = vst [vmem:[#allocation75_spill] sm:$0xff] %v19072_v30  ;;  %2682 = vst.msk [vmem:[#allocation3 + $0x488] sm:$0xff] %vm2652_vm15, %v2621_v36  ;;  %v19077_v9 = vpop.f32.mrb[31].mxu0  ;;  %6197 = vmatmul.mubr.bf16.gmra.mrb[152].mxu1 %v5560_v41  ;;  %v3657_v56 = vor.u32 %v3655_v39, %v3653_v29  ;;  %v3767_v36 = vshrl.u32 %v18902_v27, 16  ;;  %v4876_v41 = vrot.slane %v4874_v3, 1  ;;  %v19089_v30 = vld [vmem:[#allocation2 + $0x8c] sm:$0xff]  }
 0x265   : > { %22835 = vst [vmem:[#allocation76_spill] sm:$0xff] %v19077_v9  ;;  %5018 = vrot.lane.b32.xlu1 %v4869_v37, %s16826_s8  ;;  %6204 = vmatprep.mubr.bf16.mxu1 %v5566_v2  ;;  %v22836_v37 = vrot.slane %v19044_v11, 1  ;;  %v22837_v2 = vrot.slane %v19012_v42, 1  ;;  %v16475_v27 = vld [vmem:[%s22595_s3 + $0x8] sm:$0xff]   ;;  %v3773_v3 = vrot.slane %v3771_v15, 1  ;;  %v4882_v42 = vshll.u32 %v19083_v5, 16 }
 0x266   : > { %v3662_v39 = vsel %vm2317_vm12, %v3657_v56, %v3661_v45  ;;  %v3769_v14 = vor.u32 %v3767_v36, %v18986_v7  ;;  %12882 = vmatpush1.bf16.msra.mxu0 %v16475_v27  ;;  %v5571_v15 = vld [vmem:[#allocation3 + $0x3f0] sm:$0xff]  ;;  %v5581_v9 = vld [vmem:[#allocation3 + $0x440] sm:$0xff] }
 0x267   : > { %v4991_v18 = vpop.permute.xlu1 %4990  ;;  %v4111_v29 = vsel %vm2897_vm13, %v22837_v2, %v22836_v37  ;;  %3848 = vst.msk [vmem:[#allocation3 + $0x1c8] sm:$0xff] %vm2072_vm14, %v3662_v39  ;;  %v3663_v2 = vshrl.u32 %v16469_v35, 16  ;;  %12883 = vmatprep.subr.bf16.mxu0 %v22767_v19  ;;  %v19121_v27 = vld [vmem:[#allocation2 + $0x7c] sm:$0xff]  }
 0x268   : > { %5080 = vst.msk [vmem:[#allocation3 + $0x18] sm:$0xff] %vm2652_vm15, %v4991_v18  ;;  %v4872_v18 = vor.u32 %v4870_v10, %v4868_v22  ;;  %v3774_v56 = vsel %vm2317_vm12, %v3769_v14, %v3773_v3  ;;  %v22666_v22 = vrot.slane %v19089_v30, 1  ;;  %v3669_v10 = vrot.slane %v3667_v62, 1 }
 0x269   : > { %4170 = vrot.lane.b32.xlu1 %v4111_v29, %s16826_s8  ;;  %3862 = vst.msk [vmem:[#allocation3 + $0x3f8] sm:$0xff] %vm2072_vm14, %v3774_v56  ;;  %v3665_v35 = vor.u32 %v3663_v2, %v3661_v45  ;;  %v16482_v29 = vld [vmem:[%s22595_s3 + $0x10] sm:$0xff]   ;;  %v4878_v56 = vshrl.u32 %v19057_v4, 16  ;;  %v22842_v2 = vrot.slane %v19044_v11, 1  ;;  %v19140_v4 = vld [vmem:[#allocation2 + $0xa8] sm:$0xff]  }
 0x26a   : > { %v4877_v7 = vsel %vm2317_vm12, %v4872_v18, %v4876_v41  ;;  %12884 = vmatpush1.bf16.msra.mxu0 %v16482_v29  ;;  %v3775_v29 = vshrl.u32 %v19035_v54, 16 }
 0x26b   : > { %v4143_v37 = vpop.permute.xlu1 %4142  ;;  %v3670_v62 = vsel %vm2317_vm12, %v3665_v35, %v3669_v10  ;;  %12885 = vmatprep.subr.bf16.mxu0 %v22767_v19  ;;  %v16486_v35 = vld [vmem:[#allocation2 + $0x88] sm:$0xff]  }
 0x26c   : > { %4232 = vst.msk [vmem:[#allocation3 + $0x10] sm:$0xff] %vm2652_vm15, %v4143_v37  ;;  %6205 = vmatmul.mubr.bf16.gmra.mrb[156].mxu1 %v5565_v47  ;;  %v19126_v37 = vrot.slane %v4882_v42, 1  ;;  %v19128_v47 = vld [vmem:[#allocation2 + $0x94] sm:$0xff]   ;;  %v3671_v42 = vshrl.u32 %v16476_v55, 16  ;;  %v3777_v55 = vor.u32 %v3775_v29, %v3773_v3 }
 0x26d   : > { %v19112_v36 = vpop.f32.mrb[32].mxu0  ;;  %5020 = vrot.lane.b32.xlu1 %v4877_v7, %s16826_s8  ;;  %6212 = vmatprep.mubr.bf16.mxu1 %v5571_v15  ;;  %v4113_v7 = vsel %vm2897_vm13, %v22842_v2, %v22666_v22  ;;  %3849 = vst.msk [vmem:[#allocation3 + $0x1f0] sm:$0xff] %vm2072_vm14, %v3670_v62  ;;  %v3675_v15 = vshll.u32 %v19121_v27, 16  ;;  %v19149_v2 = vld [vmem:[#allocation2 + $0xec] sm:$0xff]   ;;  %4516 = vst.msk [vmem:[#allocation3 + $0x248] sm:$0xff] %vm2072_vm14, %v16486_v35  ;;  %v19152_v62 = vrot.slane %v3779_v44, 1 }
 0x26e   : > { %22838 = vst [vmem:[#allocation77_spill] sm:$0xff] %v19112_v36  ;;  %v19119_v39 = vpop.f32.mrb[33].mxu0  ;;  %v3673_v11 = vor.u32 %v3671_v42, %v3669_v10  ;;  %v22668_v54 = vrot.slane %v19128_v47, 1  ;;  %v5576_v10 = vld [vmem:[#allocation3 + $0x418] sm:$0xff]  ;;  %v16489_v42 = vld [vmem:[%s22595_s3 + $0x18] sm:$0xff]   ;;  %v4886_v35 = vshrl.u32 %v19083_v5, 16 }
 0x26f   : > { %22839 = vst [vmem:[#allocation78_spill] sm:$0xff] %v19119_v39  ;;  %v19123_v14 = vpop.f32.mrb[34].mxu0  ;;  %v4993_v18 = vpop.permute.xlu1 %4992  ;;  %v3677_v36 = vrot.slane %v3675_v15, 1  ;;  %v16490_v44 = vld [vmem:[#allocation2 + $0x84] sm:$0xff]   ;;  %12886 = vmatpush1.bf16.msra.mxu0 %v16489_v42  ;;  %v22847_v5 = vrot.slane %v19089_v30, 1  ;;  %v5575_v30 = vld [vmem:[#allocation3 + $0x410] sm:$0xff] }
 0x270   : > { %22840 = vst [vmem:[#allocation79_spill] sm:$0xff] %v19123_v14  ;;  %v19132_v45 = vpop.f32.mrb[35].mxu0  ;;  %5081 = vst.msk [vmem:[#allocation3 + $0x40] sm:$0xff] %vm2652_vm15, %v4993_v18  ;;  %v4880_v18 = vor.u32 %v4878_v56, %v4876_v41  ;;  %v19147_v14 = vld [vmem:[#allocation2 + $0xb0] sm:$0xff]   ;;  %v4890_v41 = vshll.u32 %v19140_v4, 16  ;;  %12887 = vmatprep.subr.bf16.mxu0 %v22767_v19  ;;  %v3791_v28 = vshrl.u32 %v19149_v2, 16 }
 0x271   : > { %22841 = vst [vmem:[#allocation80_spill] sm:$0xff] %v19132_v45  ;;  %4172 = vrot.lane.b32.xlu1 %v4113_v7, %s16826_s8  ;;  %v5570_v45 = vld [vmem:[#allocation3 + $0x3e8] sm:$0xff]  ;;  %v3678_v56 = vsel %vm2317_vm12, %v3673_v11, %v3677_v36  ;;  %v4898_v29 = vshll.u32 %v19147_v14, 16  ;;  %v4115_v42 = vsel %vm2897_vm13, %v22847_v5, %v22668_v54  ;;  %v3687_v54 = vshrl.u32 %v16490_v44, 16 }
 0x272   : > { %v4885_v7 = vsel %vm2317_vm12, %v4880_v18, %v19126_v37  ;;  %3850 = vst.msk [vmem:[#allocation3 + $0x218] sm:$0xff] %vm2072_vm14, %v3678_v56  ;;  %v3683_v56 = vshll.u32 %v16490_v44, 16 }
 0x273   : > { %v4145_v22 = vpop.permute.xlu1 %4144  ;;  %v19196_v20 = vrot.slane %v4898_v29, 1 }
 0x274   : > { %4233 = vst.msk [vmem:[#allocation3 + $0x38] sm:$0xff] %vm2652_vm15, %v4145_v22  ;;  %6213 = vmatmul.mubr.bf16.gmra.mrb[160].mxu1 %v5570_v45  ;;  %v19166_v22 = vld [vmem:[#allocation2 + $0x9c] sm:$0xff]   ;;  %v3782_v45 = vsel %vm2317_vm12, %v3777_v55, %v19152_v62  ;;  %v3685_v39 = vrot.slane %v3683_v56, 1  ;;  %v16502_v56 = vld [vmem:[#allocation2 + $0x94] sm:$0xff]  }
 0x275   : > { %v19163_v3 = vpop.f32.mrb[36].mxu0  ;;  %5022 = vrot.lane.b32.xlu1 %v4885_v7, %s16826_s8  ;;  %6220 = vmatprep.mubr.bf16.mxu1 %v5576_v10  ;;  %3863 = vst.msk [vmem:[#allocation3 + $0x420] sm:$0xff] %vm2072_vm14, %v3782_v45  ;;  %v3679_v10 = vshrl.u32 %v19121_v27, 16  ;;  %v4892_v45 = vrot.slane %v4890_v41, 1  ;;  %v19191_v7 = vld [vmem:[#allocation2 + $0xa4] sm:$0xff]   ;;  %v3787_v41 = vshll.u32 %v19149_v2, 16 }
 0x276   : > { %22843 = vst [vmem:[#allocation81_spill] sm:$0xff] %v19163_v3  ;;  %v19171_v15 = vpop.f32.mrb[37].mxu0  ;;  %v16497_v3 = vld [vmem:[#allocation2 + $0x8c] sm:$0xff]  }
 0x277   : > { %22844 = vst [vmem:[#allocation82_spill] sm:$0xff] %v19171_v15  ;;  %v19176_v18 = vpop.f32.mrb[38].mxu0  ;;  %v4995_v11 = vpop.permute.xlu1 %4994  ;;  %v19193_v15 = vld [vmem:[#allocation2 + $0xb8] sm:$0xff]   ;;  %v3691_v27 = vshll.u32 %v16497_v3, 16  ;;  %v16517_v2 = vld [vmem:[#allocation2 + $0xb0] sm:$0xff]  }
 0x278   : > { %22845 = vst [vmem:[#allocation83_spill] sm:$0xff] %v19176_v18  ;;  %v19181_v55 = vpop.f32.mrb[39].mxu0  ;;  %5082 = vst.msk [vmem:[#allocation3 + $0x68] sm:$0xff] %vm2652_vm15, %v4995_v11  ;;  %v16493_v18 = vld [vmem:[#allocation2 + $0x90] sm:$0xff]   ;;  %v4888_v11 = vor.u32 %v4886_v35, %v19126_v37  ;;  %v16499_v37 = vld [vmem:[#allocation2 + $0x98] sm:$0xff]   ;;  %v3783_v35 = vshrl.u32 %v19086_v31, 16 }
 0x279   : > { %22846 = vst [vmem:[#allocation84_spill] sm:$0xff] %v19181_v55  ;;  %4174 = vrot.lane.b32.xlu1 %v4115_v42, %s16826_s8  ;;  %v3681_v55 = vor.u32 %v3679_v10, %v3677_v36  ;;  %4517 = vst.msk [vmem:[#allocation3 + $0x270] sm:$0xff] %vm2072_vm14, %v16493_v18  ;;  %v4906_v18 = vshll.u32 %v19193_v15, 16  ;;  %v3689_v10 = vor.u32 %v3687_v54, %v3685_v39  ;;  %v3693_v44 = vrot.slane %v3691_v27, 1  ;;  %v16495_v31 = vld [vmem:[%s22595_s3 + $0x20] sm:$0xff]  }
 0x27a   : > { %v4893_v36 = vsel %vm2317_vm12, %v4888_v11, %v4892_v45  ;;  %4518 = vst.msk [vmem:[#allocation3 + $0x298] sm:$0xff] %vm2072_vm14, %v16499_v37  ;;  %v16504_v11 = vld [vmem:[#allocation2 + $0xa0] sm:$0xff]   ;;  %v22853_v37 = vrot.slane %v19128_v47, 1  ;;  %12888 = vmatpush1.bf16.msra.mxu0 %v16495_v31  ;;  %v3703_v47 = vshrl.u32 %v16502_v56, 16  ;;  %4521 = vst.msk [vmem:[#allocation3 + $0x310] sm:$0xff] %vm2072_vm14, %v16517_v2 }
 0x27b   : > { %v4147_v5 = vpop.permute.xlu1 %4146  ;;  %v3686_v42 = vsel %vm2317_vm12, %v3681_v55, %v3685_v39  ;;  %v19209_v55 = vld [vmem:[#allocation2 + $0xf4] sm:$0xff]   ;;  %v3694_v27 = vsel %vm2317_vm12, %v3689_v10, %v3693_v44  ;;  %v5580_v10 = vld [vmem:[#allocation3 + $0x438] sm:$0xff]  ;;  %12889 = vmatprep.subr.bf16.mxu0 %v22767_v19  ;;  %4519 = vst.msk [vmem:[#allocation3 + $0x2c0] sm:$0xff] %vm2072_vm14, %v16504_v11 }
 0x27c   : > { %4234 = vst.msk [vmem:[#allocation3 + $0x60] sm:$0xff] %vm2652_vm15, %v4147_v5  ;;  %6221 = vmatmul.mubr.bf16.gmra.mrb[164].mxu1 %v5575_v30  ;;  %v22852_v30 = vrot.slane %v19166_v22, 1  ;;  %v19256_v11 = vld [vmem:[#allocation2 + $0xc0] sm:$0xff]  }
 0x27d   : > { %3851 = vst.msk [vmem:[#allocation3 + $0x240] sm:$0xff] %vm2072_vm14, %v3686_v42  ;;  %v19205_v29 = vpop.f32.mrb[40].mxu0  ;;  %5024 = vrot.lane.b32.xlu1 %v4893_v36, %s16826_s8  ;;  %6228 = vmatprep.mubr.bf16.mxu1 %v5581_v9  ;;  %v3785_v42 = vor.u32 %v3783_v35, %v19152_v62  ;;  %v19220_v9 = vrot.slane %v3787_v41, 1  ;;  %v3695_v36 = vshrl.u32 %v16497_v3, 16  ;;  %3852 = vst.msk [vmem:[#allocation3 + $0x268] sm:$0xff] %vm2072_vm14, %v3694_v27  ;;  %v16507_v41 = vld [vmem:[#allocation2 + $0x9c] sm:$0xff]  }
 0x27e   : > { %22848 = vst [vmem:[#allocation85_spill] sm:$0xff] %v19205_v29  ;;  %v19211_v5 = vpop.f32.mrb[41].mxu0  ;;  %v3699_v29 = vshll.u32 %v16502_v56, 16  ;;  %v4117_v62 = vsel %vm2897_vm13, %v22853_v37, %v22852_v30  ;;  %v19237_v3 = vrot.slane %v4906_v18, 1  ;;  %v22854_v30 = vshrl.u32 %v19140_v4, 16  ;;  %v16509_v37 = vld [vmem:[#allocation2 + $0xa8] sm:$0xff]  }
 0x27f   : > { %22849 = vst [vmem:[#allocation86_spill] sm:$0xff] %v19211_v5  ;;  %v19222_v39 = vpop.f32.mrb[42].mxu0  ;;  %v4997_v54 = vpop.permute.xlu1 %4996  ;;  %v3790_v35 = vsel %vm2317_vm12, %v3785_v42, %v19220_v9  ;;  %v3707_v27 = vshll.u32 %v16507_v41, 16  ;;  %v5586_v18 = vld [vmem:[#allocation3 + $0x468] sm:$0xff]  ;;  %4520 = vst.msk [vmem:[#allocation3 + $0x2e8] sm:$0xff] %vm2072_vm14, %v16509_v37  ;;  %v22859_v37 = vrot.slane %v19166_v22, 1 }
 0x280   : > { %22850 = vst [vmem:[#allocation87_spill] sm:$0xff] %v19222_v39  ;;  %v19225_v5 = vpop.f32.mrb[43].mxu0  ;;  %5083 = vst.msk [vmem:[#allocation3 + $0x90] sm:$0xff] %vm2652_vm15, %v4997_v54  ;;  %v3697_v54 = vor.u32 %v3695_v36, %v3693_v44  ;;  %v3701_v39 = vrot.slane %v3699_v29, 1  ;;  %v4896_v31 = vor.u32 %v22854_v30, %v4892_v45  ;;  %v16512_v44 = vld [vmem:[#allocation2 + $0xa4] sm:$0xff]   ;;  %v16520_v30 = vld [vmem:[#allocation2 + $0xac] sm:$0xff]  }
 0x281   : > { %22851 = vst [vmem:[#allocation88_spill] sm:$0xff] %v19225_v5  ;;  %4176 = vrot.lane.b32.xlu1 %v4117_v62, %s16826_s8  ;;  %3864 = vst.msk [vmem:[#allocation3 + $0x448] sm:$0xff] %vm2072_vm14, %v3790_v35  ;;  %v19244_v5 = vld [vmem:[#allocation2 + $0xac] sm:$0xff]   ;;  %v3709_v45 = vrot.slane %v3707_v27, 1  ;;  %v22858_v27 = vrot.slane %v19191_v7, 1  ;;  %v4914_v2 = vshll.u32 %v19256_v11, 16 }
 0x282   : > { %v3702_v62 = vsel %vm2317_vm12, %v3697_v54, %v3701_v39  ;;  %v4901_v29 = vsel %vm2317_vm12, %v4896_v31, %v19196_v20  ;;  %v3705_v4 = vor.u32 %v3703_v47, %v3701_v39  ;;  %v3715_v54 = vshll.u32 %v16512_v44, 16  ;;  %v19261_v39 = vld [vmem:[#allocation2 + $0xfc] sm:$0x1] }
 0x283   : > { %v4149_v42 = vpop.permute.xlu1 %4148  ;;  %3853 = vst.msk [vmem:[#allocation3 + $0x290] sm:$0xff] %vm2072_vm14, %v3702_v62  ;;  %v16524_v62 = vld [vmem:[#allocation2 + $0xb8] sm:$0xff]  }
 0x284   : > { %4235 = vst.msk [vmem:[#allocation3 + $0x88] sm:$0xff] %vm2652_vm15, %v4149_v42  ;;  %6229 = vmatmul.mubr.bf16.gmra.mrb[168].mxu1 %v5580_v10  ;;  %v3710_v35 = vsel %vm2317_vm12, %v3705_v4, %v3709_v45  ;;  %v3711_v10 = vshrl.u32 %v16507_v41, 16  ;;  %v4119_v42 = vsel %vm2897_vm13, %v22859_v37, %v22858_v27  ;;  %v3795_v41 = vshll.u32 %v19209_v55, 16  ;;  %v16527_v27 = vld [vmem:[#allocation2 + $0xb4] sm:$0xff]  }
 0x285   : > { %v19253_v56 = vpop.f32.mrb[44].mxu0  ;;  %5026 = vrot.lane.b32.xlu1 %v4901_v29, %s16826_s8  ;;  %6236 = vmatprep.mubr.bf16.mxu1 %v5586_v18  ;;  %3854 = vst.msk [vmem:[#allocation3 + $0x2b8] sm:$0xff] %vm2072_vm14, %v3710_v35  ;;  %v3719_v18 = vshrl.u32 %v16512_v44, 16  ;;  %v22861_v4 = vshrl.u32 %v19147_v14, 16  ;;  %v3717_v22 = vrot.slane %v3715_v54, 1  ;;  %v16501_v44 = vld [vmem:[%s22595_s3 + $0x28] sm:$0xff]  }
 0x286   : > { %22855 = vst [vmem:[#allocation89_spill] sm:$0xff] %v19253_v56  ;;  %v19258_v36 = vpop.f32.mrb[45].mxu0  ;;  %v3713_v56 = vor.u32 %v3711_v10, %v3709_v45  ;;  %4522 = vst.msk [vmem:[#allocation3 + $0x338] sm:$0xff] %vm2072_vm14, %v16524_v62  ;;  %v3727_v35 = vshrl.u32 %v16520_v30, 16  ;;  %v3797_v37 = vrot.slane %v3795_v41, 1  ;;  %v3731_v10 = vshll.u32 %v16527_v27, 16  ;;  %12890 = vmatpush1.bf16.msra.mxu0 %v16501_v44 }
 0x287   : > { %22856 = vst [vmem:[#allocation90_spill] sm:$0xff] %v19258_v36  ;;  %v19263_v47 = vpop.f32.mrb[46].mxu0  ;;  %v4999_v31 = vpop.permute.xlu1 %4998  ;;  %v3723_v36 = vshll.u32 %v16520_v30, 16  ;;  %v3721_v14 = vor.u32 %v3719_v18, %v3717_v22  ;;  %v16531_v54 = vld [vmem:[#allocation2 + $0xc0] sm:$0xff]   ;;  %12891 = vmatprep.subr.bf16.mxu0 %v22767_v19  ;;  %v14399_v18 = vcombine.low %v19261_v39, %v19261_v39  ;;  %v4308_v62 = vld [vmem:[#allocation2 + $0xd0] sm:$0xf] }
 0x288   : > { %22857 = vst [vmem:[#allocation91_spill] sm:$0xff] %v19263_v47  ;;  %v19273_v29 = vpop.f32.mrb[47].mxu0  ;;  %5084 = vst.msk [vmem:[#allocation3 + $0xb8] sm:$0xff] %vm2652_vm15, %v4999_v31  ;;  %v4904_v47 = vor.u32 %v22861_v4, %v19196_v20  ;;  %v3793_v31 = vor.u32 %v3791_v28, %v19220_v9  ;;  %v3718_v20 = vsel %vm2317_vm12, %v3713_v56, %v3717_v22  ;;  %v5591_v28 = vld [vmem:[#allocation3 + $0x490] sm:$0xff]  ;;  %v3735_v22 = vshrl.u32 %v16527_v27, 16 }
 0x289   : > { %22860 = vst [vmem:[#allocation92_spill] sm:$0xff] %v19273_v29  ;;  %4178 = vrot.lane.b32.xlu1 %v4119_v42, %s16826_s8  ;;  %v3725_v45 = vrot.slane %v3723_v36, 1  ;;  %v5585_v29 = vld [vmem:[#allocation3 + $0x460] sm:$0xff]  ;;  %3855 = vst.msk [vmem:[#allocation3 + $0x2e0] sm:$0xff] %vm2072_vm14, %v3718_v20  ;;  %v3733_v36 = vrot.slane %v3731_v10, 1  ;;  %v3799_v20 = vshrl.u32 %v19209_v55, 16 }
 0x28a   : > { %v4909_v42 = vsel %vm2317_vm12, %v4904_v47, %v19237_v3  ;;  %v3798_v30 = vsel %vm2317_vm12, %v3793_v31, %v3797_v37  ;;  %4523 = vst.msk [vmem:[#allocation3 + $0x360] sm:$0xff] %vm2072_vm14, %v16531_v54  ;;  %v16534_v47 = vld [vmem:[#allocation2 + $0xbc] sm:$0xff]   ;;  %v22866_v10 = vrot.slane %v19191_v7, 1  ;;  %v4916_v54 = vrot.slane %v4914_v2, 1  ;;  %v19322_v55 = vld [vmem:[#allocation2 + $0xb4] sm:$0xff]  }
 0x28b   : > { %v4151_v4 = vpop.permute.xlu1 %4150  ;;  %v3726_v9 = vsel %vm2317_vm12, %v3721_v14, %v3725_v45  ;;  %v3729_v56 = vor.u32 %v3727_v35, %v3725_v45  ;;  %3865 = vst.msk [vmem:[#allocation3 + $0x470] sm:$0xff] %vm2072_vm14, %v3798_v30  ;;  %v16505_v35 = vld [vmem:[%s22595_s3 + $0x30] sm:$0xff]   ;;  %v3739_v39 = vshll.u32 %v16534_v47, 16  ;;  %v3743_v30 = vshrl.u32 %v16534_v47, 16 }
 0x28c   : > { %4236 = vst.msk [vmem:[#allocation3 + $0xb0] sm:$0xff] %vm2652_vm15, %v4151_v4  ;;  %6237 = vmatmul.mubr.bf16.gmra.mrb[172].mxu1 %v5585_v29  ;;  %v4910_v29 = vshrl.u32 %v19193_v15, 16  ;;  %v22865_v15 = vrot.slane %v19244_v5, 1  ;;  %v3737_v4 = vor.u32 %v3735_v22, %v3733_v36  ;;  %12892 = vmatpush1.bf16.msra.mxu0 %v16505_v35 }
 0x28d   : > { %v19299_v41 = vpop.f32.mrb[48].mxu0  ;;  %5028 = vrot.lane.b32.xlu1 %v4909_v42, %s16826_s8  ;;  %6244 = vmatprep.mubr.bf16.mxu1 %v5591_v28  ;;  %3856 = vst.msk [vmem:[#allocation3 + $0x308] sm:$0xff] %vm2072_vm14, %v3726_v9  ;;  %v3734_v31 = vsel %vm2317_vm12, %v3729_v56, %v3733_v36  ;;  %v16538_v42 = vld [vmem:[#allocation2 + $0xc8] sm:$0xff]   ;;  %v4309_v28 = vld [vmem:[#allocation2 + $0xd4] sm:$0xf] }
 0x28e   : > { %22862 = vst [vmem:[#allocation93_spill] sm:$0xff] %v19299_v41  ;;  %v19304_v44 = vpop.f32.mrb[49].mxu0  ;;  %v4121_v27 = vsel %vm2897_vm13, %v22866_v10, %v22865_v15  ;;  %3857 = vst.msk [vmem:[#allocation3 + $0x330] sm:$0xff] %vm2072_vm14, %v3734_v31  ;;  %v19324_v56 = vld [vmem:[#allocation2 + $0xc8] sm:$0xff]   ;;  %v14454_v7 = vcombine.low %v4308_v62, %v4309_v28  ;;  %v3801_v41 = vor.u32 %v3799_v20, %v3797_v37  ;;  %v3803_v15 = vshll.u32 %v14399_v18, 16  ;;  %v5590_v62 = vld [vmem:[#allocation3 + $0x488] sm:$0xff] }
 0x28f   : > { %22863 = vst [vmem:[#allocation94_spill] sm:$0xff] %v19304_v44  ;;  %v19311_v14 = vpop.f32.mrb[50].mxu0  ;;  %v5001_v45 = vpop.permute.xlu1 %5000  ;;  %v4912_v2 = vor.u32 %v4910_v29, %v19237_v3  ;;  %12893 = vmatprep.subr.bf16.mxu0 %v22767_v19  ;;  %4524 = vst.msk [vmem:[#allocation3 + $0x388] sm:$0xff] %vm2072_vm14, %v16538_v42  ;;  %v19333_v37 = vld [vmem:[#allocation2 + $0xd0] sm:$0xff]   ;;  %v4122_v3 = vrot.slane %v19322_v55, 1  ;;  %v4922_v18 = vshll.u32 %v19324_v56, 16 }
 0x290   : > { %22864 = vst [vmem:[#allocation95_spill] sm:$0xff] %v19311_v14  ;;  %v19319_v9 = vpop.f32.mrb[51].mxu0  ;;  %5085 = vst.msk [vmem:[#allocation3 + $0xe0] sm:$0xff] %vm2652_vm15, %v5001_v45  ;;  %v3741_v14 = vrot.slane %v3739_v39, 1  ;;  %v3805_v22 = vrot.slane %v3803_v15, 1  ;;  %v5448_v29 = vld [vmem:[#allocation3 + $0x18] sm:$0xff] }
 0x291   : > { %22867 = vst [vmem:[#allocation96_spill] sm:$0xff] %v19319_v9  ;;  %4180 = vrot.lane.b32.xlu1 %v4121_v27, %s16826_s8  ;;  %4525 = vst.msk [vmem:[#allocation3 + $0x3b0] sm:$0xff] %vm2072_vm14, %v14454_v7  ;;  %v4917_v35 = vsel %vm2317_vm12, %v4912_v2, %v4916_v54  ;;  %v19345_v45 = vld [vmem:[#allocation2 + $0xd8] sm:$0xff]   ;;  %v22872_v28 = vrot.slane %v19244_v5, 1  ;;  %v4918_v7 = vshrl.u32 %v19256_v11, 16  ;;  %v4924_v15 = vrot.slane %v4922_v18, 1 }
 0x292   : > { %v3742_v36 = vsel %vm2317_vm12, %v3737_v4, %v3741_v14  ;;  %v3745_v47 = vor.u32 %v3743_v30, %v3741_v14  ;;  %v3806_v20 = vsel %vm2317_vm12, %v3801_v41, %v3805_v22  ;;  %v16445_v27 = vld [vmem:[#allocation2 + $0xbc] sm:$0xff]   ;;  %v16451_v2 = vld [vmem:[#allocation2 + $0xc4] sm:$0xff]   ;;  %v4926_v11 = vshrl.u32 %v19324_v56, 16 }
 0x293   : > { %v4153_v31 = vpop.permute.xlu1 %4152  ;;  %3858 = vst.msk [vmem:[#allocation3 + $0x358] sm:$0xff] %vm2072_vm14, %v3742_v36  ;;  %3866 = vst.msk [vmem:[#allocation3 + $0x498] sm:$0xff] %vm2072_vm14, %v3806_v20  ;;  %v19354_v41 = vld [vmem:[#allocation2 + $0xe0] sm:$0xff]   ;;  %v4123_v55 = vsel %vm2897_vm13, %v22872_v28, %v4122_v3  ;;  %v4938_v36 = vshll.u32 %v19345_v45, 16  ;;  %v4920_v22 = vor.u32 %v4918_v7, %v4916_v54  ;;  %v16510_v5 = vld [vmem:[%s22595_s3 + $0x38] sm:$0xff]  }
 0x294   : > { %4237 = vst.msk [vmem:[#allocation3 + $0xd8] sm:$0xff] %vm2652_vm15, %v4153_v31  ;;  %6245 = vmatmul.mubr.bf16.gmra.mrb[176].mxu1 %v5590_v62  ;;  %v3750_v39 = vsel %vm2317_vm12, %v3745_v47, %v18925_v34  ;;  %v4930_v34 = vshll.u32 %v19333_v37, 16  ;;  %v19365_v47 = vld [vmem:[#allocation2 + $0xe8] sm:$0xff]   ;;  %v4124_v31 = vrot.slane %v16445_v27, 1  ;;  %v19369_v62 = vld [vmem:[#allocation2] sm:$0xff]   ;;  %v4946_v20 = vshll.u32 %v19354_v41, 16  ;;  %12894 = vmatpush1.bf16.msra.mxu0 %v16510_v5 }
 0x295   : > { %v19342_v14 = vpop.f32.mrb[52].mxu0  ;;  %5030 = vrot.lane.b32.xlu1 %v4917_v35, %s16826_s8  ;;  %6285 = vmatprep.mubr.bf16.mxu1 %v5448_v29  ;;  %3859 = vst.msk [vmem:[#allocation3 + $0x380] sm:$0xff] %vm2072_vm14, %v3750_v39  ;;  %v19367_v35 = vld [vmem:[#allocation2 + $0xcc] sm:$0xff]   ;;  %v5447_v39 = vld [vmem:[#allocation3 + $0x10] sm:$0xff]  ;;  %v4925_v54 = vsel %vm2317_vm12, %v4920_v22, %v4924_v15  ;;  %v4126_v27 = vrot.slane %v16451_v2, 1  ;;  %v4928_v56 = vor.u32 %v4926_v11, %v4924_v15  ;;  %v9222_v5 = vshll.u32 %v19369_v62, 16 }
 0x296   : > { %22868 = vst [vmem:[#allocation97_spill] sm:$0xff] %v19342_v14  ;;  %v19349_v10 = vpop.f32.mrb[53].mxu0  ;;  %v4932_v18 = vrot.slane %v4930_v34, 1  ;;  %v5453_v28 = vld [vmem:[#allocation3 + $0x40] sm:$0xff]  ;;  %v19382_v7 = vld [vmem:[#allocation2 + $0xf8] sm:$0xff]   ;;  %v4940_v34 = vrot.slane %v4938_v36, 1  ;;  %v4125_v2 = vsel %vm2897_vm13, %v4122_v3, %v4124_v31  ;;  %12895 = vmatprep.subr.bf16.mxu0 %v22767_v19 }
 0x297   : > { %22869 = vst [vmem:[#allocation98_spill] sm:$0xff] %v19349_v10  ;;  %v19351_v4 = vpop.f32.mrb[54].mxu0  ;;  %v5003_v42 = vpop.permute.xlu1 %5002  ;;  %v4954_v14 = vshll.u32 %v19365_v47, 16  ;;  %v4942_v11 = vshrl.u32 %v19345_v45, 16  ;;  %v4950_v45 = vshrl.u32 %v19354_v41, 16  ;;  %v5468_v59 = vld [vmem:[#allocation3 + $0xb8] sm:$0xff] }
 0x298   : > { %22870 = vst [vmem:[#allocation99_spill] sm:$0xff] %v19351_v4  ;;  %v19356_v30 = vpop.f32.mrb[55].mxu0  ;;  %5086 = vst.msk [vmem:[#allocation3 + $0x108] sm:$0xff] %vm2652_vm15, %v5003_v42  ;;  %v19376_v42 = vld [vmem:[#allocation2 + $0xf0] sm:$0xff]   ;;  %v4933_v36 = vsel %vm2317_vm12, %v4928_v56, %v4932_v18 }
 0x299   : > { %22871 = vst [vmem:[#allocation100_spill] sm:$0xff] %v19356_v30  ;;  %4182 = vrot.lane.b32.xlu1 %v4123_v55, %s16826_s8  ;;  %v19380_v55 = vld [vmem:[#allocation2 + $0xd4] sm:$0xff]   ;;  %v4128_v30 = vrot.slane %v19367_v35, 1  ;;  %v4944_v56 = vor.u32 %v4942_v11, %v4940_v34  ;;  %v16492_v44 = vld [vmem:[#allocation2 + $0x108] ss:$0 sps:$4 sm:$0x11]  }
 0x29a   : > { %v4130_v10 = vrot.slane %v19380_v55, 1  ;;  %v19420_v55 = vld [vmem:[#allocation2 + $0xe4] sm:$0xff]  }
 0x29b   : > { %v4155_v29 = vpop.permute.xlu1 %4154 }
 0x29c   : > { %4238 = vst.msk [vmem:[#allocation3 + $0x100] sm:$0xff] %vm2652_vm15, %v4155_v29  ;;  %6286 = vmatmul.mubr.bf16.vlgmr.msra.gmra.mrb[60].mxu1 %v5447_v39  ;;  %v19388_v29 = vld [vmem:[#allocation2 + $0xdc] sm:$0xff]   ;;  %v4934_v39 = vshrl.u32 %v19333_v37, 16  ;;  %v4127_v37 = vsel %vm2897_vm13, %v4124_v31, %v4126_v27  ;;  %v9220_v31 = vshrl.u32 %v19369_v62, 16  ;;  %v19436_v9 = vsel %vm2897_vm13, %v4128_v30, %v4130_v10 }
 0x29d   : > { %v19384_v4 = vpop.f32.mrb[56].mxu0  ;;  %5032 = vrot.lane.b32.xlu1 %v4925_v54, %s16826_s8  ;;  %6293 = vmatprep.mubr.bf16.mxu1 %v5453_v28  ;;  %v4948_v28 = vrot.slane %v4946_v20, 1  ;;  %v4956_v20 = vrot.slane %v4954_v14, 1  ;;  %v5452_v14 = vld [vmem:[#allocation3 + $0x38] sm:$0xff] }
 0x29e   : > { %22873 = vst [vmem:[#allocation101_spill] sm:$0xff] %v19384_v4  ;;  %v19390_v22 = vpop.f32.mrb[57].mxu0  ;;  %v4962_v4 = vshll.u32 %v19376_v42, 16  ;;  %v4936_v35 = vor.u32 %v4934_v39, %v4932_v18  ;;  %v9224_v18 = vrot.slane %v9222_v5, 1  ;;  %v7222_v62 = vld [vmem:[%s22594_s2] sm:$0xff]  ;;  %v5458_v5 = vld [vmem:[#allocation3 + $0x68] sm:$0xff] }
 0x29f   : > { %22874 = vst [vmem:[#allocation102_spill] sm:$0xff] %v19390_v22  ;;  %v19397_v54 = vpop.f32.mrb[58].mxu0  ;;  %v5005_v15 = vpop.permute.xlu1 %5004  ;;  %v19402_v22 = vld [vmem:[#allocation2 + $0x100] sm:$0xff]   ;;  %v19426_v39 = vsel %vm2317_vm12, %v4944_v56, %v4948_v28  ;;  %v4952_v11 = vor.u32 %v4950_v45, %v4948_v28  ;;  %v4958_v56 = vshrl.u32 %v19365_v47, 16  ;;  %v4966_v28 = vshrl.u32 %v19376_v42, 16  ;;  %v19440_v45 = vld [vmem:[#allocation2 + $0xf4] sm:$0xff]  }
 0x2a0   : > { %22875 = vst [vmem:[#allocation103_spill] sm:$0xff] %v19397_v54  ;;  %v19404_v3 = vpop.f32.mrb[59].mxu0  ;;  %5087 = vst.msk [vmem:[#allocation3 + $0x130] sm:$0xff] %vm2652_vm15, %v5005_v15  ;;  %v4970_v54 = vshll.u32 %v19382_v7, 16  ;;  %v19417_v15 = vsel %vm2897_vm13, %v4126_v27, %v4128_v30  ;;  %v4978_v27 = vshll.u32 %v19402_v22, 16  ;;  %v4982_v30 = vshrl.u32 %v19402_v22, 16 }
 0x2a1   : > { %22876 = vst [vmem:[#allocation104_spill] sm:$0xff] %v19404_v3  ;;  %4184 = vrot.lane.b32.xlu1 %v4125_v2, %s16826_s8  ;;  %v19414_v3 = vsel %vm2317_vm12, %v4936_v35, %v4940_v34  ;;  %v7223_v2 = vld [vmem:[%s22594_s2 + $0x8] sm:$0xff]  ;;  %v4964_v34 = vrot.slane %v4962_v4, 1  ;;  %v19444_v43 = vsel %vm2317_vm12, %v4952_v11, %v4956_v20  ;;  %v4986_v47 = vshll.u32 %v16492_v44, 16  ;;  %v16516_v11 = vld [vmem:[%s22595_s3 + $0x40] sm:$0xff]   ;;  %v7225_v44 = vld [vmem:[%s22594_s2 + $0x18] sm:$0xff] }
 0x2a2   : > { %v19428_v35 = vld [vmem:[#allocation2 + $0xec] sm:$0xff]   ;;  %v4972_v4 = vrot.slane %v4970_v54, 1  ;;  %v19454_v49 = vor.u32 %v9224_v18, %v9220_v31  ;;  %v4980_v31 = vrot.slane %v4978_v27, 1  ;;  %12896 = vmatpush1.bf16.msra.mxu0 %v16516_v11 }
 0x2a3   : > { %v4157_v41 = vpop.permute.xlu1 %4156  ;;  %v4136_v22 = vrot.slane %v19428_v35, 1  ;;  %v4988_v27 = vrot.slane %v4986_v47, 1  ;;  %12897 = vmatprep.subr.bf16.mxu0 %v22767_v19 }
 0x2a4   : > { %4239 = vst.msk [vmem:[#allocation3 + $0x128] sm:$0xff] %vm2652_vm15, %v4157_v41  ;;  %6294 = vmatmul.mubr.bf16.gmra.mrb[64].mxu1 %v5452_v14  ;;  %v22877_v41 = vrot.slane %v19388_v29, 1  ;;  %v4984_v35 = vor.u32 %v4982_v30, %v4980_v31  ;;  %v5457_v30 = vld [vmem:[#allocation3 + $0x60] sm:$0xff] }
 0x2a5   : > { %v15656_v61 = vpop.f32.mrb[60].mxu0  ;;  %5034 = vrot.lane.b32.xlu1 %v4933_v36, %s16826_s8  ;;  %6301 = vmatprep.mubr.bf16.mxu1 %v5458_v5  ;;  %v4134_v36 = vrot.slane %v19420_v55, 1  ;;  %v4974_v5 = vshrl.u32 %v19382_v7, 16  ;;  %v7224_v7 = vld [vmem:[%s22594_s2 + $0x10] sm:$0xff]  ;;  %v4960_v55 = vor.u32 %v4958_v56, %v4956_v20  ;;  %v22881_v56 = vrot.slane %v19388_v29, 1 }
 0x2a6   : > { %v19449_v14 = vsel %vm2897_vm13, %v4130_v10, %v22877_v41  ;;  %v19452_v42 = vadd.f32 %v15656_v61, %v7223_v2  ;;  %v7531_v54 = vpop.f32.mrb[61].mxu0  ;;  %v4968_v61 = vor.u32 %v4966_v28, %v4964_v34  ;;  %v4140_v28 = vrot.slane %v16496_v12, 1  ;;  %v7227_v12 = vld [vmem:[%s22594_s2 + $0x28] sm:$0xff] }
 0x2a7   : > { %v19461_v21 = vadd.f32 %v7531_v54, %v7222_v62  ;;  %v5007_v10 = vpop.permute.xlu1 %5006  ;;  %v4976_v2 = vor.u32 %v4974_v5, %v4972_v4  ;;  %v4138_v62 = vrot.slane %v19440_v45, 1  ;;  %v19479_v20 = vsel %vm2317_vm12, %v4960_v55, %v4964_v34 }
 0x2a8   : > { %22878 = vst [vmem:[#allocation105_spill] sm:$0xff] %v19452_v42  ;;  %v7831_v18 = vmax.f32 %v19452_v42, 0.0  ;;  %5088 = vst.msk [vmem:[#allocation3 + $0x158] sm:$0xff] %vm2652_vm15, %v5007_v10  ;;  %v19484_v45 = vsel %vm2897_vm13, %v22881_v56, %v4134_v36  ;;  %v19492_v47 = vsel %vm2317_vm12, %v4968_v61, %v4972_v4  ;;  %v19495_v34 = vsel %vm2897_vm13, %v4134_v36, %v4136_v22  ;;  %v5463_v10 = vld [vmem:[#allocation3 + $0x90] sm:$0xff] }
 0x2a9   : > { %22879 = vst [vmem:[#allocation106_spill] sm:$0xff] %v19461_v21  ;;  %v7830_v41 = vmax.f32 %v19461_v21, 0.0  ;;  %v15659_v54 = vpop.f32.mrb[62].mxu0  ;;  %4186 = vrot.lane.b32.xlu1 %v4127_v37, %s16826_s8  ;;  %v19506_v4 = vsel %vm2897_vm13, %v4136_v22, %v4138_v62  ;;  %v19512_v55 = vsel %vm2317_vm12, %v4984_v35, %v4988_v27  ;;  %v5462_v21 = vld [vmem:[#allocation3 + $0x88] sm:$0xff] }
 0x2aa   : > { %v15237_v42 = vpack.c.bf16 %v7831_v18, %v7831_v18  ;;  %v19476_v32 = vadd.f32 %v15659_v54, %v7225_v44  ;;  %v7541_v17 = vpop.f32.mrb[63].mxu0  ;;  %v19503_v18 = vsel %vm2317_vm12, %v4976_v2, %v4980_v31 }
 0x2ab   : > { %v15236_v5 = vpack.c.bf16 %v7830_v41, %v7830_v41  ;;  %v19486_v11 = vadd.f32 %v7541_v17, %v7224_v7  ;;  %v4159_v37 = vpop.permute.xlu1 %4158  ;;  %v7226_v17 = vld [vmem:[%s22594_s2 + $0x20] sm:$0xff]  ;;  %v19515_v41 = vsel %vm2897_vm13, %v4138_v62, %v4140_v28 }
 0x2ac   : > { %22880 = vst [vmem:[#allocation107_spill] sm:$0xff] %v19476_v32  ;;  %v8079_v44 = vshrl.u32 %v15237_v42, 16  ;;  %v7833_v29 = vmax.f32 %v19476_v32, 0.0  ;;  %4240 = vst.msk [vmem:[#allocation3 + $0x150] sm:$0xff] %vm2652_vm15, %v4159_v37  ;;  %6302 = vmatmul.mubr.bf16.gmra.mrb[68].mxu1 %v5457_v30  ;;  %v8082_v31 = vshll.u32 %v15237_v42, 16 }
 0x2ad   : > { %22882 = vst [vmem:[#allocation108_spill] sm:$0xff] %v19486_v11  ;;  %v8071_v61 = vshrl.u32 %v15236_v5, 16  ;;  %v7832_v36 = vmax.f32 %v19486_v11, 0.0  ;;  %v15662_v7 = vpop.f32.mrb[64].mxu0  ;;  %5036 = vrot.lane.b32.xlu1 %v19414_v3, %s16826_s8  ;;  %6309 = vmatprep.mubr.bf16.mxu1 %v5463_v10  ;;  %v8074_v30 = vshll.u32 %v15236_v5, 16  ;;  %v7229_v3 = vld [vmem:[%s22594_s2 + $0x38] sm:$0xff] }
 0x2ae   : > { %v19517_v54 = vrot.slane %v8079_v44, 7  ;;  %v15239_v2 = vpack.c.bf16 %v7833_v29, %v7833_v29  ;;  %v19519_v22 = vadd.f32 %v15662_v7, %v7227_v12  ;;  %v7551_v56 = vpop.f32.mrb[65].mxu0  ;;  %v7228_v12 = vld [vmem:[%s22594_s2 + $0x30] sm:$0xff] }
 0x2af   : > { %v8073_v37 = vrot.slane %v8071_v61, 7  ;;  %v15238_v32 = vpack.c.bf16 %v7832_v36, %v7832_v36  ;;  %v19521_v11 = vadd.f32 %v7551_v56, %v7226_v17  ;;  %v5009_v35 = vpop.permute.xlu1 %5008  ;;  %v16523_v61 = vld [vmem:[%s22595_s3 + $0x48] sm:$0xff]  }
 0x2b0   : > { %22883 = vst [vmem:[#allocation109_spill] sm:$0xff] %v19519_v22  ;;  %v8084_v62 = vor.u32 %v8082_v31, %v19517_v54  ;;  %v8086_v27 = vrot.slane %v19517_v54, 4  ;;  %v8097_v28 = vshrl.u32 %v15239_v2, 16  ;;  %v8100_v42 = vshll.u32 %v15239_v2, 16  ;;  %5089 = vst.msk [vmem:[#allocation3 + $0x180] sm:$0xff] %vm2652_vm15, %v5009_v35  ;;  %12898 = vmatpush1.bf16.msra.mxu0 %v16523_v61  ;;  %v7230_v61 = vld [vmem:[%s22594_s2 + $0x40] sm:$0xff] }
 0x2b1   : > { %22884 = vst [vmem:[#allocation110_spill] sm:$0xff] %v19521_v11  ;;  %v8076_v5 = vor.u32 %v8074_v30, %v8073_v37  ;;  %v8077_v44 = vrot.slane %v8073_v37, 4  ;;  %v8088_v29 = vshrl.u32 %v15238_v32, 16  ;;  %v8091_v17 = vshll.u32 %v15238_v32, 16  ;;  %v15665_v10 = vpop.f32.mrb[66].mxu0  ;;  %4188 = vrot.lane.b32.xlu1 %v19417_v15, %s16826_s8  ;;  %12899 = vmatprep.subr.bf16.mxu0 %v22767_v19 }
 0x2b2   : > { %v8670_v36 = vld [vmem:[#allocation2 + $0xc] sm:$0xf]  ;;  %v19537_v7 = vrot.slane %v8097_v28, 7  ;;  %v7835_v54 = vmax.f32 %v19519_v22, 0.0  ;;  %v7834_v31 = vmax.f32 %v19521_v11, 0.0  ;;  %v19541_v2 = vadd.f32 %v15665_v10, %v7229_v3  ;;  %v7561_v56 = vpop.f32.mrb[67].mxu0 }
 0x2b3   : > { %v8085_v32 = vsel %vm17104_vm11, %v8077_v44, %v8084_v62  ;;  %v8671_v15 = vsel %vm16997_vm9, %v8076_v5, %v8670_v36  ;;  %v8090_v37 = vrot.slane %v8088_v29, 7  ;;  %v19547_v30 = vadd.f32 %v7561_v56, %v7228_v12  ;;  %v4161_v35 = vpop.permute.xlu1 %4160 }
 0x2b4   : > { %22885 = vst [vmem:[#allocation111_spill] sm:$0xff] %v19541_v2  ;;  %8673 = vst.msk [vmem:[#allocation2 + $0x10] sm:$0xf] %vm234_vm7, %v8085_v32  ;;  %v8102_v28 = vor.u32 %v8100_v42, %v19537_v7  ;;  %v8104_v3 = vrot.slane %v19537_v7, 4  ;;  %v15241_v10 = vpack.c.bf16 %v7835_v54, %v7835_v54  ;;  %v15240_v22 = vpack.c.bf16 %v7834_v31, %v7834_v31  ;;  %v7231_v42 = vld [vmem:[%s22594_s2 + $0x48] sm:$0xff] }
 0x2b5   : > { %22886 = vst [vmem:[#allocation112_spill] sm:$0xff] %v19547_v30  ;;  %8672 = vst [vmem:[#allocation2 + $0xc] sm:$0xf] %v8671_v15  ;;  %6310 = vmatmul.mubr.bf16.gmra.mrb[72].mxu1 %v5462_v21  ;;  %v8093_v62 = vor.u32 %v8091_v17, %v8090_v37  ;;  %v8095_v12 = vrot.slane %v8090_v37, 4  ;;  %v7837_v5 = vmax.f32 %v19541_v2, 0.0  ;;  %v7836_v44 = vmax.f32 %v19547_v30, 0.0  ;;  %5038 = vrot.lane.b32.xlu1 %v19426_v39, %s16826_s8 }
 0x2b6   : > { %4241 = vst.msk [vmem:[#allocation3 + $0x178] sm:$0xff] %vm2652_vm15, %v4161_v35  ;;  %v15668_v29 = vpop.f32.mrb[68].mxu0  ;;  %6317 = vmatprep.mubr.bf16.mxu1 %v5468_v59  ;;  %v8115_v21 = vshrl.u32 %v15241_v10, 16  ;;  %v8118_v17 = vshll.u32 %v15241_v10, 16  ;;  %v8106_v36 = vshrl.u32 %v15240_v22, 16  ;;  %v8109_v7 = vshll.u32 %v15240_v22, 16 }
 0x2b7   : > { %v7571_v54 = vpop.f32.mrb[69].mxu0  ;;  %v8094_v31 = vsel %vm17104_vm11, %v8086_v27, %v8093_v62  ;;  %v8103_v56 = vsel %vm17104_vm11, %v8095_v12, %v8102_v28  ;;  %v15243_v32 = vpack.c.bf16 %v7837_v5, %v7837_v5  ;;  %v15242_v15 = vpack.c.bf16 %v7836_v44, %v7836_v44  ;;  %v5011_v37 = vpop.permute.xlu1 %5010  ;;  %v7233_v22 = vld [vmem:[%s22594_s2 + $0x58] sm:$0xff]  ;;  %v7232_v27 = vld [vmem:[%s22594_s2 + $0x50] sm:$0xff] }
 0x2b8   : > { %8674 = vst.msk [vmem:[#allocation2 + $0x14] sm:$0xf] %vm234_vm7, %v8094_v31  ;;  %8675 = vst.msk [vmem:[#allocation2 + $0x18] sm:$0xf] %vm234_vm7, %v8103_v56  ;;  %v8117_v39 = vrot.slane %v8115_v21, 7  ;;  %v8108_v35 = vrot.slane %v8106_v36, 7  ;;  %v19570_v59 = vadd.f32 %v15668_v29, %v7231_v42  ;;  %v19572_v10 = vadd.f32 %v7571_v54, %v7230_v61 }
 0x2b9   : > { %5090 = vst.msk [vmem:[#allocation3 + $0x1a8] sm:$0xff] %vm2652_vm15, %v5011_v37  ;;  %v8133_v28 = vshrl.u32 %v15243_v32, 16  ;;  %v8136_v62 = vshll.u32 %v15243_v32, 16  ;;  %v8124_v12 = vshrl.u32 %v15242_v15, 16  ;;  %v8127_v5 = vshll.u32 %v15242_v15, 16  ;;  %v15671_v44 = vpop.f32.mrb[70].mxu0  ;;  %4190 = vrot.lane.b32.xlu1 %v19436_v9, %s16826_s8 }
 0x2ba   : > { %22887 = vst [vmem:[#allocation113_spill] sm:$0xff] %v19570_v59  ;;  %22888 = vst [vmem:[#allocation114_spill] sm:$0xff] %v19572_v10  ;;  %v16529_v42 = vld [vmem:[%s22595_s3 + $0x50] sm:$0xff]   ;;  %v8120_v29 = vor.u32 %v8118_v17, %v8117_v39  ;;  %v8122_v61 = vrot.slane %v8117_v39, 4  ;;  %v8111_v21 = vor.u32 %v8109_v7, %v8108_v35  ;;  %v8113_v36 = vrot.slane %v8108_v35, 4  ;;  %v7581_v54 = vpop.f32.mrb[71].mxu0 }
 0x2bb   : > { %v7235_v31 = vld [vmem:[%s22594_s2 + $0x68] sm:$0xff]  ;;  %v7234_v56 = vld [vmem:[%s22594_s2 + $0x60] sm:$0xff]  ;;  %v19592_v9 = vrot.slane %v8133_v28, 7  ;;  %v8126_v37 = vrot.slane %v8124_v12, 7  ;;  %v7839_v2 = vmax.f32 %v19570_v59, 0.0  ;;  %v7838_v17 = vmax.f32 %v19572_v10, 0.0  ;;  %v4163_v7 = vpop.permute.xlu1 %4162  ;;  %12900 = vmatpush1.bf16.msra.mxu0 %v16529_v42 }
 0x2bc   : > { %v5467_v32 = vld [vmem:[#allocation3 + $0xb0] sm:$0xff]  ;;  %v5473_v15 = vld [vmem:[#allocation3 + $0xe0] sm:$0xff]  ;;  %v8112_v39 = vsel %vm17104_vm11, %v8104_v3, %v8111_v21  ;;  %v8121_v35 = vsel %vm17104_vm11, %v8113_v36, %v8120_v29  ;;  %v19600_v30 = vadd.f32 %v15671_v44, %v7233_v22  ;;  %v19602_v11 = vadd.f32 %v7581_v54, %v7232_v27  ;;  %4242 = vst.msk [vmem:[#allocation3 + $0x1a0] sm:$0xff] %vm2652_vm15, %v4163_v7 }
 0x2bd   : > { %v16462_v28 = vld [vmem:[#allocation2 + $0xc] sm:$0xff]   ;;  %6318 = vmatmul.mubr.bf16.gmra.mrb[76].mxu1 %v5467_v32  ;;  %8676 = vst.msk [vmem:[#allocation2 + $0x1c] sm:$0xf] %vm234_vm7, %v8112_v39  ;;  %8677 = vst.msk [vmem:[#allocation2 + $0x20] sm:$0xf] %vm234_vm7, %v8121_v35  ;;  %v8138_v12 = vor.u32 %v8136_v62, %v19592_v9  ;;  %v8140_v42 = vrot.slane %v19592_v9, 4  ;;  %v8129_v3 = vor.u32 %v8127_v5, %v8126_v37  ;;  %5040 = vrot.lane.b32.xlu1 %v19444_v43, %s16826_s8 }
 0x2be   : > { %22889 = vst [vmem:[#allocation115_spill] sm:$0xff] %v19600_v30  ;;  %22890 = vst [vmem:[#allocation116_spill] sm:$0xff] %v19602_v11  ;;  %v8131_v21 = vrot.slane %v8126_v37, 4  ;;  %v15674_v22 = vpop.f32.mrb[72].mxu0  ;;  %6325 = vmatprep.mubr.bf16.mxu1 %v5473_v15  ;;  %v15245_v27 = vpack.c.bf16 %v7839_v2, %v7839_v2  ;;  %v15244_v44 = vpack.c.bf16 %v7838_v17, %v7838_v17  ;;  %v7841_v29 = vmax.f32 %v19600_v30, 0.0  ;;  %v19614_v32 = vld [vmem:[#allocation2 + $0x8] sm:$0xff]  }
 0x2bf   : > { %v7840_v36 = vmax.f32 %v19602_v11, 0.0  ;;  %10128 = vrot.lane.b32.xlu0 %v16462_v28, %s16826_s8  ;;  %v7591_v54 = vpop.f32.mrb[73].mxu0  ;;  %12901 = vmatprep.subr.bf16.mxu0 %v22767_v19  ;;  %v8130_v62 = vsel %vm17104_vm11, %v8122_v61, %v8129_v3  ;;  %v19621_v5 = vadd.f32 %v15674_v22, %v7235_v31  ;;  %v5013_v2 = vpop.permute.xlu1 %5012  ;;  %v7237_v9 = vld [vmem:[%s22594_s2 + $0x78] sm:$0xff] }
 0x2c0   : > { %v8139_v43 = vsel %vm17104_vm11, %v8131_v21, %v8138_v12  ;;  %v19623_v15 = vadd.f32 %v7591_v54, %v7234_v56  ;;  %8678 = vst.msk [vmem:[#allocation2 + $0x24] sm:$0xf] %vm234_vm7, %v8130_v62  ;;  %v8151_v37 = vshrl.u32 %v15245_v27, 16  ;;  %v8154_v17 = vshll.u32 %v15245_v27, 16 }
 0x2c1   : > { %22891 = vst [vmem:[#allocation117_spill] sm:$0xff] %v19621_v5  ;;  %8679 = vst.msk [vmem:[#allocation2 + $0x28] sm:$0xf] %vm234_vm7, %v8139_v43  ;;  %v8142_v7 = vshrl.u32 %v15244_v44, 16  ;;  %v8145_v61 = vshll.u32 %v15244_v44, 16  ;;  %v15247_v39 = vpack.c.bf16 %v7841_v29, %v7841_v29  ;;  %v15246_v31 = vpack.c.bf16 %v7840_v36, %v7840_v36  ;;  %4192 = vrot.lane.b32.xlu1 %v19449_v14, %s16826_s8  ;;  %v15677_v28 = vpop.f32.mrb[74].mxu0 }
 0x2c2   : > { %22892 = vst [vmem:[#allocation118_spill] sm:$0xff] %v19623_v15  ;;  %5091 = vst.msk [vmem:[#allocation3 + $0x1d0] sm:$0xff] %vm2652_vm15, %v5013_v2  ;;  %v7843_v35 = vmax.f32 %v19621_v5, 0.0  ;;  %v7842_v56 = vmax.f32 %v19623_v15, 0.0  ;;  %v8153_v12 = vrot.slane %v8151_v37, 7  ;;  %v9227_v21 = vshll.u32 %v19614_v32, 16 }
 0x2c3   : > { %v8144_v3 = vrot.slane %v8142_v7, 7  ;;  %v19636_v22 = vadd.f32 %v15677_v28, %v7237_v9  ;;  %v7601_v27 = vpop.f32.mrb[75].mxu0  ;;  %v8169_v44 = vshrl.u32 %v15247_v39, 16  ;;  %v8172_v54 = vshll.u32 %v15247_v39, 16  ;;  %v4165_v36 = vpop.permute.xlu1 %4164  ;;  %v5472_v43 = vld [vmem:[#allocation3 + $0xd8] sm:$0xff]  ;;  %v5478_v2 = vld [vmem:[#allocation3 + $0x108] sm:$0xff] }
 0x2c4   : > { %v8160_v62 = vshrl.u32 %v15246_v31, 16  ;;  %v8163_v29 = vshll.u32 %v15246_v31, 16  ;;  %v8156_v5 = vor.u32 %v8154_v17, %v8153_v12  ;;  %v8158_v15 = vrot.slane %v8153_v12, 4  ;;  %4243 = vst.msk [vmem:[#allocation3 + $0x1c8] sm:$0xff] %vm2652_vm15, %v4165_v36  ;;  %v7236_v39 = vld [vmem:[%s22594_s2 + $0x70] sm:$0xff] }
 0x2c5   : > { %22893 = vst [vmem:[#allocation119_spill] sm:$0xff] %v19636_v22  ;;  %v8147_v30 = vor.u32 %v8145_v61, %v8144_v3  ;;  %v8149_v11 = vrot.slane %v8144_v3, 4  ;;  %6326 = vmatmul.mubr.bf16.gmra.mrb[80].mxu1 %v5472_v43  ;;  %v19639_v14 = vrot.slane %v8169_v44, 7  ;;  %v15249_v9 = vpack.c.bf16 %v7843_v35, %v7843_v35  ;;  %5042 = vrot.lane.b32.xlu1 %v19479_v20, %s16826_s8  ;;  %v15680_v31 = vpop.f32.mrb[76].mxu0  ;;  %v19651_v35 = vld [vmem:[#allocation2 + $0x10] sm:$0xff]  }
 0x2c6   : > { %v8162_v37 = vrot.slane %v8160_v62, 7  ;;  %v15248_v7 = vpack.c.bf16 %v7842_v56, %v7842_v56  ;;  %6333 = vmatprep.mubr.bf16.mxu1 %v5478_v2  ;;  %v9229_v28 = vrot.slane %v9227_v21, 1  ;;  %v7845_v12 = vmax.f32 %v19636_v22, 0.0  ;;  %v7611_v56 = vpop.f32.mrb[77].mxu0  ;;  %v7239_v21 = vld [vmem:[%s22594_s2 + $0x88] sm:$0xff] }
 0x2c7   : > { %v8148_v17 = vsel %vm17104_vm11, %v8140_v42, %v8147_v30  ;;  %v8157_v61 = vsel %vm17104_vm11, %v8149_v11, %v8156_v5  ;;  %v8174_v20 = vor.u32 %v8172_v54, %v19639_v14  ;;  %v8176_v3 = vrot.slane %v19639_v14, 4  ;;  %v5015_v30 = vpop.permute.xlu1 %5014  ;;  %v7238_v14 = vld [vmem:[%s22594_s2 + $0x80] sm:$0xff] }
 0x2c8   : > { %8680 = vst.msk [vmem:[#allocation2 + $0x2c] sm:$0xf] %vm234_vm7, %v8148_v17  ;;  %8681 = vst.msk [vmem:[#allocation2 + $0x30] sm:$0xf] %vm234_vm7, %v8157_v61  ;;  %v8165_v44 = vor.u32 %v8163_v29, %v8162_v37  ;;  %v8167_v62 = vrot.slane %v8162_v37, 4  ;;  %v8187_v42 = vshrl.u32 %v15249_v9, 16  ;;  %v9230_v29 = vsel %vm2317_vm12, %v19454_v49, %v9229_v28 }
 0x2c9   : > { %v8190_v36 = vshll.u32 %v15249_v9, 16  ;;  %v8178_v11 = vshrl.u32 %v15248_v7, 16  ;;  %v8181_v5 = vshll.u32 %v15248_v7, 16  ;;  %5092 = vst.msk [vmem:[#allocation3 + $0x1f8] sm:$0xff] %vm2652_vm15, %v5015_v30  ;;  %v15251_v2 = vpack.c.bf16 %v7845_v12, %v7845_v12  ;;  %4194 = vrot.lane.b32.xlu1 %v19484_v45, %s16826_s8  ;;  %v15683_v37 = vpop.f32.mrb[78].mxu0  ;;  %v5477_v9 = vld [vmem:[#allocation3 + $0x100] sm:$0xff]  ;;  %9463 = vrot.lane.b32.xlu0 %v9230_v29, %s16826_s8 }
 0x2ca   : > { %v8166_v43 = vsel %vm17104_vm11, %v8158_v15, %v8165_v44  ;;  %v8175_v54 = vsel %vm17104_vm11, %v8167_v62, %v8174_v20  ;;  %v19674_v15 = vrot.slane %v8187_v42, 7  ;;  %v19677_v49 = vadd.f32 %v7601_v27, %v7236_v39  ;;  %v7621_v45 = vpop.f32.mrb[79].mxu0  ;;  %v5483_v61 = vld [vmem:[#allocation3 + $0x130] sm:$0xff]  ;;  %v16470_v20 = vld [vmem:[#allocation2 + $0x14] sm:$0xff]  }
 0x2cb   : > { %8682 = vst.msk [vmem:[#allocation2 + $0x34] sm:$0xf] %vm234_vm7, %v8166_v43  ;;  %8683 = vst.msk [vmem:[#allocation2 + $0x38] sm:$0xf] %vm234_vm7, %v8175_v54  ;;  %v8180_v7 = vrot.slane %v8178_v11, 7  ;;  %v9231_v17 = vshrl.u32 %v19614_v32, 16  ;;  %v4167_v42 = vpop.permute.xlu1 %4166  ;;  %v19684_v43 = vadd.f32 %v15680_v31, %v7239_v21 }
 0x2cc   : > { %22894 = vst [vmem:[#allocation120_spill] sm:$0xff] %v19677_v49  ;;  %v16536_v12 = vld [vmem:[%s22595_s3 + $0x58] sm:$0xff]   ;;  %v8205_v44 = vshrl.u32 %v15251_v2, 16  ;;  %v8208_v62 = vshll.u32 %v15251_v2, 16  ;;  %v9235_v30 = vshll.u32 %v19651_v35, 16  ;;  %v16542_v32 = vld [vmem:[%s22595_s3 + $0x60] sm:$0xff]   ;;  %v8192_v27 = vor.u32 %v8190_v36, %v19674_v15 }
 0x2cd   : > { %22895 = vst [vmem:[#allocation121_spill] sm:$0xff] %v19684_v43  ;;  %v19686_v11 = vld [vmem:[#allocation2 + $0x18] sm:$0xff]   ;;  %v8183_v54 = vor.u32 %v8181_v5, %v8180_v7  ;;  %v8185_v29 = vrot.slane %v8180_v7, 4  ;;  %4244 = vst.msk [vmem:[#allocation3 + $0x1f0] sm:$0xff] %vm2652_vm15, %v4167_v42  ;;  %v7240_v31 = vld [vmem:[%s22594_s2 + $0x90] sm:$0xff]  ;;  %6334 = vmatmul.mubr.bf16.gmra.mrb[84].mxu1 %v5477_v9  ;;  %12902 = vmatpush1.bf16.msra.mxu0 %v16536_v12  ;;  %v7844_v36 = vmax.f32 %v19677_v49, 0.0 }
 0x2ce   : > { %v7241_v2 = vld [vmem:[%s22594_s2 + $0x98] sm:$0xff]  ;;  %v19700_v21 = vrot.slane %v8205_v44, 7  ;;  %v9233_v22 = vor.u32 %v9231_v17, %v9229_v28  ;;  %v9237_v39 = vrot.slane %v9235_v30, 1  ;;  %5044 = vrot.lane.b32.xlu1 %v19492_v47, %s16826_s8  ;;  %v15686_v5 = vpop.f32.mrb[80].mxu0  ;;  %6341 = vmatprep.mubr.bf16.mxu1 %v5483_v61  ;;  %v7847_v9 = vmax.f32 %v19684_v43, 0.0 }
 0x2cf   : > { %v8184_v7 = vsel %vm17104_vm11, %v8176_v3, %v8183_v54  ;;  %v8193_v42 = vsel %vm17104_vm11, %v8185_v29, %v8192_v27  ;;  %10130 = vrot.lane.b32.xlu0 %v16470_v20, %s16826_s8  ;;  %v19711_v12 = vadd.f32 %v7611_v56, %v7238_v14  ;;  %v19713_v44 = vpop.f32.mrb[81].mxu0  ;;  %12903 = vmatprep.subr.bf16.mxu0 %v22767_v19  ;;  %v5017_v61 = vpop.permute.xlu1 %5016  ;;  %v9239_v14 = vshrl.u32 %v19651_v35, 16  ;;  %v7243_v27 = vld [vmem:[%s22594_s2 + $0xa8] sm:$0xff] }
 0x2d0   : > { %8684 = vst.msk [vmem:[#allocation2 + $0x3c] sm:$0xf] %vm234_vm7, %v8184_v7  ;;  %8685 = vst.msk [vmem:[#allocation2 + $0x40] sm:$0xf] %vm234_vm7, %v8193_v42  ;;  %v8210_v47 = vor.u32 %v8208_v62, %v19700_v21  ;;  %v15250_v3 = vpack.c.bf16 %v7844_v36, %v7844_v36  ;;  %v9238_v17 = vsel %vm2317_vm12, %v9233_v22, %v9237_v39  ;;  %v9243_v30 = vshll.u32 %v19686_v11, 16  ;;  %v5482_v7 = vld [vmem:[#allocation3 + $0x128] sm:$0xff] }
 0x2d1   : > { %22896 = vst [vmem:[#allocation122_spill] sm:$0xff] %v19711_v12  ;;  %v15253_v20 = vpack.c.bf16 %v7847_v9, %v7847_v9  ;;  %5093 = vst.msk [vmem:[#allocation3 + $0x220] sm:$0xff] %vm2652_vm15, %v5017_v61  ;;  %v7846_v56 = vmax.f32 %v19711_v12, 0.0  ;;  %12904 = vmatpush1.bf16.msra.mxu0 %v16542_v32  ;;  %v19730_v22 = vadd.f32 %v15683_v37, %v7241_v2  ;;  %v15689_v36 = vpop.f32.mrb[82].mxu0  ;;  %v16477_v2 = vld [vmem:[#allocation2 + $0x1c] sm:$0xff]  }
 0x2d2   : > { %v8196_v62 = vshrl.u32 %v15250_v3, 16  ;;  %v8199_v54 = vshll.u32 %v15250_v3, 16  ;;  %4196 = vrot.lane.b32.xlu1 %v19495_v34, %s16826_s8  ;;  %v19732_v29 = vadd.f32 %v7621_v45, %v7240_v31  ;;  %12905 = vmatprep.subr.bf16.mxu0 %v22767_v19  ;;  %v9241_v61 = vor.u32 %v9239_v14, %v9237_v39  ;;  %v19736_v32 = vpop.f32.mrb[83].mxu0  ;;  %v5488_v3 = vld [vmem:[#allocation3 + $0x158] sm:$0xff] }
 0x2d3   : > { %22897 = vst [vmem:[#allocation123_spill] sm:$0xff] %v19730_v22  ;;  %9465 = vrot.lane.b32.xlu0 %v9238_v17, %s16826_s8  ;;  %v8223_v35 = vshrl.u32 %v15253_v20, 16  ;;  %v8226_v42 = vshll.u32 %v15253_v20, 16  ;;  %v15252_v9 = vpack.c.bf16 %v7846_v56, %v7846_v56  ;;  %v19738_v43 = vrot.slane %v9243_v30, 1  ;;  %v4169_v34 = vpop.permute.xlu1 %4168  ;;  %v7242_v39 = vld [vmem:[%s22594_s2 + $0xa0] sm:$0xff] }
 0x2d4   : > { %22898 = vst [vmem:[#allocation124_spill] sm:$0xff] %v19732_v29  ;;  %v8198_v28 = vrot.slane %v8196_v62, 7  ;;  %v7849_v37 = vmax.f32 %v19730_v22, 0.0  ;;  %v7848_v45 = vmax.f32 %v19732_v29, 0.0  ;;  %4245 = vst.msk [vmem:[#allocation3 + $0x218] sm:$0xff] %vm2652_vm15, %v4169_v34  ;;  %v19745_v20 = vadd.f32 %v15686_v5, %v7243_v27  ;;  %v16547_v27 = vld [vmem:[%s22595_s3 + $0x68] sm:$0xff]  }
 0x2d5   : > { %v19742_v31 = vrot.slane %v8223_v35, 7  ;;  %v8214_v12 = vshrl.u32 %v15252_v9, 16  ;;  %v8217_v17 = vshll.u32 %v15252_v9, 16  ;;  %6342 = vmatmul.mubr.bf16.gmra.mrb[88].mxu1 %v5482_v7  ;;  %v9246_v30 = vsel %vm2317_vm12, %v9241_v61, %v19738_v43  ;;  %v7245_v35 = vld [vmem:[%s22594_s2 + $0xb8] sm:$0xff]  ;;  %v19757_v5 = vpop.f32.mrb[84].mxu0  ;;  %v16551_v61 = vld [vmem:[%s22595_s3 + $0x70] sm:$0xff]   ;;  %12906 = vmatpush1.bf16.msra.mxu0 %v16547_v27 }
 0x2d6   : > { %22899 = vst [vmem:[#allocation125_spill] sm:$0xff] %v19745_v20  ;;  %v8201_v56 = vor.u32 %v8199_v54, %v8198_v28  ;;  %v8203_v14 = vrot.slane %v8198_v28, 4  ;;  %v15255_v62 = vpack.c.bf16 %v7849_v37, %v7849_v37  ;;  %5046 = vrot.lane.b32.xlu1 %v19503_v18, %s16826_s8  ;;  %6349 = vmatprep.mubr.bf16.mxu1 %v5488_v3  ;;  %v19765_v18 = vpop.f32.mrb[85].mxu0  ;;  %v22900_v3 = vrot.slane %v19674_v15, 4  ;;  %v5487_v27 = vld [vmem:[#allocation3 + $0x150] sm:$0xff] }
 0x2d7   : > { %10132 = vrot.lane.b32.xlu0 %v16477_v2, %s16826_s8  ;;  %v8228_v28 = vor.u32 %v8226_v42, %v19742_v31  ;;  %v8216_v7 = vrot.slane %v8214_v12, 7  ;;  %v15254_v9 = vpack.c.bf16 %v7848_v45, %v7848_v45  ;;  %v5019_v22 = vpop.permute.xlu1 %5018  ;;  %12907 = vmatprep.subr.bf16.mxu0 %v22767_v19 }
 0x2d8   : > { %v8202_v34 = vsel %vm17104_vm11, %v22900_v3, %v8201_v56  ;;  %v8211_v37 = vsel %vm17104_vm11, %v8203_v14, %v8210_v47  ;;  %v8241_v2 = vshrl.u32 %v15255_v62, 16  ;;  %v8244_v42 = vshll.u32 %v15255_v62, 16  ;;  %5094 = vst.msk [vmem:[#allocation3 + $0x248] sm:$0xff] %vm2652_vm15, %v5019_v22  ;;  %v19788_v62 = vld [vmem:[#allocation2 + $0x20] sm:$0xff]   ;;  %v5493_v3 = vld [vmem:[#allocation3 + $0x180] sm:$0xff] }
 0x2d9   : > { %8686 = vst.msk [vmem:[#allocation2 + $0x44] sm:$0xf] %vm234_vm7, %v8202_v34  ;;  %8687 = vst.msk [vmem:[#allocation2 + $0x48] sm:$0xf] %vm234_vm7, %v8211_v37  ;;  %v8219_v12 = vor.u32 %v8217_v17, %v8216_v7  ;;  %v8221_v45 = vrot.slane %v8216_v7, 4  ;;  %v8232_v54 = vshrl.u32 %v15254_v9, 16  ;;  %v19784_v56 = vadd.f32 %v19713_v44, %v7242_v39  ;;  %12908 = vmatpush1.bf16.msra.mxu0 %v16551_v61 }
 0x2da   : > { %v8235_v29 = vshll.u32 %v15254_v9, 16  ;;  %v19780_v15 = vrot.slane %v8241_v2, 7  ;;  %v7851_v47 = vmax.f32 %v19745_v20, 0.0  ;;  %v19786_v14 = vadd.f32 %v15689_v36, %v7245_v35  ;;  %v7244_v17 = vld [vmem:[%s22594_s2 + $0xb0] sm:$0xff]  ;;  %4198 = vrot.lane.b32.xlu1 %v19506_v4, %s16826_s8  ;;  %v19795_v22 = vpop.f32.mrb[86].mxu0  ;;  %v16484_v34 = vld [vmem:[#allocation2 + $0x24] sm:$0xff]   ;;  %12909 = vmatprep.subr.bf16.mxu0 %v22767_v19 }
 0x2db   : > { %22901 = vst [vmem:[#allocation126_spill] sm:$0xff] %v19784_v56  ;;  %v22903_v7 = vrot.slane %v19700_v21, 4  ;;  %v8229_v36 = vsel %vm17104_vm11, %v8221_v45, %v8228_v28  ;;  %9467 = vrot.lane.b32.xlu0 %v9246_v30, %s16826_s8  ;;  %v8234_v39 = vrot.slane %v8232_v54, 7  ;;  %v9247_v35 = vshrl.u32 %v19686_v11, 16  ;;  %v19805_v9 = vpop.f32.mrb[87].mxu0  ;;  %v7247_v30 = vld [vmem:[%s22594_s2 + $0xc8] sm:$0xff]  ;;  %v4171_v11 = vpop.permute.xlu1 %4170 }
 0x2dc   : > { %22902 = vst [vmem:[#allocation127_spill] sm:$0xff] %v19786_v14  ;;  %8689 = vst.msk [vmem:[#allocation2 + $0x50] sm:$0xf] %vm234_vm7, %v8229_v36  ;;  %v8246_v4 = vor.u32 %v8244_v42, %v19780_v15  ;;  %v15257_v37 = vpack.c.bf16 %v7851_v47, %v7851_v47  ;;  %v7850_v28 = vmax.f32 %v19784_v56, 0.0  ;;  %v16558_v54 = vld [vmem:[#allocation2] sm:$0xff]   ;;  %v16559_v2 = vld [vmem:[%s22595_s3 + $0x78] sm:$0xff]  }
 0x2dd   : > { %v8220_v44 = vsel %vm17104_vm11, %v22903_v7, %v8219_v12  ;;  %v8237_v12 = vor.u32 %v8235_v29, %v8234_v39  ;;  %v8239_v45 = vrot.slane %v8234_v39, 4  ;;  %v7853_v42 = vmax.f32 %v19786_v14, 0.0  ;;  %4246 = vst.msk [vmem:[#allocation3 + $0x240] sm:$0xff] %vm2652_vm15, %v4171_v11  ;;  %6350 = vmatmul.mubr.bf16.gmra.mrb[92].mxu1 %v5487_v27  ;;  %v7246_v21 = vld [vmem:[%s22594_s2 + $0xc0] sm:$0xff]  ;;  %v19828_v29 = vpop.f32.mrb[88].mxu0  ;;  %12910 = vmatpush1.bf16.msra.mxu0 %v16559_v2  ;;  %v16491_v14 = vld [vmem:[#allocation2 + $0x2c] sm:$0xff]  }
 0x2de   : > { %8688 = vst.msk [vmem:[#allocation2 + $0x4c] sm:$0xf] %vm234_vm7, %v8220_v44  ;;  %v9249_v7 = vor.u32 %v9247_v35, %v19738_v43  ;;  %v8259_v47 = vshrl.u32 %v15257_v37, 16  ;;  %v8262_v44 = vshll.u32 %v15257_v37, 16  ;;  %v15256_v36 = vpack.c.bf16 %v7850_v28, %v7850_v28  ;;  %5048 = vrot.lane.b32.xlu1 %v19512_v55, %s16826_s8  ;;  %6357 = vmatprep.mubr.bf16.mxu1 %v5493_v3  ;;  %v7249_v55 = vld [vmem:[%s22594_s2 + $0xd8] sm:$0xff]  ;;  %v7671_v3 = vpop.f32.mrb[89].mxu0 }
 0x2df   : > { %v9251_v61 = vshll.u32 %v19788_v62, 16  ;;  %8975 = vst.msk [vmem:[#allocation3] sm:$0xff] %vm2072_vm14, %v16558_v54  ;;  %10134 = vrot.lane.b32.xlu0 %v16484_v34, %s16826_s8  ;;  %v22904_v43 = vrot.slane %v19742_v31, 4  ;;  %v8247_v39 = vsel %vm17104_vm11, %v8239_v45, %v8246_v4  ;;  %v15259_v35 = vpack.c.bf16 %v7853_v42, %v7853_v42  ;;  %v5021_v4 = vpop.permute.xlu1 %5020  ;;  %v7248_v45 = vld [vmem:[%s22594_s2 + $0xd0] sm:$0xff]  ;;  %13152 = vmatprep.subr.bf16.mxu0 %v22767_v19  ;;  %v16577_v56 = vld [vmem:[#allocation2 + $0x100] sm:$0xff]  }
 0x2e0   : > { %v19839_v37 = vadd.f32 %v19736_v32, %v7244_v17  ;;  %8691 = vst.msk [vmem:[#allocation2 + $0x58] sm:$0xf] %vm234_vm7, %v8247_v39  ;;  %v19846_v31 = vrot.slane %v8259_v47, 7  ;;  %v8250_v34 = vshrl.u32 %v15256_v36, 16  ;;  %v8253_v28 = vshll.u32 %v15256_v36, 16  ;;  %v20161_v49 = vld [vmem:[#allocation2 + $0x40] sm:$0xff]  }
 0x2e1   : > { %v8238_v27 = vsel %vm17104_vm11, %v22904_v43, %v8237_v12  ;;  %v19848_v11 = vrot.slane %v9251_v61, 1  ;;  %v8277_v54 = vshrl.u32 %v15259_v35, 16  ;;  %v8280_v32 = vshll.u32 %v15259_v35, 16  ;;  %5095 = vst.msk [vmem:[#allocation3 + $0x270] sm:$0xff] %vm2652_vm15, %v5021_v4  ;;  %v5492_v35 = vld [vmem:[#allocation3 + $0x178] sm:$0xff] }
 0x2e2   : > { %22905 = vst [vmem:[#allocation128_spill] sm:$0xff] %v19839_v37  ;;  %8690 = vst.msk [vmem:[#allocation2 + $0x54] sm:$0xf] %vm234_vm7, %v8238_v27  ;;  %v7852_v17 = vmax.f32 %v19839_v37, 0.0  ;;  %v19852_v12 = vadd.f32 %v19757_v5, %v7247_v30  ;;  %v8264_v42 = vor.u32 %v8262_v44, %v19846_v31  ;;  %v8266_v47 = vrot.slane %v19846_v31, 4  ;;  %v7251_v5 = vld [vmem:[%s22594_s2 + $0xe8] sm:$0xff]  ;;  %4200 = vrot.lane.b32.xlu1 %v19515_v41, %s16826_s8 }
 0x2e3   : > { %v8252_v2 = vrot.slane %v8250_v34, 7  ;;  %v9254_v36 = vsel %vm2317_vm12, %v9249_v7, %v19848_v11  ;;  %v19866_v30 = vpop.f32.mrb[90].mxu0  ;;  %v19870_v61 = vrot.slane %v8277_v54, 7  ;;  %v19875_v27 = vadd.f32 %v19765_v18, %v7246_v21  ;;  %v7250_v7 = vld [vmem:[%s22594_s2 + $0xe0] sm:$0xff]  ;;  %v4173_v54 = vpop.permute.xlu1 %4172  ;;  %4531 = vst.msk [vmem:[#allocation3 + $0x4a0] sm:$0xff] %vm2072_vm14, %v16577_v56  ;;  %v5518_v56 = vld [vmem:[#allocation3 + $0x248] sm:$0xff] }
 0x2e4   : > { %22906 = vst [vmem:[#allocation129_spill] sm:$0xff] %v19852_v12  ;;  %9469 = vrot.lane.b32.xlu0 %v9254_v36, %s16826_s8  ;;  %v15258_v44 = vpack.c.bf16 %v7852_v17, %v7852_v17  ;;  %v7855_v43 = vmax.f32 %v19852_v12, 0.0  ;;  %v19880_v39 = vpop.f32.mrb[91].mxu0  ;;  %v19883_v41 = vadd.f32 %v19795_v22, %v7249_v55  ;;  %v19886_v4 = vadd.f32 %v19805_v9, %v7248_v45  ;;  %v5498_v17 = vld [vmem:[#allocation3 + $0x1a8] sm:$0xff] }
 0x2e5   : > { %22907 = vst [vmem:[#allocation130_spill] sm:$0xff] %v19875_v27  ;;  %v8255_v31 = vor.u32 %v8253_v28, %v8252_v2  ;;  %v8257_v34 = vrot.slane %v8252_v2, 4  ;;  %v8282_v18 = vor.u32 %v8280_v32, %v19870_v61  ;;  %4247 = vst.msk [vmem:[#allocation3 + $0x268] sm:$0xff] %vm2652_vm15, %v4173_v54  ;;  %6358 = vmatmul.mubr.bf16.gmra.mrb[96].mxu1 %v5492_v35  ;;  %v22910_v28 = vrot.slane %v19780_v15, 4  ;;  %v19898_v32 = vpop.f32.mrb[92].mxu0 }
 0x2e6   : > { %22908 = vst [vmem:[#allocation131_spill] sm:$0xff] %v19883_v41  ;;  %22909 = vst [vmem:[#allocation132_spill] sm:$0xff] %v19886_v4  ;;  %v8268_v36 = vshrl.u32 %v15258_v44, 16  ;;  %v8271_v12 = vshll.u32 %v15258_v44, 16  ;;  %v15261_v55 = vpack.c.bf16 %v7855_v43, %v7855_v43  ;;  %v7854_v45 = vmax.f32 %v19875_v27, 0.0  ;;  %6365 = vmatprep.mubr.bf16.mxu1 %v5498_v17 }
 0x2e7   : > { %v8256_v22 = vsel %vm17104_vm11, %v22910_v28, %v8255_v31  ;;  %v8265_v9 = vsel %vm17104_vm11, %v8257_v34, %v8264_v42  ;;  %v7857_v44 = vmax.f32 %v19883_v41, 0.0  ;;  %v7856_v15 = vmax.f32 %v19886_v4, 0.0  ;;  %v19908_v42 = vpop.f32.mrb[93].mxu0  ;;  %v5023_v17 = vpop.permute.xlu1 %5022  ;;  %v16564_v4 = vld [vmem:[#allocation2 + $0x8] sm:$0xff]  }
 0x2e8   : > { %8692 = vst.msk [vmem:[#allocation2 + $0x5c] sm:$0xf] %vm234_vm7, %v8256_v22  ;;  %8693 = vst.msk [vmem:[#allocation2 + $0x60] sm:$0xf] %vm234_vm7, %v8265_v9  ;;  %v8270_v2 = vrot.slane %v8268_v36, 7  ;;  %10136 = vrot.lane.b32.xlu0 %v16491_v14, %s16826_s8  ;;  %v19906_v35 = vadd.f32 %v19828_v29, %v7251_v5  ;;  %v8295_v43 = vshrl.u32 %v15261_v55, 16  ;;  %v15260_v34 = vpack.c.bf16 %v7854_v45, %v7854_v45 }
 0x2e9   : > { %v8298_v31 = vshll.u32 %v15261_v55, 16  ;;  %v19910_v54 = vadd.f32 %v7671_v3, %v7250_v7  ;;  %v15263_v36 = vpack.c.bf16 %v7857_v44, %v7857_v44  ;;  %v15262_v9 = vpack.c.bf16 %v7856_v15, %v7856_v15  ;;  %5096 = vst.msk [vmem:[#allocation3 + $0x298] sm:$0xff] %vm2652_vm15, %v5023_v17  ;;  %v19914_v5 = vpop.f32.mrb[94].mxu0  ;;  %v7253_v45 = vld [vmem:[%s22594_s2 + $0xf8] sm:$0xff]  ;;  %v5497_v17 = vld [vmem:[#allocation3 + $0x1a0] sm:$0xff] }
 0x2ea   : > { %22911 = vst [vmem:[#allocation133_spill] sm:$0xff] %v19906_v35  ;;  %v8273_v28 = vor.u32 %v8271_v12, %v8270_v2  ;;  %v8275_v22 = vrot.slane %v8270_v2, 4  ;;  %v8297_v14 = vrot.slane %v8295_v43, 7  ;;  %v8286_v21 = vshrl.u32 %v15260_v34, 16  ;;  %v19923_v2 = vpop.f32.mrb[95].mxu0  ;;  %8976 = vst.msk [vmem:[#allocation3 + $0x28] sm:$0xff] %vm2072_vm14, %v16564_v4 }
 0x2eb   : > { %22912 = vst [vmem:[#allocation134_spill] sm:$0xff] %v19910_v54  ;;  %v8289_v41 = vshll.u32 %v15260_v34, 16  ;;  %v7859_v29 = vmax.f32 %v19906_v35, 0.0  ;;  %v8313_v12 = vshrl.u32 %v15263_v36, 16  ;;  %v8316_v7 = vshll.u32 %v15263_v36, 16 }
 0x2ec   : > { %v8274_v55 = vsel %vm17104_vm11, %v8266_v47, %v8273_v28  ;;  %v8283_v3 = vsel %vm17104_vm11, %v8275_v22, %v8282_v18  ;;  %v8300_v44 = vor.u32 %v8298_v31, %v8297_v14  ;;  %v8302_v15 = vrot.slane %v8297_v14, 4  ;;  %v4175_v47 = vpop.permute.xlu1 %4174  ;;  %v16569_v18 = vld [vmem:[#allocation2 + $0x10] sm:$0xff]  }
 0x2ed   : > { %8694 = vst.msk [vmem:[#allocation2 + $0x64] sm:$0xf] %vm234_vm7, %v8274_v55  ;;  %8695 = vst.msk [vmem:[#allocation2 + $0x68] sm:$0xf] %vm234_vm7, %v8283_v3  ;;  %v8288_v43 = vrot.slane %v8286_v21, 7  ;;  %v8304_v34 = vshrl.u32 %v15262_v9, 16  ;;  %v15265_v36 = vpack.c.bf16 %v7859_v29, %v7859_v29  ;;  %6366 = vmatmul.mubr.bf16.gmra.mrb[100].mxu1 %v5497_v17  ;;  %v19936_v4 = vadd.f32 %v19866_v30, %v7253_v45 }
 0x2ee   : > { %v19928_v28 = vrot.slane %v8313_v12, 7  ;;  %v8307_v22 = vshll.u32 %v15262_v9, 16  ;;  %v7858_v35 = vmax.f32 %v19910_v54, 0.0  ;;  %v7252_v55 = vld [vmem:[%s22594_s2 + $0xf0] sm:$0xff]  ;;  %4248 = vst.msk [vmem:[#allocation3 + $0x290] sm:$0xff] %vm2652_vm15, %v4175_v47  ;;  %v5503_v21 = vld [vmem:[#allocation3 + $0x1d0] sm:$0xff] }
 0x2ef   : > { %v8291_v31 = vor.u32 %v8289_v41, %v8288_v43  ;;  %v8293_v14 = vrot.slane %v8288_v43, 4  ;;  %v8306_v3 = vrot.slane %v8304_v34, 7  ;;  %22913 = vst [vmem:[#allocation135_spill] sm:$0xff] %v19936_v4  ;;  %v19938_v12 = vld [vmem:[#allocation2 + $0x28] sm:$0xff]   ;;  %v19940_v9 = vpop.f32.mrb[96].mxu0  ;;  %6373 = vmatprep.mubr.bf16.mxu1 %v5503_v21  ;;  %8977 = vst.msk [vmem:[#allocation3 + $0x50] sm:$0xff] %vm2072_vm14, %v16569_v18 }
 0x2f0   : > { %v8318_v29 = vor.u32 %v8316_v7, %v19928_v28  ;;  %v8331_v47 = vshrl.u32 %v15265_v36, 16  ;;  %v8334_v17 = vshll.u32 %v15265_v36, 16  ;;  %v19945_v27 = vpop.f32.mrb[97].mxu0  ;;  %v22914_v41 = vrot.slane %v19870_v61, 4  ;;  %v5025_v21 = vpop.permute.xlu1 %5024  ;;  %v5502_v54 = vld [vmem:[#allocation3 + $0x1c8] sm:$0xff] }
 0x2f1   : > { %v8301_v45 = vsel %vm17104_vm11, %v8293_v14, %v8300_v44  ;;  %v8309_v43 = vor.u32 %v8307_v22, %v8306_v3  ;;  %v8311_v34 = vrot.slane %v8306_v3, 4  ;;  %v15264_v18 = vpack.c.bf16 %v7858_v35, %v7858_v35  ;;  %v7254_v44 = vld [vmem:[%s22594_s2 + $0x100] sm:$0xff]  ;;  %v7257_v22 = vld [vmem:[%s22594_s2 + $0x118] sm:$0xff]  ;;  %5097 = vst.msk [vmem:[#allocation3 + $0x2c0] sm:$0xff] %vm2652_vm15, %v5025_v21 }
 0x2f2   : > { %v8292_v30 = vsel %vm17104_vm11, %v22914_v41, %v8291_v31  ;;  %8697 = vst.msk [vmem:[#allocation2 + $0x70] sm:$0xf] %vm234_vm7, %v8301_v45  ;;  %v19955_v7 = vrot.slane %v8331_v47, 7  ;;  %v7861_v36 = vmax.f32 %v19936_v4, 0.0  ;;  %v9255_v61 = vshrl.u32 %v19788_v62, 16  ;;  %v7255_v31 = vld [vmem:[%s22594_s2 + $0x108] sm:$0xff] }
 0x2f3   : > { %8696 = vst.msk [vmem:[#allocation2 + $0x6c] sm:$0xf] %vm234_vm7, %v8292_v30  ;;  %v8310_v35 = vsel %vm17104_vm11, %v8302_v15, %v8309_v43  ;;  %v8319_v62 = vsel %vm17104_vm11, %v8311_v34, %v8318_v29  ;;  %v9259_v14 = vshll.u32 %v19938_v12, 16  ;;  %v19975_v3 = vadd.f32 %v19880_v39, %v7252_v55  ;;  %v19977_v47 = vpop.f32.mrb[98].mxu0  ;;  %v20026_v4 = vld [vmem:[#allocation2 + $0x30] sm:$0xff]  }
 0x2f4   : > { %8698 = vst.msk [vmem:[#allocation2 + $0x74] sm:$0xf] %vm234_vm7, %v8310_v35  ;;  %8699 = vst.msk [vmem:[#allocation2 + $0x78] sm:$0xf] %vm234_vm7, %v8319_v62  ;;  %v8336_v41 = vor.u32 %v8334_v17, %v19955_v7  ;;  %v8322_v45 = vshrl.u32 %v15264_v18, 16  ;;  %v8325_v15 = vshll.u32 %v15264_v18, 16  ;;  %v15267_v29 = vpack.c.bf16 %v7861_v36, %v7861_v36  ;;  %v4177_v55 = vpop.permute.xlu1 %4176 }
 0x2f5   : > { %22915 = vst [vmem:[#allocation136_spill] sm:$0xff] %v19975_v3  ;;  %v19983_v43 = vpop.f32.mrb[99].mxu0  ;;  %v9257_v34 = vor.u32 %v9255_v61, %v19848_v11  ;;  %v19986_v21 = vrot.slane %v9259_v14, 1  ;;  %v7860_v39 = vmax.f32 %v19975_v3, 0.0  ;;  %v19990_v62 = vadd.f32 %v19898_v32, %v7255_v31  ;;  %4249 = vst.msk [vmem:[#allocation3 + $0x2b8] sm:$0xff] %vm2652_vm15, %v4177_v55  ;;  %6374 = vmatmul.mubr.bf16.gmra.mrb[104].mxu1 %v5502_v54  ;;  %v5508_v11 = vld [vmem:[#allocation3 + $0x1f8] sm:$0xff] }
 0x2f6   : > { %v8324_v35 = vrot.slane %v8322_v45, 7  ;;  %v19993_v17 = vadd.f32 %v19908_v42, %v7254_v44  ;;  %v19996_v18 = vadd.f32 %v19914_v5, %v7257_v22  ;;  %v8349_v36 = vshrl.u32 %v15267_v29, 16  ;;  %v20001_v45 = vpop.f32.mrb[100].mxu0  ;;  %6381 = vmatprep.mubr.bf16.mxu1 %v5508_v11  ;;  %v16574_v32 = vld [vmem:[#allocation2 + $0x18] sm:$0xff]  }
 0x2f7   : > { %22916 = vst [vmem:[#allocation137_spill] sm:$0xff] %v19990_v62  ;;  %v8352_v61 = vshll.u32 %v15267_v29, 16  ;;  %v9262_v14 = vsel %vm2317_vm12, %v9257_v34, %v19986_v21  ;;  %v15266_v30 = vpack.c.bf16 %v7860_v39, %v7860_v39  ;;  %v7863_v5 = vmax.f32 %v19990_v62, 0.0  ;;  %v20006_v54 = vpop.f32.mrb[101].mxu0  ;;  %v7256_v39 = vld [vmem:[%s22594_s2 + $0x110] sm:$0xff]  ;;  %8978 = vst.msk [vmem:[#allocation3 + $0x78] sm:$0xff] %vm2072_vm14, %v16574_v32 }
 0x2f8   : > { %22917 = vst [vmem:[#allocation138_spill] sm:$0xff] %v19993_v17  ;;  %22918 = vst [vmem:[#allocation139_spill] sm:$0xff] %v19996_v18  ;;  %v8327_v31 = vor.u32 %v8325_v15, %v8324_v35  ;;  %v8329_v42 = vrot.slane %v8324_v35, 4  ;;  %9471 = vrot.lane.b32.xlu0 %v9262_v14, %s16826_s8  ;;  %v7862_v44 = vmax.f32 %v19993_v17, 0.0  ;;  %v20008_v22 = vrot.slane %v8349_v36, 7  ;;  %v5027_v15 = vpop.permute.xlu1 %5026 }
 0x2f9   : > { %v8340_v29 = vshrl.u32 %v15266_v30, 16  ;;  %v8343_v55 = vshll.u32 %v15266_v30, 16  ;;  %v7865_v34 = vmax.f32 %v19996_v18, 0.0  ;;  %v22919_v35 = vrot.slane %v19928_v28, 4  ;;  %v16498_v30 = vld [vmem:[#allocation2 + $0x34] sm:$0xff]   ;;  %5098 = vst.msk [vmem:[#allocation3 + $0x2e8] sm:$0xff] %vm2652_vm15, %v5027_v15 }
 0x2fa   : > { %v8337_v36 = vsel %vm17104_vm11, %v8329_v42, %v8336_v41  ;;  %v15269_v14 = vpack.c.bf16 %v7863_v5, %v7863_v5  ;;  %v15268_v62 = vpack.c.bf16 %v7862_v44, %v7862_v44  ;;  %v8354_v18 = vor.u32 %v8352_v61, %v20008_v22 }
 0x2fb   : > { %v8328_v11 = vsel %vm17104_vm11, %v22919_v35, %v8327_v31  ;;  %8701 = vst.msk [vmem:[#allocation2 + $0x80] sm:$0xf] %vm234_vm7, %v8337_v36  ;;  %v8356_v32 = vrot.slane %v20008_v22, 4  ;;  %v8342_v28 = vrot.slane %v8340_v29, 7  ;;  %v15271_v17 = vpack.c.bf16 %v7865_v34, %v7865_v34  ;;  %v20028_v31 = vpop.f32.mrb[102].mxu0  ;;  %v7259_v22 = vld [vmem:[%s22594_s2 + $0x128] sm:$0xff] }
 0x2fc   : > { %8700 = vst.msk [vmem:[#allocation2 + $0x7c] sm:$0xf] %vm234_vm7, %v8328_v11  ;;  %v8367_v41 = vshrl.u32 %v15269_v14, 16  ;;  %v8370_v42 = vshll.u32 %v15269_v14, 16  ;;  %v8358_v5 = vshrl.u32 %v15268_v62, 16  ;;  %v8361_v44 = vshll.u32 %v15268_v62, 16  ;;  %10138 = vrot.lane.b32.xlu0 %v16498_v30, %s16826_s8  ;;  %v4179_v29 = vpop.permute.xlu1 %4178 }
 0x2fd   : > { %v20031_v15 = vpop.f32.mrb[103].mxu0  ;;  %v8345_v35 = vor.u32 %v8343_v55, %v8342_v28  ;;  %v8347_v11 = vrot.slane %v8342_v28, 4  ;;  %v8385_v36 = vshrl.u32 %v15271_v17, 16  ;;  %v8388_v61 = vshll.u32 %v15271_v17, 16  ;;  %v5507_v34 = vld [vmem:[#allocation3 + $0x1f0] sm:$0xff]  ;;  %4250 = vst.msk [vmem:[#allocation3 + $0x2e0] sm:$0xff] %vm2652_vm15, %v4179_v29 }
 0x2fe   : > { %v20036_v3 = vrot.slane %v8367_v41, 7  ;;  %v8360_v37 = vrot.slane %v8358_v5, 7  ;;  %v20039_v14 = vadd.f32 %v19923_v2, %v7256_v39  ;;  %v9263_v62 = vshrl.u32 %v19938_v12, 16  ;;  %v7258_v55 = vld [vmem:[%s22594_s2 + $0x120] sm:$0xff]  ;;  %v7261_v17 = vld [vmem:[%s22594_s2 + $0x138] sm:$0xff]  ;;  %6382 = vmatmul.mubr.bf16.gmra.mrb[108].mxu1 %v5507_v34  ;;  %v5513_v30 = vld [vmem:[#allocation3 + $0x220] sm:$0xff] }
 0x2ff   : > { %v22921_v28 = vrot.slane %v19955_v7, 4  ;;  %v8355_v12 = vsel %vm17104_vm11, %v8347_v11, %v8354_v18  ;;  %v20055_v39 = vrot.slane %v8385_v36, 7  ;;  %v9267_v41 = vshll.u32 %v20026_v4, 16  ;;  %v7260_v5 = vld [vmem:[%s22594_s2 + $0x130] sm:$0xff]  ;;  %v20061_v20 = vpop.f32.mrb[104].mxu0  ;;  %6389 = vmatprep.mubr.bf16.mxu1 %v5513_v30  ;;  %v20067_v36 = vld [vmem:[#allocation2 + $0x38] sm:$0xff]  }
 0x300   : > { %22920 = vst [vmem:[#allocation140_spill] sm:$0xff] %v20039_v14  ;;  %8703 = vst.msk [vmem:[#allocation2 + $0x88] sm:$0xf] %vm234_vm7, %v8355_v12  ;;  %v8372_v7 = vor.u32 %v8370_v42, %v20036_v3  ;;  %v8363_v18 = vor.u32 %v8361_v44, %v8360_v37  ;;  %v8365_v11 = vrot.slane %v8360_v37, 4  ;;  %v20069_v29 = vpop.f32.mrb[105].mxu0  ;;  %v7864_v30 = vmax.f32 %v20039_v14, 0.0  ;;  %v5029_v12 = vpop.permute.xlu1 %5028 }
 0x301   : > { %v8346_v2 = vsel %vm17104_vm11, %v22921_v28, %v8345_v35  ;;  %v20072_v34 = vor.u32 %v8388_v61, %v20055_v39  ;;  %v9269_v44 = vrot.slane %v9267_v41, 1  ;;  %v20082_v35 = vadd.f32 %v19940_v9, %v7259_v22  ;;  %v7263_v61 = vld [vmem:[%s22594_s2 + $0x148] sm:$0xff]  ;;  %5099 = vst.msk [vmem:[#allocation3 + $0x310] sm:$0xff] %vm2652_vm15, %v5029_v12  ;;  %v20099_v22 = vpop.f32.mrb[106].mxu0  ;;  %v16579_v12 = vld [vmem:[#allocation2 + $0x20] sm:$0xff]  }
 0x302   : > { %8702 = vst.msk [vmem:[#allocation2 + $0x84] sm:$0xf] %vm234_vm7, %v8346_v2  ;;  %v9265_v2 = vor.u32 %v9263_v62, %v19986_v21  ;;  %v8364_v42 = vsel %vm17104_vm11, %v8356_v32, %v8363_v18  ;;  %v8373_v37 = vsel %vm17104_vm11, %v8365_v11, %v8372_v7  ;;  %v15270_v21 = vpack.c.bf16 %v7864_v30, %v7864_v30  ;;  %v5512_v41 = vld [vmem:[#allocation3 + $0x218] sm:$0xff] }
 0x303   : > { %22922 = vst [vmem:[#allocation141_spill] sm:$0xff] %v20082_v35  ;;  %8704 = vst.msk [vmem:[#allocation2 + $0x8c] sm:$0xf] %vm234_vm7, %v8364_v42  ;;  %v20091_v32 = vadd.f32 %v19945_v27, %v7258_v55  ;;  %v20094_v62 = vadd.f32 %v19977_v47, %v7261_v17  ;;  %v20097_v9 = vadd.f32 %v19983_v43, %v7260_v5  ;;  %v7867_v18 = vmax.f32 %v20082_v35, 0.0  ;;  %v20106_v55 = vpop.f32.mrb[107].mxu0  ;;  %v16503_v35 = vld [vmem:[#allocation2 + $0x3c] sm:$0xff]  }
 0x304   : > { %8705 = vst.msk [vmem:[#allocation2 + $0x90] sm:$0xf] %vm234_vm7, %v8373_v37  ;;  %v9270_v7 = vsel %vm2317_vm12, %v9265_v2, %v9269_v44  ;;  %v9271_v11 = vshrl.u32 %v20026_v4, 16  ;;  %v9275_v27 = vshll.u32 %v20067_v36, 16  ;;  %v8376_v47 = vshrl.u32 %v15270_v21, 16  ;;  %v4181_v30 = vpop.permute.xlu1 %4180 }
 0x305   : > { %22923 = vst [vmem:[#allocation142_spill] sm:$0xff] %v20091_v32  ;;  %22924 = vst [vmem:[#allocation143_spill] sm:$0xff] %v20094_v62  ;;  %v8379_v17 = vshll.u32 %v15270_v21, 16  ;;  %9473 = vrot.lane.b32.xlu0 %v9270_v7, %s16826_s8  ;;  %v7866_v43 = vmax.f32 %v20091_v32, 0.0  ;;  %v7869_v5 = vmax.f32 %v20094_v62, 0.0  ;;  %v15273_v2 = vpack.c.bf16 %v7867_v18, %v7867_v18 }
 0x306   : > { %22925 = vst [vmem:[#allocation144_spill] sm:$0xff] %v20097_v9  ;;  %v7868_v42 = vmax.f32 %v20097_v9, 0.0  ;;  %v9273_v37 = vor.u32 %v9271_v11, %v9269_v44  ;;  %v20112_v4 = vrot.slane %v9275_v27, 1  ;;  %4251 = vst.msk [vmem:[#allocation3 + $0x308] sm:$0xff] %vm2652_vm15, %v4181_v30  ;;  %6390 = vmatmul.mubr.bf16.gmra.mrb[112].mxu1 %v5512_v41  ;;  %v8378_v28 = vrot.slane %v8376_v47, 7  ;;  %v7262_v41 = vld [vmem:[%s22594_s2 + $0x140] sm:$0xff] }
 0x307   : > { %v15272_v21 = vpack.c.bf16 %v7866_v43, %v7866_v43  ;;  %v15275_v7 = vpack.c.bf16 %v7869_v5, %v7869_v5  ;;  %v20116_v32 = vadd.f32 %v20001_v45, %v7263_v61  ;;  %6397 = vmatprep.mubr.bf16.mxu1 %v5518_v56  ;;  %8979 = vst.msk [vmem:[#allocation3 + $0xa0] sm:$0xff] %vm2072_vm14, %v16579_v12  ;;  %v8403_v62 = vshrl.u32 %v15273_v2, 16  ;;  %v20124_v11 = vpop.f32.mrb[108].mxu0 }
 0x308   : > { %v8406_v18 = vshll.u32 %v15273_v2, 16  ;;  %v15274_v14 = vpack.c.bf16 %v7868_v42, %v7868_v42  ;;  %v9278_v44 = vsel %vm2317_vm12, %v9273_v37, %v20112_v4  ;;  %v8381_v27 = vor.u32 %v8379_v17, %v8378_v28  ;;  %v20127_v61 = vpop.f32.mrb[109].mxu0  ;;  %v5031_v5 = vpop.permute.xlu1 %5030 }
 0x309   : > { %22926 = vst [vmem:[#allocation145_spill] sm:$0xff] %v20116_v32  ;;  %v8383_v47 = vrot.slane %v8378_v28, 4  ;;  %v8394_v43 = vshrl.u32 %v15272_v21, 16  ;;  %v8397_v45 = vshll.u32 %v15272_v21, 16  ;;  %10140 = vrot.lane.b32.xlu0 %v16503_v35, %s16826_s8  ;;  %v8405_v30 = vrot.slane %v8403_v62, 7  ;;  %5100 = vst.msk [vmem:[#allocation3 + $0x338] sm:$0xff] %vm2652_vm15, %v5031_v5 }
 0x30a   : > { %v8421_v56 = vshrl.u32 %v15275_v7, 16  ;;  %v8424_v12 = vshll.u32 %v15275_v7, 16  ;;  %v8412_v2 = vshrl.u32 %v15274_v14, 16  ;;  %v22927_v42 = vrot.slane %v20036_v3, 4  ;;  %v7265_v62 = vld [vmem:[%s22594_s2 + $0x158] sm:$0xff]  ;;  %v7264_v21 = vld [vmem:[%s22594_s2 + $0x150] sm:$0xff] }
 0x30b   : > { %v8391_v28 = vsel %vm17104_vm11, %v8383_v47, %v20072_v34  ;;  %v8396_v17 = vrot.slane %v8394_v43, 7  ;;  %v8415_v35 = vshll.u32 %v15274_v14, 16  ;;  %v20143_v7 = vpop.f32.mrb[110].mxu0  ;;  %v8408_v3 = vor.u32 %v8406_v18, %v8405_v30  ;;  %v16508_v18 = vld [vmem:[#allocation2 + $0x44] sm:$0xff]  }
 0x30c   : > { %v8382_v37 = vsel %vm17104_vm11, %v22927_v42, %v8381_v27  ;;  %v8410_v5 = vrot.slane %v8405_v30, 4  ;;  %8707 = vst.msk [vmem:[#allocation2 + $0x98] sm:$0xf] %vm234_vm7, %v8391_v28  ;;  %v20147_v27 = vrot.slane %v8421_v56, 7  ;;  %v8414_v34 = vrot.slane %v8412_v2, 7  ;;  %v20149_v14 = vpop.f32.mrb[111].mxu0 }
 0x30d   : > { %8706 = vst.msk [vmem:[#allocation2 + $0x94] sm:$0xf] %vm234_vm7, %v8382_v37  ;;  %v8399_v47 = vor.u32 %v8397_v45, %v8396_v17  ;;  %v8401_v43 = vrot.slane %v8396_v17, 4  ;;  %9475 = vrot.lane.b32.xlu0 %v9278_v44, %s16826_s8  ;;  %v7871_v42 = vmax.f32 %v20116_v32, 0.0  ;;  %v20154_v9 = vadd.f32 %v20006_v54, %v7262_v41  ;;  %v7267_v30 = vld [vmem:[%s22594_s2 + $0x168] sm:$0xff]  ;;  %v4183_v37 = vpop.permute.xlu1 %4182  ;;  %v5523_v54 = vld [vmem:[#allocation3 + $0x270] sm:$0xff] }
 0x30e   : > { %v5517_v56 = vld [vmem:[#allocation3 + $0x240] sm:$0xff]  ;;  %v8426_v2 = vor.u32 %v8424_v12, %v20147_v27  ;;  %v8417_v45 = vor.u32 %v8415_v35, %v8414_v34  ;;  %v8419_v17 = vrot.slane %v8414_v34, 4  ;;  %4252 = vst.msk [vmem:[#allocation3 + $0x330] sm:$0xff] %vm2652_vm15, %v4183_v37  ;;  %v22929_v44 = vrot.slane %v20055_v39, 4  ;;  %v20171_v28 = vpop.f32.mrb[112].mxu0 }
 0x30f   : > { %22928 = vst [vmem:[#allocation146_spill] sm:$0xff] %v20154_v9  ;;  %6398 = vmatmul.mubr.bf16.gmra.mrb[116].mxu1 %v5517_v56  ;;  %v8409_v32 = vsel %vm17104_vm11, %v8401_v43, %v8408_v3  ;;  %v15277_v59 = vpack.c.bf16 %v7871_v42, %v7871_v42  ;;  %v7870_v12 = vmax.f32 %v20154_v9, 0.0  ;;  %v20180_v39 = vadd.f32 %v20028_v31, %v7265_v62  ;;  %v16584_v56 = vld [vmem:[#allocation2 + $0x28] sm:$0xff]  }
 0x310   : > { %v8400_v41 = vsel %vm17104_vm11, %v22929_v44, %v8399_v47  ;;  %6405 = vmatprep.mubr.bf16.mxu1 %v5523_v54  ;;  %v8418_v35 = vsel %vm17104_vm11, %v8410_v5, %v8417_v45  ;;  %v8427_v34 = vsel %vm17104_vm11, %v8419_v17, %v8426_v2  ;;  %8709 = vst.msk [vmem:[#allocation2 + $0xa0] sm:$0xf] %vm234_vm7, %v8409_v32  ;;  %v20185_v47 = vpop.f32.mrb[113].mxu0  ;;  %v9279_v5 = vshrl.u32 %v20067_v36, 16  ;;  %v7269_v17 = vld [vmem:[%s22594_s2 + $0x178] sm:$0xff] }
 0x311   : > { %8708 = vst.msk [vmem:[#allocation2 + $0x9c] sm:$0xf] %vm234_vm7, %v8400_v41  ;;  %22930 = vst [vmem:[#allocation147_spill] sm:$0xff] %v20180_v39  ;;  %v20183_v3 = vadd.f32 %v20031_v15, %v7264_v21  ;;  %v8439_v43 = vshrl.u32 %v15277_v59, 16  ;;  %v8442_v42 = vshll.u32 %v15277_v59, 16  ;;  %v15276_v37 = vpack.c.bf16 %v7870_v12, %v7870_v12  ;;  %10142 = vrot.lane.b32.xlu0 %v16508_v18, %s16826_s8  ;;  %v5033_v32 = vpop.permute.xlu1 %5032  ;;  %v7266_v59 = vld [vmem:[%s22594_s2 + $0x160] sm:$0xff] }
 0x312   : > { %8710 = vst.msk [vmem:[#allocation2 + $0xa4] sm:$0xf] %vm234_vm7, %v8418_v35  ;;  %8711 = vst.msk [vmem:[#allocation2 + $0xa8] sm:$0xf] %vm234_vm7, %v8427_v34  ;;  %v7873_v31 = vmax.f32 %v20180_v39, 0.0  ;;  %v9283_v62 = vshll.u32 %v20161_v49, 16  ;;  %v20195_v21 = vadd.f32 %v20061_v20, %v7267_v30  ;;  %v9281_v45 = vor.u32 %v9279_v5, %v20112_v4 }
 0x313   : > { %22931 = vst [vmem:[#allocation148_spill] sm:$0xff] %v20183_v3  ;;  %v7872_v15 = vmax.f32 %v20183_v3, 0.0  ;;  %5101 = vst.msk [vmem:[#allocation3 + $0x360] sm:$0xff] %vm2652_vm15, %v5033_v32  ;;  %v8441_v36 = vrot.slane %v8439_v43, 7  ;;  %v8430_v18 = vshrl.u32 %v15276_v37, 16  ;;  %v8433_v2 = vshll.u32 %v15276_v37, 16 }
 0x314   : > { %22932 = vst [vmem:[#allocation149_spill] sm:$0xff] %v20195_v21  ;;  %8980 = vst.msk [vmem:[#allocation3 + $0xc8] sm:$0xff] %vm2072_vm14, %v16584_v56  ;;  %v15279_v54 = vpack.c.bf16 %v7873_v31, %v7873_v31  ;;  %v20206_v30 = vrot.slane %v9283_v62, 1  ;;  %v7875_v44 = vmax.f32 %v20195_v21, 0.0  ;;  %v20209_v41 = vpop.f32.mrb[114].mxu0  ;;  %v5522_v12 = vld [vmem:[#allocation3 + $0x268] sm:$0xff]  ;;  %v20212_v4 = vadd.f32 %v20069_v29, %v7266_v59 }
 0x315   : > { %v15278_v20 = vpack.c.bf16 %v7872_v15, %v7872_v15  ;;  %v8444_v35 = vor.u32 %v8442_v42, %v8441_v36  ;;  %v8446_v34 = vrot.slane %v8441_v36, 4  ;;  %v8432_v43 = vrot.slane %v8430_v18, 7  ;;  %v20214_v37 = vpop.f32.mrb[115].mxu0  ;;  %v4185_v5 = vpop.permute.xlu1 %4184  ;;  %v5528_v32 = vld [vmem:[#allocation3 + $0x298] sm:$0xff]  ;;  %v7268_v29 = vld [vmem:[%s22594_s2 + $0x170] sm:$0xff] }
 0x316   : > { %22933 = vst [vmem:[#allocation150_spill] sm:$0xff] %v20212_v4  ;;  %v8457_v56 = vshrl.u32 %v15279_v54, 16  ;;  %v8460_v31 = vshll.u32 %v15279_v54, 16  ;;  %4253 = vst.msk [vmem:[#allocation3 + $0x358] sm:$0xff] %vm2652_vm15, %v4185_v5  ;;  %v9286_v42 = vsel %vm2317_vm12, %v9281_v45, %v20206_v30  ;;  %v15281_v36 = vpack.c.bf16 %v7875_v44, %v7875_v44  ;;  %v20219_v18 = vld [vmem:[#allocation2 + $0x84] sm:$0xff]   ;;  %v20231_v45 = vld [vmem:[#allocation2 + $0x8c] sm:$0xff]  }
 0x317   : > { %v8448_v15 = vshrl.u32 %v15278_v20, 16  ;;  %v8451_v62 = vshll.u32 %v15278_v20, 16  ;;  %6406 = vmatmul.mubr.bf16.gmra.mrb[120].mxu1 %v5522_v12  ;;  %v8435_v21 = vor.u32 %v8433_v2, %v8432_v43  ;;  %v8437_v39 = vrot.slane %v8432_v43, 4  ;;  %22934 = vst [vmem:[#allocation151_spill] sm:$0xff] %v20219_v18  ;;  %9477 = vrot.lane.b32.xlu0 %v9286_v42, %s16826_s8  ;;  %v16513_v2 = vld [vmem:[#allocation2 + $0x4c] sm:$0xff]   ;;  %v20241_v42 = vpop.f32.mrb[116].mxu0 }
 0x318   : > { %6413 = vmatprep.mubr.bf16.mxu1 %v5528_v32  ;;  %v20224_v59 = vrot.slane %v8457_v56, 7  ;;  %v7874_v20 = vmax.f32 %v20212_v4, 0.0  ;;  %v20229_v12 = vadd.f32 %v20099_v22, %v7269_v17  ;;  %v22936_v44 = vrot.slane %v20147_v27, 4  ;;  %v20245_v27 = vld [vmem:[#allocation2 + $0x94] sm:$0xff]   ;;  %v20293_v10 = vld [vmem:[#allocation2 + $0x9c] sm:$0xff]  }
 0x319   : > { %v8450_v54 = vrot.slane %v8448_v15, 7  ;;  %v8445_v5 = vsel %vm17104_vm11, %v8437_v39, %v8444_v35  ;;  %v8475_v32 = vshrl.u32 %v15281_v36, 16  ;;  %v8478_v56 = vshll.u32 %v15281_v36, 16  ;;  %v20239_v15 = vld [vmem:[#allocation2 + $0x48] sm:$0xff]   ;;  %v5035_v4 = vpop.permute.xlu1 %5034  ;;  %v20249_v39 = vpop.f32.mrb[117].mxu0 }
 0x31a   : > { %22935 = vst [vmem:[#allocation152_spill] sm:$0xff] %v20229_v12  ;;  %v8436_v43 = vsel %vm17104_vm11, %v22936_v44, %v8435_v21  ;;  %v8462_v22 = vor.u32 %v8460_v31, %v20224_v59  ;;  %v8464_v17 = vrot.slane %v20224_v59, 4  ;;  %8713 = vst.msk [vmem:[#allocation2 + $0xb0] sm:$0xf] %vm234_vm7, %v8445_v5  ;;  %v15280_v35 = vpack.c.bf16 %v7874_v20, %v7874_v20  ;;  %v20256_v59 = vpop.f32.mrb[118].mxu0  ;;  %v7271_v20 = vld [vmem:[%s22594_s2 + $0x188] sm:$0xff] }
 0x31b   : > { %v8453_v3 = vor.u32 %v8451_v62, %v8450_v54  ;;  %v8455_v9 = vrot.slane %v8450_v54, 4  ;;  %8712 = vst.msk [vmem:[#allocation2 + $0xac] sm:$0xf] %vm234_vm7, %v8436_v43  ;;  %v20252_v21 = vrot.slane %v8475_v32, 7  ;;  %v7877_v36 = vmax.f32 %v20229_v12, 0.0  ;;  %10144 = vrot.lane.b32.xlu0 %v16513_v2, %s16826_s8  ;;  %v20270_v43 = vpop.f32.mrb[119].mxu0 }
 0x31c   : > { %5102 = vst.msk [vmem:[#allocation3 + $0x388] sm:$0xff] %vm2652_vm15, %v5035_v4  ;;  %v22715_v31 = vrot.slane %v20219_v18, 1  ;;  %v11011_v44 = vrot.slane %v20231_v45, 1  ;;  %v20265_v4 = vadd.f32 %v20106_v55, %v7268_v29  ;;  %v5527_v5 = vld [vmem:[#allocation3 + $0x290] sm:$0xff]  ;;  %v5533_v55 = vld [vmem:[#allocation3 + $0x2c0] sm:$0xff]  ;;  %v9287_v12 = vshrl.u32 %v20161_v49, 16 }
 0x31d   : > { %v8454_v62 = vsel %vm17104_vm11, %v8446_v34, %v8453_v3  ;;  %v8463_v54 = vsel %vm17104_vm11, %v8455_v9, %v8462_v22  ;;  %v8480_v32 = vor.u32 %v8478_v56, %v20252_v21  ;;  %v8466_v34 = vshrl.u32 %v15280_v35, 16  ;;  %v4187_v2 = vpop.permute.xlu1 %4186 }
 0x31e   : > { %22937 = vst [vmem:[#allocation153_spill] sm:$0xff] %v20265_v4  ;;  %v8469_v9 = vshll.u32 %v15280_v35, 16  ;;  %8714 = vst.msk [vmem:[#allocation2 + $0xb4] sm:$0xf] %vm234_vm7, %v8454_v62  ;;  %v15283_v29 = vpack.c.bf16 %v7877_v36, %v7877_v36  ;;  %v11012_v45 = vsel %vm2897_vm13, %v22715_v31, %v11011_v44  ;;  %v7876_v22 = vmax.f32 %v20265_v4, 0.0 }
 0x31f   : > { %8715 = vst.msk [vmem:[#allocation2 + $0xb8] sm:$0xf] %vm234_vm7, %v8463_v54  ;;  %6414 = vmatmul.mubr.bf16.gmra.mrb[124].mxu1 %v5527_v5  ;;  %v8468_v56 = vrot.slane %v8466_v34, 7  ;;  %11071 = vrot.lane.b32.xlu1 %v11012_v45, %s16826_s8  ;;  %v9291_v35 = vshll.u32 %v20239_v15, 16  ;;  %v20285_v62 = vadd.f32 %v20124_v11, %v7271_v20  ;;  %v11013_v36 = vrot.slane %v20245_v27, 1  ;;  %v7270_v54 = vld [vmem:[%s22594_s2 + $0x180] sm:$0xff] }
 0x320   : > { %4254 = vst.msk [vmem:[#allocation3 + $0x380] sm:$0xff] %vm2652_vm15, %v4187_v2  ;;  %6421 = vmatprep.mubr.bf16.mxu1 %v5533_v55  ;;  %v8493_v31 = vshrl.u32 %v15283_v29, 16  ;;  %v8496_v49 = vshll.u32 %v15283_v29, 16  ;;  %v15282_v3 = vpack.c.bf16 %v7876_v22, %v7876_v22  ;;  %v9289_v5 = vor.u32 %v9287_v12, %v20206_v30  ;;  %v7273_v55 = vld [vmem:[%s22594_s2 + $0x198] sm:$0xff] }
 0x321   : > { %22938 = vst [vmem:[#allocation154_spill] sm:$0xff] %v20285_v62  ;;  %v8471_v34 = vor.u32 %v8469_v9, %v8468_v56  ;;  %v8473_v2 = vrot.slane %v8468_v56, 4  ;;  %v9293_v45 = vrot.slane %v9291_v35, 1  ;;  %v7879_v4 = vmax.f32 %v20285_v62, 0.0  ;;  %v5037_v11 = vpop.permute.xlu1 %5036  ;;  %v23021_v62 = vld [vmem:[#allocation40_spill] sm:$0xff] }
 0x322   : > { %v20295_v20 = vrot.slane %v8493_v31, 7  ;;  %v8484_v27 = vshrl.u32 %v15282_v3, 16  ;;  %v8487_v18 = vshll.u32 %v15282_v3, 16  ;;  %v11014_v52 = vsel %vm2897_vm13, %v11011_v44, %v11013_v36  ;;  %5103 = vst.msk [vmem:[#allocation3 + $0x3b0] sm:$0xff] %vm2652_vm15, %v5037_v11  ;;  %v7272_v44 = vld [vmem:[%s22594_s2 + $0x190] sm:$0xff] }
 0x323   : > { %v8472_v30 = vsel %vm17104_vm11, %v8464_v17, %v8471_v34  ;;  %v8481_v12 = vsel %vm17104_vm11, %v8473_v2, %v8480_v32  ;;  %v9294_v9 = vsel %vm2317_vm12, %v9289_v5, %v9293_v45  ;;  %v15285_v31 = vpack.c.bf16 %v7879_v4, %v7879_v4  ;;  %11073 = vrot.lane.b32.xlu1 %v11014_v52, %s16826_s8  ;;  %v16521_v32 = vld [vmem:[#allocation2 + $0x54] sm:$0xff]   ;;  %v5532_v5 = vld [vmem:[#allocation3 + $0x2b8] sm:$0xff] }
 0x324   : > { %v8498_v3 = vor.u32 %v8496_v49, %v20295_v20  ;;  %v8486_v22 = vrot.slane %v8484_v27, 7  ;;  %9479 = vrot.lane.b32.xlu0 %v9294_v9, %s16826_s8  ;;  %v20315_v17 = vadd.f32 %v20127_v61, %v7270_v54  ;;  %8716 = vst.msk [vmem:[#allocation2 + $0xbc] sm:$0xf] %vm234_vm7, %v8472_v30  ;;  %8717 = vst.msk [vmem:[#allocation2 + $0xc0] sm:$0xf] %vm234_vm7, %v8481_v12  ;;  %v11015_v35 = vrot.slane %v20293_v10, 1 }
 0x325   : > { %v8511_v52 = vshrl.u32 %v15285_v31, 16  ;;  %v8514_v4 = vshll.u32 %v15285_v31, 16  ;;  %v20320_v56 = vadd.f32 %v20143_v7, %v7273_v55  ;;  %v4189_v49 = vpop.permute.xlu1 %4188  ;;  %v20325_v61 = vadd.f32 %v20149_v14, %v7272_v44  ;;  %v20327_v54 = vld [vmem:[#allocation2 + $0x50] sm:$0xff]   ;;  %v7275_v27 = vld [vmem:[%s22594_s2 + $0x1a8] sm:$0xff] }
 0x326   : > { %22939 = vst [vmem:[#allocation155_spill] sm:$0xff] %v20315_v17  ;;  %v8489_v34 = vor.u32 %v8487_v18, %v8486_v22  ;;  %v8491_v2 = vrot.slane %v8486_v22, 4  ;;  %v7878_v11 = vmax.f32 %v20315_v17, 0.0  ;;  %4255 = vst.msk [vmem:[#allocation3 + $0x3a8] sm:$0xff] %vm2652_vm15, %v4189_v49  ;;  %v5538_v7 = vld [vmem:[#allocation3 + $0x2e8] sm:$0xff]  ;;  %v11016_v55 = vsel %vm2897_vm13, %v11013_v36, %v11015_v35  ;;  %v20338_v14 = vld [vmem:[#allocation2 + $0xa4] sm:$0xff]  }
 0x327   : > { %22940 = vst [vmem:[#allocation156_spill] sm:$0xff] %v20320_v56  ;;  %22941 = vst [vmem:[#allocation157_spill] sm:$0xff] %v20325_v61  ;;  %6422 = vmatmul.mubr.bf16.gmra.mrb[128].mxu1 %v5532_v5  ;;  %v20333_v10 = vrot.slane %v8511_v52, 7  ;;  %v7881_v18 = vmax.f32 %v20320_v56, 0.0  ;;  %v9295_v30 = vshrl.u32 %v20239_v15, 16  ;;  %v22942_v12 = vrot.slane %v20252_v21, 4  ;;  %11075 = vrot.lane.b32.xlu1 %v11016_v55, %s16826_s8 }
 0x328   : > { %6429 = vmatprep.mubr.bf16.mxu1 %v5538_v7  ;;  %v8499_v31 = vsel %vm17104_vm11, %v8491_v2, %v8498_v3  ;;  %v15284_v44 = vpack.c.bf16 %v7878_v11, %v7878_v11  ;;  %10146 = vrot.lane.b32.xlu0 %v16521_v32, %s16826_s8  ;;  %v7880_v36 = vmax.f32 %v20325_v61, 0.0  ;;  %v16588_v22 = vld [vmem:[#allocation2 + $0x30] sm:$0xff]   ;;  %v9299_v32 = vshll.u32 %v20327_v54, 16  ;;  %v7274_v11 = vld [vmem:[%s22594_s2 + $0x1a0] sm:$0xff] }
 0x329   : > { %v8490_v9 = vsel %vm17104_vm11, %v22942_v12, %v8489_v34  ;;  %v8516_v15 = vor.u32 %v8514_v4, %v20333_v10  ;;  %v8518_v52 = vrot.slane %v20333_v10, 4  ;;  %v15287_v49 = vpack.c.bf16 %v7881_v18, %v7881_v18  ;;  %8719 = vst.msk [vmem:[#allocation2 + $0xc8] sm:$0xf] %vm234_vm7, %v8499_v31  ;;  %v5039_v5 = vpop.permute.xlu1 %5038  ;;  %v5537_v18 = vld [vmem:[#allocation3 + $0x2e0] sm:$0xff]  ;;  %v7277_v31 = vld [vmem:[%s22594_s2 + $0x1b8] sm:$0xff] }
 0x32a   : > { %v9297_v21 = vor.u32 %v9295_v30, %v9293_v45  ;;  %8718 = vst.msk [vmem:[#allocation2 + $0xc4] sm:$0xf] %vm234_vm7, %v8490_v9  ;;  %v8502_v3 = vshrl.u32 %v15284_v44, 16  ;;  %v8505_v34 = vshll.u32 %v15284_v44, 16  ;;  %v15286_v2 = vpack.c.bf16 %v7880_v36, %v7880_v36 }
 0x32b   : > { %5104 = vst.msk [vmem:[#allocation3 + $0x3d8] sm:$0xff] %vm2652_vm15, %v5039_v5  ;;  %v8529_v4 = vshrl.u32 %v15287_v49, 16  ;;  %v8532_v45 = vshll.u32 %v15287_v49, 16  ;;  %v20360_v7 = vadd.f32 %v20171_v28, %v7275_v27  ;;  %v11017_v10 = vrot.slane %v20338_v14, 1  ;;  %v20375_v27 = vld [vmem:[#allocation2 + $0xac] sm:$0xff]   ;;  %v5543_v5 = vld [vmem:[#allocation3 + $0x310] sm:$0xff] }
 0x32c   : > { %8981 = vst.msk [vmem:[#allocation3 + $0xf0] sm:$0xff] %vm2072_vm14, %v16588_v22  ;;  %v8504_v55 = vrot.slane %v8502_v3, 7  ;;  %v8520_v30 = vshrl.u32 %v15286_v2, 16  ;;  %v8523_v12 = vshll.u32 %v15286_v2, 16  ;;  %v20363_v9 = vrot.slane %v9299_v32, 1  ;;  %v7276_v14 = vld [vmem:[%s22594_s2 + $0x1b0] sm:$0xff] }
 0x32d   : > { %22943 = vst [vmem:[#allocation158_spill] sm:$0xff] %v20360_v7  ;;  %v20368_v44 = vrot.slane %v8529_v4, 7  ;;  %v7883_v36 = vmax.f32 %v20360_v7, 0.0  ;;  %v11018_v22 = vsel %vm2897_vm13, %v11015_v35, %v11017_v10  ;;  %v20373_v28 = vadd.f32 %v20185_v47, %v7274_v11  ;;  %v4191_v49 = vpop.permute.xlu1 %4190  ;;  %v23019_v7 = vld [vmem:[#allocation38_spill] sm:$0xff] }
 0x32e   : > { %v8507_v3 = vor.u32 %v8505_v34, %v8504_v55  ;;  %v8509_v2 = vrot.slane %v8504_v55, 4  ;;  %v8522_v32 = vrot.slane %v8520_v30, 7  ;;  %v9302_v4 = vsel %vm2317_vm12, %v9297_v21, %v20363_v9  ;;  %11077 = vrot.lane.b32.xlu1 %v11018_v22, %s16826_s8  ;;  %4256 = vst.msk [vmem:[#allocation3 + $0x3d0] sm:$0xff] %vm2652_vm15, %v4191_v49  ;;  %v20394_v22 = vld [vmem:[#allocation2 + $0x58] sm:$0xff]  }
 0x32f   : > { %22944 = vst [vmem:[#allocation159_spill] sm:$0xff] %v20373_v28  ;;  %6430 = vmatmul.mubr.bf16.gmra.mrb[132].mxu1 %v5537_v18  ;;  %v8534_v47 = vor.u32 %v8532_v45, %v20368_v44  ;;  %9481 = vrot.lane.b32.xlu0 %v9302_v4, %s16826_s8  ;;  %v15289_v11 = vpack.c.bf16 %v7883_v36, %v7883_v36  ;;  %v7882_v29 = vmax.f32 %v20373_v28, 0.0  ;;  %v22945_v34 = vrot.slane %v20295_v20, 4  ;;  %v16528_v4 = vld [vmem:[#allocation2 + $0x5c] sm:$0xff]   ;;  %v7279_v20 = vld [vmem:[%s22594_s2 + $0x1c8] sm:$0xff] }
 0x330   : > { %6437 = vmatprep.mubr.bf16.mxu1 %v5543_v5  ;;  %v8517_v55 = vsel %vm17104_vm11, %v8509_v2, %v8516_v15  ;;  %v8525_v30 = vor.u32 %v8523_v12, %v8522_v32  ;;  %v8527_v18 = vrot.slane %v8522_v32, 4  ;;  %v20398_v5 = vadd.f32 %v20209_v41, %v7277_v31  ;;  %v16593_v41 = vld [vmem:[#allocation2 + $0x38] sm:$0xff]  }
 0x331   : > { %v8508_v21 = vsel %vm17104_vm11, %v22945_v34, %v8507_v3  ;;  %8721 = vst.msk [vmem:[#allocation2 + $0xd0] sm:$0xf] %vm234_vm7, %v8517_v55  ;;  %v8547_v45 = vshrl.u32 %v15289_v11, 16  ;;  %v8550_v49 = vshll.u32 %v15289_v11, 16  ;;  %v15288_v36 = vpack.c.bf16 %v7882_v29, %v7882_v29  ;;  %v5041_v15 = vpop.permute.xlu1 %5040 }
 0x332   : > { %22946 = vst [vmem:[#allocation160_spill] sm:$0xff] %v20398_v5  ;;  %8720 = vst.msk [vmem:[#allocation2 + $0xcc] sm:$0xf] %vm234_vm7, %v8508_v21  ;;  %v8526_v12 = vsel %vm17104_vm11, %v8518_v52, %v8525_v30  ;;  %v8535_v3 = vsel %vm17104_vm11, %v8527_v18, %v8534_v47  ;;  %v22719_v2 = vrot.slane %v20375_v27, 1  ;;  %v20410_v29 = vadd.f32 %v20214_v37, %v7276_v14 }
 0x333   : > { %5105 = vst.msk [vmem:[#allocation3 + $0x400] sm:$0xff] %vm2652_vm15, %v5041_v15  ;;  %v20414_v31 = vrot.slane %v8547_v45, 7  ;;  %v8538_v32 = vshrl.u32 %v15288_v36, 16  ;;  %v8541_v11 = vshll.u32 %v15288_v36, 16  ;;  %10148 = vrot.lane.b32.xlu0 %v16528_v4, %s16826_s8  ;;  %v7885_v52 = vmax.f32 %v20398_v5, 0.0  ;;  %v16533_v45 = vld [vmem:[#allocation2 + $0xb4] sm:$0xff]  }
 0x334   : > { %22947 = vst [vmem:[#allocation161_spill] sm:$0xff] %v20410_v29  ;;  %8723 = vst.msk [vmem:[#allocation2 + $0xd8] sm:$0xf] %vm234_vm7, %v8535_v3  ;;  %v11020_v37 = vsel %vm2897_vm13, %v11017_v10, %v22719_v2  ;;  %v7884_v14 = vmax.f32 %v20410_v29, 0.0  ;;  %v9303_v47 = vshrl.u32 %v20327_v54, 16  ;;  %v9307_v34 = vshll.u32 %v20394_v22, 16 }
 0x335   : > { %8722 = vst.msk [vmem:[#allocation2 + $0xd4] sm:$0xf] %vm234_vm7, %v8526_v12  ;;  %v8552_v21 = vor.u32 %v8550_v49, %v20414_v31  ;;  %v8540_v30 = vrot.slane %v8538_v32, 7  ;;  %v15291_v18 = vpack.c.bf16 %v7885_v52, %v7885_v52  ;;  %11079 = vrot.lane.b32.xlu1 %v11020_v37, %s16826_s8  ;;  %v7278_v10 = vld [vmem:[%s22594_s2 + $0x1c0] sm:$0xff]  ;;  %v7281_v54 = vld [vmem:[%s22594_s2 + $0x1d8] sm:$0xff]  ;;  %v4193_v36 = vpop.permute.xlu1 %4192  ;;  %v20439_v3 = vadd.f32 %v20241_v42, %v7279_v20  ;;  %v7280_v42 = vld [vmem:[%s22594_s2 + $0x1d0] sm:$0xff]  ;;  %v20450_v20 = vpop.permute.xlu0 %10128 }
 0x336   : > { %8982 = vst.msk [vmem:[#allocation3 + $0x118] sm:$0xff] %vm2072_vm14, %v16593_v41  ;;  %v5542_v4 = vld [vmem:[#allocation3 + $0x308] sm:$0xff]  ;;  %v15290_v15 = vpack.c.bf16 %v7884_v14, %v7884_v14  ;;  %v9305_v49 = vor.u32 %v9303_v47, %v20363_v9  ;;  %v20436_v12 = vrot.slane %v9307_v34, 1  ;;  %v5548_v41 = vld [vmem:[#allocation3 + $0x338] sm:$0xff]  ;;  %v20442_v2 = vld [vmem:[#allocation2 + $0xbc] sm:$0xff]  }
 0x337   : > { %22948 = vst [vmem:[#allocation162_spill] sm:$0xff] %v20439_v3  ;;  %4257 = vst.msk [vmem:[#allocation3 + $0x3f8] sm:$0xff] %vm2652_vm15, %v4193_v36  ;;  %6438 = vmatmul.mubr.bf16.gmra.mrb[136].mxu1 %v5542_v4  ;;  %v8543_v32 = vor.u32 %v8541_v11, %v8540_v30  ;;  %v8545_v52 = vrot.slane %v8540_v30, 4  ;;  %v8565_v37 = vshrl.u32 %v15291_v18, 16  ;;  %v8568_v55 = vshll.u32 %v15291_v18, 16  ;;  %v16535_v4 = vld [vmem:[#allocation2 + $0x64] sm:$0xff]  }
 0x338   : > { %6445 = vmatprep.mubr.bf16.mxu1 %v5548_v41  ;;  %v8556_v35 = vshrl.u32 %v15290_v15, 16  ;;  %v8559_v14 = vshll.u32 %v15290_v15, 16  ;;  %v9310_v9 = vsel %vm2317_vm12, %v9305_v49, %v20436_v12  ;;  %v7887_v47 = vmax.f32 %v20439_v3, 0.0  ;;  %v20461_v15 = vld [vmem:[#allocation2 + $0x60] sm:$0xff]  }
 0x339   : > { %v22949_v11 = vrot.slane %v20368_v44, 4  ;;  %v8553_v30 = vsel %vm17104_vm11, %v8545_v52, %v8552_v21  ;;  %v20458_v18 = vrot.slane %v8565_v37, 7  ;;  %9483 = vrot.lane.b32.xlu0 %v9310_v9, %s16826_s8  ;;  %v11021_v36 = vrot.slane %v16533_v45, 1  ;;  %v5043_v49 = vpop.permute.xlu1 %5042  ;;  %v20471_v52 = vld [vmem:[#allocation2 + $0xc4] sm:$0xff]  }
 0x33a   : > { %8725 = vst.msk [vmem:[#allocation2 + $0xe0] sm:$0xf] %vm234_vm7, %v8553_v30  ;;  %v8558_v44 = vrot.slane %v8556_v35, 7  ;;  %v15293_v41 = vpack.c.bf16 %v7887_v47, %v7887_v47  ;;  %v20469_v21 = vadd.f32 %v20256_v59, %v7281_v54  ;;  %v22952_v9 = vrot.slane %v20375_v27, 1  ;;  %v5547_v47 = vld [vmem:[#allocation3 + $0x330] sm:$0xff]  ;;  %v20481_v54 = vld [vmem:[#allocation2 + $0xcc] sm:$0xff]  }
 0x33b   : > { %v8544_v34 = vsel %vm17104_vm11, %v22949_v11, %v8543_v32  ;;  %v20466_v32 = vadd.f32 %v20249_v39, %v7278_v10  ;;  %5106 = vst.msk [vmem:[#allocation3 + $0x428] sm:$0xff] %vm2652_vm15, %v5043_v49  ;;  %v8570_v45 = vor.u32 %v8568_v55, %v20458_v18  ;;  %v11023_v35 = vrot.slane %v20442_v2, 1  ;;  %v5553_v30 = vld [vmem:[#allocation3 + $0x360] sm:$0xff]  ;;  %v16599_v49 = vld [vmem:[#allocation2 + $0x40] sm:$0xff]   ;;  %v9464_v3 = vpop.permute.xlu0 %9463 }
 0x33c   : > { %8724 = vst.msk [vmem:[#allocation2 + $0xdc] sm:$0xf] %vm234_vm7, %v8544_v34  ;;  %22951 = vst [vmem:[#allocation164_spill] sm:$0xff] %v20469_v21  ;;  %v11022_v11 = vsel %vm2897_vm13, %v22952_v9, %v11021_v36  ;;  %v8561_v39 = vor.u32 %v8559_v14, %v8558_v44  ;;  %v8563_v10 = vrot.slane %v8558_v44, 4  ;;  %v8583_v34 = vshrl.u32 %v15293_v41, 16 }
 0x33d   : > { %22950 = vst [vmem:[#allocation163_spill] sm:$0xff] %v20466_v32  ;;  %v8586_v59 = vshll.u32 %v15293_v41, 16  ;;  %11081 = vrot.lane.b32.xlu1 %v11022_v11, %s16826_s8  ;;  %v7886_v55 = vmax.f32 %v20466_v32, 0.0  ;;  %10150 = vrot.lane.b32.xlu0 %v16535_v4, %s16826_s8  ;;  %v7889_v27 = vmax.f32 %v20469_v21, 0.0  ;;  %v11024_v9 = vsel %vm2897_vm13, %v11021_v36, %v11023_v35  ;;  %v4195_v14 = vpop.permute.xlu1 %4194  ;;  %8983 = vst.msk [vmem:[#allocation3 + $0x140] sm:$0xff] %vm2072_vm14, %v16599_v49 }
 0x33e   : > { %v20488_v2 = vadd.f32 %v20270_v43, %v7280_v42  ;;  %v22954_v44 = vrot.slane %v20414_v31, 4  ;;  %v8571_v11 = vsel %vm17104_vm11, %v8563_v10, %v8570_v45  ;;  %v20496_v37 = vrot.slane %v8583_v34, 7  ;;  %4258 = vst.msk [vmem:[#allocation3 + $0x420] sm:$0xff] %vm2652_vm15, %v4195_v14  ;;  %v20505_v45 = vld [vmem:[#allocation2 + $0x68] sm:$0xff]   ;;  %9553 = vst.msk [vmem:[#allocation3] sm:$0xff] %vm2652_vm15, %v9464_v3 }
 0x33f   : > { %v9311_v4 = vshrl.u32 %v20394_v22, 16  ;;  %6446 = vmatmul.mubr.bf16.gmra.mrb[140].mxu1 %v5547_v47  ;;  %8727 = vst.msk [vmem:[#allocation2 + $0xe8] sm:$0xf] %vm234_vm7, %v8571_v11  ;;  %v15292_v43 = vpack.c.bf16 %v7886_v55, %v7886_v55  ;;  %v15295_v31 = vpack.c.bf16 %v7889_v27, %v7889_v27  ;;  %v9315_v36 = vshll.u32 %v20461_v15, 16 }
 0x340   : > { %22953 = vst [vmem:[#allocation165_spill] sm:$0xff] %v20488_v2  ;;  %v8562_v41 = vsel %vm17104_vm11, %v22954_v44, %v8561_v39  ;;  %v7888_v42 = vmax.f32 %v20488_v2, 0.0  ;;  %6453 = vmatprep.mubr.bf16.mxu1 %v5553_v30  ;;  %v8588_v22 = vor.u32 %v8586_v59, %v20496_v37  ;;  %v11025_v10 = vrot.slane %v20471_v52, 1  ;;  %v20515_v59 = vld [vmem:[#allocation2 + $0xd4] sm:$0xff]  }
 0x341   : > { %8726 = vst.msk [vmem:[#allocation2 + $0xe4] sm:$0xf] %vm234_vm7, %v8562_v41  ;;  %11083 = vrot.lane.b32.xlu1 %v11024_v9, %s16826_s8  ;;  %v9313_v39 = vor.u32 %v9311_v4, %v20436_v12  ;;  %v8574_v34 = vshrl.u32 %v15292_v43, 16  ;;  %v8577_v49 = vshll.u32 %v15292_v43, 16  ;;  %v8601_v55 = vshrl.u32 %v15295_v31, 16  ;;  %v5045_v14 = vpop.permute.xlu1 %5044  ;;  %v20517_v11 = vpop.permute.xlu0 %10130 }
 0x342   : > { %v8604_v27 = vshll.u32 %v15295_v31, 16  ;;  %v15294_v44 = vpack.c.bf16 %v7888_v42, %v7888_v42  ;;  %v9317_v41 = vrot.slane %v9315_v36, 1  ;;  %v11026_v3 = vsel %vm2897_vm13, %v11023_v35, %v11025_v10  ;;  %5107 = vst.msk [vmem:[#allocation3 + $0x450] sm:$0xff] %vm2652_vm15, %v5045_v14  ;;  %v8732_v43 = vld [vmem:[#allocation2 + $0xfc] sm:$0x1]  ;;  %v5552_v14 = vld [vmem:[#allocation3 + $0x358] sm:$0xff] }
 0x343   : > { %v11027_v30 = vrot.slane %v20481_v54, 1  ;;  %v8576_v12 = vrot.slane %v8574_v34, 7  ;;  %v8603_v9 = vrot.slane %v8601_v55, 7  ;;  %v9319_v52 = vshrl.u32 %v20461_v15, 16  ;;  %v16553_v35 = vld [vmem:[#allocation2] sm:$0xfe]  }
 0x344   : > { %v9323_v4 = vshll.u32 %v20505_v45, 16  ;;  %v8592_v31 = vshrl.u32 %v15294_v44, 16  ;;  %v8595_v42 = vshll.u32 %v15294_v44, 16  ;;  %v9318_v36 = vsel %vm2317_vm12, %v9313_v39, %v9317_v41  ;;  %v20524_v54 = vld [vmem:[#allocation2 + $0x8] sm:$0xff]   ;;  %v20528_v15 = vld [vmem:[#allocation2 + $0xdc] sm:$0xff]  }
 0x345   : > { %11085 = vrot.lane.b32.xlu1 %v11026_v3, %s16826_s8  ;;  %v8579_v47 = vor.u32 %v8577_v49, %v8576_v12  ;;  %v8581_v21 = vrot.slane %v8576_v12, 4  ;;  %v8608_v2 = vrot.slane %v8603_v9, 4  ;;  %9485 = vrot.lane.b32.xlu0 %v9318_v36, %s16826_s8  ;;  %v11028_v34 = vsel %vm2897_vm13, %v11025_v10, %v11027_v30  ;;  %v4197_v55 = vpop.permute.xlu1 %4196  ;;  %v16562_v3 = vld [vmem:[#allocation2 + $0x10] sm:$0xff]   ;;  %v9466_v29 = vpop.permute.xlu0 %9465 }
 0x346   : > { %v8606_v32 = vor.u32 %v8604_v27, %v8603_v9  ;;  %v8594_v44 = vrot.slane %v8592_v31, 7  ;;  %v9321_v5 = vor.u32 %v9319_v52, %v9317_v41  ;;  %v11029_v39 = vrot.slane %v20515_v59, 1  ;;  %4259 = vst.msk [vmem:[#allocation3 + $0x448] sm:$0xff] %vm2652_vm15, %v4197_v55  ;;  %v5558_v49 = vld [vmem:[#allocation3 + $0x388] sm:$0xff]  ;;  %v16541_v41 = vld [vmem:[#allocation2 + $0x6c] sm:$0xff]   ;;  %9554 = vst.msk [vmem:[#allocation3 + $0x28] sm:$0xff] %vm2652_vm15, %v9466_v29 }
 0x347   : > { %6454 = vmatmul.mubr.bf16.gmra.mrb[144].mxu1 %v5552_v14  ;;  %v22955_v12 = vrot.slane %v20458_v18, 4  ;;  %v8589_v36 = vsel %vm17104_vm11, %v8581_v21, %v8588_v22  ;;  %v8733_v27 = vsel %vm16982_vm6, %v8608_v2, %v8732_v43  ;;  %v9325_v9 = vrot.slane %v9323_v4, 1  ;;  %v20541_v59 = vld [vmem:[#allocation2 + $0x18] sm:$0xff]   ;;  %v20546_v21 = vld [vmem:[#allocation2 + $0x70] sm:$0xff]   ;;  %v16606_v52 = vld [vmem:[#allocation2 + $0x48] sm:$0xff]  }
 0x348   : > { %6461 = vmatprep.mubr.bf16.mxu1 %v5558_v49  ;;  %8729 = vst.msk [vmem:[#allocation2 + $0xf0] sm:$0xf] %vm234_vm7, %v8589_v36  ;;  %8734 = vst [vmem:[#allocation2 + $0xfc] sm:$0x1] %v8733_v27  ;;  %v8597_v18 = vor.u32 %v8595_v42, %v8594_v44  ;;  %v11030_v51 = vsel %vm2897_vm13, %v11027_v30, %v11029_v39  ;;  %v11031_v29 = vrot.slane %v20528_v15, 1  ;;  %v20551_v2 = vld [vmem:[#allocation2 + $0xe4] sm:$0xff]  }
 0x349   : > { %v8580_v10 = vsel %vm17104_vm11, %v22955_v12, %v8579_v47  ;;  %v8599_v47 = vrot.slane %v8594_v44, 4  ;;  %11087 = vrot.lane.b32.xlu1 %v11028_v34, %s16826_s8  ;;  %10152 = vrot.lane.b32.xlu0 %v16541_v41, %s16826_s8  ;;  %v5047_v22 = vpop.permute.xlu1 %5046  ;;  %v22956_v4 = vrot.slane %v20496_v37, 4  ;;  %v9797_v42 = vrot.slane %v16553_v35, 1  ;;  %v10133_v55 = vpop.permute.xlu0 %10132  ;;  %8984 = vst.msk [vmem:[#allocation3 + $0x168] sm:$0xff] %vm2072_vm14, %v16606_v52  ;;  %v16571_v14 = vld [vmem:[#allocation2 + $0x20] sm:$0xff]   ;;  %v5557_v49 = vld [vmem:[#allocation3 + $0x380] sm:$0xff] }
 0x34a   : > { %8728 = vst.msk [vmem:[#allocation2 + $0xec] sm:$0xf] %vm234_vm7, %v8580_v10  ;;  %v9798_v34 = vrot.slane %v20524_v54, 1  ;;  %v9326_v30 = vsel %vm2317_vm12, %v9321_v5, %v9325_v9  ;;  %v9327_v37 = vshrl.u32 %v20505_v45, 16  ;;  %v9331_v57 = vshll.u32 %v20546_v21, 16  ;;  %v16546_v12 = vld [vmem:[#allocation2 + $0x74] sm:$0xff]  }
 0x34b   : > { %v8598_v43 = vsel %vm17104_vm11, %v22956_v4, %v8597_v18  ;;  %v8607_v31 = vsel %vm17104_vm11, %v8599_v47, %v8606_v32  ;;  %5108 = vst.msk [vmem:[#allocation3 + $0x478] sm:$0xff] %vm2652_vm15, %v5047_v22  ;;  %v9800_v35 = vrot.slane %v16562_v3, 1  ;;  %v11032_v54 = vsel %vm2897_vm13, %v11029_v39, %v11031_v29  ;;  %v5563_v39 = vld [vmem:[#allocation3 + $0x3b0] sm:$0xff] }
 0x34c   : > { %8730 = vst.msk [vmem:[#allocation2 + $0xf4] sm:$0xf] %vm234_vm7, %v8598_v43  ;;  %8731 = vst.msk [vmem:[#allocation2 + $0xf8] sm:$0xf] %vm234_vm7, %v8607_v31  ;;  %v9799_v32 = vsel %vm2897_vm13, %v9797_v42, %v9798_v34  ;;  %v11033_v15 = vrot.slane %v20551_v2, 1  ;;  %v9802_v5 = vrot.slane %v20541_v59, 1  ;;  %v9329_v27 = vor.u32 %v9327_v37, %v9325_v9 }
 0x34d   : > { %11089 = vrot.lane.b32.xlu1 %v11030_v51, %s16826_s8  ;;  %9487 = vrot.lane.b32.xlu0 %v9326_v30, %s16826_s8  ;;  %9888 = vst.msk [vmem:[#allocation3 + $0x8] sm:$0xff] %vm2072_vm14, %v9799_v32  ;;  %v4199_v44 = vpop.permute.xlu1 %4198  ;;  %v9801_v45 = vsel %vm2897_vm13, %v9798_v34, %v9800_v35  ;;  %v9468_v3 = vpop.permute.xlu0 %9467  ;;  %v20584_v41 = vld [vmem:[#allocation2 + $0x78] sm:$0xff]   ;;  %v16576_v59 = vld [vmem:[#allocation2 + $0x28] sm:$0xff]   ;;  %v9804_v51 = vrot.slane %v16571_v14, 1  ;;  %v16581_v9 = vld [vmem:[#allocation2 + $0x30] sm:$0xff]   ;;  %v9335_v34 = vshrl.u32 %v20546_v21, 16 }
 0x34e   : > { %10218 = vst.msk [vmem:[#allocation3 + $0x8] sm:$0xff] %vm2652_vm15, %v20450_v20  ;;  %4260 = vst.msk [vmem:[#allocation3 + $0x470] sm:$0xff] %vm2652_vm15, %v4199_v44  ;;  %v9803_v36 = vsel %vm2897_vm13, %v9800_v35, %v9802_v5  ;;  %v9333_v20 = vrot.slane %v9331_v57, 1  ;;  %v11034_v18 = vsel %vm2897_vm13, %v11031_v29, %v11033_v15  ;;  %v20593_v22 = vld [vmem:[#allocation2 + $0x38] sm:$0xff]   ;;  %v20602_v31 = vld [vmem:[#allocation2 + $0x40] sm:$0xff]   ;;  %v9806_v57 = vrot.slane %v16576_v59, 1 }
 0x34f   : > { %6462 = vmatmul.mubr.bf16.gmra.mrb[148].mxu1 %v5557_v49  ;;  %9889 = vst.msk [vmem:[#allocation3 + $0x30] sm:$0xff] %vm2072_vm14, %v9801_v45  ;;  %9890 = vst.msk [vmem:[#allocation3 + $0x58] sm:$0xff] %vm2072_vm14, %v9803_v36  ;;  %v9805_v29 = vsel %vm2897_vm13, %v9802_v5, %v9804_v51  ;;  %v5562_v43 = vld [vmem:[#allocation3 + $0x3a8] sm:$0xff]  ;;  %v20608_v30 = vld [vmem:[#allocation2 + $0x80] sm:$0xff]   ;;  %v9808_v49 = vrot.slane %v16581_v9, 1 }
 0x350   : > { %9555 = vst.msk [vmem:[#allocation3 + $0x50] sm:$0xff] %vm2652_vm15, %v9468_v3  ;;  %6469 = vmatprep.mubr.bf16.mxu1 %v5563_v39  ;;  %10219 = vst.msk [vmem:[#allocation3 + $0x30] sm:$0xff] %vm2652_vm15, %v20517_v11  ;;  %v16565_v11 = vld [vmem:[%s22595_s3 + $0x80] sm:$0xff]   ;;  %v9334_v42 = vsel %vm2317_vm12, %v9329_v27, %v9333_v20  ;;  %v12344_v37 = vld [vmem:[#allocation3] sm:$0xff]  ;;  %v9807_v45 = vsel %vm2897_vm13, %v9804_v51, %v9806_v57  ;;  %v9337_v27 = vor.u32 %v9335_v34, %v9333_v20 }
 0x351   : > { %v20578_v10 = vld [vmem:[#allocation2 + $0xec] sm:$0xff]   ;;  %11091 = vrot.lane.b32.xlu1 %v11032_v54, %s16826_s8  ;;  %10154 = vrot.lane.b32.xlu0 %v16546_v12, %s16826_s8  ;;  %10220 = vst.msk [vmem:[#allocation3 + $0x58] sm:$0xff] %vm2652_vm15, %v10133_v55  ;;  %v5049_v2 = vpop.permute.xlu1 %5048  ;;  %v10135_v4 = vpop.permute.xlu0 %10134  ;;  %v9339_v55 = vshll.u32 %v20584_v41, 16  ;;  %v5568_v32 = vld [vmem:[#allocation3 + $0x3d8] sm:$0xff]  ;;  %v16552_v35 = vld [vmem:[#allocation2 + $0x7c] sm:$0xff]   ;;  %v9809_v39 = vsel %vm2897_vm13, %v9806_v57, %v9808_v49  ;;  %v9812_v20 = vrot.slane %v20602_v31, 1 }
 0x352   : > { %v11035_v47 = vrot.slane %v20578_v10, 1  ;;  %5109 = vst.msk [vmem:[#allocation3 + $0x4a0] sm:$0xff] %vm2652_vm15, %v5049_v2  ;;  %v20614_v14 = vld [vmem:[#allocation2 + $0xfc] ss:$0 sps:$4 sm:$0x11]   ;;  %v20619_v3 = vld [vmem:[#allocation2 + $0x48] sm:$0xff]  }
 0x353   : > { %v20595_v52 = vld [vmem:[#allocation2 + $0xf4] sm:$0xff]   ;;  %9891 = vst.msk [vmem:[#allocation3 + $0x80] sm:$0xff] %vm2072_vm14, %v9805_v29  ;;  %9892 = vst.msk [vmem:[#allocation3 + $0xa8] sm:$0xff] %vm2072_vm14, %v9807_v45  ;;  %v9810_v10 = vrot.slane %v20593_v22, 1  ;;  %v16596_v36 = vld [vmem:[#allocation2 + $0x84] sm:$0xff]   ;;  %v9341_v59 = vrot.slane %v9339_v55, 1 }
 0x354   : > { %v11036_v54 = vsel %vm2897_vm13, %v11033_v15, %v11035_v47  ;;  %v11037_v5 = vrot.slane %v20595_v52, 1  ;;  %10221 = vst.msk [vmem:[#allocation3 + $0x80] sm:$0xff] %vm2652_vm15, %v10135_v4  ;;  %v16612_v51 = vld [vmem:[#allocation2 + $0x50] sm:$0xff]   ;;  %v9814_v34 = vrot.slane %v20619_v3, 1  ;;  %v10582_v55 = vshll.u32 %v16596_v36, 16 }
 0x355   : > { %11093 = vrot.lane.b32.xlu1 %v11034_v18, %s16826_s8  ;;  %9489 = vrot.lane.b32.xlu0 %v9334_v42, %s16826_s8  ;;  %v12345_v44 = vld [vmem:[#allocation3 + $0x8] sm:$0xff]  ;;  %v4201_v21 = vpop.permute.xlu1 %4200  ;;  %v16573_v18 = vld [vmem:[%s22595_s3 + $0x88] sm:$0xff]   ;;  %9893 = vst.msk [vmem:[#allocation3 + $0xd0] sm:$0xff] %vm2072_vm14, %v9809_v39  ;;  %v9811_v9 = vsel %vm2897_vm13, %v9808_v49, %v9810_v10  ;;  %8985 = vst.msk [vmem:[#allocation3 + $0x190] sm:$0xff] %vm2072_vm14, %v16612_v51  ;;  %v9813_v31 = vsel %vm2897_vm13, %v9810_v10, %v9812_v20 }
 0x356   : > { %12911 = vmatprep.mubr.bf16.mxu0 %v12345_v44  ;;  %v9470_v12 = vpop.permute.xlu0 %9469  ;;  %4261 = vst.msk [vmem:[#allocation3 + $0x498] sm:$0xff] %vm2652_vm15, %v4201_v21  ;;  %v11038_v2 = vsel %vm2897_vm13, %v11035_v47, %v11037_v5  ;;  %v16597_v22 = vld [vmem:[#allocation2 + $0x8c] sm:$0xff]   ;;  %v16600_v29 = vld [vmem:[#allocation2 + $0x94] sm:$0xff]   ;;  %v5567_v42 = vld [vmem:[#allocation3 + $0x3d0] sm:$0xff]  ;;  %v9342_v57 = vsel %vm2317_vm12, %v9337_v27, %v9341_v59  ;;  %v9815_v45 = vsel %vm2897_vm13, %v9812_v20, %v9814_v34  ;;  %v20660_v3 = vrot.slane %v10582_v55, 1 }
 0x357   : > { %6470 = vmatmul.mubr.bf16.gmra.mrb[152].mxu1 %v5562_v43  ;;  %12912 = vmatmul.mubr.bf16.vlgmr.msra.gmra.mrb[120].mxu0 %v12344_v37  ;;  %v12350_v15 = vld [vmem:[#allocation3 + $0x30] sm:$0xff]  ;;  %9556 = vst.msk [vmem:[#allocation3 + $0x78] sm:$0xff] %vm2652_vm15, %v9470_v12  ;;  %v11039_v43 = vrot.slane %v20614_v14, 1  ;;  %v16583_v47 = vld [vmem:[%s22595_s3 + $0x90] sm:$0xff]   ;;  %v10586_v14 = vshrl.u32 %v16596_v36, 16  ;;  %v16560_v21 = vld [vmem:[#allocation2 + $0x84] sm:$0xff]  }
 0x358   : > { %6477 = vmatprep.mubr.bf16.mxu1 %v5568_v32  ;;  %13153 = vmatpush1.bf16.msra.mxu0 %v16565_v11  ;;  %v9347_v11 = vshll.u32 %v20608_v30, 16  ;;  %9894 = vst.msk [vmem:[#allocation3 + $0xf8] sm:$0xff] %vm2072_vm14, %v9811_v9  ;;  %v20647_v37 = vld [vmem:[#allocation2 + $0x50] sm:$0xff]   ;;  %v9343_v32 = vshrl.u32 %v20584_v41, 16  ;;  %9895 = vst.msk [vmem:[#allocation3 + $0x120] sm:$0xff] %vm2072_vm14, %v9813_v31  ;;  %v20655_v44 = vld [vmem:[#allocation2 + $0x9c] sm:$0xff]  }
 0x359   : > { %11095 = vrot.lane.b32.xlu1 %v11036_v54, %s16826_s8  ;;  %10156 = vrot.lane.b32.xlu0 %v16552_v35, %s16826_s8  ;;  %v20652_v35 = vld [vmem:[#allocation2 + $0x88] sm:$0xff]   ;;  %v12349_v54 = vld [vmem:[#allocation3 + $0x28] sm:$0xff]  ;;  %v10590_v41 = vshll.u32 %v16597_v22, 16  ;;  %9896 = vst.msk [vmem:[#allocation3 + $0x148] sm:$0xff] %vm2072_vm14, %v9815_v45  ;;  %v10594_v39 = vshrl.u32 %v16597_v22, 16  ;;  %v10598_v10 = vshll.u32 %v16600_v29, 16  ;;  %v11040_v27 = vsel %vm2897_vm13, %v11037_v5, %v11039_v43 }
 0x35a   : > { %12919 = vmatprep.mubr.bf16.mxu0 %v12350_v15  ;;  %13154 = vmatprep.subr.bf16.mxu0 %v22767_v19  ;;  %v10137_v4 = vpop.permute.xlu0 %10136  ;;  %v12355_v49 = vld [vmem:[#allocation3 + $0x58] sm:$0xff]  ;;  %v5573_v12 = vld [vmem:[#allocation3 + $0x400] sm:$0xff]  ;;  %v20662_v15 = vrot.slane %v9347_v11, 1  ;;  %v10588_v51 = vor.u32 %v10586_v14, %v20660_v3  ;;  %v9816_v9 = vrot.slane %v20647_v37, 1  ;;  %v9345_v20 = vor.u32 %v9343_v32, %v9341_v59  ;;  %v20677_v5 = vld [vmem:[#allocation2 + $0x58] sm:$0xff]  }
 0x35b   : > { %10222 = vst.msk [vmem:[#allocation3 + $0xa8] sm:$0xff] %vm2652_vm15, %v10137_v4  ;;  %v20665_v36 = vld [vmem:[#allocation2 + $0xa4] sm:$0xff]   ;;  %v10600_v22 = vrot.slane %v10598_v10, 1  ;;  %v10602_v11 = vshrl.u32 %v16600_v29, 16  ;;  %v10606_v52 = vshll.u32 %v20655_v44, 16  ;;  %v9351_v55 = vshrl.u32 %v20608_v30, 16 }
 0x35c   : > { %13155 = vmatpush1.bf16.msra.mxu0 %v16573_v18  ;;  %v16592_v18 = vld [vmem:[%s22595_s3 + $0x98] sm:$0xff]   ;;  %v9817_v31 = vsel %vm2897_vm13, %v9814_v34, %v9816_v9  ;;  %v9355_v59 = vshll.u32 %v20652_v35, 16  ;;  %v16603_v34 = vld [vmem:[%s22595_s3 + $0xa0] sm:$0xff]   ;;  %v10610_v30 = vshrl.u32 %v20655_v44, 16  ;;  %v10614_v14 = vshll.u32 %v20665_v36, 16 }
 0x35d   : > { %11097 = vrot.lane.b32.xlu1 %v11038_v2, %s16826_s8  ;;  %9491 = vrot.lane.b32.xlu0 %v9342_v57, %s16826_s8  ;;  %v10592_v2 = vrot.slane %v10590_v41, 1  ;;  %9897 = vst.msk [vmem:[#allocation3 + $0x170] sm:$0xff] %vm2072_vm14, %v9817_v31  ;;  %v10604_v29 = vor.u32 %v10602_v11, %v10600_v22  ;;  %v10608_v37 = vrot.slane %v10606_v52, 1  ;;  %v16619_v57 = vld [vmem:[#allocation2 + $0x58] sm:$0xff]   ;;  %v10618_v10 = vshrl.u32 %v20665_v36, 16  ;;  %v16621_v44 = vld [vmem:[%s22595_s3 + $0x100] sm:$0xff]  }
 0x35e   : > { %13156 = vmatprep.subr.bf16.mxu0 %v22767_v19  ;;  %v5578_v45 = vld [vmem:[#allocation3 + $0x428] sm:$0xff]  ;;  %8986 = vst.msk [vmem:[#allocation3 + $0x1b8] sm:$0xff] %vm2072_vm14, %v16619_v57  ;;  %v16617_v52 = vld [vmem:[#allocation2 + $0xbc] sm:$0xff]   ;;  %v9357_v36 = vrot.slane %v9355_v59, 1  ;;  %v9359_v59 = vshrl.u32 %v20652_v35, 16  ;;  %15744 = vmatprep.subr.bf16.mxu1 %v16621_v44 }
 0x35f   : > { %6478 = vmatmul.mubr.bf16.gmra.mrb[156].mxu1 %v5567_v42  ;;  %12920 = vmatmul.mubr.bf16.gmra.mrb[124].mxu0 %v12349_v54  ;;  %v10593_v4 = vsel %vm2317_vm12, %v10588_v51, %v10592_v2  ;;  %v10596_v43 = vor.u32 %v10594_v39, %v10592_v2  ;;  %v16610_v42 = vld [vmem:[#allocation2 + $0xac] sm:$0xff]   ;;  %v5572_v54 = vld [vmem:[#allocation3 + $0x3f8] sm:$0xff]  ;;  %v10609_v41 = vsel %vm2317_vm12, %v10604_v29, %v10608_v37  ;;  %v9818_v39 = vrot.slane %v20677_v5, 1  ;;  %v20719_v57 = vld [vmem:[#allocation2 + $0x98] sm:$0xff]  }
 0x360   : > { %6485 = vmatprep.mubr.bf16.mxu1 %v5573_v12  ;;  %12927 = vmatprep.mubr.bf16.mxu0 %v12355_v49  ;;  %10751 = vst.msk [vmem:[#allocation3 + $0x268] sm:$0xff] %vm2072_vm14, %v10593_v4  ;;  %v9350_v49 = vsel %vm2317_vm12, %v9345_v20, %v20662_v15  ;;  %v20697_v12 = vld [vmem:[#allocation2 + $0x90] sm:$0xff]   ;;  %10753 = vst.msk [vmem:[#allocation3 + $0x2b8] sm:$0xff] %vm2072_vm14, %v10609_v41  ;;  %v10612_v20 = vor.u32 %v10610_v30, %v10608_v37  ;;  %v10622_v11 = vshll.u32 %v16610_v42, 16  ;;  %v20716_v37 = vld [vmem:[#allocation2 + $0xc4] sm:$0xff]  }
 0x361   : > { %11099 = vrot.lane.b32.xlu1 %v11040_v27, %s16826_s8  ;;  %10158 = vrot.lane.b32.xlu0 %v16560_v21, %s16826_s8  ;;  %v10601_v32 = vsel %vm2317_vm12, %v10596_v43, %v10600_v22  ;;  %v20693_v21 = vld [vmem:[#allocation2 + $0xb4] sm:$0xff]   ;;  %v20703_v27 = vld [vmem:[#allocation2 + $0x60] sm:$0xff]   ;;  %v16566_v51 = vld [vmem:[#allocation2 + $0x8c] sm:$0xff]   ;;  %v10616_v22 = vrot.slane %v10614_v14, 1  ;;  %v9819_v5 = vsel %vm2897_vm13, %v9816_v9, %v9818_v39  ;;  %v10626_v4 = vshrl.u32 %v16610_v42, 16 }
 0x362   : > { %13157 = vmatpush1.bf16.msra.mxu0 %v16583_v47  ;;  %v12354_v47 = vld [vmem:[#allocation3 + $0x50] sm:$0xff]  ;;  %10752 = vst.msk [vmem:[#allocation3 + $0x290] sm:$0xff] %vm2072_vm14, %v10601_v32  ;;  %v12360_v2 = vld [vmem:[#allocation3 + $0x80] sm:$0xff]  ;;  %v9353_v43 = vor.u32 %v9351_v55, %v20662_v15  ;;  %9898 = vst.msk [vmem:[#allocation3 + $0x198] sm:$0xff] %vm2072_vm14, %v9819_v5  ;;  %v10624_v29 = vrot.slane %v10622_v11, 1  ;;  %v10630_v9 = vshll.u32 %v20693_v21, 16  ;;  %15745 = vmatpush3.bf16.msra.mxu1 %v16621_v44 }
 0x363   : > { %13158 = vmatprep.subr.bf16.mxu0 %v22767_v19  ;;  %v10617_v31 = vsel %vm2317_vm12, %v10612_v20, %v10616_v22  ;;  %v16615_v15 = vld [vmem:[%s22595_s3 + $0xa8] sm:$0xff]   ;;  %v9820_v42 = vrot.slane %v20703_v27, 1  ;;  %v10634_v55 = vshrl.u32 %v20693_v21, 16  ;;  %v9363_v14 = vshll.u32 %v20697_v12, 16  ;;  %v16627_v41 = vld [vmem:[#allocation2 + $0x60] sm:$0xff]   ;;  %v12365_v11 = vld [vmem:[#allocation3 + $0xa8] sm:$0xff] }
 0x364   : > { %10754 = vst.msk [vmem:[#allocation3 + $0x2e0] sm:$0xff] %vm2072_vm14, %v10617_v31  ;;  %v10628_v32 = vor.u32 %v10626_v4, %v10624_v29  ;;  %v20732_v30 = vld [vmem:[#allocation2 + $0xcc] sm:$0xff]   ;;  %v12359_v27 = vld [vmem:[#allocation3 + $0x78] sm:$0xff]  ;;  %v9361_v44 = vor.u32 %v9359_v59, %v9357_v36  ;;  %v5583_v5 = vld [vmem:[#allocation3 + $0x450] sm:$0xff] }
 0x365   : > { %9493 = vrot.lane.b32.xlu0 %v9350_v49, %s16826_s8  ;;  %v9821_v21 = vsel %vm2897_vm13, %v9818_v39, %v9820_v42  ;;  %v10646_v39 = vshll.u32 %v20716_v37, 16  ;;  %8987 = vst.msk [vmem:[#allocation3 + $0x1e0] sm:$0xff] %vm2072_vm14, %v16627_v41  ;;  %v10654_v59 = vshll.u32 %v20732_v30, 16 }
 0x366   : > { %13159 = vmatpush1.bf16.msra.mxu0 %v16592_v18  ;;  %v10620_v18 = vor.u32 %v10618_v10, %v10616_v22  ;;  %v9358_v10 = vsel %vm2317_vm12, %v9353_v43, %v9357_v36  ;;  %9899 = vst.msk [vmem:[#allocation3 + $0x1c0] sm:$0xff] %vm2072_vm14, %v9821_v21  ;;  %v10642_v22 = vshrl.u32 %v16617_v52, 16  ;;  %v10650_v36 = vshrl.u32 %v20716_v37, 16 }
 0x367   : > { %6486 = vmatmul.mubr.bf16.gmra.mrb[160].mxu1 %v5572_v54  ;;  %13160 = vmatprep.subr.bf16.mxu0 %v22767_v19  ;;  %v10638_v54 = vshll.u32 %v16617_v52, 16  ;;  %v10656_v41 = vrot.slane %v10654_v59, 1  ;;  %v20792_v59 = vld [vmem:[#allocation2 + $0x70] sm:$0xff]  }
 0x368   : > { %12928 = vmatmul.mubr.bf16.gmra.mrb[128].mxu0 %v12354_v47  ;;  %6493 = vmatprep.mubr.bf16.mxu1 %v5578_v45  ;;  %v20728_v47 = vld [vmem:[#allocation2 + $0x68] sm:$0xff]   ;;  %v10625_v35 = vsel %vm2317_vm12, %v10620_v18, %v10624_v29  ;;  %v10632_v45 = vrot.slane %v10630_v9, 1  ;;  %v16570_v18 = vld [vmem:[#allocation2 + $0x94] sm:$0xff]   ;;  %v10648_v29 = vrot.slane %v10646_v39, 1 }
 0x369   : > { %12935 = vmatprep.mubr.bf16.mxu0 %v12360_v2  ;;  %10160 = vrot.lane.b32.xlu0 %v16566_v51, %s16826_s8  ;;  %10755 = vst.msk [vmem:[#allocation3 + $0x308] sm:$0xff] %vm2072_vm14, %v10625_v35  ;;  %v20743_v51 = vld [vmem:[#allocation2 + $0xa0] sm:$0xff]   ;;  %v5577_v2 = vld [vmem:[#allocation3 + $0x420] sm:$0xff]  ;;  %v10640_v20 = vrot.slane %v10638_v54, 1  ;;  %v9822_v43 = vrot.slane %v20728_v47, 1  ;;  %v20754_v9 = vld [vmem:[#allocation2 + $0xd4] sm:$0xff]  }
 0x36a   : > { %13161 = vmatpush1.bf16.msra.mxu0 %v16603_v34  ;;  %v9472_v49 = vpop.permute.xlu0 %9471  ;;  %v16626_v34 = vld [vmem:[%s22595_s3 + $0x108] sm:$0xff]   ;;  %v10633_v4 = vsel %vm2317_vm12, %v10628_v32, %v10632_v45  ;;  %v10636_v31 = vor.u32 %v10634_v55, %v10632_v45  ;;  %v9367_v55 = vshrl.u32 %v20697_v12, 16  ;;  %v9371_v35 = vshll.u32 %v20719_v57, 16  ;;  %v20761_v54 = vld [vmem:[%s22596_s4] ss:$0 sm:$0xff] }
 0x36b   : > { %13162 = vmatprep.subr.bf16.mxu0 %v22767_v19  ;;  %9557 = vst.msk [vmem:[#allocation3 + $0xa0] sm:$0xff] %vm2652_vm15, %v9472_v49  ;;  %15746 = vmatprep.subr.bf16.mxu1 %v16626_v34  ;;  %v10644_v52 = vor.u32 %v10642_v22, %v10640_v20  ;;  %v9823_v37 = vsel %vm2897_vm13, %v9820_v42, %v9822_v43  ;;  %v20768_v49 = vrot.slane %v9363_v14, 1  ;;  %v16630_v42 = vld [vmem:[%s22595_s3 + $0x110] sm:$0xff]   ;;  %v16632_v39 = vld [vmem:[#allocation2 + $0x18] sm:$0xfe]   ;;  %v16638_v47 = vld [vmem:[#allocation2 + $0x68] sm:$0xff]  }
 0x36c   : > { %10756 = vst.msk [vmem:[#allocation3 + $0x330] sm:$0xff] %vm2072_vm14, %v10633_v4  ;;  %9900 = vst.msk [vmem:[#allocation3 + $0x1e8] sm:$0xff] %vm2072_vm14, %v9823_v37  ;;  %v10652_v21 = vor.u32 %v10650_v36, %v10648_v29  ;;  %v16631_v14 = vld [vmem:[%s22595_s3 + $0xb0] sm:$0xff]   ;;  %15747 = vmatpush3.bf16.msra.mxu1 %v16626_v34  ;;  %v12223_v36 = vrot.slane %v16632_v39, 1  ;;  %v16637_v39 = vld [vmem:[%s22595_s3 + $0x118] sm:$0xff]  }
 0x36d   : > { %9495 = vrot.lane.b32.xlu0 %v9358_v10, %s16826_s8  ;;  %v10649_v45 = vsel %vm2317_vm12, %v10644_v52, %v10648_v29  ;;  %v10658_v10 = vshrl.u32 %v20732_v30, 16  ;;  %15748 = vmatprep.subr.bf16.mxu1 %v16630_v42  ;;  %v20788_v30 = vld [vmem:[#allocation2 + $0x20] sm:$0xff]   ;;  %v5582_v29 = vld [vmem:[#allocation3 + $0x448] sm:$0xff]  ;;  %8988 = vst.msk [vmem:[#allocation3 + $0x208] sm:$0xff] %vm2072_vm14, %v16638_v47 }
 0x36e   : > { %13163 = vmatpush1.bf16.msra.mxu0 %v16615_v15  ;;  %v10139_v32 = vpop.permute.xlu0 %10138  ;;  %v10641_v15 = vsel %vm2317_vm12, %v10636_v31, %v10640_v20  ;;  %10758 = vst.msk [vmem:[#allocation3 + $0x380] sm:$0xff] %vm2072_vm14, %v10649_v45  ;;  %v10657_v22 = vsel %vm2317_vm12, %v10652_v21, %v10656_v41 }
 0x36f   : > { %6494 = vmatmul.mubr.bf16.gmra.mrb[164].mxu1 %v5577_v2  ;;  %13164 = vmatprep.subr.bf16.mxu0 %v22767_v19  ;;  %10223 = vst.msk [vmem:[#allocation3 + $0xd0] sm:$0xff] %vm2652_vm15, %v10139_v32  ;;  %v9379_v2 = vshll.u32 %v20743_v51, 16  ;;  %v6287_v20 = vpop.f32.mrb[60].mxu1  ;;  %v10660_v34 = vor.u32 %v10658_v10, %v10656_v41  ;;  %v16635_v32 = vld [vmem:[#allocation2 + $0xdc] sm:$0xff]   ;;  %v12224_v41 = vrot.slane %v20788_v30, 1  ;;  %v9824_v10 = vrot.slane %v20792_v59, 1 }
 0x370   : > { %12936 = vmatmul.mubr.bf16.gmra.mrb[132].mxu0 %v12359_v27  ;;  %6501 = vmatprep.mubr.bf16.mxu1 %v5583_v5  ;;  %10757 = vst.msk [vmem:[#allocation3 + $0x358] sm:$0xff] %vm2072_vm14, %v10641_v15  ;;  %v10662_v27 = vshll.u32 %v20754_v9, 16  ;;  %v15824_v4 = vadd.f32 %v20761_v54, %v6287_v20  ;;  %10759 = vst.msk [vmem:[#allocation3 + $0x3a8] sm:$0xff] %vm2072_vm14, %v10657_v22 }
 0x371   : > { %12943 = vmatprep.mubr.bf16.mxu0 %v12365_v11  ;;  %10162 = vrot.lane.b32.xlu0 %v16570_v18, %s16826_s8  ;;  %v6289_v11 = vpop.f32.mrb[61].mxu1  ;;  %v9366_v18 = vsel %vm2317_vm12, %v9361_v44, %v20768_v49  ;;  %v16575_v44 = vld [vmem:[#allocation2 + $0x9c] sm:$0xff]  }
 0x372   : > { %v12364_v5 = vld [vmem:[#allocation3 + $0xa0] sm:$0xff]  ;;  %v10664_v31 = vrot.slane %v10662_v27, 1  ;;  %13165 = vmatpush1.bf16.msra.mxu0 %v16631_v14  ;;  %v6290_v52 = vpop.f32.mrb[62].mxu1  ;;  %v20796_v15 = vadd.f32 %v15824_v4, %v18623_v58  ;;  %15749 = vmatpush3.bf16.msra.mxu1 %v16630_v42  ;;  %v5588_v14 = vld [vmem:[#allocation3 + $0x478] sm:$0xff]  ;;  %v10666_v27 = vshrl.u32 %v20754_v9, 16  ;;  %v10670_v58 = vshll.u32 %v16635_v32, 16 }
 0x373   : > { %13166 = vmatprep.subr.bf16.mxu0 %v22767_v19  ;;  %v15825_v37 = vadd.f32 %v20761_v54, %v6290_v52  ;;  %v6292_v45 = vpop.f32.mrb[63].mxu1  ;;  %v12225_v42 = vsel %vm2897_vm13, %v12223_v36, %v12224_v41  ;;  %v9373_v52 = vrot.slane %v9371_v35, 1  ;;  %15750 = vmatprep.subr.bf16.mxu1 %v16637_v39  ;;  %v16641_v36 = vld [vmem:[#allocation2 + $0x28] sm:$0xff]  }
 0x374   : > { %v10665_v21 = vsel %vm2317_vm12, %v10660_v34, %v10664_v31  ;;  %12314 = vst.msk [vmem:[#allocation3 + $0x20] sm:$0xff] %vm2072_vm14, %v12225_v42  ;;  %v10668_v9 = vor.u32 %v10666_v27, %v10664_v31  ;;  %v10672_v11 = vrot.slane %v10670_v58, 1  ;;  %v10674_v34 = vshrl.u32 %v16635_v32, 16 }
 0x375   : > { %9497 = vrot.lane.b32.xlu0 %v9366_v18, %s16826_s8  ;;  %10760 = vst.msk [vmem:[#allocation3 + $0x3d0] sm:$0xff] %vm2072_vm14, %v10665_v21  ;;  %v6564_v22 = vadd.f32 %v15825_v37, %v18635_v38  ;;  %v9825_v38 = vsel %vm2897_vm13, %v9822_v43, %v9824_v10  ;;  %v9369_v18 = vor.u32 %v9367_v55, %v20768_v49  ;;  %v9375_v43 = vshrl.u32 %v20719_v57, 16  ;;  %v16639_v55 = vld [vmem:[#allocation2 + $0xe4] sm:$0xff]   ;;  %v5587_v57 = vld [vmem:[#allocation3 + $0x470] sm:$0xff] }
 0x376   : > { %v12370_v20 = vld [vmem:[#allocation3 + $0xd0] sm:$0xff]  ;;  %9901 = vst.msk [vmem:[#allocation3 + $0x210] sm:$0xff] %vm2072_vm14, %v9825_v38  ;;  %v10673_v12 = vsel %vm2317_vm12, %v10668_v9, %v10672_v11  ;;  %15751 = vmatpush3.bf16.msra.mxu1 %v16637_v39  ;;  %v10678_v45 = vshll.u32 %v16639_v55, 16  ;;  %v12226_v58 = vrot.slane %v16641_v36, 1  ;;  %v16644_v39 = vld [vmem:[#allocation2 + $0xec] sm:$0xff]   ;;  %v9383_v36 = vshrl.u32 %v20743_v51, 16 }
 0x377   : > { %6502 = vmatmul.mubr.bf16.gmra.mrb[168].mxu1 %v5582_v29  ;;  %v9474_v4 = vpop.permute.xlu0 %9473  ;;  %6861 = vrot.lane.b32.xlu1 %v6564_v22, %s16826_s8  ;;  %v6295_v31 = vpop.f32.mrb[64].mxu1  ;;  %v5593_v29 = vld [vmem:[#allocation3 + $0x4a0] sm:$0xff]  ;;  %10761 = vst.msk [vmem:[#allocation3 + $0x3f8] sm:$0xff] %vm2072_vm14, %v10673_v12  ;;  %v9374_v21 = vsel %vm2317_vm12, %v9369_v18, %v9373_v52  ;;  %v20842_v22 = vld [vmem:[#allocation2 + $0x78] sm:$0xff]   ;;  %v10682_v12 = vshrl.u32 %v16639_v55, 16 }
 0x378   : > { %12944 = vmatmul.mubr.bf16.gmra.mrb[136].mxu0 %v12364_v5  ;;  %6509 = vmatprep.mubr.bf16.mxu1 %v5588_v14  ;;  %9558 = vst.msk [vmem:[#allocation3 + $0xc8] sm:$0xff] %vm2652_vm15, %v9474_v4  ;;  %v20828_v5 = vrot.slane %v9379_v2, 1  ;;  %v15826_v35 = vadd.f32 %v20761_v54, %v6295_v31  ;;  %v6297_v49 = vpop.f32.mrb[65].mxu1  ;;  %v10676_v2 = vor.u32 %v10674_v34, %v10672_v11  ;;  %v10680_v42 = vrot.slane %v10678_v45, 1  ;;  %v16580_v4 = vld [vmem:[#allocation2 + $0xa4] sm:$0xff]  }
 0x379   : > { %12951 = vmatprep.mubr.bf16.mxu0 %v12370_v20  ;;  %10164 = vrot.lane.b32.xlu0 %v16575_v44, %s16826_s8  ;;  %v6298_v37 = vpop.f32.mrb[66].mxu1  ;;  %v20840_v20 = vld [vmem:[#allocation2 + $0x30] sm:$0xff]   ;;  %v20845_v38 = vld [vmem:[#allocation2 + $0xa8] sm:$0xff]   ;;  %v9826_v34 = vrot.slane %v20842_v22, 1 }
 0x37a   : > { %v20837_v44 = vadd.f32 %v15826_v35, %v18617_v13  ;;  %v15827_v14 = vadd.f32 %v20761_v54, %v6298_v37  ;;  %v6300_v27 = vpop.f32.mrb[67].mxu1  ;;  %v12227_v13 = vsel %vm2897_vm13, %v12224_v41, %v12226_v58  ;;  %v12228_v11 = vrot.slane %v20840_v20, 1  ;;  %v16646_v49 = vld [vmem:[#allocation2 + $0x70] sm:$0xff]  }
 0x37b   : > { %v10141_v32 = vpop.permute.xlu0 %10140  ;;  %v10681_v31 = vsel %vm2317_vm12, %v10676_v2, %v10680_v42  ;;  %12315 = vst.msk [vmem:[#allocation3 + $0x48] sm:$0xff] %vm2072_vm14, %v12227_v13  ;;  %v10686_v35 = vshll.u32 %v16644_v39, 16  ;;  %v9827_v41 = vsel %vm2897_vm13, %v9824_v10, %v9826_v34  ;;  %8989 = vst.msk [vmem:[#allocation3 + $0x230] sm:$0xff] %vm2072_vm14, %v16646_v49  ;;  %v5592_v2 = vld [vmem:[#allocation3 + $0x498] sm:$0xff]  ;;  %v16648_v27 = vld [vmem:[%s22595_s3 + $0xb8] sm:$0xff]  }
 0x37c   : > { %10224 = vst.msk [vmem:[#allocation3 + $0xf8] sm:$0xff] %vm2652_vm15, %v10141_v32  ;;  %v6572_v9 = vadd.f32 %v15827_v14, %v18630_v1  ;;  %v9377_v1 = vor.u32 %v9375_v43, %v9373_v52  ;;  %v12229_v30 = vsel %vm2897_vm13, %v12226_v58, %v12228_v11  ;;  %v20867_v52 = vld [vmem:[#allocation2 + $0xf4] sm:$0xff]   ;;  %v10684_v43 = vor.u32 %v10682_v12, %v10680_v42  ;;  %v16585_v13 = vld [vmem:[#allocation2 + $0xac] sm:$0xff]   ;;  %v20891_v12 = vld [vmem:[#allocation2 + $0x40] sm:$0xff]  }
 0x37d   : > { %9499 = vrot.lane.b32.xlu0 %v9374_v21, %s16826_s8  ;;  %10762 = vst.msk [vmem:[#allocation3 + $0x420] sm:$0xff] %vm2072_vm14, %v10681_v31  ;;  %12316 = vst.msk [vmem:[#allocation3 + $0x70] sm:$0xff] %vm2072_vm14, %v12229_v30  ;;  %v10688_v55 = vrot.slane %v10686_v35, 1  ;;  %v10690_v21 = vshrl.u32 %v16644_v39, 16  ;;  %v10694_v14 = vshll.u32 %v20867_v52, 16  ;;  %v16650_v39 = vld [vmem:[#allocation2 + $0x38] sm:$0xff]   ;;  %13167 = vmatpush1.bf16.msra.mxu0 %v16648_v27 }
 0x37e   : > { %6865 = vrot.lane.b32.xlu1 %v6572_v9, %s16826_s8  ;;  %9902 = vst.msk [vmem:[#allocation3 + $0x238] sm:$0xff] %vm2072_vm14, %v9827_v41  ;;  %v9382_v58 = vsel %vm2317_vm12, %v9377_v1, %v20828_v5  ;;  %v12230_v49 = vrot.slane %v16650_v39, 1  ;;  %13168 = vmatprep.subr.bf16.mxu0 %v22767_v19  ;;  %v12232_v41 = vrot.slane %v20891_v12, 1  ;;  %v16594_v12 = vld [vmem:[#allocation2 + $0xbc] sm:$0xff]  }
 0x37f   : > { %6510 = vmatmul.mubr.bf16.gmra.mrb[172].mxu1 %v5587_v57  ;;  %v9476_v18 = vpop.permute.xlu0 %9475  ;;  %v12369_v47 = vld [vmem:[#allocation3 + $0xc8] sm:$0xff]  ;;  %v6303_v51 = vpop.f32.mrb[68].mxu1  ;;  %v10689_v45 = vsel %vm2317_vm12, %v10684_v43, %v10688_v55  ;;  %v10696_v31 = vrot.slane %v10694_v14, 1 }
 0x380   : > { %6517 = vmatprep.mubr.bf16.mxu1 %v5593_v29  ;;  %9559 = vst.msk [vmem:[#allocation3 + $0xf0] sm:$0xff] %vm2652_vm15, %v9476_v18  ;;  %12952 = vmatmul.mubr.bf16.gmra.mrb[140].mxu0 %v12369_v47  ;;  %v9387_v29 = vshll.u32 %v20845_v38, 16  ;;  %v15828_v32 = vadd.f32 %v20761_v54, %v6303_v51  ;;  %v6305_v59 = vpop.f32.mrb[69].mxu1  ;;  %v20889_v18 = vld [vmem:[#allocation2 + $0xb0] sm:$0xff]   ;;  %v10692_v47 = vor.u32 %v10690_v21, %v10688_v55  ;;  %v20904_v55 = vld [vmem:[#allocation2 + $0x80] sm:$0xff]  }
 0x381   : > { %10166 = vrot.lane.b32.xlu0 %v16580_v4, %s16826_s8  ;;  %v6306_v57 = vpop.f32.mrb[70].mxu1  ;;  %10763 = vst.msk [vmem:[#allocation3 + $0x448] sm:$0xff] %vm2072_vm14, %v10689_v45  ;;  %v9385_v51 = vor.u32 %v9383_v36, %v20828_v5  ;;  %v12233_v5 = vsel %vm2897_vm13, %v12230_v49, %v12232_v41  ;;  %v16653_v36 = vld [vmem:[#allocation2 + $0xfc] ss:$0 sps:$4 sm:$0x11]  }
 0x382   : > { %v20884_v42 = vadd.f32 %v15828_v32, %v18684_v6  ;;  %v15829_v4 = vadd.f32 %v20761_v54, %v6306_v57  ;;  %v6308_v9 = vpop.f32.mrb[71].mxu1  ;;  %v12348_v6 = vld [vmem:[#allocation3 + $0x20] sm:$0xff]  ;;  %v10697_v30 = vsel %vm2317_vm12, %v10692_v47, %v10696_v31  ;;  %v9389_v43 = vrot.slane %v9387_v29, 1  ;;  %12318 = vst.msk [vmem:[#allocation3 + $0xc0] sm:$0xff] %vm2072_vm14, %v12233_v5  ;;  %v12353_v47 = vld [vmem:[#allocation3 + $0x48] sm:$0xff] }
 0x383   : > { %v10143_v37 = vpop.permute.xlu0 %10142  ;;  %v12375_v10 = vld [vmem:[#allocation3 + $0xf8] sm:$0xff]  ;;  %10764 = vst.msk [vmem:[#allocation3 + $0x470] sm:$0xff] %vm2072_vm14, %v10697_v30  ;;  %v10698_v32 = vshrl.u32 %v20867_v52, 16  ;;  %v9391_v29 = vshrl.u32 %v20845_v38, 16  ;;  %v9828_v52 = vrot.slane %v20904_v55, 1  ;;  %v9395_v57 = vshll.u32 %v20889_v18, 16 }
 0x384   : > { %10225 = vst.msk [vmem:[#allocation3 + $0x120] sm:$0xff] %vm2652_vm15, %v10143_v37  ;;  %12959 = vmatprep.mubr.bf16.mxu0 %v12375_v10  ;;  %v6580_v35 = vadd.f32 %v15829_v4, %v18699_v50  ;;  %v12231_v50 = vsel %vm2897_vm13, %v12228_v11, %v12230_v49  ;;  %v16655_v10 = vld [vmem:[#allocation2 + $0x78] sm:$0xff]   ;;  %v10702_v14 = vshll.u32 %v16653_v36, 16  ;;  %v9390_v27 = vsel %vm2317_vm12, %v9385_v51, %v9389_v43  ;;  %v16658_v49 = vld [vmem:[#allocation2 + $0x48] sm:$0xff]   ;;  %v20976_v55 = vld [vmem:[#allocation2 + $0xc0] sm:$0xff]  }
 0x385   : > { %9501 = vrot.lane.b32.xlu0 %v9382_v58, %s16826_s8  ;;  %12317 = vst.msk [vmem:[#allocation3 + $0x98] sm:$0xff] %vm2072_vm14, %v12231_v50  ;;  %v10700_v21 = vor.u32 %v10698_v32, %v10696_v31  ;;  %v20919_v38 = vld [vmem:[#allocation2 + $0xb8] sm:$0xff]   ;;  %v9829_v39 = vsel %vm2897_vm13, %v9826_v34, %v9828_v52  ;;  %8990 = vst.msk [vmem:[#allocation3 + $0x258] sm:$0xff] %vm2072_vm14, %v16655_v10  ;;  %v20938_v34 = vld [vmem:[#allocation2 + $0x50] sm:$0xff]   ;;  %v9397_v30 = vrot.slane %v9395_v57, 1  ;;  %v12234_v51 = vrot.slane %v16658_v49, 1 }
 0x386   : > { %6869 = vrot.lane.b32.xlu1 %v6580_v35, %s16826_s8  ;;  %9903 = vst.msk [vmem:[#allocation3 + $0x260] sm:$0xff] %vm2072_vm14, %v9829_v39  ;;  %v10704_v31 = vrot.slane %v10702_v14, 1  ;;  %v9399_v32 = vshrl.u32 %v20889_v18, 16  ;;  %v12236_v36 = vrot.slane %v20938_v34, 1  ;;  %v9407_v49 = vshrl.u32 %v20919_v38, 16 }
 0x387   : > { %6518 = vmatmul.mubr.bf16.gmra.mrb[176].mxu1 %v5592_v2  ;;  %v12374_v1 = vld [vmem:[#allocation3 + $0xf0] sm:$0xff] }
 0x388   : > { %15752 = vmatprep.mubr.msk.bf16.mxu1 %vm2072_vm14, %v12348_v6  ;;  %12960 = vmatmul.mubr.bf16.gmra.mrb[144].mxu0 %v12374_v1  ;;  %v6311_v59 = vpop.f32.mrb[72].mxu1  ;;  %v12358_v6 = vld [vmem:[#allocation3 + $0x70] sm:$0xff]  ;;  %v10705_v22 = vsel %vm2317_vm12, %v10700_v21, %v10704_v31  ;;  %v9393_v1 = vor.u32 %v9391_v29, %v9389_v43  ;;  %v12237_v18 = vsel %vm2897_vm13, %v12234_v51, %v12236_v36 }
 0x389   : > { %10168 = vrot.lane.b32.xlu0 %v16585_v13, %s16826_s8  ;;  %v9478_v37 = vpop.permute.xlu0 %9477  ;;  %v15830_v20 = vadd.f32 %v20761_v54, %v6311_v59  ;;  %v6313_v11 = vpop.f32.mrb[73].mxu1  ;;  %v16589_v13 = vld [vmem:[#allocation2 + $0xb4] sm:$0xff]   ;;  %10765 = vst.msk [vmem:[#allocation3 + $0x498] sm:$0xff] %vm2072_vm14, %v10705_v22  ;;  %v9403_v59 = vshll.u32 %v20919_v38, 16  ;;  %12320 = vst.msk [vmem:[#allocation3 + $0x110] sm:$0xff] %vm2072_vm14, %v12237_v18 }
 0x38a   : > { %9560 = vst.msk [vmem:[#allocation3 + $0x118] sm:$0xff] %vm2652_vm15, %v9478_v37  ;;  %v6314_v45 = vpop.f32.mrb[74].mxu1  ;;  %v9398_v57 = vsel %vm2317_vm12, %v9393_v1, %v9397_v30  ;;  %v16667_v1 = vld [vmem:[#allocation2 + $0x60] sm:$0xff]  }
 0x38b   : > { %v12380_v2 = vld [vmem:[#allocation3 + $0x120] sm:$0xff]  ;;  %v20922_v58 = vadd.f32 %v15830_v20, %v18678_v60  ;;  %v15831_v4 = vadd.f32 %v20761_v54, %v6314_v45  ;;  %v6316_v9 = vpop.f32.mrb[75].mxu1  ;;  %v12235_v20 = vsel %vm2897_vm13, %v12232_v41, %v12234_v51  ;;  %v9405_v31 = vrot.slane %v9403_v59, 1 }
 0x38c   : > { %12967 = vmatprep.mubr.bf16.mxu0 %v12380_v2  ;;  %12319 = vst.msk [vmem:[#allocation3 + $0xe8] sm:$0xff] %vm2072_vm14, %v12235_v20  ;;  %v12363_v14 = vld [vmem:[#allocation3 + $0x98] sm:$0xff] }
 0x38d   : > { %9503 = vrot.lane.b32.xlu0 %v9390_v27, %s16826_s8  ;;  %v10145_v60 = vpop.permute.xlu0 %10144  ;;  %v6588_v35 = vadd.f32 %v15831_v4, %v18695_v40  ;;  %v20942_v40 = vld [vmem:[#allocation2 + $0x88] sm:$0xff]  }
 0x38e   : > { %10226 = vst.msk [vmem:[#allocation3 + $0x148] sm:$0xff] %vm2652_vm15, %v10145_v60  ;;  %v9830_v10 = vrot.slane %v20942_v40, 1  ;;  %v12368_v27 = vld [vmem:[#allocation3 + $0xc0] sm:$0xff]  ;;  %v21013_v40 = vld [vmem:[#allocation2 + $0x98] sm:$0xff]  }
 0x38f   : > { %15753 = vmatmul.mubr.msk.bf16.vlgmr.msra.gmra.mrb[180].mxu1 %vm2072_vm14, %v12353_v47  ;;  %6873 = vrot.lane.b32.xlu1 %v6588_v35, %s16826_s8  ;;  %v16664_v47 = vld [vmem:[%s22595_s3 + $0xc0] sm:$0xff]  }
 0x390   : > { %15756 = vmatprep.mubr.msk.bf16.mxu1 %vm2072_vm14, %v12358_v6  ;;  %v6319_v5 = vpop.f32.mrb[76].mxu1  ;;  %v9831_v4 = vsel %vm2897_vm13, %v9828_v52, %v9830_v10  ;;  %v9401_v52 = vor.u32 %v9399_v32, %v9397_v30  ;;  %13169 = vmatpush1.bf16.msra.mxu0 %v16664_v47  ;;  %v9411_v30 = vshll.u32 %v20976_v55, 16  ;;  %v16668_v32 = vld [vmem:[#allocation2 + $0x90] sm:$0xff]   ;;  %v12378_v18 = vld [vmem:[#allocation3 + $0x110] sm:$0xff] }
 0x391   : > { %10170 = vrot.lane.b32.xlu0 %v16589_v13, %s16826_s8  ;;  %v11072_v50 = vpop.permute.xlu1 %11071  ;;  %v12379_v43 = vld [vmem:[#allocation3 + $0x118] sm:$0xff]  ;;  %v15832_v29 = vadd.f32 %v20761_v54, %v6319_v5  ;;  %v6321_v37 = vpop.f32.mrb[77].mxu1  ;;  %9904 = vst.msk [vmem:[#allocation3 + $0x288] sm:$0xff] %vm2072_vm14, %v9831_v4  ;;  %13170 = vmatprep.subr.bf16.mxu0 %v22767_v19 }
 0x392   : > { %11146 = vst.msk [vmem:[#allocation3 + $0x268] sm:$0xff] %vm2652_vm15, %v11072_v50  ;;  %12968 = vmatmul.mubr.bf16.gmra.mrb[148].mxu0 %v12379_v43  ;;  %v6322_v11 = vpop.f32.mrb[78].mxu1  ;;  %v16663_v13 = vld [vmem:[#allocation2 + $0x80] sm:$0xff]   ;;  %v9406_v59 = vsel %vm2317_vm12, %v9401_v52, %v9405_v31 }
 0x393   : > { %v20958_v2 = vadd.f32 %v15832_v29, %v18747_v26  ;;  %v15833_v45 = vadd.f32 %v20761_v54, %v6322_v11  ;;  %v6324_v21 = vpop.f32.mrb[79].mxu1  ;;  %8991 = vst.msk [vmem:[#allocation3 + $0x280] sm:$0xff] %vm2072_vm14, %v16663_v13  ;;  %v12373_v50 = vld [vmem:[#allocation3 + $0xe8] sm:$0xff]  ;;  %v12240_v29 = vrot.slane %v16667_v1, 1  ;;  %v16601_v37 = vld [vmem:[#allocation2 + $0xc4] sm:$0xff]   ;;  %v9415_v13 = vshrl.u32 %v20976_v55, 16 }
 0x395   : > { %9505 = vrot.lane.b32.xlu0 %v9398_v57, %s16826_s8  ;;  %v11074_v41 = vpop.permute.xlu1 %11073  ;;  %v12385_v26 = vld [vmem:[#allocation3 + $0x148] sm:$0xff]  ;;  %v6596_v39 = vadd.f32 %v15833_v45, %v18760_v33  ;;  %v9832_v57 = vrot.slane %v16668_v32, 1  ;;  %v16670_v45 = vld [vmem:[#allocation2 + $0x88] sm:$0xff]  }
 0x396   : > { %v9480_v9 = vpop.permute.xlu0 %9479  ;;  %11147 = vst.msk [vmem:[#allocation3 + $0x290] sm:$0xff] %vm2652_vm15, %v11074_v41  ;;  %12975 = vmatprep.mubr.bf16.mxu0 %v12385_v26  ;;  %v16666_v33 = vld [vmem:[#allocation2 + $0x58] sm:$0xff]   ;;  %v9409_v41 = vor.u32 %v9407_v49, %v9405_v31 }
 0x397   : > { %15757 = vmatmul.mubr.msk.bf16.gmra.mrb[184].mxu1 %vm2072_vm14, %v12363_v14  ;;  %9561 = vst.msk [vmem:[#allocation3 + $0x140] sm:$0xff] %vm2652_vm15, %v9480_v9  ;;  %6877 = vrot.lane.b32.xlu1 %v6596_v39, %s16826_s8  ;;  %v12238_v34 = vrot.slane %v16666_v33, 1  ;;  %v20998_v14 = vld [vmem:[#allocation2 + $0xc8] sm:$0xff]   ;;  %v21011_v39 = vld [vmem:[#allocation2 + $0x70] sm:$0xff]  }
 0x398   : > { %15760 = vmatprep.mubr.msk.bf16.mxu1 %vm2072_vm14, %v12368_v27  ;;  %v6327_v60 = vpop.f32.mrb[80].mxu1  ;;  %8992 = vst.msk [vmem:[#allocation3 + $0x2a8] sm:$0xff] %vm2072_vm14, %v16670_v45  ;;  %v9413_v27 = vrot.slane %v9411_v30, 1  ;;  %v16672_v9 = vld [vmem:[#allocation2 + $0x68] sm:$0xff]   ;;  %v9419_v33 = vshll.u32 %v20998_v14, 16 }
 0x399   : > { %10172 = vrot.lane.b32.xlu0 %v16594_v12, %s16826_s8  ;;  %v11076_v6 = vpop.permute.xlu1 %11075  ;;  %v15834_v22 = vadd.f32 %v20761_v54, %v6327_v60  ;;  %v6329_v51 = vpop.f32.mrb[81].mxu1  ;;  %v12239_v38 = vsel %vm2897_vm13, %v12236_v36, %v12238_v34  ;;  %v9833_v12 = vsel %vm2897_vm13, %v9830_v10, %v9832_v57  ;;  %v12242_v31 = vrot.slane %v16672_v9, 1 }
 0x39a   : > { %v10147_v35 = vpop.permute.xlu0 %10146  ;;  %11148 = vst.msk [vmem:[#allocation3 + $0x2b8] sm:$0xff] %vm2652_vm15, %v11076_v6  ;;  %v6330_v43 = vpop.f32.mrb[82].mxu1  ;;  %v9834_v6 = vrot.slane %v21013_v40, 1  ;;  %v9414_v49 = vsel %vm2317_vm12, %v9409_v41, %v9413_v27  ;;  %v16608_v51 = vld [vmem:[#allocation2 + $0xcc] sm:$0xff]  }
 0x39b   : > { %10227 = vst.msk [vmem:[#allocation3 + $0x170] sm:$0xff] %vm2652_vm15, %v10147_v35  ;;  %v20990_v5 = vadd.f32 %v15834_v22, %v18740_v46  ;;  %v15835_v20 = vadd.f32 %v20761_v54, %v6330_v43  ;;  %v6332_v11 = vpop.f32.mrb[83].mxu1  ;;  %v12241_v46 = vsel %vm2897_vm13, %v12238_v34, %v12240_v29  ;;  %v12244_v35 = vrot.slane %v21011_v39, 1 }
 0x39c   : > { %12321 = vst.msk [vmem:[#allocation3 + $0x138] sm:$0xff] %vm2072_vm14, %v12239_v38  ;;  %12322 = vst.msk [vmem:[#allocation3 + $0x160] sm:$0xff] %vm2072_vm14, %v12241_v46  ;;  %v12243_v30 = vsel %vm2897_vm13, %v12240_v29, %v12242_v31  ;;  %v16677_v29 = vld [vmem:[#allocation2 + $0x90] sm:$0xff]   ;;  %v9421_v11 = vrot.slane %v9419_v33, 1 }
 0x39d   : > { %9507 = vrot.lane.b32.xlu0 %v9406_v59, %s16826_s8  ;;  %v6604_v36 = vadd.f32 %v15835_v20, %v18752_v63  ;;  %9905 = vst.msk [vmem:[#allocation3 + $0x2b0] sm:$0xff] %vm2072_vm14, %v9833_v12  ;;  %12323 = vst.msk [vmem:[#allocation3 + $0x188] sm:$0xff] %vm2072_vm14, %v12243_v30  ;;  %v12245_v32 = vsel %vm2897_vm13, %v12242_v31, %v12244_v35  ;;  %v9835_v59 = vsel %vm2897_vm13, %v9832_v57, %v9834_v6 }
 0x39e   : > { %v12384_v21 = vld [vmem:[#allocation3 + $0x140] sm:$0xff]  ;;  %12324 = vst.msk [vmem:[#allocation3 + $0x1b0] sm:$0xff] %vm2072_vm14, %v12245_v32  ;;  %9906 = vst.msk [vmem:[#allocation3 + $0x2d8] sm:$0xff] %vm2072_vm14, %v9835_v59  ;;  %v9417_v20 = vor.u32 %v9415_v13, %v9413_v27 }
 0x39f   : > { %15761 = vmatmul.mubr.msk.bf16.gmra.mrb[188].mxu1 %vm2072_vm14, %v12373_v50  ;;  %12976 = vmatmul.mubr.bf16.gmra.mrb[152].mxu0 %v12384_v21  ;;  %8993 = vst.msk [vmem:[#allocation3 + $0x2d0] sm:$0xff] %vm2072_vm14, %v16677_v29  ;;  %v21049_v21 = vld [vmem:[#allocation2 + $0x80] sm:$0xff]   ;;  %v21083_v59 = vld [vmem:[#allocation2 + $0x90] sm:$0xff]  }
 0x3a0   : > { %15764 = vmatprep.mubr.msk.bf16.mxu1 %vm2072_vm14, %v12378_v18  ;;  %v11078_v4 = vpop.permute.xlu1 %11077  ;;  %6881 = vrot.lane.b32.xlu1 %v6604_v36, %s16826_s8  ;;  %v6335_v63 = vpop.f32.mrb[84].mxu1  ;;  %v21041_v18 = vld [vmem:[#allocation2 + $0xd0] sm:$0xff]   ;;  %v9422_v41 = vsel %vm2317_vm12, %v9417_v20, %v9421_v11 }
 0x3a1   : > { %10174 = vrot.lane.b32.xlu0 %v16601_v37, %s16826_s8  ;;  %v9482_v26 = vpop.permute.xlu0 %9481  ;;  %11149 = vst.msk [vmem:[#allocation3 + $0x2e0] sm:$0xff] %vm2652_vm15, %v11078_v4  ;;  %v15836_v47 = vadd.f32 %v20761_v54, %v6335_v63  ;;  %v6337_v52 = vpop.f32.mrb[85].mxu1  ;;  %v9423_v4 = vshrl.u32 %v20998_v14, 16  ;;  %v21055_v63 = vld [vmem:[#allocation2 + $0xa0] sm:$0xff]   ;;  %v9427_v39 = vshll.u32 %v21041_v18, 16  ;;  %v16614_v14 = vld [vmem:[#allocation2 + $0xd4] sm:$0xff]  }
 0x3a2   : > { %9562 = vst.msk [vmem:[#allocation3 + $0x168] sm:$0xff] %vm2652_vm15, %v9482_v26  ;;  %v12390_v10 = vld [vmem:[#allocation3 + $0x170] sm:$0xff]  ;;  %v6338_v60 = vpop.f32.mrb[86].mxu1  ;;  %v12248_v26 = vrot.slane %v21049_v21, 1  ;;  %v9431_v20 = vshrl.u32 %v21041_v18, 16 }
 0x3a3   : > { %12983 = vmatprep.mubr.bf16.mxu0 %v12390_v10  ;;  %v21023_v22 = vadd.f32 %v15836_v47, %v18810_v8  ;;  %v15837_v34 = vadd.f32 %v20761_v54, %v6338_v60  ;;  %v6340_v55 = vpop.f32.mrb[87].mxu1  ;;  %v12383_v1 = vld [vmem:[#allocation3 + $0x138] sm:$0xff]  ;;  %v12388_v38 = vld [vmem:[#allocation3 + $0x160] sm:$0xff]  ;;  %v16622_v18 = vld [vmem:[#allocation2 + $0xdc] sm:$0xff]  }
 0x3a4   : > { %v16676_v8 = vld [vmem:[%s22595_s3 + $0xc8] sm:$0xff]   ;;  %v12393_v52 = vld [vmem:[#allocation3 + $0x188] sm:$0xff] }
 0x3a5   : > { %9509 = vrot.lane.b32.xlu0 %v9414_v49, %s16826_s8  ;;  %v10149_v50 = vpop.permute.xlu0 %10148  ;;  %v6612_v43 = vadd.f32 %v15837_v34, %v18823_v53  ;;  %13171 = vmatpush1.bf16.msra.mxu0 %v16676_v8  ;;  %v16679_v53 = vld [vmem:[#allocation2 + $0x78] sm:$0xff]   ;;  %v9836_v34 = vrot.slane %v21055_v63, 1  ;;  %v21085_v8 = vld [vmem:[#allocation2 + $0xa8] sm:$0xff]  }
 0x3a6   : > { %10228 = vst.msk [vmem:[#allocation3 + $0x198] sm:$0xff] %vm2652_vm15, %v10149_v50  ;;  %13172 = vmatprep.subr.bf16.mxu0 %v22767_v19  ;;  %v12246_v12 = vrot.slane %v16679_v53, 1  ;;  %v12398_v60 = vld [vmem:[#allocation3 + $0x1b0] sm:$0xff]  ;;  %v16685_v50 = vld [vmem:[#allocation2 + $0x88] sm:$0xff]  }
 0x3a7   : > { %15765 = vmatmul.mubr.msk.bf16.gmra.mrb[192].mxu1 %vm2072_vm14, %v12383_v1  ;;  %v11080_v37 = vpop.permute.xlu1 %11079  ;;  %6885 = vrot.lane.b32.xlu1 %v6612_v43, %s16826_s8  ;;  %v21072_v1 = vld [vmem:[#allocation2 + $0xd8] sm:$0xff]   ;;  %v9837_v30 = vsel %vm2897_vm13, %v9834_v6, %v9836_v34  ;;  %v21090_v6 = vld [vmem:[%s22596_s4] ss:$0 sm:$0xff]  ;;  %v12250_v29 = vrot.slane %v16685_v50, 1 }
 0x3a8   : > { %15768 = vmatprep.mubr.msk.bf16.mxu1 %vm2072_vm14, %v12388_v38  ;;  %11150 = vst.msk [vmem:[#allocation3 + $0x308] sm:$0xff] %vm2652_vm15, %v11080_v37  ;;  %v6343_v45 = vpop.f32.mrb[88].mxu1  ;;  %v12247_v31 = vsel %vm2897_vm13, %v12244_v35, %v12246_v12  ;;  %v12249_v49 = vsel %vm2897_vm13, %v12246_v12, %v12248_v26 }
 0x3a9   : > { %10176 = vrot.lane.b32.xlu0 %v16608_v51, %s16826_s8  ;;  %v12389_v57 = vld [vmem:[#allocation3 + $0x168] sm:$0xff]  ;;  %v15838_v46 = vadd.f32 %v20761_v54, %v6343_v45  ;;  %v6345_v36 = vpop.f32.mrb[89].mxu1  ;;  %12325 = vst.msk [vmem:[#allocation3 + $0x1d8] sm:$0xff] %vm2072_vm14, %v12247_v31  ;;  %12326 = vst.msk [vmem:[#allocation3 + $0x200] sm:$0xff] %vm2072_vm14, %v12249_v49  ;;  %v9425_v51 = vor.u32 %v9423_v4, %v9421_v11  ;;  %v9435_v11 = vshll.u32 %v21072_v1, 16  ;;  %v9838_v45 = vrot.slane %v21085_v8, 1 }
 0x3aa   : > { %12984 = vmatmul.mubr.bf16.gmra.mrb[156].mxu0 %v12389_v57  ;;  %v6346_v9 = vpop.f32.mrb[90].mxu1  ;;  %9907 = vst.msk [vmem:[#allocation3 + $0x300] sm:$0xff] %vm2072_vm14, %v9837_v30  ;;  %v12252_v57 = vrot.slane %v21083_v59, 1  ;;  %v21130_v30 = vld [vmem:[#allocation2 + $0xb0] sm:$0xff]  }
 0x3ab   : > { %v9484_v27 = vpop.permute.xlu0 %9483  ;;  %v21060_v10 = vadd.f32 %v15838_v46, %v18799_v24  ;;  %v15839_v13 = vadd.f32 %v20761_v54, %v6346_v9  ;;  %v6348_v47 = vpop.f32.mrb[91].mxu1  ;;  %v16683_v54 = vld [vmem:[#allocation2 + $0x98] sm:$0xff]   ;;  %v9839_v63 = vsel %vm2897_vm13, %v9836_v34, %v9838_v45 }
 0x3ac   : > { %9563 = vst.msk [vmem:[#allocation3 + $0x190] sm:$0xff] %vm2652_vm15, %v9484_v27  ;;  %v12251_v27 = vsel %vm2897_vm13, %v12248_v26, %v12250_v29  ;;  %v12253_v9 = vsel %vm2897_vm13, %v12250_v29, %v12252_v57  ;;  %v16690_v26 = vld [vmem:[#allocation2 + $0xa0] sm:$0xff]  }
 0x3ad   : > { %9511 = vrot.lane.b32.xlu0 %v9422_v41, %s16826_s8  ;;  %v12395_v33 = vld [vmem:[#allocation3 + $0x198] sm:$0xff]  ;;  %v6620_v24 = vadd.f32 %v15839_v13, %v18815_v23  ;;  %v9429_v23 = vrot.slane %v9427_v39, 1  ;;  %8994 = vst.msk [vmem:[#allocation3 + $0x2f8] sm:$0xff] %vm2072_vm14, %v16683_v54  ;;  %12327 = vst.msk [vmem:[#allocation3 + $0x228] sm:$0xff] %vm2072_vm14, %v12251_v27 }
 0x3ae   : > { %12991 = vmatprep.mubr.bf16.mxu0 %v12395_v33  ;;  %12328 = vst.msk [vmem:[#allocation3 + $0x250] sm:$0xff] %vm2072_vm14, %v12253_v9  ;;  %9908 = vst.msk [vmem:[#allocation3 + $0x328] sm:$0xff] %vm2072_vm14, %v9839_v63  ;;  %v21118_v33 = vld [vmem:[#allocation2 + $0xe0] sm:$0xff]   ;;  %v21162_v63 = vld [vmem:[#allocation2 + $0xf0] ss:$0 sps:$4 sm:$0x11]  }
 0x3af   : > { %v11082_v55 = vpop.permute.xlu1 %11081  ;;  %15769 = vmatmul.mubr.msk.bf16.gmra.mrb[196].mxu1 %vm2072_vm14, %v12393_v52  ;;  %v10151_v35 = vpop.permute.xlu0 %10150  ;;  %6889 = vrot.lane.b32.xlu1 %v6620_v24, %s16826_s8  ;;  %v9430_v21 = vsel %vm2317_vm12, %v9425_v51, %v9429_v23  ;;  %v9433_v31 = vor.u32 %v9431_v20, %v9429_v23  ;;  %8995 = vst.msk [vmem:[#allocation3 + $0x320] sm:$0xff] %vm2072_vm14, %v16690_v26  ;;  %v9443_v50 = vshll.u32 %v21118_v33, 16  ;;  %v9447_v9 = vshrl.u32 %v21118_v33, 16 }
 0x3b0   : > { %11151 = vst.msk [vmem:[#allocation3 + $0x330] sm:$0xff] %vm2652_vm15, %v11082_v55  ;;  %15772 = vmatprep.mubr.msk.bf16.mxu1 %vm2072_vm14, %v12398_v60  ;;  %10229 = vst.msk [vmem:[#allocation3 + $0x1c0] sm:$0xff] %vm2652_vm15, %v10151_v35  ;;  %v6351_v32 = vpop.f32.mrb[92].mxu1  ;;  %v12403_v41 = vld [vmem:[#allocation3 + $0x1d8] sm:$0xff]  ;;  %v12408_v4 = vld [vmem:[#allocation3 + $0x200] sm:$0xff]  ;;  %v9439_v60 = vshrl.u32 %v21072_v1, 16 }
 0x3b1   : > { %10178 = vrot.lane.b32.xlu0 %v16614_v14, %s16826_s8  ;;  %v15840_v43 = vadd.f32 %v21090_v6, %v6351_v32  ;;  %v6353_v38 = vpop.f32.mrb[93].mxu1  ;;  %v9437_v14 = vrot.slane %v9435_v11, 1  ;;  %v21128_v35 = vld [vmem:[#allocation2 + $0xa0] sm:$0xff]   ;;  %v9840_v11 = vrot.slane %v21130_v30, 1 }
 0x3b2   : > { %v6354_v53 = vpop.f32.mrb[94].mxu1  ;;  %v12256_v29 = vrot.slane %v21128_v35, 1 }
 0x3b3   : > { %v11084_v40 = vpop.permute.xlu1 %11083  ;;  %v12394_v37 = vld [vmem:[#allocation3 + $0x190] sm:$0xff]  ;;  %v21100_v46 = vadd.f32 %v15840_v43, %v18892_v48  ;;  %v15841_v36 = vadd.f32 %v21090_v6, %v6354_v53  ;;  %v6356_v12 = vpop.f32.mrb[95].mxu1  ;;  %v16689_v48 = vld [vmem:[%s22595_s3 + $0xd0] sm:$0xff]   ;;  %v9438_v23 = vsel %vm2317_vm12, %v9433_v31, %v9437_v14  ;;  %v9841_v27 = vsel %vm2897_vm13, %v9838_v45, %v9840_v11 }
 0x3b4   : > { %11152 = vst.msk [vmem:[#allocation3 + $0x358] sm:$0xff] %vm2652_vm15, %v11084_v40  ;;  %12992 = vmatmul.mubr.bf16.gmra.mrb[160].mxu0 %v12394_v37  ;;  %v12413_v43 = vld [vmem:[#allocation3 + $0x228] sm:$0xff]  ;;  %v16629_v37 = vld [vmem:[#allocation2 + $0xe4] sm:$0xff]  }
 0x3b5   : > { %9513 = vrot.lane.b32.xlu0 %v9430_v21, %s16826_s8  ;;  %v6628_v13 = vadd.f32 %v15841_v36, %v18907_v0  ;;  %13173 = vmatpush1.bf16.msra.mxu0 %v16689_v48  ;;  %v16692_v0 = vld [vmem:[#allocation2 + $0x98] sm:$0xff]   ;;  %v16696_v36 = vld [vmem:[#allocation2 + $0xa8] sm:$0xff]   ;;  %9909 = vst.msk [vmem:[#allocation3 + $0x350] sm:$0xff] %vm2072_vm14, %v9841_v27  ;;  %v21164_v45 = vld [vmem:[#allocation2 + $0xb0] sm:$0xff]  }
 0x3b6   : > { %13174 = vmatprep.subr.bf16.mxu0 %v22767_v19  ;;  %v12254_v54 = vrot.slane %v16692_v0, 1  ;;  %v12418_v20 = vld [vmem:[#allocation3 + $0x250] sm:$0xff]  ;;  %8996 = vst.msk [vmem:[#allocation3 + $0x348] sm:$0xff] %vm2072_vm14, %v16696_v36  ;;  %v12260_v33 = vrot.slane %v21164_v45, 1 }
 0x3b7   : > { %v11086_v39 = vpop.permute.xlu1 %11085  ;;  %15773 = vmatmul.mubr.msk.bf16.gmra.mrb[200].mxu1 %vm2072_vm14, %v12403_v41  ;;  %v9486_v47 = vpop.permute.xlu0 %9485  ;;  %v12400_v52 = vld [vmem:[#allocation3 + $0x1c0] sm:$0xff]  ;;  %6893 = vrot.lane.b32.xlu1 %v6628_v13, %s16826_s8  ;;  %v21166_v48 = vld [vmem:[#allocation2 + $0xb8] sm:$0xff]  }
 0x3b8   : > { %11153 = vst.msk [vmem:[#allocation3 + $0x380] sm:$0xff] %vm2652_vm15, %v11086_v39  ;;  %15776 = vmatprep.mubr.msk.bf16.mxu1 %vm2072_vm14, %v12408_v4  ;;  %9564 = vst.msk [vmem:[#allocation3 + $0x1b8] sm:$0xff] %vm2652_vm15, %v9486_v47  ;;  %12999 = vmatprep.mubr.bf16.mxu0 %v12400_v52  ;;  %v6359_v49 = vpop.f32.mrb[96].mxu1  ;;  %v12255_v38 = vsel %vm2897_vm13, %v12252_v57, %v12254_v54  ;;  %v12257_v21 = vsel %vm2897_vm13, %v12254_v54, %v12256_v29  ;;  %v21149_v41 = vld [vmem:[#allocation2 + $0xe8] sm:$0xff]  }
 0x3b9   : > { %10180 = vrot.lane.b32.xlu0 %v16622_v18, %s16826_s8  ;;  %v15842_v55 = vadd.f32 %v21090_v6, %v6359_v49  ;;  %v6361_v24 = vpop.f32.mrb[97].mxu1  ;;  %12329 = vst.msk [vmem:[#allocation3 + $0x278] sm:$0xff] %vm2072_vm14, %v12255_v38  ;;  %12330 = vst.msk [vmem:[#allocation3 + $0x2a0] sm:$0xff] %vm2072_vm14, %v12257_v21  ;;  %v9445_v18 = vrot.slane %v9443_v50, 1  ;;  %v16698_v4 = vld [vmem:[#allocation2 + $0xa8] sm:$0xff]   ;;  %v16701_v49 = vld [vmem:[%s22595_s3 + $0xd8] sm:$0xff]  }
 0x3ba   : > { %v6362_v1 = vpop.f32.mrb[98].mxu1  ;;  %v12258_v47 = vrot.slane %v16698_v4, 1  ;;  %13175 = vmatpush1.bf16.msra.mxu0 %v16701_v49  ;;  %v21196_v21 = vld [vmem:[#allocation2 + $0x18] sm:$0xff]   ;;  %v9455_v36 = vshrl.u32 %v21149_v41, 16 }
 0x3bb   : > { %v11088_v34 = vpop.permute.xlu1 %11087  ;;  %v10153_v51 = vpop.permute.xlu0 %10152  ;;  %v21137_v32 = vadd.f32 %v15842_v55, %v18879_v16  ;;  %v15843_v59 = vadd.f32 %v21090_v6, %v6362_v1  ;;  %v22957_v55 = vld [vmem:[#allocation66_spill] sm:$0xff]  ;;  %13176 = vmatprep.subr.bf16.mxu0 %v22767_v19 }
 0x3bc   : > { %11154 = vst.msk [vmem:[#allocation3 + $0x3a8] sm:$0xff] %vm2652_vm15, %v11088_v34  ;;  %10230 = vst.msk [vmem:[#allocation3 + $0x1e8] sm:$0xff] %vm2652_vm15, %v10153_v51  ;;  %v6364_v40 = vpop.f32.mrb[99].mxu1  ;;  %v12259_v30 = vsel %vm2897_vm13, %v12256_v29, %v12258_v47  ;;  %v16640_v51 = vld [vmem:[#allocation2 + $0xec] sm:$0xff]   ;;  %v12261_v50 = vsel %vm2897_vm13, %v12258_v47, %v12260_v33 }
 0x3bd   : > { %9515 = vrot.lane.b32.xlu0 %v9438_v23, %s16826_s8  ;;  %v6636_v16 = vadd.f32 %v15843_v59, %v18900_v25  ;;  %v9441_v25 = vor.u32 %v9439_v60, %v9437_v14  ;;  %v9451_v14 = vshll.u32 %v21149_v41, 16  ;;  %v9842_v60 = vrot.slane %v21166_v48, 1  ;;  %12331 = vst.msk [vmem:[#allocation3 + $0x2c8] sm:$0xff] %vm2072_vm14, %v12259_v30  ;;  %v22958_v40 = vld [vmem:[#allocation68_spill] sm:$0xff]  ;;  %12332 = vst.msk [vmem:[#allocation3 + $0x2f0] sm:$0xff] %vm2072_vm14, %v12261_v50  ;;  %v16703_v29 = vld [vmem:[#allocation2 + $0xb0] sm:$0xff]  }
 0x3be   : > { %8997 = vst.msk [vmem:[#allocation3 + $0x370] sm:$0xff] %vm2072_vm14, %v16703_v29 }
 0x3bf   : > { %v11090_v53 = vpop.permute.xlu1 %11089  ;;  %15777 = vmatmul.mubr.msk.bf16.gmra.mrb[204].mxu1 %vm2072_vm14, %v12413_v43  ;;  %v9488_v12 = vpop.permute.xlu0 %9487  ;;  %v12399_v57 = vld [vmem:[#allocation3 + $0x1b8] sm:$0xff]  ;;  %6897 = vrot.lane.b32.xlu1 %v6636_v16, %s16826_s8  ;;  %v9446_v34 = vsel %vm2317_vm12, %v9441_v25, %v9445_v18  ;;  %v9843_v1 = vsel %vm2897_vm13, %v9840_v11, %v9842_v60  ;;  %v9453_v11 = vrot.slane %v9451_v14, 1  ;;  %v9459_v16 = vshll.u32 %v21162_v63, 16 }
 0x3c0   : > { %11155 = vst.msk [vmem:[#allocation3 + $0x3d0] sm:$0xff] %vm2652_vm15, %v11090_v53  ;;  %15780 = vmatprep.mubr.msk.bf16.mxu1 %vm2072_vm14, %v12418_v20  ;;  %9565 = vst.msk [vmem:[#allocation3 + $0x1e0] sm:$0xff] %vm2652_vm15, %v9488_v12  ;;  %13000 = vmatmul.mubr.bf16.gmra.mrb[164].mxu0 %v12399_v57  ;;  %v6367_v8 = vpop.f32.mrb[100].mxu1  ;;  %v12423_v23 = vld [vmem:[#allocation3 + $0x278] sm:$0xff]  ;;  %v12428_v38 = vld [vmem:[#allocation3 + $0x2a0] sm:$0xff]  ;;  %v9449_v53 = vor.u32 %v9447_v9, %v9445_v18 }
 0x3c1   : > { %10182 = vrot.lane.b32.xlu0 %v16629_v37, %s16826_s8  ;;  %v15844_v13 = vadd.f32 %v21090_v6, %v6367_v8  ;;  %v6369_v26 = vpop.f32.mrb[101].mxu1  ;;  %9910 = vst.msk [vmem:[#allocation3 + $0x378] sm:$0xff] %vm2072_vm14, %v9843_v1  ;;  %v16705_v12 = vld [vmem:[#allocation2 + $0xb8] sm:$0xff]   ;;  %v21204_v57 = vld [vmem:[#allocation2 + $0x20] sm:$0xff]  }
 0x3c2   : > { %v6370_v0 = vpop.f32.mrb[102].mxu1  ;;  %v12262_v9 = vrot.slane %v16705_v12, 1  ;;  %v16706_v63 = vld [vmem:[#allocation2 + $0xc0] sm:$0xff]   ;;  %v11648_v26 = vshll.u32 %v21196_v21, 16  ;;  %v22960_v1 = vld [vmem:[#allocation67_spill] sm:$0xff] }
 0x3c3   : > { %v11092_v39 = vpop.permute.xlu1 %11091  ;;  %v10155_v52 = vpop.permute.xlu0 %10154  ;;  %v12405_v31 = vld [vmem:[#allocation3 + $0x1e8] sm:$0xff]  ;;  %v21179_v24 = vadd.f32 %v15844_v13, %v22957_v55  ;;  %v15845_v54 = vadd.f32 %v21090_v6, %v6370_v0  ;;  %v21207_v8 = vld [vmem:[#allocation2 + $0xc0] sm:$0xff]   ;;  %v9461_v13 = vrot.slane %v9459_v16, 1  ;;  %v21239_v16 = vld [vmem:[#allocation2 + $0x28] sm:$0xff]  }
 0x3c4   : > { %11156 = vst.msk [vmem:[#allocation3 + $0x3f8] sm:$0xff] %vm2652_vm15, %v11092_v39  ;;  %10231 = vst.msk [vmem:[#allocation3 + $0x210] sm:$0xff] %vm2652_vm15, %v10155_v52  ;;  %13007 = vmatprep.mubr.bf16.mxu0 %v12405_v31  ;;  %v6372_v35 = vpop.f32.mrb[103].mxu1  ;;  %v9454_v39 = vsel %vm2317_vm12, %v9449_v53, %v9453_v11  ;;  %v22959_v52 = vld [vmem:[#allocation65_spill] sm:$0xff]  ;;  %v12263_v49 = vsel %vm2897_vm13, %v12260_v33, %v12262_v9  ;;  %v16709_v55 = vld [vmem:[#allocation2 + $0xb8] sm:$0xff]   ;;  %v11650_v29 = vrot.slane %v11648_v26, 1 }
 0x3c5   : > { %9517 = vrot.lane.b32.xlu0 %v9446_v34, %s16826_s8  ;;  %v6644_v43 = vadd.f32 %v15845_v54, %v22958_v40  ;;  %v12264_v34 = vrot.slane %v16706_v63, 1  ;;  %v16649_v54 = vld [vmem:[#allocation2 + $0xf4] sm:$0xff]   ;;  %v11646_v35 = vshrl.u32 %v21196_v21, 16  ;;  %12333 = vst.msk [vmem:[#allocation3 + $0x318] sm:$0xff] %vm2072_vm14, %v12263_v49  ;;  %8998 = vst.msk [vmem:[#allocation3 + $0x398] sm:$0xff] %vm2072_vm14, %v16709_v55  ;;  %v16711_v53 = vld [vmem:[#allocation2 + $0xc8] sm:$0xff]  }
 0x3c6   : > { %v12433_v30 = vld [vmem:[#allocation3 + $0x2c8] sm:$0xff] }
 0x3c7   : > { %v11094_v59 = vpop.permute.xlu1 %11093  ;;  %15781 = vmatmul.mubr.msk.bf16.gmra.mrb[208].mxu1 %vm2072_vm14, %v12423_v23  ;;  %v9490_v37 = vpop.permute.xlu0 %9489  ;;  %v12404_v20 = vld [vmem:[#allocation3 + $0x1e0] sm:$0xff]  ;;  %6901 = vrot.lane.b32.xlu1 %v6644_v43, %s16826_s8  ;;  %v9844_v23 = vrot.slane %v21207_v8, 1  ;;  %v12265_v33 = vsel %vm2897_vm13, %v12262_v9, %v12264_v34 }
 0x3c8   : > { %11157 = vst.msk [vmem:[#allocation3 + $0x420] sm:$0xff] %vm2652_vm15, %v11094_v59  ;;  %15784 = vmatprep.mubr.msk.bf16.mxu1 %vm2072_vm14, %v12428_v38  ;;  %9566 = vst.msk [vmem:[#allocation3 + $0x208] sm:$0xff] %vm2652_vm15, %v9490_v37  ;;  %13008 = vmatmul.mubr.bf16.gmra.mrb[168].mxu0 %v12404_v20  ;;  %v6375_v27 = vpop.f32.mrb[104].mxu1  ;;  %v9457_v38 = vor.u32 %v9455_v36, %v9453_v11  ;;  %v11653_v37 = vshll.u32 %v21204_v57, 16  ;;  %v21237_v11 = vld [vmem:[#allocation2 + $0x14] sm:$0xff]   ;;  %v12266_v36 = vrot.slane %v16711_v53, 1 }
 0x3c9   : > { %10184 = vrot.lane.b32.xlu0 %v16640_v51, %s16826_s8  ;;  %v15846_v18 = vadd.f32 %v21090_v6, %v6375_v27  ;;  %v6377_v4 = vpop.f32.mrb[105].mxu1  ;;  %v12438_v51 = vld [vmem:[#allocation3 + $0x2f0] sm:$0xff]  ;;  %12334 = vst.msk [vmem:[#allocation3 + $0x340] sm:$0xff] %vm2072_vm14, %v12265_v33  ;;  %v9845_v20 = vsel %vm2897_vm13, %v9842_v60, %v9844_v23  ;;  %v21241_v12 = vld [vmem:[#allocation2 + $0xd0] sm:$0xff]  }
 0x3ca   : > { %v6378_v47 = vpop.f32.mrb[106].mxu1  ;;  %9911 = vst.msk [vmem:[#allocation3 + $0x3a0] sm:$0xff] %vm2072_vm14, %v9845_v20  ;;  %v21243_v60 = vld [vmem:[#allocation2 + $0xc] sm:$0xfe]   ;;  %v9462_v63 = vsel %vm2317_vm12, %v9457_v38, %v9461_v13  ;;  %v11655_v26 = vrot.slane %v11653_v37, 1  ;;  %v11657_v38 = vshrl.u32 %v21204_v57, 16 }
 0x3cb   : > { %v11096_v25 = vpop.permute.xlu1 %11095  ;;  %v10157_v45 = vpop.permute.xlu0 %10156  ;;  %v12410_v41 = vld [vmem:[#allocation3 + $0x210] sm:$0xff]  ;;  %v21214_v31 = vadd.f32 %v15846_v18, %v22959_v52  ;;  %v15847_v14 = vadd.f32 %v21090_v6, %v6378_v47  ;;  %v21246_v18 = vld [vmem:[#allocation2 + $0xc8] sm:$0xff]   ;;  %v21282_v53 = vld [vmem:[#allocation2 + $0xd0] sm:$0xff]  }
 0x3cc   : > { %11158 = vst.msk [vmem:[#allocation3 + $0x448] sm:$0xff] %vm2652_vm15, %v11096_v25  ;;  %10232 = vst.msk [vmem:[#allocation3 + $0x238] sm:$0xff] %vm2652_vm15, %v10157_v45  ;;  %13015 = vmatprep.mubr.bf16.mxu0 %v12410_v41  ;;  %v6380_v0 = vpop.f32.mrb[107].mxu1  ;;  %v12267_v45 = vsel %vm2897_vm13, %v12264_v34, %v12266_v36  ;;  %v12268_v41 = vrot.slane %v21241_v12, 1  ;;  %v22961_v47 = vld [vmem:[#allocation70_spill] sm:$0xff]  ;;  %v12443_v13 = vld [vmem:[#allocation3 + $0x318] sm:$0xff] }
 0x3cd   : > { %9519 = vrot.lane.b32.xlu0 %v9454_v39, %s16826_s8  ;;  %v6652_v59 = vadd.f32 %v15847_v14, %v22960_v1  ;;  %v16714_v39 = vld [vmem:[%s22595_s3 + $0xe0] sm:$0xff]   ;;  %12335 = vst.msk [vmem:[#allocation3 + $0x368] sm:$0xff] %vm2072_vm14, %v12267_v45  ;;  %v9846_v49 = vrot.slane %v21246_v18, 1  ;;  %v11661_v34 = vshll.u32 %v21239_v16, 16 }
 0x3ce   : > { %v12269_v55 = vsel %vm2897_vm13, %v12266_v36, %v12268_v41  ;;  %13177 = vmatpush1.bf16.msra.mxu0 %v16714_v39  ;;  %v21280_v20 = vld [vmem:[#allocation2 + $0xe0] sm:$0xff]  }
 0x3cf   : > { %v11098_v50 = vpop.permute.xlu1 %11097  ;;  %15785 = vmatmul.mubr.msk.bf16.gmra.mrb[212].mxu1 %vm2072_vm14, %v12433_v30  ;;  %v9492_v40 = vpop.permute.xlu0 %9491  ;;  %v12409_v43 = vld [vmem:[#allocation3 + $0x208] sm:$0xff]  ;;  %6905 = vrot.lane.b32.xlu1 %v6652_v59, %s16826_s8  ;;  %v11651_v30 = vor.u32 %v11650_v29, %v11646_v35  ;;  %12336 = vst.msk [vmem:[#allocation3 + $0x390] sm:$0xff] %vm2072_vm14, %v12269_v55  ;;  %v9847_v59 = vsel %vm2897_vm13, %v9844_v23, %v9846_v49  ;;  %v10980_v23 = vrot.slane %v21243_v60, 1  ;;  %v11663_v37 = vrot.slane %v11661_v34, 1 }
 0x3d0   : > { %11159 = vst.msk [vmem:[#allocation3 + $0x470] sm:$0xff] %vm2652_vm15, %v11098_v50  ;;  %15788 = vmatprep.mubr.msk.bf16.mxu1 %vm2072_vm14, %v12438_v51  ;;  %9567 = vst.msk [vmem:[#allocation3 + $0x230] sm:$0xff] %vm2652_vm15, %v9492_v40  ;;  %13016 = vmatmul.mubr.bf16.gmra.mrb[172].mxu0 %v12409_v43  ;;  %v22962_v51 = vld [vmem:[#allocation72_spill] sm:$0xff]  ;;  %v12448_v1 = vld [vmem:[#allocation3 + $0x340] sm:$0xff]  ;;  %v10981_v43 = vrot.slane %v21237_v11, 1 }
 0x3d1   : > { %10186 = vrot.lane.b32.xlu0 %v16649_v54, %s16826_s8  ;;  %v6383_v21 = vpop.f32.mrb[108].mxu1  ;;  %v16716_v54 = vld [vmem:[#allocation2 + $0xc0] sm:$0xff]   ;;  %13178 = vmatprep.subr.bf16.mxu0 %v22767_v19  ;;  %9912 = vst.msk [vmem:[#allocation3 + $0x3c8] sm:$0xff] %vm2072_vm14, %v9847_v59  ;;  %v11656_v35 = vsel %vm2317_vm12, %v11651_v30, %v11655_v26  ;;  %v16718_v29 = vld [vmem:[#allocation2 + $0xd8] sm:$0xff]   ;;  %v21287_v60 = vld [vmem:[#allocation2 + $0x30] sm:$0xff]   ;;  %v11665_v30 = vshrl.u32 %v21239_v16, 16 }
 0x3d2   : > { %v15848_v27 = vadd.f32 %v21090_v6, %v6383_v21  ;;  %v6385_v25 = vpop.f32.mrb[109].mxu1  ;;  %8999 = vst.msk [vmem:[#allocation3 + $0x3c0] sm:$0xff] %vm2072_vm14, %v16716_v54  ;;  %v12270_v12 = vrot.slane %v16718_v29, 1  ;;  %v11659_v54 = vor.u32 %v11657_v38, %v11655_v26  ;;  %v16724_v26 = vld [vmem:[#allocation2 + $0xe8] sm:$0xff]   ;;  %v21321_v38 = vld [vmem:[#allocation2 + $0xf0] sm:$0xff]  }
 0x3d3   : > { %v11100_v48 = vpop.permute.xlu1 %11099  ;;  %v10159_v4 = vpop.permute.xlu0 %10158  ;;  %v12415_v9 = vld [vmem:[#allocation3 + $0x238] sm:$0xff]  ;;  %v21285_v25 = vld [vmem:[#allocation2 + $0x1c] sm:$0xff]  }
 0x3d4   : > { %11160 = vst.msk [vmem:[#allocation3 + $0x498] sm:$0xff] %vm2652_vm15, %v11100_v48  ;;  %v6386_v8 = vpop.f32.mrb[110].mxu1  ;;  %10233 = vst.msk [vmem:[#allocation3 + $0x260] sm:$0xff] %vm2652_vm15, %v10159_v4  ;;  %13023 = vmatprep.mubr.bf16.mxu0 %v12415_v9  ;;  %v21257_v52 = vadd.f32 %v15848_v27, %v22961_v47  ;;  %v12272_v4 = vrot.slane %v21280_v20, 1  ;;  %v9848_v9 = vrot.slane %v21282_v53, 1  ;;  %v11664_v16 = vsel %vm2317_vm12, %v11659_v54, %v11663_v37  ;;  %v21371_v53 = vld [vmem:[#allocation2 + $0xe0] sm:$0xff]  }
 0x3d5   : > { %v15849_v14 = vadd.f32 %v21090_v6, %v6386_v8  ;;  %v6388_v0 = vpop.f32.mrb[111].mxu1  ;;  %9521 = vrot.lane.b32.xlu0 %v9462_v63, %s16826_s8  ;;  %v10982_v63 = vsel %vm2897_vm13, %v10980_v23, %v10981_v43  ;;  %v22963_v8 = vld [vmem:[#allocation69_spill] sm:$0xff]  ;;  %v12274_v20 = vrot.slane %v16724_v26, 1 }
 0x3d6   : > { %v12271_v0 = vsel %vm2897_vm13, %v12268_v41, %v12270_v12  ;;  %v12273_v34 = vsel %vm2897_vm13, %v12270_v12, %v12272_v4  ;;  %v9849_v55 = vsel %vm2897_vm13, %v9846_v49, %v9848_v9  ;;  %v16722_v41 = vld [vmem:[#allocation2 + $0xc8] sm:$0xff]  }
 0x3d7   : > { %v6660_v50 = vadd.f32 %v15849_v14, %v22962_v51  ;;  %15789 = vmatmul.mubr.msk.bf16.gmra.mrb[216].mxu1 %vm2072_vm14, %v12443_v13  ;;  %v9494_v33 = vpop.permute.xlu0 %9493  ;;  %v12414_v40 = vld [vmem:[#allocation3 + $0x230] sm:$0xff]  ;;  %v12453_v14 = vld [vmem:[#allocation3 + $0x368] sm:$0xff]  ;;  %12337 = vst.msk [vmem:[#allocation3 + $0x3b8] sm:$0xff] %vm2072_vm14, %v12271_v0  ;;  %12338 = vst.msk [vmem:[#allocation3 + $0x3e0] sm:$0xff] %vm2072_vm14, %v12273_v34 }
 0x3d8   : > { %15792 = vmatprep.mubr.msk.bf16.mxu1 %vm2072_vm14, %v12448_v1  ;;  %9568 = vst.msk [vmem:[#allocation3 + $0x258] sm:$0xff] %vm2652_vm15, %v9494_v33  ;;  %13024 = vmatmul.mubr.bf16.gmra.mrb[176].mxu0 %v12414_v40  ;;  %v12458_v13 = vld [vmem:[#allocation3 + $0x390] sm:$0xff]  ;;  %v22964_v51 = vld [vmem:[#allocation71_spill] sm:$0xff]  ;;  %v10983_v33 = vrot.slane %v21285_v25, 1  ;;  %v11669_v40 = vshll.u32 %v21287_v60, 16  ;;  %v16726_v23 = vld [vmem:[%s22595_s3 + $0xe8] sm:$0xff]  }
 0x3d9   : > { %6909 = vrot.lane.b32.xlu1 %v6660_v50, %s16826_s8  ;;  %11889 = vrot.lane.b32.xlu0 %v11656_v35, %s16826_s8  ;;  %v6391_v57 = vpop.f32.mrb[112].mxu1  ;;  %9913 = vst.msk [vmem:[#allocation3 + $0x3f0] sm:$0xff] %vm2072_vm14, %v9849_v55  ;;  %v21313_v35 = vld [vmem:[#allocation2 + $0x24] sm:$0xff]   ;;  %9000 = vst.msk [vmem:[#allocation3 + $0x3e8] sm:$0xff] %vm2072_vm14, %v16722_v41  ;;  %v9852_v25 = vrot.slane %v21371_v53, 1 }
 0x3da   : > { %v15850_v21 = vadd.f32 %v21090_v6, %v6391_v57  ;;  %v6393_v36 = vpop.f32.mrb[113].mxu1  ;;  %v10984_v12 = vsel %vm2897_vm13, %v10981_v43, %v10983_v33  ;;  %13179 = vmatpush1.bf16.msra.mxu0 %v16726_v23 }
 0x3db   : > { %v10161_v48 = vpop.permute.xlu0 %10160  ;;  %v12420_v27 = vld [vmem:[#allocation3 + $0x260] sm:$0xff]  ;;  %v6394_v18 = vpop.f32.mrb[114].mxu1  ;;  %13180 = vmatprep.subr.bf16.mxu0 %v22767_v19 }
 0x3dc   : > { %10234 = vst.msk [vmem:[#allocation3 + $0x288] sm:$0xff] %vm2652_vm15, %v10161_v48  ;;  %13031 = vmatprep.mubr.bf16.mxu0 %v12420_v27  ;;  %v21296_v45 = vadd.f32 %v15850_v21, %v22963_v8  ;;  %v15851_v39 = vadd.f32 %v21090_v6, %v6394_v18  ;;  %v6396_v47 = vpop.f32.mrb[115].mxu1  ;;  %v11667_v48 = vor.u32 %v11665_v30, %v11663_v37  ;;  %v11671_v27 = vrot.slane %v11669_v40, 1  ;;  %v21332_v18 = vld [vmem:[#allocation2 + $0x38] sm:$0xff]   ;;  %v16729_v30 = vld [vmem:[#allocation2 + $0xd0] sm:$0xff]  }
 0x3dd   : > { %11041 = vrot.lane.b32.xlu0 %v10982_v63, %s16826_s8  ;;  %v12276_v8 = vrot.slane %v21321_v38, 1  ;;  %v22965_v47 = vld [vmem:[#allocation74_spill] sm:$0xff]  ;;  %v12275_v37 = vsel %vm2897_vm13, %v12272_v4, %v12274_v20  ;;  %9001 = vst.msk [vmem:[#allocation3 + $0x410] sm:$0xff] %vm2072_vm14, %v16729_v30 }
 0x3de   : > { %v6668_v50 = vadd.f32 %v15851_v39, %v22964_v51  ;;  %v21335_v39 = vld [vmem:[#allocation2 + $0xd8] sm:$0xff]   ;;  %v12463_v43 = vld [vmem:[#allocation3 + $0x3b8] sm:$0xff]  ;;  %v12468_v34 = vld [vmem:[#allocation3 + $0x3e0] sm:$0xff]  ;;  %12339 = vst.msk [vmem:[#allocation3 + $0x408] sm:$0xff] %vm2072_vm14, %v12275_v37 }
 0x3df   : > { %15793 = vmatmul.mubr.msk.bf16.gmra.mrb[220].mxu1 %vm2072_vm14, %v12453_v14  ;;  %v9496_v1 = vpop.permute.xlu0 %9495  ;;  %v12419_v59 = vld [vmem:[#allocation3 + $0x258] sm:$0xff]  ;;  %v12277_v55 = vsel %vm2897_vm13, %v12274_v20, %v12276_v8  ;;  %v9850_v54 = vrot.slane %v21335_v39, 1  ;;  %v22966_v51 = vld [vmem:[#allocation76_spill] sm:$0xff] }
 0x3e0   : > { %15796 = vmatprep.mubr.msk.bf16.mxu1 %vm2072_vm14, %v12458_v13  ;;  %9569 = vst.msk [vmem:[#allocation3 + $0x280] sm:$0xff] %vm2652_vm15, %v9496_v1  ;;  %13032 = vmatmul.mubr.bf16.gmra.mrb[180].mxu0 %v12419_v59  ;;  %v10985_v13 = vrot.slane %v21313_v35, 1  ;;  %v11673_v1 = vshrl.u32 %v21287_v60, 16  ;;  %v11677_v59 = vshll.u32 %v21332_v18, 16  ;;  %v16731_v60 = vld [vmem:[#allocation2 + $0xf8] sm:$0xff]  }
 0x3e1   : > { %6913 = vrot.lane.b32.xlu1 %v6668_v50, %s16826_s8  ;;  %11891 = vrot.lane.b32.xlu0 %v11664_v16, %s16826_s8  ;;  %12340 = vst.msk [vmem:[#allocation3 + $0x430] sm:$0xff] %vm2072_vm14, %v12277_v55  ;;  %v9851_v40 = vsel %vm2897_vm13, %v9848_v9, %v9850_v54  ;;  %v11672_v16 = vsel %vm2317_vm12, %v11667_v48, %v11671_v27  ;;  %v22967_v48 = vld [vmem:[#allocation4_spill] sm:$0xff] }
 0x3e2   : > { %v6399_v49 = vpop.f32.mrb[116].mxu1  ;;  %9914 = vst.msk [vmem:[#allocation3 + $0x418] sm:$0xff] %vm2072_vm14, %v9851_v40  ;;  %v10986_v9 = vsel %vm2897_vm13, %v10983_v33, %v10985_v13  ;;  %v21385_v33 = vld [vmem:[#allocation2 + $0x40] sm:$0xff]  }
 0x3e3   : > { %v15852_v29 = vadd.f32 %v21090_v6, %v6399_v49  ;;  %v6401_v57 = vpop.f32.mrb[117].mxu1  ;;  %v10163_v21 = vpop.permute.xlu0 %10162  ;;  %v12425_v36 = vld [vmem:[#allocation3 + $0x288] sm:$0xff]  ;;  %v11685_v53 = vshll.u32 %v21385_v33, 16 }
 0x3e4   : > { %v6402_v63 = vpop.f32.mrb[118].mxu1  ;;  %10235 = vst.msk [vmem:[#allocation3 + $0x2b0] sm:$0xff] %vm2652_vm15, %v10163_v21  ;;  %13039 = vmatprep.mubr.bf16.mxu0 %v12425_v36  ;;  %v11675_v21 = vor.u32 %v11673_v1, %v11671_v27  ;;  %v11679_v36 = vrot.slane %v11677_v59, 1  ;;  %v16736_v1 = vld [vmem:[%s22595_s3 + $0xf0] sm:$0xff]  }
 0x3e5   : > { %v21339_v14 = vadd.f32 %v15852_v29, %v22965_v47  ;;  %v15853_v11 = vadd.f32 %v21090_v6, %v6402_v63  ;;  %v6404_v0 = vpop.f32.mrb[119].mxu1  ;;  %11043 = vrot.lane.b32.xlu0 %v10984_v12, %s16826_s8  ;;  %v12278_v29 = vrot.slane %v16731_v60, 1  ;;  %v21379_v12 = vld [vmem:[#allocation2 + $0x2c] sm:$0xff]   ;;  %v16734_v47 = vld [vmem:[#allocation2 + $0xd8] sm:$0xff]   ;;  %13181 = vmatpush1.bf16.msra.mxu0 %v16736_v1 }
 0x3e6   : > { %9002 = vst.msk [vmem:[#allocation3 + $0x438] sm:$0xff] %vm2072_vm14, %v16734_v47  ;;  %v11680_v60 = vsel %vm2317_vm12, %v11675_v21, %v11679_v36  ;;  %13182 = vmatprep.subr.bf16.mxu0 %v22767_v19 }
 0x3e7   : > { %v6676_v50 = vadd.f32 %v15853_v11, %v22966_v51  ;;  %15797 = vmatmul.mubr.msk.bf16.gmra.mrb[224].mxu1 %vm2072_vm14, %v12463_v43  ;;  %v9498_v4 = vpop.permute.xlu0 %9497  ;;  %v12424_v41 = vld [vmem:[#allocation3 + $0x280] sm:$0xff]  ;;  %v22968_v11 = vld [vmem:[#allocation73_spill] sm:$0xff]  ;;  %v12279_v37 = vsel %vm2897_vm13, %v12276_v8, %v12278_v29  ;;  %v12473_v51 = vld [vmem:[#allocation3 + $0x408] sm:$0xff] }
 0x3e8   : > { %15800 = vmatprep.mubr.msk.bf16.mxu1 %vm2072_vm14, %v12468_v34  ;;  %9570 = vst.msk [vmem:[#allocation3 + $0x2a8] sm:$0xff] %vm2652_vm15, %v9498_v4  ;;  %13040 = vmatmul.mubr.bf16.gmra.mrb[184].mxu0 %v12424_v41  ;;  %v22969_v34 = vld [vmem:[#allocation64_spill] sm:$0xff]  ;;  %v22971_v4 = vld [vmem:[#allocation75_spill] sm:$0xff] }
 0x3e9   : > { %6917 = vrot.lane.b32.xlu1 %v6676_v50, %s16826_s8  ;;  %11893 = vrot.lane.b32.xlu0 %v11672_v16, %s16826_s8  ;;  %v6862_v23 = vpop.permute.xlu1 %6861  ;;  %v22970_v55 = vrot.slane %v22969_v34, 1  ;;  %12341 = vst.msk [vmem:[#allocation3 + $0x458] sm:$0xff] %vm2072_vm14, %v12279_v37  ;;  %v9853_v50 = vsel %vm2897_vm13, %v9850_v54, %v9852_v25  ;;  %v12478_v8 = vld [vmem:[#allocation3 + $0x430] sm:$0xff]  ;;  %v11681_v16 = vshrl.u32 %v21332_v18, 16  ;;  %v16737_v54 = vld [vmem:[#allocation2 + $0xe8] sm:$0xff]   ;;  %v21415_v18 = vld [vmem:[#allocation2 + $0x34] sm:$0xff]  }
 0x3ea   : > { %v6407_v26 = vpop.f32.mrb[120].mxu1  ;;  %v7040_v63 = vsel %vm2072_vm14, %v22967_v48, %v6862_v23  ;;  %9915 = vst.msk [vmem:[#allocation3 + $0x440] sm:$0xff] %vm2072_vm14, %v9853_v50  ;;  %v21437_v37 = vld [vmem:[%s22596_s4] ss:$0 sm:$0xff] }
 0x3eb   : > { %v15854_v49 = vadd.f32 %v21090_v6, %v6407_v26  ;;  %v6409_v38 = vpop.f32.mrb[121].mxu1  ;;  %v10165_v57 = vpop.permute.xlu0 %10164  ;;  %v12430_v20 = vld [vmem:[#allocation3 + $0x2b0] sm:$0xff]  ;;  %7100 = vst [vmem:[%s21369_s26 + $0x8] sm:$0xff] %v7040_v63  ;;  %v12281_v30 = vsel %vm2897_vm13, %v12278_v29, %v22970_v55  ;;  %v10987_v26 = vrot.slane %v21379_v12, 1  ;;  %v11683_v48 = vor.u32 %v11681_v16, %v11679_v36  ;;  %v21419_v63 = vld [vmem:[#allocation2 + $0x48] sm:$0xff]  }
 0x3ec   : > { %v6410_v39 = vpop.f32.mrb[122].mxu1  ;;  %10236 = vst.msk [vmem:[#allocation3 + $0x2d8] sm:$0xff] %vm2652_vm15, %v10165_v57  ;;  %13047 = vmatprep.mubr.bf16.mxu0 %v12430_v20  ;;  %v16739_v57 = vld [vmem:[#allocation2 + $0xe0] sm:$0xff]   ;;  %v10989_v55 = vrot.slane %v21415_v18, 1  ;;  %v11689_v16 = vshrl.u32 %v21385_v33, 16 }
 0x3ed   : > { %v21388_v0 = vadd.f32 %v15854_v49, %v22968_v11  ;;  %v15855_v27 = vadd.f32 %v21090_v6, %v6410_v39  ;;  %v6412_v43 = vpop.f32.mrb[123].mxu1  ;;  %11045 = vrot.lane.b32.xlu0 %v10986_v9, %s16826_s8  ;;  %12342 = vst.msk [vmem:[#allocation3 + $0x480] sm:$0xff] %vm2072_vm14, %v12281_v30  ;;  %v9854_v49 = vrot.slane %v16737_v54, 1  ;;  %v22972_v39 = vld [vmem:[#allocation6_spill] sm:$0xff]  ;;  %v10988_v19 = vsel %vm2897_vm13, %v10985_v13, %v10987_v26  ;;  %v22974_v30 = vld [vmem:[#allocation80_spill] sm:$0xff] }
 0x3ee   : > { %v22973_v43 = vld [vmem:[#allocation78_spill] sm:$0xff]  ;;  %9003 = vst.msk [vmem:[#allocation3 + $0x460] sm:$0xff] %vm2072_vm14, %v16739_v57  ;;  %v16744_v54 = vld [vmem:[%s22595_s3 + $0xf8] sm:$0xff]  }
 0x3ef   : > { %v6684_v41 = vadd.f32 %v15855_v27, %v22971_v4  ;;  %15801 = vmatmul.mubr.msk.bf16.gmra.mrb[228].mxu1 %vm2072_vm14, %v12473_v51  ;;  %v9500_v59 = vpop.permute.xlu0 %9499  ;;  %v12429_v40 = vld [vmem:[#allocation3 + $0x2a8] sm:$0xff]  ;;  %v9855_v27 = vsel %vm2897_vm13, %v9852_v25, %v9854_v49  ;;  %v16741_v13 = vld [vmem:[#allocation2 + $0xf0] ss:$0 sps:$4 sm:$0x11]   ;;  %13183 = vmatpush1.bf16.msra.mxu0 %v16744_v54 }
 0x3f0   : > { %15804 = vmatprep.mubr.msk.bf16.mxu1 %vm2072_vm14, %v12478_v8  ;;  %9571 = vst.msk [vmem:[#allocation3 + $0x2d0] sm:$0xff] %vm2652_vm15, %v9500_v59  ;;  %13048 = vmatmul.mubr.bf16.gmra.mrb[188].mxu0 %v12429_v40  ;;  %v6866_v29 = vpop.permute.xlu1 %6865  ;;  %v12483_v35 = vld [vmem:[#allocation3 + $0x458] sm:$0xff]  ;;  %v11693_v8 = vshll.u32 %v21419_v63, 16  ;;  %v9856_v1 = vrot.slane %v16741_v13, 1  ;;  %v16746_v57 = vld [vmem:[#allocation2 + $0x18] sm:$0xff]  }
 0x3f1   : > { %6921 = vrot.lane.b32.xlu1 %v6684_v41, %s16826_s8  ;;  %11895 = vrot.lane.b32.xlu0 %v11680_v60, %s16826_s8  ;;  %v7042_v47 = vsel %vm2072_vm14, %v22972_v39, %v6866_v29  ;;  %9916 = vst.msk [vmem:[#allocation3 + $0x468] sm:$0xff] %vm2072_vm14, %v9855_v27  ;;  %v16743_v59 = vld [vmem:[#allocation2 + $0xe8] sm:$0xff]   ;;  %v21456_v60 = vld [vmem:[#allocation2 + $0x50] sm:$0xff]   ;;  %v22975_v39 = vld [vmem:[#allocation8_spill] sm:$0xff]  ;;  %v10990_v27 = vsel %vm2897_vm13, %v10987_v26, %v10989_v55 }
 0x3f2   : > { %v6415_v9 = vpop.f32.mrb[124].mxu1  ;;  %7102 = vst [vmem:[%s21369_s26 + $0x18] sm:$0xff] %v7042_v47  ;;  %9004 = vst.msk [vmem:[#allocation3 + $0x488] sm:$0xff] %vm2072_vm14, %v16743_v59  ;;  %v16748_v13 = vld [vmem:[#allocation2 + $0x14] sm:$0xff]  }
 0x3f3   : > { %v15856_v38 = vadd.f32 %v21090_v6, %v6415_v9  ;;  %v6417_v23 = vpop.f32.mrb[125].mxu1  ;;  %v10167_v20 = vpop.permute.xlu0 %10166  ;;  %v12435_v21 = vld [vmem:[#allocation3 + $0x2d8] sm:$0xff]  ;;  %v11687_v6 = vrot.slane %v11685_v53, 1  ;;  %v9857_v9 = vsel %vm2897_vm13, %v9854_v49, %v9856_v1  ;;  %11401 = vst.msk [vmem:[#allocation3 + $0x18] sm:$0xff] %vm2072_vm14, %v16746_v57 }
 0x3f4   : > { %v6418_v11 = vpop.f32.mrb[126].mxu1  ;;  %10237 = vst.msk [vmem:[#allocation3 + $0x300] sm:$0xff] %vm2652_vm15, %v10167_v20  ;;  %13055 = vmatprep.mubr.bf16.mxu0 %v12435_v21  ;;  %v12488_v50 = vld [vmem:[#allocation3 + $0x480] sm:$0xff]  ;;  %v16750_v1 = vld [vmem:[#allocation2 + $0x20] sm:$0xff]  }
 0x3f5   : > { %v21431_v36 = vadd.f32 %v15856_v38, %v22973_v43  ;;  %v15857_v25 = vadd.f32 %v21437_v37, %v6418_v11  ;;  %v6420_v34 = vpop.f32.mrb[127].mxu1  ;;  %11047 = vrot.lane.b32.xlu0 %v10988_v19, %s16826_s8  ;;  %v11688_v40 = vsel %vm2317_vm12, %v11683_v48, %v11687_v6  ;;  %v21460_v38 = vld [vmem:[#allocation2 + $0x3c] sm:$0xff]   ;;  %9917 = vst.msk [vmem:[#allocation3 + $0x490] sm:$0xff] %vm2072_vm14, %v9857_v9  ;;  %v11695_v48 = vrot.slane %v11693_v8, 1  ;;  %v16747_v11 = vld [vmem:[#allocation2 + $0xc] sm:$0xff]   ;;  %v22976_v43 = vld [vmem:[#allocation77_spill] sm:$0xff] }
 0x3f6   : > { %v11691_v19 = vor.u32 %v11689_v16, %v11687_v6  ;;  %v11697_v16 = vshrl.u32 %v21419_v63, 16  ;;  %11402 = vst.msk [vmem:[#allocation3 + $0x40] sm:$0xff] %vm2072_vm14, %v16750_v1  ;;  %v11705_v1 = vshrl.u32 %v21456_v60, 16 }
 0x3f7   : > { %v6692_v51 = vadd.f32 %v15857_v25, %v22974_v30  ;;  %15805 = vmatmul.mubr.msk.bf16.gmra.mrb[232].mxu1 %vm2072_vm14, %v12483_v35  ;;  %v9502_v4 = vpop.permute.xlu0 %9501  ;;  %v12434_v41 = vld [vmem:[#allocation3 + $0x2d0] sm:$0xff]  ;;  %v10465_v30 = vshll.u32 %v16747_v11, 16 }
 0x3f8   : > { %15808 = vmatprep.mubr.msk.bf16.mxu1 %vm2072_vm14, %v12488_v50  ;;  %9572 = vst.msk [vmem:[#allocation3 + $0x2f8] sm:$0xff] %vm2652_vm15, %v9502_v4  ;;  %13056 = vmatmul.mubr.bf16.gmra.mrb[192].mxu0 %v12434_v41  ;;  %v6870_v29 = vpop.permute.xlu1 %6869  ;;  %v22977_v50 = vld [vmem:[#allocation79_spill] sm:$0xff]  ;;  %v10470_v4 = vshll.u32 %v16748_v13, 16  ;;  %v10463_v41 = vshrl.u32 %v16747_v11, 16  ;;  %v11696_v59 = vsel %vm2317_vm12, %v11691_v19, %v11695_v48 }
 0x3f9   : > { %6925 = vrot.lane.b32.xlu1 %v6692_v51, %s16826_s8  ;;  %11897 = vrot.lane.b32.xlu0 %v11688_v40, %s16826_s8  ;;  %v7044_v47 = vsel %vm2072_vm14, %v22975_v39, %v6870_v29  ;;  %v11701_v51 = vshll.u32 %v21456_v60, 16  ;;  %v10467_v8 = vrot.slane %v10465_v30, 1  ;;  %v10991_v40 = vrot.slane %v21460_v38, 1  ;;  %v21500_v30 = vld [vmem:[#allocation2 + $0x44] sm:$0xff]  }
 0x3fa   : > { %v6423_v53 = vpop.f32.mrb[128].mxu1  ;;  %7104 = vst [vmem:[%s21369_s26 + $0x28] sm:$0xff] %v7044_v47  ;;  %v10472_v54 = vrot.slane %v10470_v4, 1 }
 0x3fb   : > { %v15858_v23 = vadd.f32 %v21437_v37, %v6423_v53  ;;  %v6425_v33 = vpop.f32.mrb[129].mxu1  ;;  %v10169_v20 = vpop.permute.xlu0 %10168  ;;  %v12440_v21 = vld [vmem:[#allocation3 + $0x300] sm:$0xff]  ;;  %v16752_v53 = vld [vmem:[#allocation2 + $0x1c] sm:$0xff]   ;;  %v11703_v47 = vrot.slane %v11701_v51, 1 }
 0x3fc   : > { %v6426_v49 = vpop.f32.mrb[130].mxu1  ;;  %10238 = vst.msk [vmem:[#allocation3 + $0x328] sm:$0xff] %vm2652_vm15, %v10169_v20  ;;  %13063 = vmatprep.mubr.bf16.mxu0 %v12440_v21  ;;  %v21488_v33 = vld [vmem:[#allocation2 + $0x58] sm:$0xff]   ;;  %v10478_v21 = vshll.u32 %v16752_v53, 16  ;;  %v22979_v51 = vld [vmem:[#allocation82_spill] sm:$0xff] }
 0x3fd   : > { %v21473_v25 = vadd.f32 %v15858_v23, %v22976_v43  ;;  %v15859_v34 = vadd.f32 %v21437_v37, %v6426_v49  ;;  %v6428_v35 = vpop.f32.mrb[131].mxu1  ;;  %11049 = vrot.lane.b32.xlu0 %v10990_v27, %s16826_s8  ;;  %v10468_v23 = vor.u32 %v10467_v8, %v10463_v41  ;;  %v22978_v49 = vld [vmem:[#allocation10_spill] sm:$0xff]  ;;  %v10474_v43 = vshrl.u32 %v16748_v13, 16 }
 0x3fe   : > { %v11699_v35 = vor.u32 %v11697_v16, %v11695_v48  ;;  %v11709_v18 = vshll.u32 %v21488_v33, 16  ;;  %v16756_v16 = vld [vmem:[#allocation2 + $0x24] sm:$0xff]  }
 0x3ff   : > { %v6700_v12 = vadd.f32 %v15859_v34, %v22977_v50  ;;  %v9504_v26 = vpop.permute.xlu0 %9503  ;;  %v12439_v6 = vld [vmem:[#allocation3 + $0x2f8] sm:$0xff]  ;;  %v10473_v19 = vsel %vm2317_vm12, %v10468_v23, %v10472_v54  ;;  %v10992_v34 = vsel %vm2897_vm13, %v10989_v55, %v10991_v40  ;;  %v10476_v13 = vor.u32 %v10474_v43, %v10472_v54  ;;  %v22980_v55 = vld [vmem:[#allocation84_spill] sm:$0xff] }
 0x400   : > { %9573 = vst.msk [vmem:[#allocation3 + $0x320] sm:$0xff] %vm2652_vm15, %v9504_v26  ;;  %13064 = vmatmul.mubr.bf16.gmra.mrb[196].mxu0 %v12439_v6  ;;  %v10480_v26 = vrot.slane %v10478_v21, 1  ;;  %v16754_v6 = vld [vmem:[#allocation2 + $0x28] sm:$0xff]   ;;  %v11704_v54 = vsel %vm2317_vm12, %v11699_v35, %v11703_v47  ;;  %v10482_v23 = vshrl.u32 %v16752_v53, 16  ;;  %v22981_v43 = vld [vmem:[#allocation12_spill] sm:$0xff] }
 0x401   : > { %6929 = vrot.lane.b32.xlu1 %v6700_v12, %s16826_s8  ;;  %11899 = vrot.lane.b32.xlu0 %v11696_v59, %s16826_s8  ;;  %v6874_v20 = vpop.permute.xlu1 %6873  ;;  %10736 = vst.msk [vmem:[#allocation3 + $0x10] sm:$0xff] %vm2072_vm14, %v10473_v19  ;;  %11403 = vst.msk [vmem:[#allocation3 + $0x68] sm:$0xff] %vm2072_vm14, %v16754_v6  ;;  %v21523_v19 = vld [vmem:[#allocation2 + $0x4c] sm:$0xff]  }
 0x402   : > { %v6431_v9 = vpop.f32.mrb[132].mxu1  ;;  %v7046_v11 = vsel %vm2072_vm14, %v22978_v49, %v6874_v20  ;;  %v10481_v59 = vsel %vm2317_vm12, %v10476_v13, %v10480_v26  ;;  %v21520_v20 = vld [vmem:[#allocation2 + $0x60] sm:$0xff]   ;;  %v16758_v49 = vld [vmem:[#allocation2 + $0x30] sm:$0xff]   ;;  %v10484_v35 = vor.u32 %v10482_v23, %v10480_v26 }
 0x403   : > { %v15860_v29 = vadd.f32 %v21437_v37, %v6431_v9  ;;  %v6433_v57 = vpop.f32.mrb[133].mxu1  ;;  %v10171_v39 = vpop.permute.xlu0 %10170  ;;  %v12445_v63 = vld [vmem:[#allocation3 + $0x328] sm:$0xff]  ;;  %7106 = vst [vmem:[%s21369_s26 + $0x38] sm:$0xff] %v7046_v11  ;;  %v10993_v9 = vrot.slane %v21500_v30, 1  ;;  %10737 = vst.msk [vmem:[#allocation3 + $0x38] sm:$0xff] %vm2072_vm14, %v10481_v59  ;;  %v22982_v13 = vld [vmem:[#allocation81_spill] sm:$0xff] }
 0x404   : > { %v6434_v27 = vpop.f32.mrb[134].mxu1  ;;  %10239 = vst.msk [vmem:[#allocation3 + $0x350] sm:$0xff] %vm2652_vm15, %v10171_v39  ;;  %13071 = vmatprep.mubr.bf16.mxu0 %v12445_v63  ;;  %v11711_v57 = vrot.slane %v11709_v18, 1  ;;  %v16760_v26 = vld [vmem:[#allocation2 + $0x2c] sm:$0xff]   ;;  %v11717_v38 = vshll.u32 %v21520_v20, 16 }
 0x405   : > { %v21503_v50 = vadd.f32 %v15860_v29, %v22979_v51  ;;  %v15861_v12 = vadd.f32 %v21437_v37, %v6434_v27  ;;  %v6436_v4 = vpop.f32.mrb[135].mxu1  ;;  %11051 = vrot.lane.b32.xlu0 %v10992_v34, %s16826_s8  ;;  %v10486_v29 = vshll.u32 %v16756_v16, 16  ;;  %11404 = vst.msk [vmem:[#allocation3 + $0x90] sm:$0xff] %vm2072_vm14, %v16758_v49 }
 0x406   : > { %v11707_v4 = vor.u32 %v11705_v1, %v11703_v47  ;;  %v10494_v47 = vshll.u32 %v16760_v26, 16  ;;  %v11719_v49 = vrot.slane %v11717_v38, 1 }
 0x407   : > { %v6708_v48 = vadd.f32 %v15861_v12, %v22980_v55  ;;  %v9506_v41 = vpop.permute.xlu0 %9505  ;;  %v12444_v8 = vld [vmem:[#allocation3 + $0x320] sm:$0xff]  ;;  %v10488_v51 = vrot.slane %v10486_v29, 1  ;;  %v10994_v12 = vsel %vm2897_vm13, %v10991_v40, %v10993_v9  ;;  %v11713_v29 = vshrl.u32 %v21488_v33, 16 }
 0x408   : > { %9574 = vst.msk [vmem:[#allocation3 + $0x348] sm:$0xff] %vm2652_vm15, %v9506_v41  ;;  %13072 = vmatmul.mubr.bf16.gmra.mrb[200].mxu0 %v12444_v8  ;;  %v10490_v41 = vshrl.u32 %v16756_v16, 16  ;;  %v22983_v8 = vld [vmem:[#allocation83_spill] sm:$0xff]  ;;  %v11712_v23 = vsel %vm2317_vm12, %v11707_v4, %v11711_v57  ;;  %v10496_v16 = vrot.slane %v10494_v47, 1  ;;  %v11721_v47 = vshrl.u32 %v21520_v20, 16 }
 0x409   : > { %6933 = vrot.lane.b32.xlu1 %v6708_v48, %s16826_s8  ;;  %11901 = vrot.lane.b32.xlu0 %v11704_v54, %s16826_s8  ;;  %v6878_v63 = vpop.permute.xlu1 %6877  ;;  %v10489_v48 = vsel %vm2317_vm12, %v10484_v35, %v10488_v51  ;;  %v11715_v4 = vor.u32 %v11713_v29, %v11711_v57  ;;  %v16766_v57 = vld [vmem:[#allocation2 + $0x40] sm:$0xff]  }
 0x40a   : > { %v6439_v60 = vpop.f32.mrb[136].mxu1  ;;  %v7048_v53 = vsel %vm2072_vm14, %v22981_v43, %v6878_v63  ;;  %10738 = vst.msk [vmem:[#allocation3 + $0x60] sm:$0xff] %vm2072_vm14, %v10489_v48  ;;  %v10492_v54 = vor.u32 %v10490_v41, %v10488_v51  ;;  %v10498_v51 = vshrl.u32 %v16760_v26, 16  ;;  %v22985_v48 = vld [vmem:[#allocation14_spill] sm:$0xff]  ;;  %11406 = vst.msk [vmem:[#allocation3 + $0xe0] sm:$0xff] %vm2072_vm14, %v16766_v57 }
 0x40b   : > { %v15862_v21 = vadd.f32 %v21437_v37, %v6439_v60  ;;  %v6441_v39 = vpop.f32.mrb[137].mxu1  ;;  %v10173_v11 = vpop.permute.xlu0 %10172  ;;  %v12450_v27 = vld [vmem:[#allocation3 + $0x350] sm:$0xff]  ;;  %7108 = vst [vmem:[%s21369_s26 + $0x48] sm:$0xff] %v7048_v53  ;;  %v10995_v60 = vrot.slane %v21523_v19, 1  ;;  %v16764_v53 = vld [vmem:[#allocation2 + $0x34] sm:$0xff]  }
 0x40c   : > { %v6442_v34 = vpop.f32.mrb[138].mxu1  ;;  %10240 = vst.msk [vmem:[#allocation3 + $0x378] sm:$0xff] %vm2652_vm15, %v10173_v11  ;;  %13079 = vmatprep.mubr.bf16.mxu0 %v12450_v27  ;;  %v21550_v39 = vld [vmem:[#allocation2 + $0x68] sm:$0xff]   ;;  %v10497_v43 = vsel %vm2317_vm12, %v10492_v54, %v10496_v16  ;;  %v22986_v54 = vld [vmem:[#allocation88_spill] sm:$0xff] }
 0x40d   : > { %v21534_v6 = vadd.f32 %v15862_v21, %v22982_v13  ;;  %v15863_v18 = vadd.f32 %v21437_v37, %v6442_v34  ;;  %v6444_v55 = vpop.f32.mrb[139].mxu1  ;;  %11053 = vrot.lane.b32.xlu0 %v10994_v12, %s16826_s8  ;;  %v16762_v21 = vld [vmem:[#allocation2 + $0x38] sm:$0xff]   ;;  %10739 = vst.msk [vmem:[#allocation3 + $0x88] sm:$0xff] %vm2072_vm14, %v10497_v43  ;;  %v10996_v12 = vsel %vm2897_vm13, %v10993_v9, %v10995_v60  ;;  %v11725_v26 = vshll.u32 %v21550_v39, 16 }
 0x40e   : > { %11405 = vst.msk [vmem:[#allocation3 + $0xb8] sm:$0xff] %vm2072_vm14, %v16762_v21  ;;  %v21562_v13 = vld [vmem:[#allocation2 + $0x54] sm:$0xff]   ;;  %v10502_v9 = vshll.u32 %v16764_v53, 16  ;;  %v11720_v21 = vsel %vm2317_vm12, %v11715_v4, %v11719_v49 }
 0x40f   : > { %v6716_v40 = vadd.f32 %v15863_v18, %v22983_v8  ;;  %v9508_v1 = vpop.permute.xlu0 %9507  ;;  %v12449_v59 = vld [vmem:[#allocation3 + $0x348] sm:$0xff]  ;;  %v22984_v18 = vld [vmem:[#allocation86_spill] sm:$0xff]  ;;  %v11727_v20 = vrot.slane %v11725_v26, 1 }
 0x410   : > { %9575 = vst.msk [vmem:[#allocation3 + $0x370] sm:$0xff] %vm2652_vm15, %v9508_v1  ;;  %13080 = vmatmul.mubr.bf16.gmra.mrb[204].mxu0 %v12449_v59  ;;  %v10504_v29 = vrot.slane %v10502_v9, 1 }
 0x411   : > { %6937 = vrot.lane.b32.xlu1 %v6716_v40, %s16826_s8  ;;  %11903 = vrot.lane.b32.xlu0 %v11712_v23, %s16826_s8  ;;  %v10500_v40 = vor.u32 %v10498_v51, %v10496_v16  ;;  %v16768_v16 = vld [vmem:[#allocation2 + $0x3c] sm:$0xff]  }
 0x412   : > { %v6447_v63 = vpop.f32.mrb[140].mxu1  ;;  %v6882_v35 = vpop.permute.xlu1 %6881 }
 0x413   : > { %v15864_v11 = vadd.f32 %v21437_v37, %v6447_v63  ;;  %v6449_v27 = vpop.f32.mrb[141].mxu1  ;;  %v10175_v33 = vpop.permute.xlu0 %10174  ;;  %v12455_v34 = vld [vmem:[#allocation3 + $0x378] sm:$0xff]  ;;  %v7050_v41 = vsel %vm2072_vm14, %v22985_v48, %v6882_v35  ;;  %v10997_v63 = vrot.slane %v21562_v13, 1  ;;  %v21584_v35 = vld [vmem:[#allocation2 + $0x5c] sm:$0xff]  }
 0x414   : > { %10241 = vst.msk [vmem:[#allocation3 + $0x3a0] sm:$0xff] %vm2652_vm15, %v10175_v33  ;;  %13087 = vmatprep.mubr.bf16.mxu0 %v12455_v34  ;;  %v6450_v38 = vpop.f32.mrb[142].mxu1  ;;  %7110 = vst [vmem:[%s21369_s26 + $0x58] sm:$0xff] %v7050_v41  ;;  %v10506_v27 = vshrl.u32 %v16764_v53, 16  ;;  %v10505_v33 = vsel %vm2317_vm12, %v10500_v40, %v10504_v29  ;;  %v16770_v34 = vld [vmem:[#allocation2 + $0x48] sm:$0xff]   ;;  %v21588_v48 = vld [vmem:[#allocation2 + $0x78] sm:$0xff]  }
 0x415   : > { %v21565_v55 = vadd.f32 %v15864_v11, %v22984_v18  ;;  %11055 = vrot.lane.b32.xlu0 %v10996_v12, %s16826_s8  ;;  %v15865_v8 = vadd.f32 %v21437_v37, %v6450_v38  ;;  %v6452_v30 = vpop.f32.mrb[143].mxu1  ;;  %v21579_v11 = vld [vmem:[#allocation2 + $0x70] sm:$0xff]   ;;  %10740 = vst.msk [vmem:[#allocation3 + $0xb0] sm:$0xff] %vm2072_vm14, %v10505_v33  ;;  %v11723_v18 = vor.u32 %v11721_v47, %v11719_v49  ;;  %v22987_v41 = vld [vmem:[#allocation16_spill] sm:$0xff]  ;;  %11407 = vst.msk [vmem:[#allocation3 + $0x108] sm:$0xff] %vm2072_vm14, %v16770_v34 }
 0x416   : > { %v10510_v30 = vshll.u32 %v16768_v16, 16  ;;  %v10998_v40 = vsel %vm2897_vm13, %v10995_v60, %v10997_v63  ;;  %v11733_v9 = vshll.u32 %v21579_v11, 16  ;;  %v22988_v49 = vld [vmem:[#allocation85_spill] sm:$0xff]  ;;  %v10999_v19 = vrot.slane %v21584_v35, 1  ;;  %v22989_v60 = vld [vmem:[#allocation87_spill] sm:$0xff] }
 0x417   : > { %v9510_v1 = vpop.permute.xlu0 %9509  ;;  %v12454_v59 = vld [vmem:[#allocation3 + $0x370] sm:$0xff]  ;;  %v6724_v23 = vadd.f32 %v15865_v8, %v22986_v54  ;;  %v10508_v8 = vor.u32 %v10506_v27, %v10504_v29  ;;  %v21605_v54 = vld [vmem:[#allocation2 + $0x64] sm:$0xff]   ;;  %v10514_v27 = vshrl.u32 %v16768_v16, 16  ;;  %v11741_v34 = vshll.u32 %v21588_v48, 16 }
 0x418   : > { %9576 = vst.msk [vmem:[#allocation3 + $0x398] sm:$0xff] %vm2652_vm15, %v9510_v1  ;;  %13088 = vmatmul.mubr.bf16.gmra.mrb[208].mxu0 %v12454_v59  ;;  %v11729_v59 = vshrl.u32 %v21550_v39, 16  ;;  %v16772_v29 = vld [vmem:[#allocation2 + $0x44] sm:$0xff]   ;;  %v11728_v39 = vsel %vm2317_vm12, %v11723_v18, %v11727_v20  ;;  %v11000_v18 = vsel %vm2897_vm13, %v10997_v63, %v10999_v19 }
 0x419   : > { %11905 = vrot.lane.b32.xlu0 %v11720_v21, %s16826_s8  ;;  %6941 = vrot.lane.b32.xlu1 %v6724_v23, %s16826_s8  ;;  %v6886_v4 = vpop.permute.xlu1 %6885  ;;  %v10512_v23 = vrot.slane %v10510_v30, 1  ;;  %v16783_v35 = vld [vmem:[#allocation2 + $0x64] sm:$0xff]  }
 0x41a   : > { %v6455_v43 = vpop.f32.mrb[144].mxu1  ;;  %v7052_v38 = vsel %vm2072_vm14, %v22987_v41, %v6886_v4  ;;  %v21613_v4 = vrot.slane %v11733_v9, 1  ;;  %v11001_v41 = vrot.slane %v21605_v54, 1  ;;  %v11731_v30 = vor.u32 %v11729_v59, %v11727_v20 }
 0x41b   : > { %v15866_v51 = vadd.f32 %v21437_v37, %v6455_v43  ;;  %v6457_v12 = vpop.f32.mrb[145].mxu1  ;;  %v10177_v13 = vpop.permute.xlu0 %10176  ;;  %v12460_v53 = vld [vmem:[#allocation3 + $0x3a0] sm:$0xff]  ;;  %7112 = vst [vmem:[%s21369_s26 + $0x68] sm:$0xff] %v7052_v38  ;;  %v10516_v16 = vor.u32 %v10514_v27, %v10512_v23  ;;  %v21629_v27 = vrot.slane %v11741_v34, 1  ;;  %v10522_v59 = vshrl.u32 %v16772_v29, 16 }
 0x41c   : > { %v6458_v26 = vpop.f32.mrb[146].mxu1  ;;  %10242 = vst.msk [vmem:[#allocation3 + $0x3c8] sm:$0xff] %vm2652_vm15, %v10177_v13  ;;  %13095 = vmatprep.mubr.bf16.mxu0 %v12460_v53  ;;  %v10518_v12 = vshll.u32 %v16772_v29, 16  ;;  %v21615_v13 = vld [vmem:[#allocation2 + $0x80] sm:$0xff]   ;;  %v16774_v53 = vld [vmem:[#allocation2 + $0x50] sm:$0xff]  }
 0x41d   : > { %v21599_v57 = vadd.f32 %v15866_v51, %v22988_v49  ;;  %v15867_v47 = vadd.f32 %v21437_v37, %v6458_v26  ;;  %v6460_v1 = vpop.f32.mrb[147].mxu1  ;;  %11057 = vrot.lane.b32.xlu0 %v10998_v40, %s16826_s8  ;;  %v10513_v51 = vsel %vm2317_vm12, %v10508_v8, %v10512_v23  ;;  %v21621_v38 = vld [vmem:[#allocation2 + $0x6c] sm:$0xff]   ;;  %v11737_v40 = vshrl.u32 %v21579_v11, 16  ;;  %11408 = vst.msk [vmem:[#allocation3 + $0x130] sm:$0xff] %vm2072_vm14, %v16774_v53  ;;  %v16778_v23 = vld [vmem:[#allocation2 + $0x58] sm:$0xff]  }
 0x41e   : > { %10741 = vst.msk [vmem:[#allocation3 + $0xd8] sm:$0xff] %vm2072_vm14, %v10513_v51  ;;  %v10520_v8 = vrot.slane %v10518_v12, 1  ;;  %v16776_v1 = vld [vmem:[#allocation2 + $0x4c] sm:$0xff]   ;;  %v11749_v51 = vshll.u32 %v21615_v13, 16  ;;  %11409 = vst.msk [vmem:[#allocation3 + $0x158] sm:$0xff] %vm2072_vm14, %v16778_v23  ;;  %v11003_v29 = vrot.slane %v21621_v38, 1 }
 0x41f   : > { %v6732_v21 = vadd.f32 %v15867_v47, %v22989_v60  ;;  %v9512_v43 = vpop.permute.xlu0 %9511  ;;  %v12459_v33 = vld [vmem:[#allocation3 + $0x398] sm:$0xff]  ;;  %v22991_v12 = vld [vmem:[#allocation90_spill] sm:$0xff] }
 0x420   : > { %9577 = vst.msk [vmem:[#allocation3 + $0x3c0] sm:$0xff] %vm2652_vm15, %v9512_v43  ;;  %13096 = vmatmul.mubr.bf16.gmra.mrb[212].mxu0 %v12459_v33  ;;  %v22990_v43 = vld [vmem:[#allocation18_spill] sm:$0xff]  ;;  %v10521_v20 = vsel %vm2317_vm12, %v10516_v16, %v10520_v8  ;;  %v10524_v16 = vor.u32 %v10522_v59, %v10520_v8  ;;  %v21650_v23 = vrot.slane %v11749_v51, 1  ;;  %v21656_v59 = vld [vmem:[#allocation2 + $0x74] sm:$0xff]   ;;  %v11002_v51 = vsel %vm2897_vm13, %v10999_v19, %v11001_v41 }
 0x421   : > { %6945 = vrot.lane.b32.xlu1 %v6732_v21, %s16826_s8  ;;  %11907 = vrot.lane.b32.xlu0 %v11728_v39, %s16826_s8  ;;  %v6890_v47 = vpop.permute.xlu1 %6889  ;;  %10742 = vst.msk [vmem:[#allocation3 + $0x100] sm:$0xff] %vm2072_vm14, %v10521_v20  ;;  %v11739_v19 = vor.u32 %v11737_v40, %v21613_v4  ;;  %v10554_v40 = vshrl.u32 %v16783_v35, 16  ;;  %v16798_v38 = vld [vmem:[#allocation2 + $0xc8] sm:$0xff]  }
 0x422   : > { %v6463_v26 = vpop.f32.mrb[148].mxu1  ;;  %v7054_v33 = vsel %vm2072_vm14, %v22990_v43, %v6890_v47  ;;  %v10530_v43 = vshrl.u32 %v16776_v1, 16  ;;  %11423 = vst.msk [vmem:[#allocation3 + $0x388] sm:$0xff] %vm2072_vm14, %v16798_v38  ;;  %v23005_v38 = vld [vmem:[#allocation100_spill] sm:$0xff] }
 0x423   : > { %v15868_v9 = vadd.f32 %v21437_v37, %v6463_v26  ;;  %v6465_v49 = vpop.f32.mrb[149].mxu1  ;;  %v10179_v60 = vpop.permute.xlu0 %10178  ;;  %v12465_v21 = vld [vmem:[#allocation3 + $0x3c8] sm:$0xff]  ;;  %7114 = vst [vmem:[%s21369_s26 + $0x78] sm:$0xff] %v7054_v33  ;;  %v10526_v26 = vshll.u32 %v16776_v1, 16  ;;  %v16780_v33 = vld [vmem:[#allocation2 + $0x60] sm:$0xff]  }
 0x424   : > { %v6466_v63 = vpop.f32.mrb[150].mxu1  ;;  %10243 = vst.msk [vmem:[#allocation3 + $0x3f0] sm:$0xff] %vm2652_vm15, %v10179_v60  ;;  %13103 = vmatprep.mubr.bf16.mxu0 %v12465_v21  ;;  %v16779_v49 = vld [vmem:[#allocation2 + $0x54] sm:$0xff]   ;;  %v22992_v60 = vld [vmem:[#allocation92_spill] sm:$0xff] }
 0x425   : > { %v21637_v39 = vadd.f32 %v15868_v9, %v22991_v12  ;;  %v15869_v53 = vadd.f32 %v21437_v37, %v6466_v63  ;;  %v6468_v34 = vpop.f32.mrb[151].mxu1  ;;  %11059 = vrot.lane.b32.xlu0 %v11000_v18, %s16826_s8  ;;  %v10528_v21 = vrot.slane %v10526_v26, 1  ;;  %v11736_v18 = vsel %vm2317_vm12, %v11731_v30, %v21613_v4  ;;  %11410 = vst.msk [vmem:[#allocation3 + $0x180] sm:$0xff] %vm2072_vm14, %v16780_v33  ;;  %v16781_v1 = vld [vmem:[#allocation2 + $0x5c] sm:$0xff]   ;;  %v16782_v30 = vld [vmem:[#allocation2 + $0x68] sm:$0xff]  }
 0x426   : > { %v10534_v34 = vshll.u32 %v16779_v49, 16  ;;  %11411 = vst.msk [vmem:[#allocation3 + $0x1a8] sm:$0xff] %vm2072_vm14, %v16782_v30  ;;  %v10546_v47 = vshrl.u32 %v16781_v1, 16  ;;  %v16785_v4 = vld [vmem:[#allocation2 + $0x6c] sm:$0xff]  }
 0x427   : > { %v6740_v9 = vadd.f32 %v15869_v53, %v22992_v60  ;;  %v9514_v63 = vpop.permute.xlu0 %9513  ;;  %v12464_v12 = vld [vmem:[#allocation3 + $0x3c0] sm:$0xff]  ;;  %v10529_v8 = vsel %vm2317_vm12, %v10524_v16, %v10528_v21  ;;  %v10532_v20 = vor.u32 %v10530_v43, %v10528_v21  ;;  %v10538_v60 = vshrl.u32 %v16779_v49, 16 }
 0x428   : > { %9578 = vst.msk [vmem:[#allocation3 + $0x3e8] sm:$0xff] %vm2652_vm15, %v9514_v63  ;;  %13104 = vmatmul.mubr.bf16.gmra.mrb[216].mxu0 %v12464_v12  ;;  %v10536_v26 = vrot.slane %v10534_v34, 1  ;;  %v10542_v43 = vshll.u32 %v16781_v1, 16  ;;  %v22993_v12 = vld [vmem:[#allocation20_spill] sm:$0xff]  ;;  %v10550_v1 = vshll.u32 %v16783_v35, 16 }
 0x429   : > { %6949 = vrot.lane.b32.xlu1 %v6740_v9, %s16826_s8  ;;  %11909 = vrot.lane.b32.xlu0 %v11736_v18, %s16826_s8  ;;  %10743 = vst.msk [vmem:[#allocation3 + $0x128] sm:$0xff] %vm2072_vm14, %v10529_v8  ;;  %v6894_v21 = vpop.permute.xlu1 %6893  ;;  %v16788_v35 = vld [vmem:[#allocation2 + $0x80] sm:$0xff]  }
 0x42a   : > { %v6471_v53 = vpop.f32.mrb[152].mxu1  ;;  %v7056_v18 = vsel %vm2072_vm14, %v22993_v12, %v6894_v21  ;;  %v10537_v49 = vsel %vm2317_vm12, %v10532_v20, %v10536_v26  ;;  %v10540_v8 = vor.u32 %v10538_v60, %v10536_v26  ;;  %v10544_v20 = vrot.slane %v10542_v43, 1  ;;  %v16784_v26 = vld [vmem:[#allocation2 + $0x70] sm:$0xff]   ;;  %v16786_v43 = vld [vmem:[#allocation2 + $0x78] sm:$0xff]   ;;  %11414 = vst.msk [vmem:[#allocation3 + $0x220] sm:$0xff] %vm2072_vm14, %v16788_v35 }
 0x42b   : > { %v15870_v16 = vadd.f32 %v21437_v37, %v6471_v53  ;;  %v6473_v9 = vpop.f32.mrb[153].mxu1  ;;  %v10181_v33 = vpop.permute.xlu0 %10180  ;;  %v12470_v63 = vld [vmem:[#allocation3 + $0x3f0] sm:$0xff]  ;;  %v22994_v53 = vld [vmem:[#allocation89_spill] sm:$0xff]  ;;  %7116 = vst [vmem:[%s21369_s26 + $0x88] sm:$0xff] %v7056_v18  ;;  %10744 = vst.msk [vmem:[#allocation3 + $0x150] sm:$0xff] %vm2072_vm14, %v10537_v49  ;;  %v11005_v18 = vrot.slane %v21656_v59, 1 }
 0x42c   : > { %v6474_v34 = vpop.f32.mrb[154].mxu1  ;;  %10244 = vst.msk [vmem:[#allocation3 + $0x418] sm:$0xff] %vm2652_vm15, %v10181_v33  ;;  %13111 = vmatprep.mubr.bf16.mxu0 %v12470_v63  ;;  %v22995_v60 = vld [vmem:[#allocation91_spill] sm:$0xff]  ;;  %v10545_v33 = vsel %vm2317_vm12, %v10540_v8, %v10544_v20  ;;  %v10548_v11 = vor.u32 %v10546_v47, %v10544_v20  ;;  %v10558_v47 = vshll.u32 %v16785_v4, 16  ;;  %v10562_v8 = vshrl.u32 %v16785_v4, 16  ;;  %v16751_v59 = vld [vmem:[#allocation2 + $0xa0] sm:$0xff]  }
 0x42d   : > { %v21674_v9 = vadd.f32 %v15870_v16, %v22994_v53  ;;  %v15871_v21 = vadd.f32 %v21437_v37, %v6474_v34  ;;  %v6476_v12 = vpop.f32.mrb[155].mxu1  ;;  %11061 = vrot.lane.b32.xlu0 %v11002_v51, %s16826_s8  ;;  %10745 = vst.msk [vmem:[#allocation3 + $0x178] sm:$0xff] %vm2072_vm14, %v10545_v33  ;;  %v10552_v34 = vrot.slane %v10550_v1, 1  ;;  %11412 = vst.msk [vmem:[#allocation3 + $0x1d0] sm:$0xff] %vm2072_vm14, %v16784_v26  ;;  %v16787_v49 = vld [vmem:[#allocation2 + $0x74] sm:$0xff]   ;;  %v21690_v53 = vld [vmem:[#allocation2 + $0x88] sm:$0xff]  }
 0x42e   : > { %v11744_v51 = vsel %vm2317_vm12, %v11739_v19, %v21629_v27  ;;  %11413 = vst.msk [vmem:[#allocation3 + $0x1f8] sm:$0xff] %vm2072_vm14, %v16786_v43  ;;  %v16789_v1 = vld [vmem:[#allocation2 + $0x7c] sm:$0xff]   ;;  %v10566_v33 = vshll.u32 %v16787_v49, 16  ;;  %v10570_v4 = vshrl.u32 %v16787_v49, 16  ;;  %v22997_v43 = vld [vmem:[#allocation22_spill] sm:$0xff] }
 0x42f   : > { %v6748_v30 = vadd.f32 %v15871_v21, %v22995_v60  ;;  %v9516_v16 = vpop.permute.xlu0 %9515  ;;  %v12469_v63 = vld [vmem:[#allocation3 + $0x3e8] sm:$0xff]  ;;  %v10553_v12 = vsel %vm2317_vm12, %v10548_v11, %v10552_v34  ;;  %v10556_v20 = vor.u32 %v10554_v40, %v10552_v34  ;;  %v11004_v11 = vsel %vm2897_vm13, %v11001_v41, %v11003_v29  ;;  %v22998_v49 = vld [vmem:[#allocation94_spill] sm:$0xff] }
 0x430   : > { %9579 = vst.msk [vmem:[#allocation3 + $0x410] sm:$0xff] %vm2652_vm15, %v9516_v16  ;;  %13112 = vmatmul.mubr.bf16.gmra.mrb[220].mxu0 %v12469_v63  ;;  %v22996_v40 = vshrl.u32 %v21588_v48, 16 }
 0x431   : > { %6953 = vrot.lane.b32.xlu1 %v6748_v30, %s16826_s8  ;;  %11911 = vrot.lane.b32.xlu0 %v11744_v51, %s16826_s8  ;;  %v6898_v60 = vpop.permute.xlu1 %6897  ;;  %10746 = vst.msk [vmem:[#allocation3 + $0x1a0] sm:$0xff] %vm2072_vm14, %v10553_v12  ;;  %v10560_v30 = vrot.slane %v10558_v47, 1  ;;  %v16790_v12 = vld [vmem:[#allocation2 + $0x88] sm:$0xff]  }
 0x432   : > { %v6479_v21 = vpop.f32.mrb[156].mxu1  ;;  %v11747_v34 = vor.u32 %v22996_v40, %v21629_v27  ;;  %v7058_v51 = vsel %vm2072_vm14, %v22997_v43, %v6898_v60  ;;  %v16791_v27 = vld [vmem:[#allocation2 + $0x90] sm:$0xff]   ;;  %v10568_v60 = vrot.slane %v10566_v33, 1  ;;  %11415 = vst.msk [vmem:[#allocation3 + $0x248] sm:$0xff] %vm2072_vm14, %v16790_v12  ;;  %v11753_v33 = vshrl.u32 %v21615_v13, 16 }
 0x433   : > { %v15872_v26 = vadd.f32 %v21437_v37, %v6479_v21  ;;  %v6481_v19 = vpop.f32.mrb[157].mxu1  ;;  %v10183_v16 = vpop.permute.xlu0 %10182  ;;  %v12475_v63 = vld [vmem:[#allocation3 + $0x418] sm:$0xff]  ;;  %v10574_v21 = vshll.u32 %v16789_v1, 16  ;;  %7118 = vst [vmem:[%s21369_s26 + $0x98] sm:$0xff] %v7058_v51  ;;  %v10564_v48 = vor.u32 %v10562_v8, %v10560_v30  ;;  %11416 = vst.msk [vmem:[#allocation3 + $0x270] sm:$0xff] %vm2072_vm14, %v16791_v27  ;;  %v16795_v27 = vld [vmem:[#allocation2 + $0xb0] sm:$0xff]  }
 0x434   : > { %v6482_v47 = vpop.f32.mrb[158].mxu1  ;;  %10245 = vst.msk [vmem:[#allocation3 + $0x440] sm:$0xff] %vm2652_vm15, %v10183_v16  ;;  %13119 = vmatprep.mubr.bf16.mxu0 %v12475_v63  ;;  %v10561_v19 = vsel %vm2317_vm12, %v10556_v20, %v10560_v30  ;;  %v10578_v16 = vshrl.u32 %v16789_v1, 16  ;;  %v16792_v63 = vld [vmem:[#allocation2 + $0x98] sm:$0xff]   ;;  %v11757_v20 = vshll.u32 %v21690_v53, 16  ;;  %v10572_v30 = vor.u32 %v10570_v4, %v10568_v60  ;;  %v21731_v4 = vld [vmem:[#allocation2 + $0x90] sm:$0xff]  }
 0x435   : > { %v21709_v35 = vadd.f32 %v15872_v26, %v22998_v49  ;;  %v15873_v54 = vadd.f32 %v21437_v37, %v6482_v47  ;;  %v6484_v41 = vpop.f32.mrb[159].mxu1  ;;  %11063 = vrot.lane.b32.xlu0 %v11004_v11, %s16826_s8  ;;  %10747 = vst.msk [vmem:[#allocation3 + $0x1c8] sm:$0xff] %vm2072_vm14, %v10561_v19  ;;  %v10576_v40 = vrot.slane %v10574_v21, 1  ;;  %v22999_v26 = vld [vmem:[#allocation96_spill] sm:$0xff]  ;;  %v10569_v8 = vsel %vm2317_vm12, %v10564_v48, %v10568_v60 }
 0x436   : > { %11417 = vst.msk [vmem:[#allocation3 + $0x298] sm:$0xff] %vm2072_vm14, %v16792_v63  ;;  %v11752_v1 = vsel %vm2317_vm12, %v11747_v34, %v21650_v23  ;;  %v21726_v47 = vld [vmem:[#allocation2 + $0x7c] sm:$0xff]   ;;  %10748 = vst.msk [vmem:[#allocation3 + $0x1f0] sm:$0xff] %vm2072_vm14, %v10569_v8  ;;  %v16794_v34 = vld [vmem:[#allocation2 + $0xa8] sm:$0xff]  }
 0x437   : > { %v6756_v43 = vadd.f32 %v15873_v54, %v22999_v26  ;;  %v9518_v37 = vpop.permute.xlu0 %9517  ;;  %v12474_v51 = vld [vmem:[#allocation3 + $0x410] sm:$0xff]  ;;  %v10580_v11 = vor.u32 %v10578_v16, %v10576_v40  ;;  %v10577_v49 = vsel %vm2317_vm12, %v10572_v30, %v10576_v40  ;;  %v11759_v40 = vrot.slane %v11757_v20, 1  ;;  %11419 = vst.msk [vmem:[#allocation3 + $0x2e8] sm:$0xff] %vm2072_vm14, %v16794_v34  ;;  %v23001_v8 = vld [vmem:[#allocation93_spill] sm:$0xff]  ;;  %11420 = vst.msk [vmem:[#allocation3 + $0x310] sm:$0xff] %vm2072_vm14, %v16795_v27 }
 0x438   : > { %9580 = vst.msk [vmem:[#allocation3 + $0x438] sm:$0xff] %vm2652_vm15, %v9518_v37  ;;  %13120 = vmatmul.mubr.bf16.gmra.mrb[224].mxu0 %v12474_v51  ;;  %v16793_v21 = vld [vmem:[#allocation2 + $0xa0] sm:$0xff]   ;;  %v11006_v37 = vsel %vm2897_vm13, %v11003_v29, %v11005_v18  ;;  %v11755_v51 = vor.u32 %v11753_v33, %v21650_v23  ;;  %v11007_v29 = vrot.slane %v21726_v47, 1  ;;  %v23002_v23 = vld [vmem:[#allocation95_spill] sm:$0xff]  ;;  %v11765_v34 = vshll.u32 %v21731_v4, 16 }
 0x439   : > { %6957 = vrot.lane.b32.xlu1 %v6756_v43, %s16826_s8  ;;  %11913 = vrot.lane.b32.xlu0 %v11752_v1, %s16826_s8  ;;  %v10585_v54 = vsel %vm2317_vm12, %v10580_v11, %v20660_v3  ;;  %v21739_v13 = vld [vmem:[%s22596_s4] ss:$0 sm:$0xff]  ;;  %v6902_v48 = vpop.permute.xlu1 %6901  ;;  %10749 = vst.msk [vmem:[#allocation3 + $0x218] sm:$0xff] %vm2072_vm14, %v10577_v49  ;;  %11418 = vst.msk [vmem:[#allocation3 + $0x2c0] sm:$0xff] %vm2072_vm14, %v16793_v21  ;;  %v16796_v43 = vld [vmem:[#allocation2 + $0xb8] sm:$0xff]   ;;  %v11761_v21 = vshrl.u32 %v21690_v53, 16 }
 0x43a   : > { %v6487_v12 = vpop.f32.mrb[160].mxu1  ;;  %10750 = vst.msk [vmem:[#allocation3 + $0x240] sm:$0xff] %vm2072_vm14, %v10585_v54  ;;  %v23000_v16 = vld [vmem:[#allocation24_spill] sm:$0xff]  ;;  %11421 = vst.msk [vmem:[#allocation3 + $0x338] sm:$0xff] %vm2072_vm14, %v16796_v43  ;;  %v11760_v53 = vsel %vm2317_vm12, %v11755_v51, %v11759_v40  ;;  %v11008_v51 = vsel %vm2897_vm13, %v11005_v18, %v11007_v29 }
 0x43b   : > { %v15874_v41 = vadd.f32 %v21739_v13, %v6487_v12  ;;  %v6489_v19 = vpop.f32.mrb[161].mxu1  ;;  %v10185_v60 = vpop.permute.xlu0 %10184  ;;  %v12480_v3 = vld [vmem:[#allocation3 + $0x440] sm:$0xff]  ;;  %v7060_v63 = vsel %vm2072_vm14, %v23000_v16, %v6902_v48  ;;  %v16797_v1 = vld [vmem:[#allocation2 + $0xc0] sm:$0xff]  }
 0x43c   : > { %v6490_v26 = vpop.f32.mrb[162].mxu1  ;;  %10246 = vst.msk [vmem:[#allocation3 + $0x468] sm:$0xff] %vm2652_vm15, %v10185_v60  ;;  %13127 = vmatprep.mubr.bf16.mxu0 %v12480_v3  ;;  %7120 = vst [vmem:[%s21369_s26 + $0xa8] sm:$0xff] %v7060_v63  ;;  %v16799_v12 = vld [vmem:[#allocation2 + $0xd0] sm:$0xff]   ;;  %v16800_v60 = vld [vmem:[#allocation2 + $0xd8] sm:$0xff]   ;;  %v11763_v63 = vor.u32 %v11761_v21, %v11759_v40 }
 0x43d   : > { %v21756_v20 = vadd.f32 %v15874_v41, %v23001_v8  ;;  %v15875_v30 = vadd.f32 %v21739_v13, %v6490_v26  ;;  %v6492_v11 = vpop.f32.mrb[163].mxu1  ;;  %11065 = vrot.lane.b32.xlu0 %v11006_v37, %s16826_s8  ;;  %11422 = vst.msk [vmem:[#allocation3 + $0x360] sm:$0xff] %vm2072_vm14, %v16797_v1  ;;  %11424 = vst.msk [vmem:[#allocation3 + $0x3b0] sm:$0xff] %vm2072_vm14, %v16799_v12  ;;  %v16804_v41 = vld [vmem:[#allocation2 + $0xf8] sm:$0xff]   ;;  %v23003_v26 = vld [vmem:[#allocation26_spill] sm:$0xff]  ;;  %v11767_v8 = vrot.slane %v11765_v34, 1 }
 0x43e   : > { %11429 = vst.msk [vmem:[#allocation3 + $0x478] sm:$0xff] %vm2072_vm14, %v16804_v41  ;;  %v23004_v11 = vld [vmem:[#allocation98_spill] sm:$0xff]  ;;  %11425 = vst.msk [vmem:[#allocation3 + $0x3d8] sm:$0xff] %vm2072_vm14, %v16800_v60  ;;  %v23006_v60 = vld [vmem:[#allocation151_spill] sm:$0xff] }
 0x43f   : > { %v6764_v33 = vadd.f32 %v15875_v30, %v23002_v23  ;;  %v9520_v49 = vpop.permute.xlu0 %9519  ;;  %v12479_v54 = vld [vmem:[#allocation3 + $0x438] sm:$0xff]  ;;  %v16749_v30 = vld [vmem:[#allocation2 + $0x98] sm:$0xff]   ;;  %v11768_v18 = vsel %vm2317_vm12, %v11763_v63, %v11767_v8 }
 0x440   : > { %9581 = vst.msk [vmem:[#allocation3 + $0x460] sm:$0xff] %vm2652_vm15, %v9520_v49  ;;  %13128 = vmatmul.mubr.bf16.gmra.mrb[228].mxu0 %v12479_v54  ;;  %v11769_v49 = vshrl.u32 %v21731_v4, 16  ;;  %v11773_v54 = vshll.u32 %v16749_v30, 16  ;;  %v11777_v63 = vshrl.u32 %v16749_v30, 16  ;;  %v11781_v4 = vshll.u32 %v16751_v59, 16 }
 0x441   : > { %6961 = vrot.lane.b32.xlu1 %v6764_v33, %s16826_s8  ;;  %11915 = vrot.lane.b32.xlu0 %v11760_v53, %s16826_s8  ;;  %v6906_v27 = vpop.permute.xlu1 %6905 }
 0x442   : > { %v6495_v47 = vpop.f32.mrb[164].mxu1  ;;  %v7062_v43 = vsel %vm2072_vm14, %v23003_v26, %v6906_v27  ;;  %v23008_v26 = vld [vmem:[#allocation28_spill] sm:$0xff] }
 0x443   : > { %v15876_v19 = vadd.f32 %v21739_v13, %v6495_v47  ;;  %v6497_v48 = vpop.f32.mrb[165].mxu1  ;;  %v10187_v3 = vpop.permute.xlu0 %10186  ;;  %v12485_v16 = vld [vmem:[#allocation3 + $0x468] sm:$0xff]  ;;  %7122 = vst [vmem:[%s21369_s26 + $0xb8] sm:$0xff] %v7062_v43 }
 0x444   : > { %v6498_v37 = vpop.f32.mrb[166].mxu1  ;;  %10247 = vst.msk [vmem:[#allocation3 + $0x490] sm:$0xff] %vm2652_vm15, %v10187_v3  ;;  %13135 = vmatprep.mubr.bf16.mxu0 %v12485_v16  ;;  %v23007_v3 = vrot.slane %v23006_v60, 1  ;;  %v16802_v60 = vld [vmem:[#allocation2 + $0xe8] sm:$0xff]  }
 0x445   : > { %v21783_v1 = vadd.f32 %v15876_v19, %v23004_v11  ;;  %v15877_v40 = vadd.f32 %v21739_v13, %v6498_v37  ;;  %v6500_v21 = vpop.f32.mrb[167].mxu1  ;;  %11067 = vrot.lane.b32.xlu0 %v11008_v51, %s16826_s8  ;;  %v16801_v19 = vld [vmem:[#allocation2 + $0xe0] sm:$0xff]   ;;  %v11771_v51 = vor.u32 %v11769_v49, %v11767_v8  ;;  %v11775_v11 = vrot.slane %v11773_v54, 1  ;;  %v16755_v8 = vld [vmem:[#allocation2 + $0xb0] sm:$0xff]   ;;  %11427 = vst.msk [vmem:[#allocation3 + $0x428] sm:$0xff] %vm2072_vm14, %v16802_v60 }
 0x446   : > { %v11010_v16 = vsel %vm2897_vm13, %v11007_v29, %v23007_v3  ;;  %v23009_v21 = vld [vmem:[#allocation97_spill] sm:$0xff]  ;;  %11426 = vst.msk [vmem:[#allocation3 + $0x400] sm:$0xff] %vm2072_vm14, %v16801_v19  ;;  %v23010_v29 = vld [vmem:[#allocation99_spill] sm:$0xff]  ;;  %v11785_v54 = vshrl.u32 %v16751_v59, 16 }
 0x447   : > { %v6772_v23 = vadd.f32 %v15877_v40, %v23005_v38  ;;  %v9522_v33 = vpop.permute.xlu0 %9521  ;;  %v12484_v12 = vld [vmem:[#allocation3 + $0x460] sm:$0xff]  ;;  %v11776_v49 = vsel %vm2317_vm12, %v11771_v51, %v11775_v11 }
 0x448   : > { %9582 = vst.msk [vmem:[#allocation3 + $0x488] sm:$0xff] %vm2652_vm15, %v9522_v33  ;;  %13136 = vmatmul.mubr.bf16.gmra.mrb[232].mxu0 %v12484_v12  ;;  %v16753_v40 = vld [vmem:[#allocation2 + $0xa8] sm:$0xff]  }
 0x449   : > { %6965 = vrot.lane.b32.xlu1 %v6772_v23, %s16826_s8  ;;  %11917 = vrot.lane.b32.xlu0 %v11768_v18, %s16826_s8 }
 0x44a   : > { %v6503_v34 = vpop.f32.mrb[168].mxu1 }
 0x44b   : > { %v15878_v53 = vadd.f32 %v21739_v13, %v6503_v34  ;;  %v6505_v47 = vpop.f32.mrb[169].mxu1  ;;  %v6910_v41 = vpop.permute.xlu1 %6909  ;;  %v12490_v27 = vld [vmem:[#allocation3 + $0x490] sm:$0xff]  ;;  %v11779_v34 = vor.u32 %v11777_v63, %v11775_v11 }
 0x44c   : > { %v11890_v48 = vpop.permute.xlu0 %11889  ;;  %v7064_v43 = vsel %vm2072_vm14, %v23008_v26, %v6910_v41  ;;  %v6506_v37 = vpop.f32.mrb[170].mxu1  ;;  %13143 = vmatprep.mubr.bf16.mxu0 %v12490_v27  ;;  %v11783_v47 = vrot.slane %v11781_v4, 1  ;;  %v11793_v4 = vshrl.u32 %v16753_v40, 16  ;;  %v11797_v26 = vshll.u32 %v16755_v8, 16 }
 0x44d   : > { %11979 = vst.msk [vmem:[#allocation3 + $0x18] sm:$0xff] %vm2652_vm15, %v11890_v48  ;;  %v21803_v38 = vadd.f32 %v15878_v53, %v23009_v21  ;;  %7124 = vst [vmem:[%s21369_s26 + $0xc8] sm:$0xff] %v7064_v43  ;;  %v15879_v23 = vadd.f32 %v21739_v13, %v6506_v37  ;;  %v6508_v33 = vpop.f32.mrb[171].mxu1  ;;  %11069 = vrot.lane.b32.xlu0 %v11010_v16, %s16826_s8  ;;  %v11789_v53 = vshll.u32 %v16753_v40, 16  ;;  %v23011_v43 = vld [vmem:[#allocation30_spill] sm:$0xff]  ;;  %v16757_v21 = vld [vmem:[#allocation2 + $0xb8] sm:$0xff]  }
 0x44e   : > { %v11784_v63 = vsel %vm2317_vm12, %v11779_v34, %v11783_v47  ;;  %v11787_v51 = vor.u32 %v11785_v54, %v11783_v47  ;;  %v23013_v40 = vld [vmem:[#allocation104_spill] sm:$0xff]  ;;  %v11801_v47 = vshrl.u32 %v16755_v8, 16 }
 0x44f   : > { %v6780_v30 = vadd.f32 %v15879_v23, %v23010_v29  ;;  %v12489_v18 = vld [vmem:[#allocation3 + $0x488] sm:$0xff]  ;;  %v11791_v11 = vrot.slane %v11789_v53, 1  ;;  %v23012_v23 = vld [vmem:[#allocation102_spill] sm:$0xff]  ;;  %v11805_v53 = vshll.u32 %v16757_v21, 16 }
 0x450   : > { %v11042_v12 = vpop.permute.xlu0 %11041  ;;  %13144 = vmatmul.mubr.bf16.gmra.mrb[236].mxu0 %v12489_v18 }
 0x451   : > { %11131 = vst.msk [vmem:[#allocation3 + $0x10] sm:$0xff] %vm2652_vm15, %v11042_v12  ;;  %6969 = vrot.lane.b32.xlu1 %v6780_v30, %s16826_s8  ;;  %11919 = vrot.lane.b32.xlu0 %v11776_v49, %s16826_s8  ;;  %v11795_v49 = vor.u32 %v11793_v4, %v11791_v11  ;;  %v11792_v54 = vsel %vm2317_vm12, %v11787_v51, %v11791_v11 }
 0x452   : > { %v6511_v41 = vpop.f32.mrb[172].mxu1 }
 0x453   : > { %v15880_v19 = vadd.f32 %v21739_v13, %v6511_v41  ;;  %v6513_v48 = vpop.f32.mrb[173].mxu1  ;;  %v6914_v27 = vpop.permute.xlu1 %6913  ;;  %v11799_v41 = vrot.slane %v11797_v26, 1 }
 0x454   : > { %v11892_v3 = vpop.permute.xlu0 %11891  ;;  %v12347_v16 = vld [vmem:[#allocation3 + $0x18] sm:$0xff]  ;;  %v7066_v59 = vsel %vm2072_vm14, %v23011_v43, %v6914_v27  ;;  %v6514_v37 = vpop.f32.mrb[174].mxu1  ;;  %v11809_v43 = vshrl.u32 %v16757_v21, 16  ;;  %v23016_v21 = vld [vmem:[#allocation103_spill] sm:$0xff] }
 0x455   : > { %11980 = vst.msk [vmem:[#allocation3 + $0x40] sm:$0xff] %vm2652_vm15, %v11892_v3  ;;  %13184 = vmatprep.mubr.bf16.mxu0 %v12347_v16  ;;  %v21820_v33 = vadd.f32 %v15880_v19, %v23012_v23  ;;  %7126 = vst [vmem:[%s21369_s26 + $0xd8] sm:$0xff] %v7066_v59  ;;  %v15881_v29 = vadd.f32 %v21739_v13, %v6514_v37  ;;  %v6516_v30 = vpop.f32.mrb[175].mxu1  ;;  %11921 = vrot.lane.b32.xlu0 %v11784_v63, %s16826_s8  ;;  %v16759_v19 = vld [vmem:[#allocation2 + $0xc0] sm:$0xff]   ;;  %v16803_v16 = vld [vmem:[#allocation2 + $0xf0] sm:$0xff]   ;;  %v11807_v23 = vrot.slane %v11805_v53, 1 }
 0x456   : > { %v11800_v4 = vsel %vm2317_vm12, %v11795_v49, %v11799_v41  ;;  %v11803_v26 = vor.u32 %v11801_v47, %v11799_v41  ;;  %v16761_v59 = vld [vmem:[#allocation2 + $0xc8] sm:$0xff]   ;;  %v23014_v37 = vld [vmem:[#allocation32_spill] sm:$0xff]  ;;  %11428 = vst.msk [vmem:[#allocation3 + $0x450] sm:$0xff] %vm2072_vm14, %v16803_v16  ;;  %v11817_v47 = vshrl.u32 %v16759_v19, 16 }
 0x457   : > { %v6788_v12 = vadd.f32 %v15881_v29, %v23013_v40  ;;  %v11813_v29 = vshll.u32 %v16759_v19, 16  ;;  %v23015_v30 = vld [vmem:[#allocation101_spill] sm:$0xff] }
 0x458   : > { %v11044_v18 = vpop.permute.xlu0 %11043  ;;  %v12346_v34 = vld [vmem:[#allocation3 + $0x10] sm:$0xff]  ;;  %v11808_v53 = vsel %vm2317_vm12, %v11803_v26, %v11807_v23 }
 0x459   : > { %11132 = vst.msk [vmem:[#allocation3 + $0x38] sm:$0xff] %vm2652_vm15, %v11044_v18  ;;  %13185 = vmatmul.mubr.bf16.vlgmr.msra.gmra.mrb[120].mxu0 %v12346_v34  ;;  %6973 = vrot.lane.b32.xlu1 %v6788_v12, %s16826_s8 }
 0x45a   : > { %11923 = vrot.lane.b32.xlu0 %v11792_v54, %s16826_s8  ;;  %v6519_v48 = vpop.f32.mrb[176].mxu1  ;;  %v11821_v54 = vshll.u32 %v16761_v59, 16 }
 0x45b   : > { %v15882_v27 = vadd.f32 %v21739_v13, %v6519_v48  ;;  %v6521_v60 = vpop.f32.mrb[177].mxu1  ;;  %v6918_v3 = vpop.permute.xlu1 %6917  ;;  %v11811_v48 = vor.u32 %v11809_v43, %v11807_v23 }
 0x45c   : > { %v11894_v63 = vpop.permute.xlu0 %11893  ;;  %v12352_v8 = vld [vmem:[#allocation3 + $0x40] sm:$0xff]  ;;  %v7068_v51 = vsel %vm2072_vm14, %v23014_v37, %v6918_v3  ;;  %v6522_v11 = vpop.f32.mrb[178].mxu1 }
 0x45d   : > { %11981 = vst.msk [vmem:[#allocation3 + $0x68] sm:$0xff] %vm2652_vm15, %v11894_v63  ;;  %13192 = vmatprep.mubr.bf16.mxu0 %v12352_v8  ;;  %v21837_v40 = vadd.f32 %v15882_v27, %v23015_v30  ;;  %7128 = vst [vmem:[%s21369_s26 + $0xe8] sm:$0xff] %v7068_v51  ;;  %v15883_v12 = vadd.f32 %v21739_v13, %v6522_v11  ;;  %v6524_v18 = vpop.f32.mrb[179].mxu1  ;;  %v11815_v27 = vrot.slane %v11813_v29, 1  ;;  %v16763_v60 = vld [vmem:[#allocation2 + $0xd0] sm:$0xff]   ;;  %v11825_v11 = vshrl.u32 %v16761_v59, 16 }
 0x45e   : > { %11925 = vrot.lane.b32.xlu0 %v11800_v4, %s16826_s8  ;;  %v11823_v4 = vrot.slane %v11821_v54, 1  ;;  %v23017_v37 = vld [vmem:[#allocation34_spill] sm:$0xff]  ;;  %v11829_v23 = vshll.u32 %v16763_v60, 16  ;;  %v16765_v29 = vld [vmem:[#allocation2 + $0xd8] sm:$0xff]   ;;  %v16767_v54 = vld [vmem:[#allocation2 + $0xe0] sm:$0xff]  }
 0x45f   : > { %v6796_v34 = vadd.f32 %v15883_v12, %v23016_v21  ;;  %v11819_v8 = vor.u32 %v11817_v47, %v11815_v27  ;;  %v11816_v51 = vsel %vm2317_vm12, %v11811_v48, %v11815_v27  ;;  %v11837_v47 = vshll.u32 %v16765_v29, 16 }
 0x460   : > { %v11046_v49 = vpop.permute.xlu0 %11045  ;;  %v12351_v41 = vld [vmem:[#allocation3 + $0x38] sm:$0xff] }
 0x461   : > { %11133 = vst.msk [vmem:[#allocation3 + $0x60] sm:$0xff] %vm2652_vm15, %v11046_v49  ;;  %13193 = vmatmul.mubr.bf16.gmra.mrb[124].mxu0 %v12351_v41  ;;  %6977 = vrot.lane.b32.xlu1 %v6796_v34, %s16826_s8  ;;  %v11824_v21 = vsel %vm2317_vm12, %v11819_v8, %v11823_v4  ;;  %v11827_v34 = vor.u32 %v11825_v11, %v11823_v4  ;;  %v11831_v49 = vrot.slane %v11829_v23, 1  ;;  %v11833_v41 = vshrl.u32 %v16763_v60, 16  ;;  %v23018_v8 = vld [vmem:[#allocation36_spill] sm:$0xff] }
 0x462   : > { %11927 = vrot.lane.b32.xlu0 %v11808_v53, %s16826_s8  ;;  %v21848_v13 = vpop.f32.mrb[180].mxu1  ;;  %v11845_v11 = vshll.u32 %v16767_v54, 16 }
 0x463   : > { %v21850_v3 = vpop.f32.mrb[181].mxu1  ;;  %v6922_v16 = vpop.permute.xlu1 %6921  ;;  %v11832_v60 = vsel %vm2317_vm12, %v11827_v34, %v11831_v49  ;;  %v16771_v34 = vld [vmem:[#allocation2 + $0xf0] sm:$0xff]  }
 0x464   : > { %v11896_v19 = vpop.permute.xlu0 %11895  ;;  %v12357_v63 = vld [vmem:[#allocation3 + $0x68] sm:$0xff]  ;;  %v7070_v26 = vsel %vm2072_vm14, %v23017_v37, %v6922_v16  ;;  %v21854_v43 = vpop.f32.mrb[182].mxu1 }
 0x465   : > { %11982 = vst.msk [vmem:[#allocation3 + $0x90] sm:$0xff] %vm2652_vm15, %v11896_v19  ;;  %13200 = vmatprep.mubr.bf16.mxu0 %v12357_v63  ;;  %7130 = vst [vmem:[%s21369_s26 + $0xf8] sm:$0xff] %v7070_v26  ;;  %v21859_v30 = vpop.f32.mrb[183].mxu1  ;;  %v11841_v19 = vshrl.u32 %v16765_v29, 16  ;;  %v16769_v63 = vld [vmem:[#allocation2 + $0xe8] sm:$0xff]   ;;  %v11835_v26 = vor.u32 %v11833_v41, %v11831_v49 }
 0x466   : > { %11929 = vrot.lane.b32.xlu0 %v11816_v51, %s16826_s8  ;;  %v11839_v51 = vrot.slane %v11837_v47, 1 }
 0x468   : > { %v11048_v12 = vpop.permute.xlu0 %11047  ;;  %v12356_v18 = vld [vmem:[#allocation3 + $0x60] sm:$0xff] }
 0x469   : > { %11134 = vst.msk [vmem:[#allocation3 + $0x88] sm:$0xff] %vm2652_vm15, %v11048_v12  ;;  %13201 = vmatmul.mubr.bf16.gmra.mrb[128].mxu0 %v12356_v18  ;;  %v11849_v18 = vshrl.u32 %v16767_v54, 16 }
 0x46a   : > { %11931 = vrot.lane.b32.xlu0 %v11824_v21, %s16826_s8  ;;  %v21865_v59 = vpop.f32.mrb[184].mxu1  ;;  %v11853_v21 = vshll.u32 %v16769_v63, 16 }
 0x46b   : > { %v21867_v53 = vpop.f32.mrb[185].mxu1  ;;  %v6926_v48 = vpop.permute.xlu1 %6925 }
 0x46c   : > { %v11898_v27 = vpop.permute.xlu0 %11897  ;;  %v12362_v16 = vld [vmem:[#allocation3 + $0x90] sm:$0xff]  ;;  %v7072_v37 = vsel %vm2072_vm14, %v23018_v8, %v6926_v48  ;;  %v21871_v4 = vpop.f32.mrb[186].mxu1  ;;  %v11840_v48 = vsel %vm2317_vm12, %v11835_v26, %v11839_v51  ;;  %v11857_v26 = vshrl.u32 %v16769_v63, 16 }
 0x46d   : > { %11983 = vst.msk [vmem:[#allocation3 + $0xb8] sm:$0xff] %vm2652_vm15, %v11898_v27  ;;  %13208 = vmatprep.mubr.bf16.mxu0 %v12362_v16  ;;  %7132 = vst [vmem:[%s21369_s26 + $0x108] sm:$0xff] %v7072_v37  ;;  %v21876_v23 = vpop.f32.mrb[187].mxu1  ;;  %v11843_v27 = vor.u32 %v11841_v19, %v11839_v51  ;;  %v11847_v16 = vrot.slane %v11845_v11, 1  ;;  %v11861_v51 = vshll.u32 %v16771_v34, 16  ;;  %v16773_v11 = vld [vmem:[#allocation2 + $0xf8] sm:$0xff]  }
 0x46e   : > { %11933 = vrot.lane.b32.xlu0 %v11832_v60, %s16826_s8  ;;  %v11855_v60 = vrot.slane %v11853_v21, 1  ;;  %v11873_v17 = vshrl.u32 %v16773_v11, 16 }
 0x46f   : > { %v11851_v54 = vor.u32 %v11849_v18, %v11847_v16  ;;  %v11848_v19 = vsel %vm2317_vm12, %v11843_v27, %v11847_v16  ;;  %v16775_v27 = vld [vmem:[#allocation2 + $0x100] sm:$0xff]  }
 0x470   : > { %v11050_v29 = vpop.permute.xlu0 %11049  ;;  %v12361_v12 = vld [vmem:[#allocation3 + $0x88] sm:$0xff]  ;;  %v16805_v16 = vld [vmem:[#allocation2 + $0x100] sm:$0xff]  }
 0x471   : > { %11135 = vst.msk [vmem:[#allocation3 + $0xb0] sm:$0xff] %vm2652_vm15, %v11050_v29  ;;  %13209 = vmatmul.mubr.bf16.gmra.mrb[132].mxu0 %v12361_v12  ;;  %v11856_v28 = vsel %vm2317_vm12, %v11851_v54, %v11855_v60 }
 0x472   : > { %11935 = vrot.lane.b32.xlu0 %v11840_v48, %s16826_s8  ;;  %v21882_v49 = vpop.f32.mrb[188].mxu1  ;;  %11430 = vst.msk [vmem:[#allocation3 + $0x4a0] sm:$0xff] %vm2072_vm14, %v16805_v16 }
 0x473   : > { %v21884_v41 = vpop.f32.mrb[189].mxu1  ;;  %v6930_v47 = vpop.permute.xlu1 %6929 }
 0x474   : > { %v11900_v8 = vpop.permute.xlu0 %11899  ;;  %v12367_v37 = vld [vmem:[#allocation3 + $0xb8] sm:$0xff]  ;;  %v7074_v29 = vsel %vm2072_vm14, %v23019_v7, %v6930_v47  ;;  %v21888_v12 = vpop.f32.mrb[190].mxu1  ;;  %v11859_v7 = vor.u32 %v11857_v26, %v11855_v60  ;;  %v11863_v47 = vrot.slane %v11861_v51, 1  ;;  %v11877_v51 = vshll.u32 %v16775_v27, 16 }
 0x475   : > { %11984 = vst.msk [vmem:[#allocation3 + $0xe0] sm:$0xff] %vm2652_vm15, %v11900_v8  ;;  %13216 = vmatprep.mubr.bf16.mxu0 %v12367_v37  ;;  %7134 = vst [vmem:[%s21369_s26 + $0x118] sm:$0xff] %v7074_v29  ;;  %v21893_v48 = vpop.f32.mrb[191].mxu1  ;;  %v11865_v8 = vshrl.u32 %v16771_v34, 16  ;;  %v11869_v37 = vshll.u32 %v16773_v11, 16 }
 0x476   : > { %11937 = vrot.lane.b32.xlu0 %v11848_v19, %s16826_s8  ;;  %v16777_v29 = vld [vmem:[#allocation2 + $0x108] ss:$0 sps:$4 sm:$0x11]  }
 0x477   : > { %v11867_v34 = vor.u32 %v11865_v8, %v11863_v47  ;;  %v11871_v26 = vrot.slane %v11869_v37, 1 }
 0x478   : > { %v11052_v18 = vpop.permute.xlu0 %11051  ;;  %v12366_v21 = vld [vmem:[#allocation3 + $0xb0] sm:$0xff] }
 0x479   : > { %11136 = vst.msk [vmem:[#allocation3 + $0xd8] sm:$0xff] %vm2652_vm15, %v11052_v18  ;;  %13217 = vmatmul.mubr.bf16.gmra.mrb[136].mxu0 %v12366_v21 }
 0x47a   : > { %11939 = vrot.lane.b32.xlu0 %v11856_v28, %s16826_s8  ;;  %v21899_v63 = vpop.f32.mrb[192].mxu1  ;;  %v11864_v28 = vsel %vm2317_vm12, %v11859_v7, %v11863_v47  ;;  %v11875_v7 = vor.u32 %v11873_v17, %v11871_v26  ;;  %v11879_v47 = vrot.slane %v11877_v51, 1 }
 0x47b   : > { %23020 = vst [vmem:[#allocation66_spill] sm:$0xff] %v21899_v63  ;;  %v21901_v19 = vpop.f32.mrb[193].mxu1  ;;  %v6934_v56 = vpop.permute.xlu1 %6933  ;;  %v11881_v63 = vshrl.u32 %v16775_v27, 16 }
 0x47c   : > { %v11902_v61 = vpop.permute.xlu0 %11901  ;;  %v12372_v54 = vld [vmem:[#allocation3 + $0xe0] sm:$0xff]  ;;  %v7076_v18 = vsel %vm2072_vm14, %v23021_v62, %v6934_v56  ;;  %v21905_v60 = vpop.f32.mrb[194].mxu1  ;;  %v11885_v62 = vshll.u32 %v16777_v29, 16  ;;  %v11880_v17 = vsel %vm2317_vm12, %v11875_v7, %v11879_v47 }
 0x47d   : > { %23022 = vst [vmem:[#allocation68_spill] sm:$0xff] %v21905_v60  ;;  %11985 = vst.msk [vmem:[#allocation3 + $0x108] sm:$0xff] %vm2652_vm15, %v11902_v61  ;;  %13224 = vmatprep.mubr.bf16.mxu0 %v12372_v54  ;;  %v21911_v21 = vpop.f32.mrb[195].mxu1  ;;  %v11872_v61 = vsel %vm2317_vm12, %v11867_v34, %v11871_v26  ;;  %v11883_v37 = vor.u32 %v11881_v63, %v11879_v47 }
 0x47e   : > { %7136 = vst [vmem:[%s21369_s26 + $0x128] sm:$0xff] %v7076_v18  ;;  %11941 = vrot.lane.b32.xlu0 %v11864_v28, %s16826_s8  ;;  %v11887_v16 = vrot.slane %v11885_v62, 1  ;;  %v23023_v18 = vld [vmem:[#allocation42_spill] sm:$0xff] }
 0x480   : > { %v11054_v56 = vpop.permute.xlu0 %11053  ;;  %v12371_v60 = vld [vmem:[#allocation3 + $0xd8] sm:$0xff]  ;;  %v11888_v63 = vsel %vm2317_vm12, %v11883_v37, %v11887_v16 }
 0x481   : > { %11137 = vst.msk [vmem:[#allocation3 + $0x100] sm:$0xff] %vm2652_vm15, %v11054_v56  ;;  %13225 = vmatmul.mubr.bf16.gmra.mrb[140].mxu0 %v12371_v60 }
 0x482   : > { %11943 = vrot.lane.b32.xlu0 %v11872_v61, %s16826_s8  ;;  %v21917_v8 = vpop.f32.mrb[196].mxu1 }
 0x483   : > { %v21919_v54 = vpop.f32.mrb[197].mxu1  ;;  %v6938_v11 = vpop.permute.xlu1 %6937 }
 0x484   : > { %v11904_v27 = vpop.permute.xlu0 %11903  ;;  %v12377_v29 = vld [vmem:[#allocation3 + $0x108] sm:$0xff]  ;;  %v7078_v28 = vsel %vm2072_vm14, %v23023_v18, %v6938_v11  ;;  %v21923_v60 = vpop.f32.mrb[198].mxu1  ;;  %v23024_v11 = vld [vmem:[#allocation44_spill] sm:$0xff] }
 0x485   : > { %11986 = vst.msk [vmem:[#allocation3 + $0x130] sm:$0xff] %vm2652_vm15, %v11904_v27  ;;  %13232 = vmatprep.mubr.bf16.mxu0 %v12377_v29  ;;  %7138 = vst [vmem:[%s21369_s26 + $0x138] sm:$0xff] %v7078_v28  ;;  %v21928_v34 = vpop.f32.mrb[199].mxu1 }
 0x486   : > { %11945 = vrot.lane.b32.xlu0 %v11880_v17, %s16826_s8 }
 0x488   : > { %v11056_v26 = vpop.permute.xlu0 %11055  ;;  %v12376_v51 = vld [vmem:[#allocation3 + $0x100] sm:$0xff] }
 0x489   : > { %11138 = vst.msk [vmem:[#allocation3 + $0x128] sm:$0xff] %vm2652_vm15, %v11056_v26  ;;  %13233 = vmatmul.mubr.bf16.gmra.mrb[144].mxu0 %v12376_v51 }
 0x48a   : > { %11947 = vrot.lane.b32.xlu0 %v11888_v63, %s16826_s8  ;;  %v21934_v62 = vpop.f32.mrb[200].mxu1 }
 0x48b   : > { %v21936_v56 = vpop.f32.mrb[201].mxu1  ;;  %v6942_v47 = vpop.permute.xlu1 %6941 }
 0x48c   : > { %v11906_v61 = vpop.permute.xlu0 %11905  ;;  %v12382_v7 = vld [vmem:[#allocation3 + $0x130] sm:$0xff]  ;;  %v7080_v37 = vsel %vm2072_vm14, %v23024_v11, %v6942_v47  ;;  %v21941_v16 = vpop.f32.mrb[202].mxu1 }
 0x48d   : > { %11987 = vst.msk [vmem:[#allocation3 + $0x158] sm:$0xff] %vm2652_vm15, %v11906_v61  ;;  %13240 = vmatprep.mubr.bf16.mxu0 %v12382_v7  ;;  %7140 = vst [vmem:[%s21369_s26 + $0x148] sm:$0xff] %v7080_v37  ;;  %v21946_v27 = vpop.f32.mrb[203].mxu1 }
 0x48e   : > { %6859 = vrot.lane.b32.xlu0 %v20796_v15, %s16826_s8  ;;  %v23025_v15 = vld [vmem:[#allocation46_spill] sm:$0xff] }
 0x490   : > { %v11058_v29 = vpop.permute.xlu0 %11057  ;;  %v12381_v18 = vld [vmem:[#allocation3 + $0x128] sm:$0xff] }
 0x491   : > { %11139 = vst.msk [vmem:[#allocation3 + $0x150] sm:$0xff] %vm2652_vm15, %v11058_v29  ;;  %13241 = vmatmul.mubr.bf16.gmra.mrb[148].mxu0 %v12381_v18 }
 0x492   : > { %6863 = vrot.lane.b32.xlu0 %v20837_v44, %s16826_s8  ;;  %v21951_v28 = vpop.f32.mrb[204].mxu1 }
 0x493   : > { %v21953_v17 = vpop.f32.mrb[205].mxu1  ;;  %v6946_v63 = vpop.permute.xlu1 %6945 }
 0x494   : > { %v11908_v26 = vpop.permute.xlu0 %11907  ;;  %v12387_v51 = vld [vmem:[#allocation3 + $0x158] sm:$0xff]  ;;  %v7082_v61 = vsel %vm2072_vm14, %v23025_v15, %v6946_v63  ;;  %v21957_v7 = vpop.f32.mrb[206].mxu1 }
 0x495   : > { %11988 = vst.msk [vmem:[#allocation3 + $0x180] sm:$0xff] %vm2652_vm15, %v11908_v26  ;;  %13248 = vmatprep.mubr.bf16.mxu0 %v12387_v51  ;;  %7142 = vst [vmem:[%s21369_s26 + $0x158] sm:$0xff] %v7082_v61  ;;  %v21961_v47 = vpop.f32.mrb[207].mxu1  ;;  %v23027_v51 = vld [vmem:[#allocation48_spill] sm:$0xff] }
 0x496   : > { %6867 = vrot.lane.b32.xlu0 %v20884_v42, %s16826_s8 }
 0x498   : > { %v11060_v44 = vpop.permute.xlu0 %11059  ;;  %v12386_v11 = vld [vmem:[#allocation3 + $0x150] sm:$0xff] }
 0x499   : > { %11140 = vst.msk [vmem:[#allocation3 + $0x178] sm:$0xff] %vm2652_vm15, %v11060_v44  ;;  %13249 = vmatmul.mubr.bf16.gmra.mrb[152].mxu0 %v12386_v11 }
 0x49a   : > { %6871 = vrot.lane.b32.xlu0 %v20922_v58, %s16826_s8  ;;  %v21968_v37 = vpop.f32.mrb[208].mxu1 }
 0x49b   : > { %23026 = vst [vmem:[#allocation65_spill] sm:$0xff] %v21968_v37  ;;  %v21970_v29 = vpop.f32.mrb[209].mxu1  ;;  %v6950_v18 = vpop.permute.xlu1 %6949 }
 0x49c   : > { %v11910_v63 = vpop.permute.xlu0 %11909  ;;  %v12392_v26 = vld [vmem:[#allocation3 + $0x180] sm:$0xff]  ;;  %v7084_v15 = vsel %vm2072_vm14, %v23027_v51, %v6950_v18  ;;  %v21974_v61 = vpop.f32.mrb[210].mxu1 }
 0x49d   : > { %23028 = vst [vmem:[#allocation67_spill] sm:$0xff] %v21974_v61  ;;  %11989 = vst.msk [vmem:[#allocation3 + $0x1a8] sm:$0xff] %vm2652_vm15, %v11910_v63  ;;  %13256 = vmatprep.mubr.bf16.mxu0 %v12392_v26  ;;  %v21978_v42 = vpop.f32.mrb[211].mxu1 }
 0x49e   : > { %7144 = vst [vmem:[%s21369_s26 + $0x168] sm:$0xff] %v7084_v15  ;;  %6875 = vrot.lane.b32.xlu0 %v20958_v2, %s16826_s8  ;;  %v23030_v15 = vld [vmem:[#allocation50_spill] sm:$0xff] }
 0x4a0   : > { %v11062_v58 = vpop.permute.xlu0 %11061  ;;  %v12391_v44 = vld [vmem:[#allocation3 + $0x178] sm:$0xff] }
 0x4a1   : > { %11141 = vst.msk [vmem:[#allocation3 + $0x1a0] sm:$0xff] %vm2652_vm15, %v11062_v58  ;;  %13257 = vmatmul.mubr.bf16.gmra.mrb[156].mxu0 %v12391_v44 }
 0x4a2   : > { %6879 = vrot.lane.b32.xlu0 %v20990_v5, %s16826_s8  ;;  %v21985_v11 = vpop.f32.mrb[212].mxu1 }
 0x4a3   : > { %23029 = vst [vmem:[#allocation70_spill] sm:$0xff] %v21985_v11  ;;  %v21987_v18 = vpop.f32.mrb[213].mxu1  ;;  %v6954_v63 = vpop.permute.xlu1 %6953 }
 0x4a4   : > { %v11912_v26 = vpop.permute.xlu0 %11911  ;;  %v12397_v51 = vld [vmem:[#allocation3 + $0x1a8] sm:$0xff]  ;;  %v7086_v61 = vsel %vm2072_vm14, %v23030_v15, %v6954_v63  ;;  %v21991_v37 = vpop.f32.mrb[214].mxu1  ;;  %v23033_v15 = vld [vmem:[#allocation52_spill] sm:$0xff] }
 0x4a5   : > { %23031 = vst [vmem:[#allocation72_spill] sm:$0xff] %v21991_v37  ;;  %11990 = vst.msk [vmem:[#allocation3 + $0x1d0] sm:$0xff] %vm2652_vm15, %v11912_v26  ;;  %13264 = vmatprep.mubr.bf16.mxu0 %v12397_v51  ;;  %v21995_v2 = vpop.f32.mrb[215].mxu1 }
 0x4a6   : > { %7146 = vst [vmem:[%s21369_s26 + $0x178] sm:$0xff] %v7086_v61  ;;  %6883 = vrot.lane.b32.xlu0 %v21023_v22, %s16826_s8 }
 0x4a8   : > { %v11064_v5 = vpop.permute.xlu0 %11063  ;;  %v12396_v58 = vld [vmem:[#allocation3 + $0x1a0] sm:$0xff] }
 0x4a9   : > { %11142 = vst.msk [vmem:[#allocation3 + $0x1c8] sm:$0xff] %vm2652_vm15, %v11064_v5  ;;  %13265 = vmatmul.mubr.bf16.gmra.mrb[160].mxu0 %v12396_v58 }
 0x4aa   : > { %6887 = vrot.lane.b32.xlu0 %v21060_v10, %s16826_s8  ;;  %v22002_v44 = vpop.f32.mrb[216].mxu1 }
 0x4ab   : > { %23032 = vst [vmem:[#allocation69_spill] sm:$0xff] %v22002_v44  ;;  %v22004_v63 = vpop.f32.mrb[217].mxu1  ;;  %v6958_v26 = vpop.permute.xlu1 %6957 }
 0x4ac   : > { %v11914_v61 = vpop.permute.xlu0 %11913  ;;  %v12402_v51 = vld [vmem:[#allocation3 + $0x1d0] sm:$0xff]  ;;  %v7088_v37 = vsel %vm2072_vm14, %v23033_v15, %v6958_v26  ;;  %v22008_v11 = vpop.f32.mrb[218].mxu1  ;;  %v23036_v15 = vld [vmem:[#allocation54_spill] sm:$0xff] }
 0x4ad   : > { %23034 = vst [vmem:[#allocation71_spill] sm:$0xff] %v22008_v11  ;;  %11991 = vst.msk [vmem:[#allocation3 + $0x1f8] sm:$0xff] %vm2652_vm15, %v11914_v61  ;;  %13272 = vmatprep.mubr.bf16.mxu0 %v12402_v51  ;;  %v22012_v22 = vpop.f32.mrb[219].mxu1 }
 0x4ae   : > { %7148 = vst [vmem:[%s21369_s26 + $0x188] sm:$0xff] %v7088_v37  ;;  %6891 = vrot.lane.b32.xlu0 %v21100_v46, %s16826_s8 }
 0x4b0   : > { %v11066_v10 = vpop.permute.xlu0 %11065  ;;  %v12401_v5 = vld [vmem:[#allocation3 + $0x1c8] sm:$0xff] }
 0x4b1   : > { %11143 = vst.msk [vmem:[#allocation3 + $0x1f0] sm:$0xff] %vm2652_vm15, %v11066_v10  ;;  %13273 = vmatmul.mubr.bf16.gmra.mrb[164].mxu0 %v12401_v5 }
 0x4b2   : > { %6895 = vrot.lane.b32.xlu0 %v21137_v32, %s16826_s8  ;;  %v22019_v58 = vpop.f32.mrb[220].mxu1 }
 0x4b3   : > { %23035 = vst [vmem:[#allocation74_spill] sm:$0xff] %v22019_v58  ;;  %v22021_v26 = vpop.f32.mrb[221].mxu1  ;;  %v6962_v61 = vpop.permute.xlu1 %6961 }
 0x4b4   : > { %v11916_v37 = vpop.permute.xlu0 %11915  ;;  %v12407_v51 = vld [vmem:[#allocation3 + $0x1f8] sm:$0xff]  ;;  %v7090_v11 = vsel %vm2072_vm14, %v23036_v15, %v6962_v61  ;;  %v22025_v44 = vpop.f32.mrb[222].mxu1  ;;  %v12493_v61 = vld [vmem:[#allocation3 + $0x4a8] sm:$0xff] }
 0x4b5   : > { %23037 = vst [vmem:[#allocation76_spill] sm:$0xff] %v22025_v44  ;;  %11992 = vst.msk [vmem:[#allocation3 + $0x220] sm:$0xff] %vm2652_vm15, %v11916_v37  ;;  %13280 = vmatprep.mubr.bf16.mxu0 %v12407_v51  ;;  %v22029_v46 = vpop.f32.mrb[223].mxu1  ;;  %15809 = vmatmul.mubr.msk.bf16.gmra.mrb[236].mxu1 %vm2072_vm14, %v12493_v61 }
 0x4b6   : > { %7150 = vst [vmem:[%s21369_s26 + $0x198] sm:$0xff] %v7090_v11  ;;  %6899 = vrot.lane.b32.xlu0 %v21179_v24, %s16826_s8  ;;  %v23039_v24 = vld [vmem:[#allocation56_spill] sm:$0xff] }
 0x4b8   : > { %v11068_v32 = vpop.permute.xlu0 %11067  ;;  %v12406_v10 = vld [vmem:[#allocation3 + $0x1f0] sm:$0xff] }
 0x4b9   : > { %11144 = vst.msk [vmem:[#allocation3 + $0x218] sm:$0xff] %vm2652_vm15, %v11068_v32  ;;  %13281 = vmatmul.mubr.bf16.gmra.mrb[168].mxu0 %v12406_v10 }
 0x4ba   : > { %6903 = vrot.lane.b32.xlu0 %v21214_v31, %s16826_s8  ;;  %v22036_v5 = vpop.f32.mrb[224].mxu1 }
 0x4bb   : > { %23038 = vst [vmem:[#allocation4_spill] sm:$0xff] %v22036_v5  ;;  %v22038_v37 = vpop.f32.mrb[225].mxu1  ;;  %v6966_v11 = vpop.permute.xlu1 %6965 }
 0x4bc   : > { %v11918_v51 = vpop.permute.xlu0 %11917  ;;  %v12412_v15 = vld [vmem:[#allocation3 + $0x220] sm:$0xff]  ;;  %v7092_v44 = vsel %vm2072_vm14, %v23039_v24, %v6966_v11  ;;  %v22043_v58 = vpop.f32.mrb[226].mxu1 }
 0x4bd   : > { %23040 = vst [vmem:[#allocation73_spill] sm:$0xff] %v22043_v58  ;;  %11993 = vst.msk [vmem:[#allocation3 + $0x248] sm:$0xff] %vm2652_vm15, %v11918_v51  ;;  %13288 = vmatprep.mubr.bf16.mxu0 %v12412_v15  ;;  %v22047_v31 = vpop.f32.mrb[227].mxu1  ;;  %v23042_v24 = vld [vmem:[#allocation58_spill] sm:$0xff] }
 0x4be   : > { %7152 = vst [vmem:[%s21369_s26 + $0x1a8] sm:$0xff] %v7092_v44  ;;  %6907 = vrot.lane.b32.xlu0 %v21257_v52, %s16826_s8 }
 0x4c0   : > { %v11070_v32 = vpop.permute.xlu0 %11069  ;;  %v12411_v10 = vld [vmem:[#allocation3 + $0x218] sm:$0xff] }
 0x4c1   : > { %11145 = vst.msk [vmem:[#allocation3 + $0x240] sm:$0xff] %vm2652_vm15, %v11070_v32  ;;  %13289 = vmatmul.mubr.bf16.gmra.mrb[172].mxu0 %v12411_v10 }
 0x4c2   : > { %6911 = vrot.lane.b32.xlu0 %v21296_v45, %s16826_s8  ;;  %v22054_v61 = vpop.f32.mrb[228].mxu1 }
 0x4c3   : > { %23041 = vst [vmem:[#allocation64_spill] sm:$0xff] %v22054_v61  ;;  %v22056_v11 = vpop.f32.mrb[229].mxu1  ;;  %v6970_v51 = vpop.permute.xlu1 %6969 }
 0x4c4   : > { %v11920_v44 = vpop.permute.xlu0 %11919  ;;  %v12417_v15 = vld [vmem:[#allocation3 + $0x248] sm:$0xff]  ;;  %v7094_v58 = vsel %vm2072_vm14, %v23042_v24, %v6970_v51  ;;  %v22060_v5 = vpop.f32.mrb[230].mxu1  ;;  %v23044_v24 = vld [vmem:[#allocation60_spill] sm:$0xff] }
 0x4c5   : > { %23043 = vst [vmem:[#allocation75_spill] sm:$0xff] %v22060_v5  ;;  %11994 = vst.msk [vmem:[#allocation3 + $0x270] sm:$0xff] %vm2652_vm15, %v11920_v44  ;;  %13296 = vmatprep.mubr.bf16.mxu0 %v12417_v15  ;;  %v22064_v52 = vpop.f32.mrb[231].mxu1 }
 0x4c6   : > { %7154 = vst [vmem:[%s21369_s26 + $0x1b8] sm:$0xff] %v7094_v58  ;;  %6915 = vrot.lane.b32.xlu0 %v21339_v14, %s16826_s8 }
 0x4c8   : > { %v11922_v45 = vpop.permute.xlu0 %11921  ;;  %v12416_v32 = vld [vmem:[#allocation3 + $0x240] sm:$0xff] }
 0x4c9   : > { %11995 = vst.msk [vmem:[#allocation3 + $0x298] sm:$0xff] %vm2652_vm15, %v11922_v45  ;;  %13297 = vmatmul.mubr.bf16.gmra.mrb[176].mxu0 %v12416_v32  ;;  %v12421_v45 = vld [vmem:[#allocation3 + $0x268] sm:$0xff] }
 0x4ca   : > { %6919 = vrot.lane.b32.xlu0 %v21388_v0, %s16826_s8  ;;  %v22071_v10 = vpop.f32.mrb[232].mxu1 }
 0x4cb   : > { %v22073_v51 = vpop.f32.mrb[233].mxu1  ;;  %v6974_v44 = vpop.permute.xlu1 %6973 }
 0x4cc   : > { %v11924_v58 = vpop.permute.xlu0 %11923  ;;  %v12422_v15 = vld [vmem:[#allocation3 + $0x270] sm:$0xff]  ;;  %v7096_v5 = vsel %vm2072_vm14, %v23044_v24, %v6974_v44  ;;  %v22077_v61 = vpop.f32.mrb[234].mxu1  ;;  %v23045_v24 = vld [vmem:[#allocation62_spill] sm:$0xff] }
 0x4cd   : > { %11996 = vst.msk [vmem:[#allocation3 + $0x2c0] sm:$0xff] %vm2652_vm15, %v11924_v58  ;;  %13304 = vmatprep.mubr.bf16.mxu0 %v12422_v15  ;;  %7156 = vst [vmem:[%s21369_s26 + $0x1c8] sm:$0xff] %v7096_v5  ;;  %v22081_v14 = vpop.f32.mrb[235].mxu1  ;;  %v12426_v15 = vld [vmem:[#allocation3 + $0x290] sm:$0xff] }
 0x4ce   : > { %6923 = vrot.lane.b32.xlu0 %v21431_v36, %s16826_s8 }
 0x4d0   : > { %v11926_v0 = vpop.permute.xlu0 %11925  ;;  %v12427_v32 = vld [vmem:[#allocation3 + $0x298] sm:$0xff] }
 0x4d1   : > { %11997 = vst.msk [vmem:[#allocation3 + $0x2e8] sm:$0xff] %vm2652_vm15, %v11926_v0  ;;  %13305 = vmatmul.mubr.bf16.gmra.mrb[180].mxu0 %v12421_v45 }
 0x4d2   : > { %13312 = vmatprep.mubr.bf16.mxu0 %v12427_v32  ;;  %6927 = vrot.lane.b32.xlu0 %v21473_v25, %s16826_s8  ;;  %v12431_v32 = vld [vmem:[#allocation3 + $0x2b8] sm:$0xff] }
 0x4d3   : > { %v6978_v44 = vpop.permute.xlu1 %6977 }
 0x4d4   : > { %v11928_v58 = vpop.permute.xlu0 %11927  ;;  %v7098_v5 = vsel %vm2072_vm14, %v23045_v24, %v6978_v44  ;;  %v12432_v0 = vld [vmem:[#allocation3 + $0x2c0] sm:$0xff] }
 0x4d5   : > { %11998 = vst.msk [vmem:[#allocation3 + $0x310] sm:$0xff] %vm2652_vm15, %v11928_v58  ;;  %7158 = vst [vmem:[%s21369_s26 + $0x1d8] sm:$0xff] %v7098_v5  ;;  %v12436_v58 = vld [vmem:[#allocation3 + $0x2e0] sm:$0xff]  ;;  %v12441_v5 = vld [vmem:[#allocation3 + $0x308] sm:$0xff] }
 0x4d6   : > { %6931 = vrot.lane.b32.xlu0 %v21503_v50, %s16826_s8 }
 0x4d8   : > { %v11930_v36 = vpop.permute.xlu0 %11929  ;;  %v12437_v50 = vld [vmem:[#allocation3 + $0x2e8] sm:$0xff] }
 0x4d9   : > { %11999 = vst.msk [vmem:[#allocation3 + $0x338] sm:$0xff] %vm2652_vm15, %v11930_v36  ;;  %13313 = vmatmul.mubr.bf16.gmra.mrb[184].mxu0 %v12426_v15  ;;  %v12446_v15 = vld [vmem:[#allocation3 + $0x330] sm:$0xff] }
 0x4da   : > { %13320 = vmatprep.mubr.bf16.mxu0 %v12432_v0  ;;  %6935 = vrot.lane.b32.xlu0 %v21534_v6, %s16826_s8 }
 0x4dc   : > { %v11932_v25 = vpop.permute.xlu0 %11931 }
 0x4dd   : > { %12000 = vst.msk [vmem:[#allocation3 + $0x360] sm:$0xff] %vm2652_vm15, %v11932_v25  ;;  %v23046_v25 = vld [vmem:[#allocation5_spill] sm:$0xff] }
 0x4de   : > { %6939 = vrot.lane.b32.xlu0 %v21565_v55, %s16826_s8  ;;  %v12442_v55 = vld [vmem:[#allocation3 + $0x310] sm:$0xff] }
 0x4e0   : > { %v11934_v45 = vpop.permute.xlu0 %11933 }
 0x4e1   : > { %12001 = vst.msk [vmem:[#allocation3 + $0x388] sm:$0xff] %vm2652_vm15, %v11934_v45  ;;  %13321 = vmatmul.mubr.bf16.gmra.mrb[188].mxu0 %v12431_v32 }
 0x4e2   : > { %13328 = vmatprep.mubr.bf16.mxu0 %v12437_v50  ;;  %6943 = vrot.lane.b32.xlu0 %v21599_v57, %s16826_s8  ;;  %v23047_v50 = vld [vmem:[#allocation7_spill] sm:$0xff] }
 0x4e4   : > { %v11936_v44 = vpop.permute.xlu0 %11935 }
 0x4e5   : > { %12002 = vst.msk [vmem:[#allocation3 + $0x3b0] sm:$0xff] %vm2652_vm15, %v11936_v44 }
 0x4e6   : > { %6947 = vrot.lane.b32.xlu0 %v21637_v39, %s16826_s8  ;;  %v12447_v39 = vld [vmem:[#allocation3 + $0x338] sm:$0xff] }
 0x4e8   : > { %v11938_v6 = vpop.permute.xlu0 %11937  ;;  %v12457_v32 = vld [vmem:[#allocation3 + $0x388] sm:$0xff] }
 0x4e9   : > { %12003 = vst.msk [vmem:[#allocation3 + $0x3d8] sm:$0xff] %vm2652_vm15, %v11938_v6  ;;  %13329 = vmatmul.mubr.bf16.gmra.mrb[192].mxu0 %v12436_v58  ;;  %v12456_v6 = vld [vmem:[#allocation3 + $0x380] sm:$0xff]  ;;  %v23048_v58 = vld [vmem:[#allocation9_spill] sm:$0xff] }
 0x4ea   : > { %13336 = vmatprep.mubr.bf16.mxu0 %v12442_v55  ;;  %6951 = vrot.lane.b32.xlu0 %v21674_v9, %s16826_s8 }
 0x4ec   : > { %v11940_v24 = vpop.permute.xlu0 %11939 }
 0x4ed   : > { %12004 = vst.msk [vmem:[#allocation3 + $0x400] sm:$0xff] %vm2652_vm15, %v11940_v24  ;;  %v12462_v24 = vld [vmem:[#allocation3 + $0x3b0] sm:$0xff] }
 0x4ee   : > { %6955 = vrot.lane.b32.xlu0 %v21709_v35, %s16826_s8  ;;  %v12452_v35 = vld [vmem:[#allocation3 + $0x360] sm:$0xff] }
 0x4f0   : > { %v11942_v57 = vpop.permute.xlu0 %11941 }
 0x4f1   : > { %12005 = vst.msk [vmem:[#allocation3 + $0x428] sm:$0xff] %vm2652_vm15, %v11942_v57  ;;  %13337 = vmatmul.mubr.bf16.gmra.mrb[196].mxu0 %v12441_v5  ;;  %v23049_v5 = vld [vmem:[#allocation11_spill] sm:$0xff] }
 0x4f2   : > { %13344 = vmatprep.mubr.bf16.mxu0 %v12447_v39  ;;  %6959 = vrot.lane.b32.xlu0 %v21756_v20, %s16826_s8 }
 0x4f4   : > { %v11944_v36 = vpop.permute.xlu0 %11943 }
 0x4f5   : > { %12006 = vst.msk [vmem:[#allocation3 + $0x450] sm:$0xff] %vm2652_vm15, %v11944_v36  ;;  %v12461_v36 = vld [vmem:[#allocation3 + $0x3a8] sm:$0xff] }
 0x4f6   : > { %6963 = vrot.lane.b32.xlu0 %v21783_v1, %s16826_s8  ;;  %v12451_v1 = vld [vmem:[#allocation3 + $0x358] sm:$0xff] }
 0x4f8   : > { %v11946_v9 = vpop.permute.xlu0 %11945 }
 0x4f9   : > { %12007 = vst.msk [vmem:[#allocation3 + $0x478] sm:$0xff] %vm2652_vm15, %v11946_v9  ;;  %13345 = vmatmul.mubr.bf16.gmra.mrb[200].mxu0 %v12446_v15  ;;  %v23050_v9 = vld [vmem:[#allocation13_spill] sm:$0xff] }
 0x4fa   : > { %13352 = vmatprep.mubr.bf16.mxu0 %v12452_v35  ;;  %6967 = vrot.lane.b32.xlu0 %v21803_v38, %s16826_s8  ;;  %v12467_v35 = vld [vmem:[#allocation3 + $0x3d8] sm:$0xff] }
 0x4fc   : > { %v11948_v0 = vpop.permute.xlu0 %11947 }
 0x4fd   : > { %12008 = vst.msk [vmem:[#allocation3 + $0x4a0] sm:$0xff] %vm2652_vm15, %v11948_v0 }
 0x4fe   : > { %6971 = vrot.lane.b32.xlu0 %v21820_v33, %s16826_s8 }
 0x500   : > { %v6860_v20 = vpop.permute.xlu0 %6859 }
 0x501   : > { %v7039_v45 = vsel %vm2072_vm14, %v23046_v25, %v6860_v20  ;;  %13353 = vmatmul.mubr.bf16.gmra.mrb[204].mxu0 %v12451_v1  ;;  %v23051_v20 = vld [vmem:[#allocation15_spill] sm:$0xff] }
 0x502   : > { %7099 = vst [vmem:[%s21369_s26] sm:$0xff] %v7039_v45  ;;  %13360 = vmatprep.mubr.bf16.mxu0 %v12457_v32  ;;  %6975 = vrot.lane.b32.xlu0 %v21837_v40, %s16826_s8  ;;  %v12466_v45 = vld [vmem:[#allocation3 + $0x3d0] sm:$0xff]  ;;  %v23052_v32 = vld [vmem:[#allocation17_spill] sm:$0xff] }
 0x504   : > { %v6864_v38 = vpop.permute.xlu0 %6863 }
 0x505   : > { %v7041_v44 = vsel %vm2072_vm14, %v23047_v50, %v6864_v38  ;;  %v12472_v50 = vld [vmem:[#allocation3 + $0x400] sm:$0xff] }
 0x506   : > { %7101 = vst [vmem:[%s21369_s26 + $0x10] sm:$0xff] %v7041_v44 }
 0x508   : > { %v6868_v33 = vpop.permute.xlu0 %6867 }
 0x509   : > { %v7043_v55 = vsel %vm2072_vm14, %v23048_v58, %v6868_v33  ;;  %13361 = vmatmul.mubr.bf16.gmra.mrb[208].mxu0 %v12456_v6  ;;  %v23053_v33 = vld [vmem:[#allocation19_spill] sm:$0xff] }
 0x50a   : > { %7103 = vst [vmem:[%s21369_s26 + $0x20] sm:$0xff] %v7043_v55  ;;  %13368 = vmatprep.mubr.bf16.mxu0 %v12462_v24  ;;  %v12471_v55 = vld [vmem:[#allocation3 + $0x3f8] sm:$0xff] }
 0x50b   : > { %v23054_v24 = vld [vmem:[#allocation21_spill] sm:$0xff] }
 0x50c   : > { %v6872_v57 = vpop.permute.xlu0 %6871 }
 0x50d   : > { %v7045_v40 = vsel %vm2072_vm14, %v23049_v5, %v6872_v57  ;;  %v12477_v5 = vld [vmem:[#allocation3 + $0x428] sm:$0xff] }
 0x50e   : > { %7105 = vst [vmem:[%s21369_s26 + $0x30] sm:$0xff] %v7045_v40 }
 0x510   : > { %v6876_v39 = vpop.permute.xlu0 %6875 }
 0x511   : > { %v7047_v15 = vsel %vm2072_vm14, %v23050_v9, %v6876_v39  ;;  %13369 = vmatmul.mubr.bf16.gmra.mrb[212].mxu0 %v12461_v36  ;;  %v23055_v39 = vld [vmem:[#allocation23_spill] sm:$0xff] }
 0x512   : > { %7107 = vst [vmem:[%s21369_s26 + $0x40] sm:$0xff] %v7047_v15  ;;  %13376 = vmatprep.mubr.bf16.mxu0 %v12467_v35  ;;  %v12476_v15 = vld [vmem:[#allocation3 + $0x420] sm:$0xff]  ;;  %v23056_v35 = vld [vmem:[#allocation25_spill] sm:$0xff] }
 0x514   : > { %v6880_v0 = vpop.permute.xlu0 %6879 }
 0x515   : > { %v7049_v1 = vsel %vm2072_vm14, %v23051_v20, %v6880_v0  ;;  %v12482_v20 = vld [vmem:[#allocation3 + $0x450] sm:$0xff] }
 0x516   : > { %7109 = vst [vmem:[%s21369_s26 + $0x50] sm:$0xff] %v7049_v1  ;;  %v22162_v1 = vld [vmem:[%s22596_s4] ss:$0 sm:$0xff] }
 0x518   : > { %v6884_v25 = vpop.permute.xlu0 %6883 }
 0x519   : > { %v7051_v38 = vsel %vm2072_vm14, %v23052_v32, %v6884_v25  ;;  %13377 = vmatmul.mubr.bf16.gmra.mrb[216].mxu0 %v12466_v45 }
 0x51a   : > { %7111 = vst [vmem:[%s21369_s26 + $0x60] sm:$0xff] %v7051_v38  ;;  %13384 = vmatprep.mubr.bf16.mxu0 %v12472_v50  ;;  %v23057_v38 = vld [vmem:[#allocation27_spill] sm:$0xff] }
 0x51c   : > { %v6888_v44 = vpop.permute.xlu0 %6887 }
 0x51d   : > { %v7053_v6 = vsel %vm2072_vm14, %v23053_v33, %v6888_v44 }
 0x51e   : > { %7113 = vst [vmem:[%s21369_s26 + $0x70] sm:$0xff] %v7053_v6 }
 0x520   : > { %v6892_v58 = vpop.permute.xlu0 %6891 }
 0x521   : > { %v7055_v57 = vsel %vm2072_vm14, %v23054_v24, %v6892_v58  ;;  %13385 = vmatmul.mubr.bf16.gmra.mrb[220].mxu0 %v12471_v55 }
 0x522   : > { %7115 = vst [vmem:[%s21369_s26 + $0x80] sm:$0xff] %v7055_v57  ;;  %13392 = vmatprep.mubr.bf16.mxu0 %v12477_v5  ;;  %v12481_v57 = vld [vmem:[#allocation3 + $0x448] sm:$0xff] }
 0x524   : > { %v6896_v40 = vpop.permute.xlu0 %6895 }
 0x525   : > { %v7057_v36 = vsel %vm2072_vm14, %v23055_v39, %v6896_v40  ;;  %v23058_v40 = vld [vmem:[#allocation29_spill] sm:$0xff] }
 0x526   : > { %7117 = vst [vmem:[%s21369_s26 + $0x90] sm:$0xff] %v7057_v36  ;;  %v12487_v36 = vld [vmem:[#allocation3 + $0x478] sm:$0xff] }
 0x528   : > { %v6900_v9 = vpop.permute.xlu0 %6899 }
 0x529   : > { %v7059_v0 = vsel %vm2072_vm14, %v23056_v35, %v6900_v9  ;;  %13393 = vmatmul.mubr.bf16.gmra.mrb[224].mxu0 %v12476_v15  ;;  %v23059_v35 = vld [vmem:[#allocation31_spill] sm:$0xff] }
 0x52a   : > { %7119 = vst [vmem:[%s21369_s26 + $0xa0] sm:$0xff] %v7059_v0  ;;  %13400 = vmatprep.mubr.bf16.mxu0 %v12482_v20 }
 0x52c   : > { %v13186_v25 = vpop.f32.mrb[120].mxu0  ;;  %v6904_v45 = vpop.permute.xlu0 %6903 }
 0x52d   : > { %v15884_v32 = vadd.f32 %v22162_v1, %v13186_v25  ;;  %v7061_v50 = vsel %vm2072_vm14, %v23057_v38, %v6904_v45  ;;  %v13188_v44 = vpop.f32.mrb[121].mxu0  ;;  %v12492_v38 = vld [vmem:[#allocation3 + $0x4a0] sm:$0xff] }
 0x52e   : > { %7121 = vst [vmem:[%s21369_s26 + $0xb0] sm:$0xff] %v7061_v50  ;;  %v13189_v33 = vpop.f32.mrb[122].mxu0  ;;  %v12486_v44 = vld [vmem:[#allocation3 + $0x470] sm:$0xff] }
 0x52f   : > { %v13460_v6 = vadd.f32 %v15884_v32, %v21850_v3  ;;  %v15885_v58 = vadd.f32 %v22162_v1, %v13189_v33  ;;  %v13191_v55 = vpop.f32.mrb[123].mxu0 }
 0x530   : > { %v6908_v24 = vpop.permute.xlu0 %6907 }
 0x531   : > { %v13463_v5 = vadd.f32 %v15885_v58, %v21859_v30  ;;  %v7063_v39 = vsel %vm2072_vm14, %v23058_v40, %v6908_v24  ;;  %13401 = vmatmul.mubr.bf16.gmra.mrb[228].mxu0 %v12481_v57  ;;  %13758 = vrot.lane.b32.xlu0 %v13460_v6, %s16826_s8  ;;  %v23060_v6 = vld [vmem:[#allocation33_spill] sm:$0xff]  ;;  %v23061_v57 = vld [vmem:[#allocation35_spill] sm:$0xff] }
 0x532   : > { %7123 = vst [vmem:[%s21369_s26 + $0xc0] sm:$0xff] %v7063_v39  ;;  %13408 = vmatprep.mubr.bf16.mxu0 %v12487_v36 }
 0x533   : > { %13760 = vrot.lane.b32.xlu1 %v13463_v5, %s16826_s8 }
 0x534   : > { %v13194_v3 = vpop.f32.mrb[124].mxu0  ;;  %v6912_v9 = vpop.permute.xlu0 %6911 }
 0x535   : > { %v15886_v15 = vadd.f32 %v22162_v1, %v13194_v3  ;;  %v7065_v0 = vsel %vm2072_vm14, %v23059_v35, %v6912_v9  ;;  %v13196_v30 = vpop.f32.mrb[125].mxu0 }
 0x536   : > { %7125 = vst [vmem:[%s21369_s26 + $0xd0] sm:$0xff] %v7065_v0  ;;  %v13197_v20 = vpop.f32.mrb[126].mxu0  ;;  %v23062_v0 = vld [vmem:[#allocation37_spill] sm:$0xff] }
 0x537   : > { %v13468_v25 = vadd.f32 %v15886_v15, %v21848_v13  ;;  %v15887_v45 = vadd.f32 %v22162_v1, %v13197_v20  ;;  %v13199_v32 = vpop.f32.mrb[127].mxu0  ;;  %v12491_v15 = vld [vmem:[#allocation3 + $0x498] sm:$0xff] }
 0x538   : > { %v6916_v50 = vpop.permute.xlu0 %6915 }
 0x539   : > { %v13471_v33 = vadd.f32 %v15887_v45, %v21854_v43  ;;  %v7067_v58 = vsel %vm2072_vm14, %v23060_v6, %v6916_v50  ;;  %13409 = vmatmul.mubr.bf16.gmra.mrb[232].mxu0 %v12486_v44  ;;  %13762 = vrot.lane.b32.xlu0 %v13468_v25, %s16826_s8  ;;  %v23063_v45 = vld [vmem:[#allocation39_spill] sm:$0xff] }
 0x53a   : > { %7127 = vst [vmem:[%s21369_s26 + $0xe0] sm:$0xff] %v7067_v58  ;;  %13416 = vmatprep.mubr.bf16.mxu0 %v12492_v38 }
 0x53b   : > { %13764 = vrot.lane.b32.xlu1 %v13471_v33, %s16826_s8 }
 0x53c   : > { %v13202_v13 = vpop.f32.mrb[128].mxu0  ;;  %v6920_v55 = vpop.permute.xlu0 %6919 }
 0x53d   : > { %v15888_v24 = vadd.f32 %v22162_v1, %v13202_v13  ;;  %v7069_v5 = vsel %vm2072_vm14, %v23061_v57, %v6920_v55  ;;  %v13204_v40 = vpop.f32.mrb[129].mxu0  ;;  %v23064_v13 = vld [vmem:[#allocation41_spill] sm:$0xff] }
 0x53e   : > { %7129 = vst [vmem:[%s21369_s26 + $0xf0] sm:$0xff] %v7069_v5  ;;  %v13205_v43 = vpop.f32.mrb[130].mxu0 }
 0x53f   : > { %v13476_v39 = vadd.f32 %v15888_v24, %v21867_v53  ;;  %v15889_v36 = vadd.f32 %v22162_v1, %v13205_v43  ;;  %v13207_v3 = vpop.f32.mrb[131].mxu0 }
 0x540   : > { %v6924_v9 = vpop.permute.xlu0 %6923 }
 0x541   : > { %v13479_v35 = vadd.f32 %v15889_v36, %v21876_v23  ;;  %v7071_v30 = vsel %vm2072_vm14, %v23062_v0, %v6924_v9  ;;  %13417 = vmatmul.mubr.bf16.gmra.mrb[236].mxu0 %v12491_v15  ;;  %13766 = vrot.lane.b32.xlu0 %v13476_v39, %s16826_s8 }
 0x542   : > { %7131 = vst [vmem:[%s21369_s26 + $0x100] sm:$0xff] %v7071_v30 }
 0x543   : > { %13768 = vrot.lane.b32.xlu1 %v13479_v35, %s16826_s8  ;;  %v23066_v35 = vld [vmem:[#allocation45_spill] sm:$0xff] }
 0x544   : > { %v13210_v20 = vpop.f32.mrb[132].mxu0  ;;  %v6928_v53 = vpop.permute.xlu0 %6927 }
 0x545   : > { %v15890_v25 = vadd.f32 %v22162_v1, %v13210_v20  ;;  %v7073_v32 = vsel %vm2072_vm14, %v23063_v45, %v6928_v53  ;;  %v13212_v38 = vpop.f32.mrb[133].mxu0 }
 0x546   : > { %7133 = vst [vmem:[%s21369_s26 + $0x110] sm:$0xff] %v7073_v32  ;;  %v13213_v23 = vpop.f32.mrb[134].mxu0 }
 0x547   : > { %v13484_v50 = vadd.f32 %v15890_v25, %v21865_v59  ;;  %v15891_v44 = vadd.f32 %v22162_v1, %v13213_v23  ;;  %v13215_v33 = vpop.f32.mrb[135].mxu0  ;;  %v23065_v59 = vld [vmem:[#allocation43_spill] sm:$0xff] }
 0x548   : > { %v6932_v6 = vpop.permute.xlu0 %6931  ;;  %v23068_v33 = vld [vmem:[#allocation49_spill] sm:$0xff] }
 0x549   : > { %v13487_v58 = vadd.f32 %v15891_v44, %v21871_v4  ;;  %v7075_v55 = vsel %vm2072_vm14, %v23064_v13, %v6932_v6  ;;  %13770 = vrot.lane.b32.xlu0 %v13484_v50, %s16826_s8 }
 0x54a   : > { %7135 = vst [vmem:[%s21369_s26 + $0x120] sm:$0xff] %v7075_v55 }
 0x54b   : > { %13772 = vrot.lane.b32.xlu1 %v13487_v58, %s16826_s8 }
 0x54c   : > { %v13218_v24 = vpop.f32.mrb[136].mxu0  ;;  %v6936_v57 = vpop.permute.xlu0 %6935 }
 0x54d   : > { %v15892_v5 = vadd.f32 %v22162_v1, %v13218_v24  ;;  %v7077_v40 = vsel %vm2072_vm14, %v23065_v59, %v6936_v57  ;;  %v13220_v43 = vpop.f32.mrb[137].mxu0 }
 0x54e   : > { %7137 = vst [vmem:[%s21369_s26 + $0x130] sm:$0xff] %v7077_v40  ;;  %v13221_v4 = vpop.f32.mrb[138].mxu0 }
 0x54f   : > { %v13492_v39 = vadd.f32 %v15892_v5, %v21884_v41  ;;  %v15893_v36 = vadd.f32 %v22162_v1, %v13221_v4  ;;  %v13223_v3 = vpop.f32.mrb[139].mxu0  ;;  %v23067_v41 = vld [vmem:[#allocation47_spill] sm:$0xff] }
 0x550   : > { %v6940_v9 = vpop.permute.xlu0 %6939 }
 0x551   : > { %v13495_v15 = vadd.f32 %v15893_v36, %v21893_v48  ;;  %v7079_v0 = vsel %vm2072_vm14, %v23066_v35, %v6940_v9  ;;  %13774 = vrot.lane.b32.xlu0 %v13492_v39, %s16826_s8  ;;  %v23070_v39 = vld [vmem:[#allocation53_spill] sm:$0xff] }
 0x552   : > { %7139 = vst [vmem:[%s21369_s26 + $0x140] sm:$0xff] %v7079_v0 }
 0x553   : > { %13776 = vrot.lane.b32.xlu1 %v13495_v15, %s16826_s8 }
 0x554   : > { %v13226_v30 = vpop.f32.mrb[140].mxu0  ;;  %v6944_v20 = vpop.permute.xlu0 %6943 }
 0x555   : > { %v15894_v53 = vadd.f32 %v22162_v1, %v13226_v30  ;;  %v7081_v25 = vsel %vm2072_vm14, %v23067_v41, %v6944_v20  ;;  %v13228_v45 = vpop.f32.mrb[141].mxu0  ;;  %v23072_v30 = vld [vmem:[#allocation66_spill] sm:$0xff] }
 0x556   : > { %7141 = vst [vmem:[%s21369_s26 + $0x150] sm:$0xff] %v7081_v25  ;;  %v13229_v48 = vpop.f32.mrb[142].mxu0  ;;  %v23073_v45 = vld [vmem:[#allocation68_spill] sm:$0xff] }
 0x557   : > { %v13500_v32 = vadd.f32 %v15894_v53, %v21882_v49  ;;  %v15895_v38 = vadd.f32 %v22162_v1, %v13229_v48  ;;  %v13231_v23 = vpop.f32.mrb[143].mxu0  ;;  %v23069_v49 = vld [vmem:[#allocation51_spill] sm:$0xff] }
 0x558   : > { %v6948_v50 = vpop.permute.xlu0 %6947 }
 0x559   : > { %v13503_v44 = vadd.f32 %v15895_v38, %v21888_v12  ;;  %v7083_v6 = vsel %vm2072_vm14, %v23068_v33, %v6948_v50  ;;  %13778 = vrot.lane.b32.xlu0 %v13500_v32, %s16826_s8  ;;  %v23074_v32 = vld [vmem:[#allocation57_spill] sm:$0xff]  ;;  %v23075_v33 = vld [vmem:[#allocation59_spill] sm:$0xff] }
 0x55a   : > { %7143 = vst [vmem:[%s21369_s26 + $0x160] sm:$0xff] %v7083_v6 }
 0x55b   : > { %13780 = vrot.lane.b32.xlu1 %v13503_v44, %s16826_s8 }
 0x55c   : > { %v13234_v58 = vpop.f32.mrb[144].mxu0  ;;  %v6952_v13 = vpop.permute.xlu0 %6951 }
 0x55d   : > { %v15896_v55 = vadd.f32 %v22162_v1, %v13234_v58  ;;  %v7085_v24 = vsel %vm2072_vm14, %v23069_v49, %v6952_v13  ;;  %v13236_v57 = vpop.f32.mrb[145].mxu0 }
 0x55e   : > { %7145 = vst [vmem:[%s21369_s26 + $0x170] sm:$0xff] %v7085_v24  ;;  %v13237_v12 = vpop.f32.mrb[146].mxu0 }
 0x55f   : > { %v13508_v5 = vadd.f32 %v15896_v55, %v21901_v19  ;;  %v15897_v59 = vadd.f32 %v22162_v1, %v13237_v12  ;;  %v13239_v40 = vpop.f32.mrb[147].mxu0  ;;  %v23071_v19 = vld [vmem:[#allocation55_spill] sm:$0xff] }
 0x560   : > { %v6956_v43 = vpop.permute.xlu0 %6955 }
 0x561   : > { %v13511_v4 = vadd.f32 %v15897_v59, %v21911_v21  ;;  %v7087_v36 = vsel %vm2072_vm14, %v23070_v39, %v6956_v43  ;;  %13782 = vrot.lane.b32.xlu0 %v13508_v5, %s16826_s8  ;;  %v23076_v5 = vld [vmem:[#allocation61_spill] sm:$0xff]  ;;  %v23077_v39 = vld [vmem:[#allocation63_spill] sm:$0xff] }
 0x562   : > { %7147 = vst [vmem:[%s21369_s26 + $0x180] sm:$0xff] %v7087_v36 }
 0x563   : > { %13784 = vrot.lane.b32.xlu1 %v13511_v4, %s16826_s8 }
 0x564   : > { %v13242_v3 = vpop.f32.mrb[148].mxu0  ;;  %v6960_v9 = vpop.permute.xlu0 %6959 }
 0x565   : > { %v15898_v15 = vadd.f32 %v22162_v1, %v13242_v3  ;;  %v7089_v35 = vsel %vm2072_vm14, %v23071_v19, %v6960_v9  ;;  %v13244_v0 = vpop.f32.mrb[149].mxu0 }
 0x566   : > { %7149 = vst [vmem:[%s21369_s26 + $0x190] sm:$0xff] %v7089_v35  ;;  %v13245_v21 = vpop.f32.mrb[150].mxu0 }
 0x567   : > { %v13516_v20 = vadd.f32 %v15898_v15, %v23072_v30  ;;  %v15899_v53 = vadd.f32 %v22162_v1, %v13245_v21  ;;  %v13247_v41 = vpop.f32.mrb[151].mxu0 }
 0x568   : > { %v6964_v25 = vpop.permute.xlu0 %6963 }
 0x569   : > { %v13519_v48 = vadd.f32 %v15899_v53, %v23073_v45  ;;  %v7091_v38 = vsel %vm2072_vm14, %v23074_v32, %v6964_v25  ;;  %13786 = vrot.lane.b32.xlu0 %v13516_v20, %s16826_s8 }
 0x56a   : > { %7151 = vst [vmem:[%s21369_s26 + $0x1a0] sm:$0xff] %v7091_v38 }
 0x56b   : > { %13788 = vrot.lane.b32.xlu1 %v13519_v48, %s16826_s8 }
 0x56c   : > { %v13250_v23 = vpop.f32.mrb[152].mxu0  ;;  %v6968_v50 = vpop.permute.xlu0 %6967 }
 0x56d   : > { %v15900_v44 = vadd.f32 %v22162_v1, %v13250_v23  ;;  %v7093_v6 = vsel %vm2072_vm14, %v23075_v33, %v6968_v50  ;;  %v13252_v58 = vpop.f32.mrb[153].mxu0 }
 0x56e   : > { %7153 = vst [vmem:[%s21369_s26 + $0x1b0] sm:$0xff] %v7093_v6  ;;  %v13253_v13 = vpop.f32.mrb[154].mxu0 }
 0x56f   : > { %v13524_v55 = vadd.f32 %v15900_v44, %v21919_v54  ;;  %v15901_v49 = vadd.f32 %v22162_v1, %v13253_v13  ;;  %v13255_v24 = vpop.f32.mrb[155].mxu0 }
 0x570   : > { %v6972_v57 = vpop.permute.xlu0 %6971 }
 0x571   : > { %v13527_v12 = vadd.f32 %v15901_v49, %v21928_v34  ;;  %v7095_v59 = vsel %vm2072_vm14, %v23076_v5, %v6972_v57  ;;  %13790 = vrot.lane.b32.xlu0 %v13524_v55, %s16826_s8 }
 0x572   : > { %7155 = vst [vmem:[%s21369_s26 + $0x1c0] sm:$0xff] %v7095_v59 }
 0x573   : > { %13792 = vrot.lane.b32.xlu1 %v13527_v12, %s16826_s8 }
 0x574   : > { %v13258_v40 = vpop.f32.mrb[156].mxu0  ;;  %v6976_v43 = vpop.permute.xlu0 %6975 }
 0x575   : > { %v15902_v4 = vadd.f32 %v22162_v1, %v13258_v40  ;;  %v7097_v54 = vsel %vm2072_vm14, %v23077_v39, %v6976_v43  ;;  %v13260_v36 = vpop.f32.mrb[157].mxu0 }
 0x576   : > { %7157 = vst [vmem:[%s21369_s26 + $0x1d0] sm:$0xff] %v7097_v54  ;;  %v13261_v3 = vpop.f32.mrb[158].mxu0 }
 0x577   : > { %v13532_v34 = vadd.f32 %v15902_v4, %v21917_v8  ;;  %v15903_v9 = vadd.f32 %v22162_v1, %v13261_v3  ;;  %v13263_v15 = vpop.f32.mrb[159].mxu0 }
 0x578   : > { %v23078_v15 = vld [vmem:[#allocation106_spill] sm:$0xff] }
 0x579   : > { %v13535_v19 = vadd.f32 %v15903_v9, %v21923_v60  ;;  %13794 = vrot.lane.b32.xlu0 %v13532_v34, %s16826_s8 }
 0x57b   : > { %13796 = vrot.lane.b32.xlu1 %v13535_v19, %s16826_s8 }
 0x57c   : > { %v13266_v35 = vpop.f32.mrb[160].mxu0 }
 0x57d   : > { %v15904_v0 = vadd.f32 %v22162_v1, %v13266_v35  ;;  %v13268_v21 = vpop.f32.mrb[161].mxu0 }
 0x57e   : > { %v13269_v30 = vpop.f32.mrb[162].mxu0 }
 0x57f   : > { %v13540_v20 = vadd.f32 %v15904_v0, %v21936_v56  ;;  %v15905_v53 = vadd.f32 %v22162_v1, %v13269_v30  ;;  %v13271_v41 = vpop.f32.mrb[163].mxu0  ;;  %v23079_v30 = vld [vmem:[#allocation105_spill] sm:$0xff] }
 0x581   : > { %v13543_v8 = vadd.f32 %v15905_v53, %v21946_v27  ;;  %13798 = vrot.lane.b32.xlu0 %v13540_v20, %s16826_s8 }
 0x583   : > { %13800 = vrot.lane.b32.xlu1 %v13543_v8, %s16826_s8 }
 0x584   : > { %v13274_v60 = vpop.f32.mrb[164].mxu0 }
 0x585   : > { %v15906_v25 = vadd.f32 %v22162_v1, %v13274_v60  ;;  %v13276_v45 = vpop.f32.mrb[165].mxu0 }
 0x586   : > { %v13277_v48 = vpop.f32.mrb[166].mxu0 }
 0x587   : > { %v13548_v32 = vadd.f32 %v15906_v25, %v21934_v62  ;;  %v15907_v38 = vadd.f32 %v22162_v1, %v13277_v48  ;;  %v13279_v23 = vpop.f32.mrb[167].mxu0  ;;  %v23081_v25 = vld [vmem:[#allocation67_spill] sm:$0xff] }
 0x588   : > { %v22294_v6 = vpop.f32.mrb[236].mxu1 }
 0x589   : > { %v13551_v56 = vadd.f32 %v15907_v38, %v21941_v16  ;;  %13802 = vrot.lane.b32.xlu0 %v13548_v32, %s16826_s8  ;;  %v22298_v55 = vpop.f32.mrb[237].mxu1  ;;  %v23082_v32 = vld [vmem:[#allocation108_spill] sm:$0xff] }
 0x58a   : > { %v22300_v49 = vpop.f32.mrb[238].mxu1 }
 0x58b   : > { %13804 = vrot.lane.b32.xlu1 %v13551_v56, %s16826_s8  ;;  %v22304_v24 = vpop.f32.mrb[239].mxu1 }
 0x58c   : > { %v13282_v27 = vpop.f32.mrb[168].mxu0 }
 0x58d   : > { %v15908_v50 = vadd.f32 %v22162_v1, %v13282_v27  ;;  %v13284_v44 = vpop.f32.mrb[169].mxu0 }
 0x58e   : > { %v13285_v33 = vpop.f32.mrb[170].mxu0  ;;  %v23083_v44 = vld [vmem:[#allocation107_spill] sm:$0xff] }
 0x58f   : > { %v13556_v58 = vadd.f32 %v15908_v50, %v21953_v17  ;;  %v15909_v62 = vadd.f32 %v22162_v1, %v13285_v33  ;;  %v13287_v13 = vpop.f32.mrb[171].mxu0 }
 0x591   : > { %v13559_v16 = vadd.f32 %v15909_v62, %v21961_v47  ;;  %13806 = vrot.lane.b32.xlu0 %v13556_v58, %s16826_s8 }
 0x593   : > { %13808 = vrot.lane.b32.xlu1 %v13559_v16, %s16826_s8 }
 0x594   : > { %v13290_v57 = vpop.f32.mrb[172].mxu0 }
 0x595   : > { %v15910_v12 = vadd.f32 %v22162_v1, %v13290_v57  ;;  %v13292_v5 = vpop.f32.mrb[173].mxu0 }
 0x596   : > { %v13293_v17 = vpop.f32.mrb[174].mxu0  ;;  %v23084_v5 = vld [vmem:[#allocation110_spill] sm:$0xff] }
 0x597   : > { %v13564_v59 = vadd.f32 %v15910_v12, %v21951_v28  ;;  %v15911_v40 = vadd.f32 %v22162_v1, %v13293_v17  ;;  %v13295_v43 = vpop.f32.mrb[175].mxu0 }
 0x599   : > { %v13567_v4 = vadd.f32 %v15911_v40, %v21957_v7  ;;  %13810 = vrot.lane.b32.xlu0 %v13564_v59, %s16826_s8 }
 0x59b   : > { %13812 = vrot.lane.b32.xlu1 %v13567_v4, %s16826_s8  ;;  %v23085_v4 = vld [vmem:[#allocation109_spill] sm:$0xff] }
 0x59c   : > { %v13298_v47 = vpop.f32.mrb[176].mxu0 }
 0x59d   : > { %v15912_v39 = vadd.f32 %v22162_v1, %v13298_v47  ;;  %v13300_v54 = vpop.f32.mrb[177].mxu0 }
 0x59e   : > { %v13301_v36 = vpop.f32.mrb[178].mxu0 }
 0x59f   : > { %v13572_v3 = vadd.f32 %v15912_v39, %v21970_v29  ;;  %v15913_v28 = vadd.f32 %v22162_v1, %v13301_v36  ;;  %v13303_v34 = vpop.f32.mrb[179].mxu0 }
 0x5a1   : > { %v13575_v9 = vadd.f32 %v15913_v28, %v21978_v42  ;;  %13814 = vrot.lane.b32.xlu0 %v13572_v3, %s16826_s8  ;;  %v23080_v42 = vld [vmem:[#allocation65_spill] sm:$0xff]  ;;  %v23087_v28 = vld [vmem:[#allocation72_spill] sm:$0xff] }
 0x5a3   : > { %13816 = vrot.lane.b32.xlu1 %v13575_v9, %s16826_s8  ;;  %v13759_v7 = vpop.permute.xlu0 %13758 }
 0x5a4   : > { %v13938_v19 = vsel %vm2072_vm14, %v23078_v15, %v13759_v7  ;;  %v13306_v35 = vpop.f32.mrb[180].mxu0  ;;  %v23088_v7 = vld [vmem:[#allocation112_spill] sm:$0xff] }
 0x5a5   : > { %15114 = vst [vmem:[%s21369_s26 + $0x1e0] sm:$0xff] %v13938_v19  ;;  %v15914_v0 = vadd.f32 %v22162_v1, %v13306_v35  ;;  %v13308_v29 = vpop.f32.mrb[181].mxu0  ;;  %v13761_v21 = vpop.permute.xlu1 %13760 }
 0x5a6   : > { %v13939_v20 = vsel %vm2072_vm14, %v23079_v30, %v13761_v21  ;;  %v13309_v53 = vpop.f32.mrb[182].mxu0  ;;  %v23089_v21 = vld [vmem:[#allocation111_spill] sm:$0xff] }
 0x5a7   : > { %v13580_v41 = vadd.f32 %v15914_v0, %v23080_v42  ;;  %15115 = vst [vmem:[%s21369_s26 + $0x1e8] sm:$0xff] %v13939_v20  ;;  %v15915_v8 = vadd.f32 %v22162_v1, %v13309_v53  ;;  %v13311_v60 = vpop.f32.mrb[183].mxu0 }
 0x5a9   : > { %v13583_v45 = vadd.f32 %v15915_v8, %v23081_v25  ;;  %13818 = vrot.lane.b32.xlu0 %v13580_v41, %s16826_s8  ;;  %v23090_v25 = vld [vmem:[#allocation114_spill] sm:$0xff] }
 0x5ab   : > { %13820 = vrot.lane.b32.xlu1 %v13583_v45, %s16826_s8  ;;  %v13763_v48 = vpop.permute.xlu0 %13762 }
 0x5ac   : > { %v13940_v38 = vsel %vm2072_vm14, %v23082_v32, %v13763_v48  ;;  %v13314_v23 = vpop.f32.mrb[184].mxu0 }
 0x5ad   : > { %15116 = vst [vmem:[%s21369_s26 + $0x1f0] sm:$0xff] %v13940_v38  ;;  %v15916_v56 = vadd.f32 %v22162_v1, %v13314_v23  ;;  %v13316_v27 = vpop.f32.mrb[185].mxu0  ;;  %v13765_v50 = vpop.permute.xlu1 %13764  ;;  %v23091_v23 = vld [vmem:[#allocation113_spill] sm:$0xff] }
 0x5ae   : > { %v13941_v33 = vsel %vm2072_vm14, %v23083_v44, %v13765_v50  ;;  %v13317_v58 = vpop.f32.mrb[186].mxu0 }
 0x5af   : > { %v13588_v62 = vadd.f32 %v15916_v56, %v21987_v18  ;;  %15117 = vst [vmem:[%s21369_s26 + $0x1f8] sm:$0xff] %v13941_v33  ;;  %v15917_v13 = vadd.f32 %v22162_v1, %v13317_v58  ;;  %v13319_v16 = vpop.f32.mrb[187].mxu0  ;;  %v23093_v58 = vld [vmem:[#allocation71_spill] sm:$0xff] }
 0x5b0   : > { %v23094_v16 = vld [vmem:[#allocation116_spill] sm:$0xff] }
 0x5b1   : > { %v13591_v57 = vadd.f32 %v15917_v13, %v21995_v2  ;;  %13822 = vrot.lane.b32.xlu0 %v13588_v62, %s16826_s8  ;;  %v23086_v2 = vld [vmem:[#allocation70_spill] sm:$0xff] }
 0x5b3   : > { %13824 = vrot.lane.b32.xlu1 %v13591_v57, %s16826_s8  ;;  %v13767_v12 = vpop.permute.xlu0 %13766 }
 0x5b4   : > { %v13942_v17 = vsel %vm2072_vm14, %v23084_v5, %v13767_v12  ;;  %v13322_v59 = vpop.f32.mrb[188].mxu0 }
 0x5b5   : > { %15118 = vst [vmem:[%s21369_s26 + $0x200] sm:$0xff] %v13942_v17  ;;  %v15918_v18 = vadd.f32 %v22162_v1, %v13322_v59  ;;  %v13324_v40 = vpop.f32.mrb[189].mxu0  ;;  %v13769_v43 = vpop.permute.xlu1 %13768 }
 0x5b6   : > { %v13943_v47 = vsel %vm2072_vm14, %v23085_v4, %v13769_v43  ;;  %v13325_v39 = vpop.f32.mrb[190].mxu0 }
 0x5b7   : > { %v13596_v54 = vadd.f32 %v15918_v18, %v23086_v2  ;;  %15119 = vst [vmem:[%s21369_s26 + $0x208] sm:$0xff] %v13943_v47  ;;  %v15919_v36 = vadd.f32 %v22162_v1, %v13325_v39  ;;  %v13327_v3 = vpop.f32.mrb[191].mxu0  ;;  %v23095_v18 = vld [vmem:[#allocation115_spill] sm:$0xff] }
 0x5b9   : > { %v13599_v34 = vadd.f32 %v15919_v36, %v23087_v28  ;;  %13826 = vrot.lane.b32.xlu0 %v13596_v54, %s16826_s8  ;;  %v23096_v36 = vld [vmem:[#allocation118_spill] sm:$0xff] }
 0x5bb   : > { %13828 = vrot.lane.b32.xlu1 %v13599_v34, %s16826_s8  ;;  %v13771_v9 = vpop.permute.xlu0 %13770 }
 0x5bc   : > { %v13944_v15 = vsel %vm2072_vm14, %v23088_v7, %v13771_v9  ;;  %v13330_v19 = vpop.f32.mrb[192].mxu0  ;;  %v23097_v7 = vld [vmem:[#allocation117_spill] sm:$0xff] }
 0x5bd   : > { %15120 = vst [vmem:[%s21369_s26 + $0x210] sm:$0xff] %v13944_v15  ;;  %v15920_v35 = vadd.f32 %v22162_v1, %v13330_v19  ;;  %v13332_v0 = vpop.f32.mrb[193].mxu0  ;;  %v13773_v29 = vpop.permute.xlu1 %13772 }
 0x5be   : > { %v13945_v30 = vsel %vm2072_vm14, %v23089_v21, %v13773_v29  ;;  %v13333_v20 = vpop.f32.mrb[194].mxu0  ;;  %v23099_v21 = vld [vmem:[#allocation76_spill] sm:$0xff] }
 0x5bf   : > { %v13604_v53 = vadd.f32 %v15920_v35, %v22004_v63  ;;  %15121 = vst [vmem:[%s21369_s26 + $0x218] sm:$0xff] %v13945_v30  ;;  %v15921_v42 = vadd.f32 %v22162_v1, %v13333_v20  ;;  %v13335_v41 = vpop.f32.mrb[195].mxu0 }
 0x5c1   : > { %v13607_v8 = vadd.f32 %v15921_v42, %v22012_v22  ;;  %13830 = vrot.lane.b32.xlu0 %v13604_v53, %s16826_s8  ;;  %v23092_v22 = vld [vmem:[#allocation69_spill] sm:$0xff]  ;;  %v23100_v53 = vld [vmem:[#allocation120_spill] sm:$0xff] }
 0x5c3   : > { %13832 = vrot.lane.b32.xlu1 %v13607_v8, %s16826_s8  ;;  %v13775_v60 = vpop.permute.xlu0 %13774 }
 0x5c4   : > { %v13946_v45 = vsel %vm2072_vm14, %v23090_v25, %v13775_v60  ;;  %v13338_v48 = vpop.f32.mrb[196].mxu0 }
 0x5c5   : > { %15122 = vst [vmem:[%s21369_s26 + $0x220] sm:$0xff] %v13946_v45  ;;  %v15922_v63 = vadd.f32 %v22162_v1, %v13338_v48  ;;  %v13340_v32 = vpop.f32.mrb[197].mxu0  ;;  %v13777_v38 = vpop.permute.xlu1 %13776  ;;  %v23101_v45 = vld [vmem:[#allocation119_spill] sm:$0xff] }
 0x5c6   : > { %v13947_v56 = vsel %vm2072_vm14, %v23091_v23, %v13777_v38  ;;  %v13341_v27 = vpop.f32.mrb[198].mxu0 }
 0x5c7   : > { %v13612_v50 = vadd.f32 %v15922_v63, %v23092_v22  ;;  %15123 = vst [vmem:[%s21369_s26 + $0x228] sm:$0xff] %v13947_v56  ;;  %v15923_v44 = vadd.f32 %v22162_v1, %v13341_v27  ;;  %v13343_v33 = vpop.f32.mrb[199].mxu0  ;;  %v23102_v22 = vld [vmem:[#allocation122_spill] sm:$0xff] }
 0x5c9   : > { %v13615_v62 = vadd.f32 %v15923_v44, %v23093_v58  ;;  %13834 = vrot.lane.b32.xlu0 %v13612_v50, %s16826_s8 }
 0x5cb   : > { %13836 = vrot.lane.b32.xlu1 %v13615_v62, %s16826_s8  ;;  %v13779_v13 = vpop.permute.xlu0 %13778  ;;  %v23103_v62 = vld [vmem:[#allocation121_spill] sm:$0xff] }
 0x5cc   : > { %v13948_v57 = vsel %vm2072_vm14, %v23094_v16, %v13779_v13  ;;  %v13346_v12 = vpop.f32.mrb[200].mxu0 }
 0x5cd   : > { %15124 = vst [vmem:[%s21369_s26 + $0x230] sm:$0xff] %v13948_v57  ;;  %v15924_v5 = vadd.f32 %v22162_v1, %v13346_v12  ;;  %v13348_v17 = vpop.f32.mrb[201].mxu0  ;;  %v13781_v59 = vpop.permute.xlu1 %13780 }
 0x5ce   : > { %v13949_v40 = vsel %vm2072_vm14, %v23095_v18, %v13781_v59  ;;  %v13349_v43 = vpop.f32.mrb[202].mxu0  ;;  %v23105_v17 = vld [vmem:[#allocation73_spill] sm:$0xff] }
 0x5cf   : > { %v13620_v4 = vadd.f32 %v15924_v5, %v22021_v26  ;;  %15125 = vst [vmem:[%s21369_s26 + $0x238] sm:$0xff] %v13949_v40  ;;  %v15925_v47 = vadd.f32 %v22162_v1, %v13349_v43  ;;  %v13351_v39 = vpop.f32.mrb[203].mxu0  ;;  %v23106_v40 = vld [vmem:[#allocation124_spill] sm:$0xff] }
 0x5d1   : > { %v13623_v2 = vadd.f32 %v15925_v47, %v22029_v46  ;;  %13838 = vrot.lane.b32.xlu0 %v13620_v4, %s16826_s8  ;;  %v23098_v46 = vld [vmem:[#allocation74_spill] sm:$0xff] }
 0x5d3   : > { %13840 = vrot.lane.b32.xlu1 %v13623_v2, %s16826_s8  ;;  %v13783_v54 = vpop.permute.xlu0 %13782 }
 0x5d4   : > { %v13950_v3 = vsel %vm2072_vm14, %v23096_v36, %v13783_v54  ;;  %v13354_v28 = vpop.f32.mrb[204].mxu0  ;;  %v23107_v54 = vld [vmem:[#allocation123_spill] sm:$0xff] }
 0x5d5   : > { %15126 = vst [vmem:[%s21369_s26 + $0x240] sm:$0xff] %v13950_v3  ;;  %v15926_v26 = vadd.f32 %v22162_v1, %v13354_v28  ;;  %v13356_v34 = vpop.f32.mrb[205].mxu0  ;;  %v13785_v9 = vpop.permute.xlu1 %13784 }
 0x5d6   : > { %v13951_v15 = vsel %vm2072_vm14, %v23097_v7, %v13785_v9  ;;  %v13357_v19 = vpop.f32.mrb[206].mxu0 }
 0x5d7   : > { %v13628_v35 = vadd.f32 %v15926_v26, %v23098_v46  ;;  %15127 = vst [vmem:[%s21369_s26 + $0x248] sm:$0xff] %v13951_v15  ;;  %v15927_v0 = vadd.f32 %v22162_v1, %v13357_v19  ;;  %v13359_v29 = vpop.f32.mrb[207].mxu0  ;;  %v23108_v15 = vld [vmem:[#allocation126_spill] sm:$0xff] }
 0x5d8   : > { %v23109_v29 = vld [vmem:[#allocation125_spill] sm:$0xff] }
 0x5d9   : > { %v13631_v30 = vadd.f32 %v15927_v0, %v23099_v21  ;;  %13842 = vrot.lane.b32.xlu0 %v13628_v35, %s16826_s8 }
 0x5db   : > { %13844 = vrot.lane.b32.xlu1 %v13631_v30, %s16826_s8  ;;  %v13787_v20 = vpop.permute.xlu0 %13786 }
 0x5dc   : > { %v13952_v42 = vsel %vm2072_vm14, %v23100_v53, %v13787_v20  ;;  %v13362_v41 = vpop.f32.mrb[208].mxu0 }
 0x5dd   : > { %15128 = vst [vmem:[%s21369_s26 + $0x250] sm:$0xff] %v13952_v42  ;;  %v15928_v8 = vadd.f32 %v22162_v1, %v13362_v41  ;;  %v13364_v60 = vpop.f32.mrb[209].mxu0  ;;  %v13789_v25 = vpop.permute.xlu1 %13788  ;;  %v23111_v41 = vld [vmem:[#allocation75_spill] sm:$0xff] }
 0x5de   : > { %v13953_v48 = vsel %vm2072_vm14, %v23101_v45, %v13789_v25  ;;  %v13365_v63 = vpop.f32.mrb[210].mxu0  ;;  %v23112_v25 = vld [vmem:[#allocation128_spill] sm:$0xff] }
 0x5df   : > { %v13636_v32 = vadd.f32 %v15928_v8, %v22038_v37  ;;  %15129 = vst [vmem:[%s21369_s26 + $0x258] sm:$0xff] %v13953_v48  ;;  %v15929_v38 = vadd.f32 %v22162_v1, %v13365_v63  ;;  %v13367_v23 = vpop.f32.mrb[211].mxu0 }
 0x5e0   : > { %v23113_v23 = vld [vmem:[#allocation127_spill] sm:$0xff] }
 0x5e1   : > { %v13639_v56 = vadd.f32 %v15929_v38, %v22047_v31  ;;  %13846 = vrot.lane.b32.xlu0 %v13636_v32, %s16826_s8  ;;  %v23104_v31 = vld [vmem:[#allocation4_spill] sm:$0xff] }
 0x5e3   : > { %13848 = vrot.lane.b32.xlu1 %v13639_v56, %s16826_s8  ;;  %v13791_v27 = vpop.permute.xlu0 %13790 }
 0x5e4   : > { %v13954_v50 = vsel %vm2072_vm14, %v23102_v22, %v13791_v27  ;;  %v13370_v44 = vpop.f32.mrb[212].mxu0 }
 0x5e5   : > { %15130 = vst [vmem:[%s21369_s26 + $0x260] sm:$0xff] %v13954_v50  ;;  %v15930_v37 = vadd.f32 %v22162_v1, %v13370_v44  ;;  %v13372_v33 = vpop.f32.mrb[213].mxu0  ;;  %v13793_v58 = vpop.permute.xlu1 %13792 }
 0x5e6   : > { %v13955_v13 = vsel %vm2072_vm14, %v23103_v62, %v13793_v58  ;;  %v13373_v16 = vpop.f32.mrb[214].mxu0  ;;  %v23114_v58 = vld [vmem:[#allocation130_spill] sm:$0xff] }
 0x5e7   : > { %v13644_v57 = vadd.f32 %v15930_v37, %v23104_v31  ;;  %15131 = vst [vmem:[%s21369_s26 + $0x268] sm:$0xff] %v13955_v13  ;;  %v15931_v12 = vadd.f32 %v22162_v1, %v13373_v16  ;;  %v13375_v5 = vpop.f32.mrb[215].mxu0 }
 0x5e9   : > { %v13647_v59 = vadd.f32 %v15931_v12, %v23105_v17  ;;  %13850 = vrot.lane.b32.xlu0 %v13644_v57, %s16826_s8  ;;  %v23115_v57 = vld [vmem:[#allocation129_spill] sm:$0xff] }
 0x5eb   : > { %13852 = vrot.lane.b32.xlu1 %v13647_v59, %s16826_s8  ;;  %v13795_v18 = vpop.permute.xlu0 %13794 }
 0x5ec   : > { %v13956_v43 = vsel %vm2072_vm14, %v23106_v40, %v13795_v18  ;;  %v13378_v4 = vpop.f32.mrb[216].mxu0 }
 0x5ed   : > { %15132 = vst [vmem:[%s21369_s26 + $0x270] sm:$0xff] %v13956_v43  ;;  %v15932_v47 = vadd.f32 %v22162_v1, %v13378_v4  ;;  %v13380_v39 = vpop.f32.mrb[217].mxu0  ;;  %v13797_v2 = vpop.permute.xlu1 %13796  ;;  %v23116_v43 = vld [vmem:[#allocation132_spill] sm:$0xff] }
 0x5ee   : > { %v13957_v36 = vsel %vm2072_vm14, %v23107_v54, %v13797_v2  ;;  %v13381_v3 = vpop.f32.mrb[218].mxu0  ;;  %v23117_v54 = vld [vmem:[#allocation131_spill] sm:$0xff] }
 0x5ef   : > { %v13652_v28 = vadd.f32 %v15932_v47, %v22056_v11  ;;  %15133 = vst [vmem:[%s21369_s26 + $0x278] sm:$0xff] %v13957_v36  ;;  %v15933_v26 = vadd.f32 %v22162_v1, %v13381_v3  ;;  %v13383_v34 = vpop.f32.mrb[219].mxu0 }
 0x5f1   : > { %v13655_v9 = vadd.f32 %v15933_v26, %v22064_v52  ;;  %13854 = vrot.lane.b32.xlu0 %v13652_v28, %s16826_s8  ;;  %v23110_v52 = vld [vmem:[#allocation64_spill] sm:$0xff] }
 0x5f3   : > { %13856 = vrot.lane.b32.xlu1 %v13655_v9, %s16826_s8  ;;  %v13799_v7 = vpop.permute.xlu0 %13798 }
 0x5f4   : > { %v13958_v19 = vsel %vm2072_vm14, %v23108_v15, %v13799_v7  ;;  %v13386_v46 = vpop.f32.mrb[220].mxu0  ;;  %v23118_v7 = vld [vmem:[#allocation134_spill] sm:$0xff] }
 0x5f5   : > { %15134 = vst [vmem:[%s21369_s26 + $0x280] sm:$0xff] %v13958_v19  ;;  %v15934_v11 = vadd.f32 %v22162_v1, %v13386_v46  ;;  %v13388_v35 = vpop.f32.mrb[221].mxu0  ;;  %v13801_v0 = vpop.permute.xlu1 %13800 }
 0x5f6   : > { %v13959_v21 = vsel %vm2072_vm14, %v23109_v29, %v13801_v0  ;;  %v13389_v30 = vpop.f32.mrb[222].mxu0 }
 0x5f7   : > { %v13660_v20 = vadd.f32 %v15934_v11, %v23110_v52  ;;  %15135 = vst [vmem:[%s21369_s26 + $0x288] sm:$0xff] %v13959_v21  ;;  %v15935_v53 = vadd.f32 %v22162_v1, %v13389_v30  ;;  %v13391_v42 = vpop.f32.mrb[223].mxu0 }
 0x5f9   : > { %v13663_v8 = vadd.f32 %v15935_v53, %v23111_v41  ;;  %13858 = vrot.lane.b32.xlu0 %v13660_v20, %s16826_s8  ;;  %v23120_v53 = vld [vmem:[#allocation136_spill] sm:$0xff] }
 0x5fb   : > { %13860 = vrot.lane.b32.xlu1 %v13663_v8, %s16826_s8  ;;  %v13803_v60 = vpop.permute.xlu0 %13802 }
 0x5fc   : > { %v13960_v45 = vsel %vm2072_vm14, %v23112_v25, %v13803_v60  ;;  %v13394_v48 = vpop.f32.mrb[224].mxu0  ;;  %v23122_v60 = vld [vmem:[#allocation138_spill] sm:$0xff] }
 0x5fd   : > { %15136 = vst [vmem:[%s21369_s26 + $0x290] sm:$0xff] %v13960_v45  ;;  %v15936_v63 = vadd.f32 %v22162_v1, %v13394_v48  ;;  %v13396_v32 = vpop.f32.mrb[225].mxu0  ;;  %v13805_v38 = vpop.permute.xlu1 %13804  ;;  %v23123_v45 = vld [vmem:[#allocation137_spill] sm:$0xff] }
 0x5fe   : > { %v13961_v56 = vsel %vm2072_vm14, %v23113_v23, %v13805_v38  ;;  %v13397_v27 = vpop.f32.mrb[226].mxu0  ;;  %v23124_v32 = vld [vmem:[#allocation140_spill] sm:$0xff] }
 0x5ff   : > { %v13668_v22 = vadd.f32 %v15936_v63, %v22073_v51  ;;  %15137 = vst [vmem:[%s21369_s26 + $0x298] sm:$0xff] %v13961_v56  ;;  %v15937_v50 = vadd.f32 %v22162_v1, %v13397_v27  ;;  %v13399_v44 = vpop.f32.mrb[227].mxu0  ;;  %v23125_v56 = vld [vmem:[#allocation139_spill] sm:$0xff] }
 0x601   : > { %v13671_v37 = vadd.f32 %v15937_v50, %v22081_v14  ;;  %13862 = vrot.lane.b32.xlu0 %v13668_v22, %s16826_s8  ;;  %v23126_v50 = vld [vmem:[#allocation142_spill] sm:$0xff] }
 0x603   : > { %13864 = vrot.lane.b32.xlu1 %v13671_v37, %s16826_s8  ;;  %v13807_v33 = vpop.permute.xlu0 %13806 }
 0x604   : > { %v13962_v62 = vsel %vm2072_vm14, %v23114_v58, %v13807_v33  ;;  %v13402_v13 = vpop.f32.mrb[228].mxu0  ;;  %v23127_v33 = vld [vmem:[#allocation141_spill] sm:$0xff] }
 0x605   : > { %15138 = vst [vmem:[%s21369_s26 + $0x2a0] sm:$0xff] %v13962_v62  ;;  %v15938_v51 = vadd.f32 %v22162_v1, %v13402_v13  ;;  %v13404_v16 = vpop.f32.mrb[229].mxu0  ;;  %v13809_v31 = vpop.permute.xlu1 %13808  ;;  %v23128_v13 = vld [vmem:[#allocation144_spill] sm:$0xff] }
 0x606   : > { %v13963_v12 = vsel %vm2072_vm14, %v23115_v57, %v13809_v31  ;;  %v13405_v5 = vpop.f32.mrb[230].mxu0  ;;  %v23129_v31 = vld [vmem:[#allocation143_spill] sm:$0xff] }
 0x607   : > { %v13676_v14 = vadd.f32 %v15938_v51, %v22071_v10  ;;  %15139 = vst [vmem:[%s21369_s26 + $0x2a8] sm:$0xff] %v13963_v12  ;;  %v15939_v17 = vadd.f32 %v22162_v1, %v13405_v5  ;;  %v13407_v59 = vpop.f32.mrb[231].mxu0  ;;  %v23130_v5 = vld [vmem:[#allocation146_spill] sm:$0xff] }
 0x608   : > { %v23131_v59 = vld [vmem:[#allocation145_spill] sm:$0xff] }
 0x609   : > { %v13679_v18 = vadd.f32 %v15939_v17, %v22077_v61  ;;  %13866 = vrot.lane.b32.xlu0 %v13676_v14, %s16826_s8 }
 0x60b   : > { %13868 = vrot.lane.b32.xlu1 %v13679_v18, %s16826_s8  ;;  %v13811_v40 = vpop.permute.xlu0 %13810 }
 0x60c   : > { %v13964_v4 = vsel %vm2072_vm14, %v23116_v43, %v13811_v40  ;;  %v13410_v47 = vpop.f32.mrb[232].mxu0  ;;  %v23132_v43 = vld [vmem:[#allocation148_spill] sm:$0xff] }
 0x60d   : > { %15140 = vst [vmem:[%s21369_s26 + $0x2b0] sm:$0xff] %v13964_v4  ;;  %v15940_v10 = vadd.f32 %v22162_v1, %v13410_v47  ;;  %v13412_v39 = vpop.f32.mrb[233].mxu0  ;;  %v13813_v2 = vpop.permute.xlu1 %13812 }
 0x60e   : > { %v13965_v36 = vsel %vm2072_vm14, %v23117_v54, %v13813_v2  ;;  %v13413_v3 = vpop.f32.mrb[234].mxu0  ;;  %v23134_v54 = vld [vmem:[#allocation150_spill] sm:$0xff] }
 0x60f   : > { %15141 = vst [vmem:[%s21369_s26 + $0x2b8] sm:$0xff] %v13965_v36  ;;  %v15941_v61 = vadd.f32 %v22162_v1, %v13413_v3  ;;  %v13684_v28 = vadd.f32 %v15940_v10, %v22298_v55  ;;  %v13415_v26 = vpop.f32.mrb[235].mxu0  ;;  %v23119_v55 = vld [vmem:[#allocation133_spill] sm:$0xff]  ;;  %v23133_v10 = vld [vmem:[#allocation147_spill] sm:$0xff] }
 0x611   : > { %v13687_v34 = vadd.f32 %v15941_v61, %v22304_v24  ;;  %13870 = vrot.lane.b32.xlu0 %v13684_v28, %s16826_s8  ;;  %v23135_v61 = vld [vmem:[#allocation149_spill] sm:$0xff] }
 0x613   : > { %13872 = vrot.lane.b32.xlu1 %v13687_v34, %s16826_s8  ;;  %v13815_v9 = vpop.permute.xlu0 %13814  ;;  %v23136_v34 = vld [vmem:[#allocation153_spill] sm:$0xff] }
 0x614   : > { %v13966_v15 = vsel %vm2072_vm14, %v23118_v7, %v13815_v9  ;;  %v13418_v19 = vpop.f32.mrb[236].mxu0 }
 0x615   : > { %15142 = vst [vmem:[%s21369_s26 + $0x2c0] sm:$0xff] %v13966_v15  ;;  %v15942_v46 = vadd.f32 %v22162_v1, %v13418_v19  ;;  %v13420_v11 = vpop.f32.mrb[237].mxu0  ;;  %v13817_v35 = vpop.permute.xlu1 %13816  ;;  %v23137_v15 = vld [vmem:[#allocation152_spill] sm:$0xff] }
 0x616   : > { %v13967_v0 = vsel %vm2072_vm14, %v23119_v55, %v13817_v35  ;;  %v13421_v24 = vpop.f32.mrb[238].mxu0  ;;  %v23138_v11 = vld [vmem:[#allocation155_spill] sm:$0xff] }
 0x617   : > { %v13692_v29 = vadd.f32 %v15942_v46, %v22294_v6  ;;  %15143 = vst [vmem:[%s21369_s26 + $0x2c8] sm:$0xff] %v13967_v0  ;;  %v15943_v21 = vadd.f32 %v22162_v1, %v13421_v24  ;;  %v13423_v30 = vpop.f32.mrb[239].mxu0  ;;  %v23121_v6 = vld [vmem:[#allocation135_spill] sm:$0xff]  ;;  %v23139_v0 = vld [vmem:[#allocation154_spill] sm:$0xff] }
 0x619   : > { %v13695_v52 = vadd.f32 %v15943_v21, %v22300_v49  ;;  %13874 = vrot.lane.b32.xlu0 %v13692_v29, %s16826_s8  ;;  %v23140_v21 = vld [vmem:[#allocation157_spill] sm:$0xff] }
 0x61b   : > { %13876 = vrot.lane.b32.xlu1 %v13695_v52, %s16826_s8  ;;  %v13819_v20 = vpop.permute.xlu0 %13818 }
 0x61c   : > { %v13968_v42 = vsel %vm2072_vm14, %v23120_v53, %v13819_v20  ;;  %v23141_v20 = vld [vmem:[#allocation156_spill] sm:$0xff] }
 0x61d   : > { %15144 = vst [vmem:[%s21369_s26 + $0x2d0] sm:$0xff] %v13968_v42  ;;  %v13821_v41 = vpop.permute.xlu1 %13820 }
 0x61e   : > { %v13969_v8 = vsel %vm2072_vm14, %v23121_v6, %v13821_v41  ;;  %v23142_v41 = vld [vmem:[#allocation159_spill] sm:$0xff] }
 0x61f   : > { %15145 = vst [vmem:[%s21369_s26 + $0x2d8] sm:$0xff] %v13969_v8 }
 0x623   : > { %v13823_v1 = vpop.permute.xlu0 %13822 }
 0x624   : > { %v13970_v49 = vsel %vm2072_vm14, %v23122_v60, %v13823_v1  ;;  %v23143_v1 = vld [vmem:[#allocation158_spill] sm:$0xff] }
 0x625   : > { %15146 = vst [vmem:[%s21369_s26 + $0x2e0] sm:$0xff] %v13970_v49  ;;  %v13825_v25 = vpop.permute.xlu1 %13824 }
 0x626   : > { %v13971_v48 = vsel %vm2072_vm14, %v23123_v45, %v13825_v25  ;;  %v23144_v25 = vld [vmem:[#allocation161_spill] sm:$0xff] }
 0x627   : > { %15147 = vst [vmem:[%s21369_s26 + $0x2e8] sm:$0xff] %v13971_v48 }
 0x62b   : > { %v13827_v63 = vpop.permute.xlu0 %13826 }
 0x62c   : > { %v13972_v38 = vsel %vm2072_vm14, %v23124_v32, %v13827_v63  ;;  %v23145_v63 = vld [vmem:[#allocation160_spill] sm:$0xff] }
 0x62d   : > { %15148 = vst [vmem:[%s21369_s26 + $0x2f0] sm:$0xff] %v13972_v38  ;;  %v13829_v23 = vpop.permute.xlu1 %13828 }
 0x62e   : > { %v13973_v27 = vsel %vm2072_vm14, %v23125_v56, %v13829_v23  ;;  %v23146_v23 = vld [vmem:[#allocation163_spill] sm:$0xff] }
 0x62f   : > { %15149 = vst [vmem:[%s21369_s26 + $0x2f8] sm:$0xff] %v13973_v27 }
 0x633   : > { %v13831_v22 = vpop.permute.xlu0 %13830 }
 0x634   : > { %v13974_v44 = vsel %vm2072_vm14, %v23126_v50, %v13831_v22  ;;  %v23147_v22 = vld [vmem:[#allocation162_spill] sm:$0xff] }
 0x635   : > { %15150 = vst [vmem:[%s21369_s26 + $0x300] sm:$0xff] %v13974_v44  ;;  %v13833_v37 = vpop.permute.xlu1 %13832 }
 0x636   : > { %v13975_v58 = vsel %vm2072_vm14, %v23127_v33, %v13833_v37  ;;  %v23148_v37 = vld [vmem:[#allocation165_spill] sm:$0xff] }
 0x637   : > { %15151 = vst [vmem:[%s21369_s26 + $0x308] sm:$0xff] %v13975_v58 }
 0x63b   : > { %v13835_v62 = vpop.permute.xlu0 %13834 }
 0x63c   : > { %v13976_v51 = vsel %vm2072_vm14, %v23128_v13, %v13835_v62  ;;  %v23149_v62 = vld [vmem:[#allocation164_spill] sm:$0xff] }
 0x63d   : > { %15152 = vst [vmem:[%s21369_s26 + $0x310] sm:$0xff] %v13976_v51  ;;  %v13837_v16 = vpop.permute.xlu1 %13836 }
 0x63e   : > { %v13977_v57 = vsel %vm2072_vm14, %v23129_v31, %v13837_v16 }
 0x63f   : > { %15153 = vst [vmem:[%s21369_s26 + $0x318] sm:$0xff] %v13977_v57 }
 0x643   : > { %v13839_v12 = vpop.permute.xlu0 %13838 }
 0x644   : > { %v13978_v14 = vsel %vm2072_vm14, %v23130_v5, %v13839_v12 }
 0x645   : > { %15154 = vst [vmem:[%s21369_s26 + $0x320] sm:$0xff] %v13978_v14  ;;  %v13841_v17 = vpop.permute.xlu1 %13840 }
 0x646   : > { %v13979_v18 = vsel %vm2072_vm14, %v23131_v59, %v13841_v17 }
 0x647   : > { %15155 = vst [vmem:[%s21369_s26 + $0x328] sm:$0xff] %v13979_v18 }
 0x64b   : > { %v13843_v40 = vpop.permute.xlu0 %13842 }
 0x64c   : > { %v13980_v4 = vsel %vm2072_vm14, %v23132_v43, %v13843_v40 }
 0x64d   : > { %15156 = vst [vmem:[%s21369_s26 + $0x330] sm:$0xff] %v13980_v4  ;;  %v13845_v47 = vpop.permute.xlu1 %13844 }
 0x64e   : > { %v13981_v39 = vsel %vm2072_vm14, %v23133_v10, %v13845_v47 }
 0x64f   : > { %15157 = vst [vmem:[%s21369_s26 + $0x338] sm:$0xff] %v13981_v39 }
 0x653   : > { %v13847_v2 = vpop.permute.xlu0 %13846 }
 0x654   : > { %v13982_v36 = vsel %vm2072_vm14, %v23134_v54, %v13847_v2 }
 0x655   : > { %15158 = vst [vmem:[%s21369_s26 + $0x340] sm:$0xff] %v13982_v36  ;;  %v13849_v3 = vpop.permute.xlu1 %13848 }
 0x656   : > { %v13983_v28 = vsel %vm2072_vm14, %v23135_v61, %v13849_v3 }
 0x657   : > { %15159 = vst [vmem:[%s21369_s26 + $0x348] sm:$0xff] %v13983_v28 }
 0x65b   : > { %v13851_v26 = vpop.permute.xlu0 %13850 }
 0x65c   : > { %v13984_v9 = vsel %vm2072_vm14, %v23136_v34, %v13851_v26 }
 0x65d   : > { %15160 = vst [vmem:[%s21369_s26 + $0x350] sm:$0xff] %v13984_v9  ;;  %v13853_v7 = vpop.permute.xlu1 %13852 }
 0x65e   : > { %v13985_v19 = vsel %vm2072_vm14, %v23137_v15, %v13853_v7 }
 0x65f   : > { %15161 = vst [vmem:[%s21369_s26 + $0x358] sm:$0xff] %v13985_v19 }
 0x663   : > { %v13855_v46 = vpop.permute.xlu0 %13854 }
 0x664   : > { %v13986_v35 = vsel %vm2072_vm14, %v23138_v11, %v13855_v46 }
 0x665   : > { %15162 = vst [vmem:[%s21369_s26 + $0x360] sm:$0xff] %v13986_v35  ;;  %v13857_v55 = vpop.permute.xlu1 %13856 }
 0x666   : > { %v13987_v24 = vsel %vm2072_vm14, %v23139_v0, %v13857_v55 }
 0x667   : > { %15163 = vst [vmem:[%s21369_s26 + $0x368] sm:$0xff] %v13987_v24 }
 0x66b   : > { %v13859_v29 = vpop.permute.xlu0 %13858 }
 0x66c   : > { %v13988_v30 = vsel %vm2072_vm14, %v23140_v21, %v13859_v29 }
 0x66d   : > { %15164 = vst [vmem:[%s21369_s26 + $0x370] sm:$0xff] %v13988_v30  ;;  %v13861_v52 = vpop.permute.xlu1 %13860 }
 0x66e   : > { %v13989_v53 = vsel %vm2072_vm14, %v23141_v20, %v13861_v52 }
 0x66f   : > { %15165 = vst [vmem:[%s21369_s26 + $0x378] sm:$0xff] %v13989_v53 }
 0x673   : > { %v13863_v42 = vpop.permute.xlu0 %13862 }
 0x674   : > { %v13990_v6 = vsel %vm2072_vm14, %v23142_v41, %v13863_v42 }
 0x675   : > { %15166 = vst [vmem:[%s21369_s26 + $0x380] sm:$0xff] %v13990_v6  ;;  %v13865_v8 = vpop.permute.xlu1 %13864 }
 0x676   : > { %v13991_v60 = vsel %vm2072_vm14, %v23143_v1, %v13865_v8 }
 0x677   : > { %15167 = vst [vmem:[%s21369_s26 + $0x388] sm:$0xff] %v13991_v60 }
 0x67b   : > { %v13867_v49 = vpop.permute.xlu0 %13866 }
 0x67c   : > { %v13992_v45 = vsel %vm2072_vm14, %v23144_v25, %v13867_v49 }
 0x67d   : > { %15168 = vst [vmem:[%s21369_s26 + $0x390] sm:$0xff] %v13992_v45  ;;  %v13869_v48 = vpop.permute.xlu1 %13868 }
 0x67e   : > { %v13993_v32 = vsel %vm2072_vm14, %v23145_v63, %v13869_v48 }
 0x67f   : > { %15169 = vst [vmem:[%s21369_s26 + $0x398] sm:$0xff] %v13993_v32 }
 0x683   : > { %v13871_v38 = vpop.permute.xlu0 %13870 }
 0x684   : > { %v13994_v56 = vsel %vm2072_vm14, %v23146_v23, %v13871_v38 }
 0x685   : > { %15170 = vst [vmem:[%s21369_s26 + $0x3a0] sm:$0xff] %v13994_v56  ;;  %v13873_v27 = vpop.permute.xlu1 %13872 }
 0x686   : > { %v13995_v50 = vsel %vm2072_vm14, %v23147_v22, %v13873_v27 }
 0x687   : > { %15171 = vst [vmem:[%s21369_s26 + $0x3a8] sm:$0xff] %v13995_v50 }
 0x68b   : > { %v13875_v44 = vpop.permute.xlu0 %13874 }
 0x68c   : > { %v13996_v33 = vsel %vm2072_vm14, %v23148_v37, %v13875_v44 }
 0x68d   : > { %15172 = vst [vmem:[%s21369_s26 + $0x3b0] sm:$0xff] %v13996_v33  ;;  %v13877_v58 = vpop.permute.xlu1 %13876 }
 0x68e   : > { %v13997_v13 = vsel %vm2072_vm14, %v23149_v62, %v13877_v58 }
 0x68f   : > { %15173 = vst [vmem:[%s21369_s26 + $0x3b8] sm:$0xff] %v13997_v13 }
 0x690 PF: > { %s15_s18 = sadd.s32 1, %s16822_s18  }
 0x691   : > { %p12_p4 = scmp.ge.s32.totalorder %s15_s18, 4  }
 0x693   :  { %14 = sbr.rel (!%p12_p4) target bundleno = 1 (0x1), region = 72 }

</bundles_post_ra>
